<compile_context>
chip_gen: v6e
topology: v6e:2x2x1
jax: 0.10.0
libtpu: 0.0.40
codegen_flags: <defaults>
</compile_context>

<pallas_src>
import functools

import jax
import jax.numpy as jnp
from jax.experimental import pallas as pl
from jax.experimental.pallas import tpu as pltpu

F32 = jnp.float32
BF16 = jnp.bfloat16

_VMEM_LIMIT = 32 * 1024 * 1024  # fits v5e/v6e/v7x scoped-VMEM budgets


def _round_up(x, m):
    return ((x + m - 1) // m) * m


# --------------------------- tiled matmul + bias ----------------------------

def _matmul_bias_kernel(x_ref, w_ref, b_ref, o_ref, acc_ref):
    @pl.when(pl.program_id(2) == 0)
    def _init():
        acc_ref[...] = jnp.zeros_like(acc_ref)

    acc_ref[...] += jnp.dot(x_ref[...], w_ref[...],
                            preferred_element_type=jnp.float32)

    @pl.when(pl.program_id(2) == pl.num_programs(2) - 1)
    def _finalize():
        o_ref[...] = (acc_ref[...] + b_ref[...]).astype(o_ref.dtype)


def matmul_bias(x, w, b, *, tm=256, tn=256, tk=512):
    """x: (M, K), w: (K, N), b: (N,) -> (M, N) f32.  bf16 MXU, f32 accumulate."""
    M, K = x.shape
    _, N = w.shape
    tm = min(tm, _round_up(M, 8))
    tn = min(tn, _round_up(N, 128))
    tk = min(tk, _round_up(K, 128))
    Mp, Kp, Np = _round_up(M, tm), _round_up(K, tk), _round_up(N, tn)
    xp = jnp.pad(x, ((0, Mp - M), (0, Kp - K))).astype(BF16)
    wp = jnp.pad(w, ((0, Kp - K), (0, Np - N))).astype(BF16)
    bp = jnp.pad(b.reshape(1, N).astype(F32), ((0, 0), (0, Np - N)))
    grid = (Mp // tm, Np // tn, Kp // tk)
    out = pl.pallas_call(
        _matmul_bias_kernel,
        out_shape=jax.ShapeDtypeStruct((Mp, Np), F32),
        grid_spec=pltpu.PrefetchScalarGridSpec(
            num_scalar_prefetch=0,
            grid=grid,
            in_specs=[
                pl.BlockSpec((tm, tk), lambda i, j, k: (i, k)),
                pl.BlockSpec((tk, tn), lambda i, j, k: (k, j)),
                pl.BlockSpec((1, tn), lambda i, j, k: (0, j)),
            ],
            out_specs=pl.BlockSpec((tm, tn), lambda i, j, k: (i, j)),
            scratch_shapes=[pltpu.VMEM((tm, tn), jnp.float32)],
        ),
        compiler_params=pltpu.CompilerParams(
            dimension_semantics=("parallel", "parallel", "arbitrary"),
            vmem_limit_bytes=_VMEM_LIMIT),
        cost_estimate=pl.CostEstimate(
            flops=2 * Mp * Np * Kp,
            transcendentals=0,
            bytes_accessed=(Mp * Kp + Kp * Np) * 2 + Mp * Np * 4),
    )(xp, wp, bp)
    return out[:M, :N]


# --------------------------- GroupNorm (+ SiLU) -----------------------------

def _gn_silu_kernel(x_ref, g_ref, b_ref, p_ref, o_ref, *, eps, silu):
    # x block: (HW, C) f32; p: (C, C) group-averaging matrix (1/(HW*Cg) within
    # a group, 0 elsewhere) -> per-channel mean/var broadcast via a tiny matmul.
    x = x_ref[0]
    mean_c = jnp.dot(jnp.sum(x, axis=0, keepdims=True), p_ref[...],
                     preferred_element_type=jnp.float32)          # (1, C)
    xc = x - mean_c
    var_c = jnp.dot(jnp.sum(xc * xc, axis=0, keepdims=True), p_ref[...],
                    preferred_element_type=jnp.float32)           # (1, C)
    y = xc * jax.lax.rsqrt(var_c + eps) * g_ref[...] + b_ref[...]
    if silu:
        y = y * jax.nn.sigmoid(y)
    o_ref[0] = y.astype(o_ref.dtype)


def group_norm_silu(x, gamma, beta, *, num_groups=32, eps=1e-5, silu=True,
                    out_dtype=BF16):
    """x: (B, H*W, C) channels-last.  Biased per-(batch, group) stats in f32."""
    B, HW, C = x.shape
    cg = C // num_groups
    grp = jnp.arange(C, dtype=jnp.int32) // cg
    pmat = (grp[:, None] == grp[None, :]).astype(F32) / float(HW * cg)  # (C, C)
    # TODO(synk): for SD-sized H*W, row-tile the (HW, C) block with a two-pass
    # (stats, normalize) grid; at these sizes one batch element fits VMEM.
    kernel = functools.partial(_gn_silu_kernel, eps=eps, silu=silu)
    return pl.pallas_call(
        kernel,
        out_shape=jax.ShapeDtypeStruct((B, HW, C), out_dtype),
        grid_spec=pltpu.PrefetchScalarGridSpec(
            num_scalar_prefetch=0,
            grid=(B,),
            in_specs=[
                pl.BlockSpec((1, HW, C), lambda b: (b, 0, 0)),
                pl.BlockSpec((1, C), lambda b: (0, 0)),
                pl.BlockSpec((1, C), lambda b: (0, 0)),
                pl.BlockSpec((C, C), lambda b: (0, 0)),
            ],
            out_specs=pl.BlockSpec((1, HW, C), lambda b: (b, 0, 0)),
        ),
        compiler_params=pltpu.CompilerParams(
            dimension_semantics=("parallel",),
            vmem_limit_bytes=_VMEM_LIMIT),
    )(x.astype(F32), gamma.reshape(1, C).astype(F32),
      beta.reshape(1, C).astype(F32), pmat)


# ----------------------- 3x3 conv (in-kernel 9 taps) ------------------------

def _conv3x3_kernel(x_ref, w_ref, b_ref, *rest, n, wp, has_emb, has_res):
    idx = 0
    emb_ref = None
    res_ref = None
    if has_emb:
        emb_ref = rest[idx]; idx += 1
    if has_res:
        res_ref = rest[idx]; idx += 1
    o_ref = rest[idx]
    cout = o_ref.shape[-1]

    # Fused epilogue terms (bias, time-embedding row, residual) seed the f32
    # accumulator, which lives directly in the output VMEM block.
    acc0 = jnp.zeros((n, cout), jnp.float32) + b_ref[...]
    if has_emb:
        acc0 = acc0 + emb_ref[0]
    if has_res:
        acc0 = acc0 + res_ref[0]
    o_ref[0] = acc0

    # 9-tap accumulation: each tap is a contiguous row-shifted slice of the
    # padded, row-flattened image times a (Cin, Cout) weight slab on the MXU.
    for ky in range(3):
        for kx in range(3):
            d = ky * wp + kx
            o_ref[0] += jnp.dot(x_ref[0, d:d + n, :], w_ref[ky * 3 + kx],
                                preferred_element_type=jnp.float32)


def conv2d_3x3(x_padflat, w9, b, *, H, W, Wp, emb=None, residual=None):
    """3x3 / stride 1 / pad 1 conv, channels-last.

    x_padflat: (B, Hp*Wp, Cin) bf16  zero-padded image, rows flattened.
    w9:        (9, Cin, Cout)  bf16  tap-major weights.
    b:         (Cout,)         f32.
    emb:       optional (B, Cout) f32, broadcast-added to every position.
    residual:  optional (B, H*Wp, Cout) f32 (padded-flat), added to the output.
    returns    (B, H*Wp, Cout) f32 in padded-flat form (columns >= W are junk).
    """
    B = x_padflat.shape[0]
    Cin = x_padflat.shape[-1]
    Cout = w9.shape[-1]
    n = H * Wp

    in_specs = [
        pl.BlockSpec((1, x_padflat.shape[1], Cin), lambda b_: (b_, 0, 0)),
        pl.BlockSpec((9, Cin, Cout), lambda b_: (0, 0, 0)),
        pl.BlockSpec((1, Cout), lambda b_: (0, 0)),
    ]
    args = [x_padflat.astype(BF16), w9.astype(BF16),
            b.reshape(1, Cout).astype(F32)]
    if emb is not None:
        in_specs.append(pl.BlockSpec((1, 1, Cout), lambda b_: (b_, 0, 0)))
        args.append(emb.reshape(B, 1, Cout).astype(F32))
    if residual is not None:
        in_specs.append(pl.BlockSpec((1, n, Cout), lambda b_: (b_, 0, 0)))
        args.append(residual.astype(F32))

    # TODO(synk): at SD-sized H*W also tile the grid over row blocks / Cout
    # tiles; one image per grid step comfortably fits VMEM at these sizes.
    kernel = functools.partial(_conv3x3_kernel, n=n, wp=Wp,
                               has_emb=emb is not None,
                               has_res=residual is not None)
    return pl.pallas_call(
        kernel,
        out_shape=jax.ShapeDtypeStruct((B, n, Cout), F32),
        grid_spec=pltpu.PrefetchScalarGridSpec(
            num_scalar_prefetch=0,
            grid=(B,),
            in_specs=in_specs,
            out_specs=pl.BlockSpec((1, n, Cout), lambda b_: (b_, 0, 0)),
        ),
        compiler_params=pltpu.CompilerParams(
            dimension_semantics=("parallel",),
            vmem_limit_bytes=_VMEM_LIMIT),
        cost_estimate=pl.CostEstimate(
            flops=2 * B * n * 9 * Cin * Cout,
            transcendentals=0,
            bytes_accessed=(x_padflat.size + w9.size) * 2 + B * n * Cout * 4),
    )(*args)


# ------------------------------ layout helpers ------------------------------

def _pad_image(h_flat, H, W, Hp, Wp, dtype=BF16):
    """(B, H*W, C) valid rows -> (B, Hp*Wp, C) zero-padded, row-flattened."""
    B, _, C = h_flat.shape
    img = h_flat.reshape(B, H, W, C)
    img = jnp.pad(img, ((0, 0), (1, Hp - H - 1), (1, Wp - W - 1), (0, 0)))
    return img.reshape(B, Hp * Wp, C).astype(dtype)


def _extract_valid(h_padflat, H, W, Wp):
    """(B, H*Wp, C) padded-flat conv output -> (B, H*W, C) valid rows."""
    B, _, C = h_padflat.shape
    return h_padflat.reshape(B, H, Wp, C)[:, :, :W, :].reshape(B, H * W, C)


def _widen_to_padflat(h_flat, H, W, Wp):
    """(B, H*W, C) -> (B, H*Wp, C): zero-pad each row's width to Wp."""
    B, _, C = h_flat.shape
    img = h_flat.reshape(B, H, W, C)
    img = jnp.pad(img, ((0, 0), (0, 0), (0, Wp - W), (0, 0)))
    return img.reshape(B, H * Wp, C)


# -------------------------------- ResBlock ----------------------------------

def res_block(p, x_nchw, t_emb):
    """ResBlock forward.  x_nchw: (B, Cin, H, W) f32, t_emb: (B, E) f32."""
    B, Cin, H, W = x_nchw.shape
    Cout = p["conv1_b"].shape[0]
    Wp = _round_up(W + 2, 8)     # lane/sublane-friendly padded width
    Hp = H + 3                   # 1 top pad + 2 bottom pads (tap-slice slack)

    x = jnp.transpose(x_nchw, (0, 2, 3, 1)).reshape(B, H * W, Cin)  # NHWC rows

    # ---- h = conv1(silu(norm1(x))) + fc_embed(t)[..., None, None] ----------
    h = group_norm_silu(x, p["norm1_g"], p["norm1_b"], silu=True)
    emb = matmul_bias(t_emb, p["fc_w"], p["fc_b"])                  # (B, Cout)
    h = conv2d_3x3(_pad_image(h, H, W, Hp, Wp), p["conv1_w"], p["conv1_b"],
                   H=H, W=W, Wp=Wp, emb=emb)                        # padded-flat

    # ---- shortcut(x), fused into conv2's epilogue ---------------------------
    if "short_w" in p:
        res = matmul_bias(x.reshape(B * H * W, Cin), p["short_w"],
                          p["short_b"]).reshape(B, H * W, Cout)
    else:
        res = x.astype(F32)                                         # identity
    res = _widen_to_padflat(res, H, W, Wp)

    # ---- h = conv2(silu(norm2(h))) + shortcut(x) ----------------------------
    h = _extract_valid(h, H, W, Wp)
    h = group_norm_silu(h, p["norm2_g"], p["norm2_b"], silu=True)
    h = conv2d_3x3(_pad_image(h, H, W, Hp, Wp), p["conv2_w"], p["conv2_b"],
                   H=H, W=W, Wp=Wp, residual=res)

    out = _extract_valid(h, H, W, Wp)                               # (B, HW, Cout)
    return out.reshape(B, H, W, Cout).transpose(0, 3, 1, 2)         # back to NCHW


# ------------------------------ param init ----------------------------------

def init_params(key, in_channels, embed_channels, out_channels):
    ks = iter(jax.random.split(key, 8))

    def w(shape, scale=0.05):
        return scale * jax.random.normal(next(ks), shape, dtype=F32)

    p = dict(
        norm1_g=jnp.ones((in_channels,), F32),
        norm1_b=jnp.zeros((in_channels,), F32),
        # conv weights stored kernel-ready: tap-major (9, Cin, Cout), bf16
        conv1_w=w((3, 3, in_channels, out_channels))
        .reshape(9, in_channels, out_channels).astype(BF16),
        conv1_b=w((out_channels,)),
        # fc_embed stored pre-transposed: (E, Cout)
        fc_w=w((embed_channels, out_channels)).astype(BF16),
        fc_b=w((out_channels,)),
        norm2_g=jnp.ones((out_channels,), F32),
        norm2_b=jnp.zeros((out_channels,), F32),
        conv2_w=w((3, 3, out_channels, out_channels))
        .reshape(9, out_channels, out_channels).astype(BF16),
        conv2_b=w((out_channels,)),
    )
    if in_channels != out_channels:
        p["short_w"] = w((in_channels, out_channels)).astype(BF16)   # 1x1 conv
        p["short_b"] = w((out_channels,))
    return p


# ---------------------------------- main -------------------------------------

if __name__ == "__main__":
    key = jax.random.PRNGKey(0)
    kp, kx, kt = jax.random.split(key, 3)

    B, H, W = 2, 16, 16
    in_channels, out_channels, embed_channels = 96, 128, 320   # 32-divisible

    params = init_params(kp, in_channels, embed_channels, out_channels)
    x = jax.random.normal(kx, (B, in_channels, H, W), dtype=F32)
    t_emb = jax.random.normal(kt, (B, embed_channels), dtype=F32)

    out = jax.jit(res_block)(params, x, t_emb)
    out = jax.block_until_ready(out)
    assert out.shape == (B, out_channels, H, W), out.shape
    assert bool(jnp.all(jnp.isfinite(out)))
    print("KERNEL_OK")
</pallas_src>

<mosaic_0001>
module attributes {stable_mosaic.version = 11 : i64} {
  func.func @_gn_silu_kernel(%arg0: i32, %arg1: memref<1x256x96xf32, #tpu.memory_space<vmem>>, %arg2: memref<1x96xf32, #tpu.memory_space<vmem>>, %arg3: memref<1x96xf32, #tpu.memory_space<vmem>>, %arg4: memref<96x96xf32, #tpu.memory_space<vmem>>, %arg5: memref<1x256x96xbf16, #tpu.memory_space<vmem>>) attributes {dimension_semantics = [#tpu.dimension_semantics<parallel>], iteration_bounds = array<i64: 2>, scalar_prefetch = 0 : i64, scratch_operands = 0 : i64, tpu.core_type = #tpu.core_type<tc>, window_params = [{transform_indices = @transform_0, window_bounds = array<i64: 1, 256, 96>}, {pipeline_mode = #tpu.pipeline_mode<synchronous>, transform_indices = @transform_1, window_bounds = array<i64: 1, 96>}, {pipeline_mode = #tpu.pipeline_mode<synchronous>, transform_indices = @transform_2, window_bounds = array<i64: 1, 96>}, {pipeline_mode = #tpu.pipeline_mode<synchronous>, transform_indices = @transform_3, window_bounds = array<i64: 96, 96>}, {transform_indices = @transform_4, window_bounds = array<i64: 1, 256, 96>}]} {
    %c0 = arith.constant 0 : index
    %c0_0 = arith.constant 0 : index
    %c0_1 = arith.constant 0 : index
    %0 = vector.load %arg1[%c0, %c0_0, %c0_1] : memref<1x256x96xf32, #tpu.memory_space<vmem>>, vector<1x256x96xf32>
    %1 = vector.shape_cast %0 : vector<1x256x96xf32> to vector<256x96xf32>
    %cst = arith.constant dense<0.000000e+00> : vector<96xf32>
    %2 = vector.multi_reduction <add>, %1, %cst [0] : vector<256x96xf32> to vector<96xf32>
    %3 = vector.shape_cast %2 : vector<96xf32> to vector<1x96xf32>
    %c0_2 = arith.constant 0 : index
    %c0_3 = arith.constant 0 : index
    %4 = vector.load %arg4[%c0_2, %c0_3] : memref<96x96xf32, #tpu.memory_space<vmem>>, vector<96x96xf32>
    %cst_4 = arith.constant dense<0.000000e+00> : vector<1x96xf32>
    %5 = tpu.matmul %3, %4, %cst_4 {dimension_numbers = #tpu.dot_dimension_numbers<[1], [0], [0], [1], [0, 0, 1, 1], [], []>} : vector<1x96xf32>, vector<96x96xf32>, vector<1x96xf32> -> vector<1x96xf32>
    %6 = vector.broadcast %5 : vector<1x96xf32> to vector<256x96xf32>
    %7 = arith.subf %1, %6 : vector<256x96xf32>
    %8 = arith.mulf %7, %7 : vector<256x96xf32>
    %cst_5 = arith.constant dense<0.000000e+00> : vector<96xf32>
    %9 = vector.multi_reduction <add>, %8, %cst_5 [0] : vector<256x96xf32> to vector<96xf32>
    %10 = vector.shape_cast %9 : vector<96xf32> to vector<1x96xf32>
    %c0_6 = arith.constant 0 : index
    %c0_7 = arith.constant 0 : index
    %11 = vector.load %arg4[%c0_6, %c0_7] : memref<96x96xf32, #tpu.memory_space<vmem>>, vector<96x96xf32>
    %cst_8 = arith.constant dense<0.000000e+00> : vector<1x96xf32>
    %12 = tpu.matmul %10, %11, %cst_8 {dimension_numbers = #tpu.dot_dimension_numbers<[1], [0], [0], [1], [0, 0, 1, 1], [], []>} : vector<1x96xf32>, vector<96x96xf32>, vector<1x96xf32> -> vector<1x96xf32>
    %cst_9 = arith.constant 9.99999974E-6 : f32
    %13 = vector.broadcast %cst_9 : f32 to vector<1x96xf32>
    %14 = arith.addf %12, %13 : vector<1x96xf32>
    %15 = math.rsqrt %14 : vector<1x96xf32>
    %16 = vector.broadcast %15 : vector<1x96xf32> to vector<256x96xf32>
    %17 = arith.mulf %7, %16 : vector<256x96xf32>
    %c0_10 = arith.constant 0 : index
    %c0_11 = arith.constant 0 : index
    %18 = vector.load %arg2[%c0_10, %c0_11] : memref<1x96xf32, #tpu.memory_space<vmem>>, vector<1x96xf32>
    %19 = vector.broadcast %18 : vector<1x96xf32> to vector<256x96xf32>
    %20 = arith.mulf %17, %19 : vector<256x96xf32>
    %c0_12 = arith.constant 0 : index
    %c0_13 = arith.constant 0 : index
    %21 = vector.load %arg3[%c0_12, %c0_13] : memref<1x96xf32, #tpu.memory_space<vmem>>, vector<1x96xf32>
    %22 = vector.broadcast %21 : vector<1x96xf32> to vector<256x96xf32>
    %23 = arith.addf %20, %22 : vector<256x96xf32>
    %24 = arith.negf %23 : vector<256x96xf32>
    %25 = math.exp %24 : vector<256x96xf32>
    %cst_14 = arith.constant 1.000000e+00 : f32
    %26 = vector.broadcast %cst_14 : f32 to vector<256x96xf32>
    %27 = arith.addf %26, %25 : vector<256x96xf32>
    %28 = arith.divf %26, %27 : vector<256x96xf32>
    %29 = arith.mulf %23, %28 : vector<256x96xf32>
    %30 = arith.truncf %29 : vector<256x96xf32> to vector<256x96xbf16>
    %c0_15 = arith.constant 0 : index
    %c0_16 = arith.constant 0 : index
    %c0_17 = arith.constant 0 : index
    %31 = vector.load %arg5[%c0_15, %c0_16, %c0_17] : memref<1x256x96xbf16, #tpu.memory_space<vmem>>, vector<1x256x96xbf16>
    %32 = vector.shape_cast %31 : vector<1x256x96xbf16> to vector<256x96xbf16>
    %33 = vector.shape_cast %30 : vector<256x96xbf16> to vector<1x256x96xbf16>
    tpu.vector_store %arg5[%c0_15, %c0_16, %c0_17], %33 {strides = array<i32>} : memref<1x256x96xbf16, #tpu.memory_space<vmem>>, vector<1x256x96xbf16>,
    return
  }
  func.func @transform_0(%arg0: i32) -> (i32, i32, i32) {
    %c0_i32 = arith.constant 0 : i32
    %c0_i32_0 = arith.constant 0 : i32
    %c0_i32_1 = arith.constant 0 : i32
    return %arg0, %c0_i32, %c0_i32_0 : i32, i32, i32
  }
  func.func @transform_1(%arg0: i32) -> (i32, i32) {
    %c0_i32 = arith.constant 0 : i32
    %c0_i32_0 = arith.constant 0 : i32
    %c0_i32_1 = arith.constant 0 : i32
    return %c0_i32, %c0_i32_0 : i32, i32
  }
  func.func @transform_2(%arg0: i32) -> (i32, i32) {
    %c0_i32 = arith.constant 0 : i32
    %c0_i32_0 = arith.constant 0 : i32
    %c0_i32_1 = arith.constant 0 : i32
    return %c0_i32, %c0_i32_0 : i32, i32
  }
  func.func @transform_3(%arg0: i32) -> (i32, i32) {
    %c0_i32 = arith.constant 0 : i32
    %c0_i32_0 = arith.constant 0 : i32
    %c0_i32_1 = arith.constant 0 : i32
    return %c0_i32, %c0_i32_0 : i32, i32
  }
  func.func @transform_4(%arg0: i32) -> (i32, i32, i32) {
    %c0_i32 = arith.constant 0 : i32
    %c0_i32_0 = arith.constant 0 : i32
    %c0_i32_1 = arith.constant 0 : i32
    return %arg0, %c0_i32, %c0_i32_0 : i32, i32, i32
  }
}

module attributes {stable_mosaic.version = 11 : i64} {
  func.func @_matmul_bias_kernel(%arg0: i32, %arg1: i32, %arg2: i32, %arg3: memref<8x384xbf16, #tpu.memory_space<vmem>>, %arg4: memref<384x128xbf16, #tpu.memory_space<vmem>>, %arg5: memref<1x128xf32, #tpu.memory_space<vmem>>, %arg6: memref<8x128xf32, #tpu.memory_space<vmem>>, %arg7: memref<8x128xf32, #tpu.memory_space<vmem>>) attributes {dimension_semantics = [#tpu.dimension_semantics<parallel>, #tpu.dimension_semantics<parallel>, #tpu.dimension_semantics<arbitrary>], iteration_bounds = array<i64: 1, 1, 1>, scalar_prefetch = 0 : i64, scratch_operands = 1 : i64, tpu.core_type = #tpu.core_type<tc>, window_params = [{transform_indices = @transform_0, window_bounds = array<i64: 8, 384>}, {transform_indices = @transform_1, window_bounds = array<i64: 384, 128>}, {transform_indices = @transform_2, window_bounds = array<i64: 1, 128>}, {transform_indices = @transform_3, window_bounds = array<i64: 8, 128>}]} {
    %c0_i32 = arith.constant 0 : i32
    %0 = arith.cmpi eq, %arg2, %c0_i32 : i32
    %1 = arith.extui %0 : i1 to i32
    %c0_i32_0 = arith.constant 0 : i32
    %2 = arith.cmpi ne, %1, %c0_i32_0 : i32
    scf.if %2 {
      %cst_10 = arith.constant 0.000000e+00 : f32
      %12 = vector.broadcast %cst_10 : f32 to vector<8x128xf32>
      %c0_11 = arith.constant 0 : index
      %c0_12 = arith.constant 0 : index
      %13 = vector.load %arg7[%c0_11, %c0_12] : memref<8x128xf32, #tpu.memory_space<vmem>>, vector<8x128xf32>
      tpu.vector_store %arg7[%c0_11, %c0_12], %12 {strides = array<i32>} : memref<8x128xf32, #tpu.memory_space<vmem>>, vector<8x128xf32>,
    } else {
    }
    %c0 = arith.constant 0 : index
    %c0_1 = arith.constant 0 : index
    %3 = vector.load %arg7[%c0, %c0_1] : memref<8x128xf32, #tpu.memory_space<vmem>>, vector<8x128xf32>
    %c0_2 = arith.constant 0 : index
    %c0_3 = arith.constant 0 : index
    %4 = vector.load %arg3[%c0_2, %c0_3] : memref<8x384xbf16, #tpu.memory_space<vmem>>, vector<8x384xbf16>
    %c0_4 = arith.constant 0 : index
    %c0_5 = arith.constant 0 : index
    %5 = vector.load %arg4[%c0_4, %c0_5] : memref<384x128xbf16, #tpu.memory_space<vmem>>, vector<384x128xbf16>
    %cst = arith.constant dense<0.000000e+00> : vector<8x128xf32>
    %6 = tpu.matmul %4, %5, %cst {dimension_numbers = #tpu.dot_dimension_numbers<[1], [0], [0], [1], [0, 0, 1, 1], [], []>} : vector<8x384xbf16>, vector<384x128xbf16>, vector<8x128xf32> -> vector<8x128xf32>
    %7 = arith.addf %3, %6 : vector<8x128xf32>
    %c0_6 = arith.constant 0 : index
    %c0_7 = arith.constant 0 : index
    %8 = vector.load %arg7[%c0_6, %c0_7] : memref<8x128xf32, #tpu.memory_space<vmem>>, vector<8x128xf32>
    tpu.vector_store %arg7[%c0_6, %c0_7], %7 {strides = array<i32>} : memref<8x128xf32, #tpu.memory_space<vmem>>, vector<8x128xf32>,
    %c0_i32_8 = arith.constant 0 : i32
    %9 = arith.cmpi eq, %arg2, %c0_i32_8 : i32
    %10 = arith.extui %9 : i1 to i32
    %c0_i32_9 = arith.constant 0 : i32
    %11 = arith.cmpi ne, %10, %c0_i32_9 : i32
    scf.if %11 {
      %c0_10 = arith.constant 0 : index
      %c0_11 = arith.constant 0 : index
      %12 = vector.load %arg7[%c0_10, %c0_11] : memref<8x128xf32, #tpu.memory_space<vmem>>, vector<8x128xf32>
      %c0_12 = arith.constant 0 : index
      %c0_13 = arith.constant 0 : index
      %13 = vector.load %arg5[%c0_12, %c0_13] : memref<1x128xf32, #tpu.memory_space<vmem>>, vector<1x128xf32>
      %14 = vector.broadcast %13 : vector<1x128xf32> to vector<8x128xf32>
      %15 = arith.addf %12, %14 : vector<8x128xf32>
      %c0_14 = arith.constant 0 : index
      %c0_15 = arith.constant 0 : index
      %16 = vector.load %arg6[%c0_14, %c0_15] : memref<8x128xf32, #tpu.memory_space<vmem>>, vector<8x128xf32>
      tpu.vector_store %arg6[%c0_14, %c0_15], %15 {strides = array<i32>} : memref<8x128xf32, #tpu.memory_space<vmem>>, vector<8x128xf32>,
    } else {
    }
    return
  }
  func.func @transform_0(%arg0: i32, %arg1: i32, %arg2: i32) -> (i32, i32) {
    %c0_i32 = arith.constant 0 : i32
    return %arg0, %arg2 : i32, i32
  }
  func.func @transform_1(%arg0: i32, %arg1: i32, %arg2: i32) -> (i32, i32) {
    %c0_i32 = arith.constant 0 : i32
    return %arg2, %arg1 : i32, i32
  }
  func.func @transform_2(%arg0: i32, %arg1: i32, %arg2: i32) -> (i32, i32) {
    %c0_i32 = arith.constant 0 : i32
    %c0_i32_0 = arith.constant 0 : i32
    return %c0_i32, %arg1 : i32, i32
  }
  func.func @transform_3(%arg0: i32, %arg1: i32, %arg2: i32) -> (i32, i32) {
    %c0_i32 = arith.constant 0 : i32
    return %arg0, %arg1 : i32, i32
  }
}

module attributes {stable_mosaic.version = 11 : i64} {
  func.func @_conv3x3_kernel(%arg0: i32, %arg1: memref<1x456x96xbf16, #tpu.memory_space<vmem>>, %arg2: memref<9x96x128xbf16, #tpu.memory_space<vmem>>, %arg3: memref<1x128xf32, #tpu.memory_space<vmem>>, %arg4: memref<1x1x128xf32, #tpu.memory_space<vmem>>, %arg5: memref<1x384x128xf32, #tpu.memory_space<vmem>>) attributes {dimension_semantics = [#tpu.dimension_semantics<parallel>], iteration_bounds = array<i64: 2>, scalar_prefetch = 0 : i64, scratch_operands = 0 : i64, tpu.core_type = #tpu.core_type<tc>, window_params = [{transform_indices = @transform_0, window_bounds = array<i64: 1, 456, 96>}, {pipeline_mode = #tpu.pipeline_mode<synchronous>, transform_indices = @transform_1, window_bounds = array<i64: 9, 96, 128>}, {pipeline_mode = #tpu.pipeline_mode<synchronous>, transform_indices = @transform_2, window_bounds = array<i64: 1, 128>}, {transform_indices = @transform_3, window_bounds = array<i64: 1, 1, 128>}, {transform_indices = @transform_4, window_bounds = array<i64: 1, 384, 128>}]} {
    %cst = arith.constant 0.000000e+00 : f32
    %0 = vector.broadcast %cst : f32 to vector<384x128xf32>
    %c0 = arith.constant 0 : index
    %c0_0 = arith.constant 0 : index
    %1 = vector.load %arg3[%c0, %c0_0] : memref<1x128xf32, #tpu.memory_space<vmem>>, vector<1x128xf32>
    %2 = vector.broadcast %1 : vector<1x128xf32> to vector<384x128xf32>
    %3 = arith.addf %0, %2 : vector<384x128xf32>
    %c0_1 = arith.constant 0 : index
    %c0_2 = arith.constant 0 : index
    %c0_3 = arith.constant 0 : index
    %4 = vector.load %arg4[%c0_1, %c0_2, %c0_3] : memref<1x1x128xf32, #tpu.memory_space<vmem>>, vector<1x1x128xf32>
    %5 = vector.shape_cast %4 : vector<1x1x128xf32> to vector<1x128xf32>
    %6 = vector.broadcast %5 : vector<1x128xf32> to vector<384x128xf32>
    %7 = arith.addf %3, %6 : vector<384x128xf32>
    %c0_4 = arith.constant 0 : index
    %c0_5 = arith.constant 0 : index
    %c0_6 = arith.constant 0 : index
    %8 = vector.load %arg5[%c0_4, %c0_5, %c0_6] : memref<1x384x128xf32, #tpu.memory_space<vmem>>, vector<1x384x128xf32>
    %9 = vector.shape_cast %8 : vector<1x384x128xf32> to vector<384x128xf32>
    %10 = vector.shape_cast %7 : vector<384x128xf32> to vector<1x384x128xf32>
    tpu.vector_store %arg5[%c0_4, %c0_5, %c0_6], %10 {strides = array<i32>} : memref<1x384x128xf32, #tpu.memory_space<vmem>>, vector<1x384x128xf32>,
    %c0_7 = arith.constant 0 : index
    %c0_8 = arith.constant 0 : index
    %c0_9 = arith.constant 0 : index
    %11 = vector.load %arg5[%c0_7, %c0_8, %c0_9] : memref<1x384x128xf32, #tpu.memory_space<vmem>>, vector<1x384x128xf32>
    %12 = vector.shape_cast %11 : vector<1x384x128xf32> to vector<384x128xf32>
    %c0_10 = arith.constant 0 : index
    %c0_11 = arith.constant 0 : index
    %c0_12 = arith.constant 0 : index
    %13 = vector.load %arg1[%c0_10, %c0_11, %c0_12] : memref<1x456x96xbf16, #tpu.memory_space<vmem>>, vector<1x384x96xbf16>
    %14 = vector.shape_cast %13 : vector<1x384x96xbf16> to vector<384x96xbf16>
    %c0_13 = arith.constant 0 : index
    %c0_14 = arith.constant 0 : index
    %c0_15 = arith.constant 0 : index
    %15 = vector.load %arg2[%c0_13, %c0_14, %c0_15] : memref<9x96x128xbf16, #tpu.memory_space<vmem>>, vector<1x96x128xbf16>
    %16 = vector.shape_cast %15 : vector<1x96x128xbf16> to vector<96x128xbf16>
    %cst_16 = arith.constant dense<0.000000e+00> : vector<384x128xf32>
    %17 = tpu.matmul %14, %16, %cst_16 {dimension_numbers = #tpu.dot_dimension_numbers<[1], [0], [0], [1], [0, 0, 1, 1], [], []>} : vector<384x96xbf16>, vector<96x128xbf16>, vector<384x128xf32> -> vector<384x128xf32>
    %18 = arith.addf %12, %17 : vector<384x128xf32>
    %c0_17 = arith.constant 0 : index
    %c0_18 = arith.constant 0 : index
    %c0_19 = arith.constant 0 : index
    %19 = vector.load %arg5[%c0_17, %c0_18, %c0_19] : memref<1x384x128xf32, #tpu.memory_space<vmem>>, vector<1x384x128xf32>
    %20 = vector.shape_cast %19 : vector<1x384x128xf32> to vector<384x128xf32>
    %21 = vector.shape_cast %18 : vector<384x128xf32> to vector<1x384x128xf32>
    tpu.vector_store %arg5[%c0_17, %c0_18, %c0_19], %21 {strides = array<i32>} : memref<1x384x128xf32, #tpu.memory_space<vmem>>, vector<1x384x128xf32>,
    %c0_20 = arith.constant 0 : index
    %c0_21 = arith.constant 0 : index
    %c0_22 = arith.constant 0 : index
    %22 = vector.load %arg5[%c0_20, %c0_21, %c0_22] : memref<1x384x128xf32, #tpu.memory_space<vmem>>, vector<1x384x128xf32>
    %23 = vector.shape_cast %22 : vector<1x384x128xf32> to vector<384x128xf32>
    %c0_23 = arith.constant 0 : index
    %c1 = arith.constant 1 : index
    %c0_24 = arith.constant 0 : index
    %24 = vector.load %arg1[%c0_23, %c1, %c0_24] : memref<1x456x96xbf16, #tpu.memory_space<vmem>>, vector<1x384x96xbf16>
    %25 = vector.shape_cast %24 : vector<1x384x96xbf16> to vector<384x96xbf16>
    %c1_25 = arith.constant 1 : index
    %c0_26 = arith.constant 0 : index
    %c0_27 = arith.constant 0 : index
    %26 = vector.load %arg2[%c1_25, %c0_26, %c0_27] : memref<9x96x128xbf16, #tpu.memory_space<vmem>>, vector<1x96x128xbf16>
    %27 = vector.shape_cast %26 : vector<1x96x128xbf16> to vector<96x128xbf16>
    %cst_28 = arith.constant dense<0.000000e+00> : vector<384x128xf32>
    %28 = tpu.matmul %25, %27, %cst_28 {dimension_numbers = #tpu.dot_dimension_numbers<[1], [0], [0], [1], [0, 0, 1, 1], [], []>} : vector<384x96xbf16>, vector<96x128xbf16>, vector<384x128xf32> -> vector<384x128xf32>
    %29 = arith.addf %23, %28 : vector<384x128xf32>
    %c0_29 = arith.constant 0 : index
    %c0_30 = arith.constant 0 : index
    %c0_31 = arith.constant 0 : index
    %30 = vector.load %arg5[%c0_29, %c0_30, %c0_31] : memref<1x384x128xf32, #tpu.memory_space<vmem>>, vector<1x384x128xf32>
    %31 = vector.shape_cast %30 : vector<1x384x128xf32> to vector<384x128xf32>
    %32 = vector.shape_cast %29 : vector<384x128xf32> to vector<1x384x128xf32>
    tpu.vector_store %arg5[%c0_29, %c0_30, %c0_31], %32 {strides = array<i32>} : memref<1x384x128xf32, #tpu.memory_space<vmem>>, vector<1x384x128xf32>,
    %c0_32 = arith.constant 0 : index
    %c0_33 = arith.constant 0 : index
    %c0_34 = arith.constant 0 : index
    %33 = vector.load %arg5[%c0_32, %c0_33, %c0_34] : memref<1x384x128xf32, #tpu.memory_space<vmem>>, vector<1x384x128xf32>
    %34 = vector.shape_cast %33 : vector<1x384x128xf32> to vector<384x128xf32>
    %c0_35 = arith.constant 0 : index
    %c2 = arith.constant 2 : index
    %c0_36 = arith.constant 0 : index
    %35 = vector.load %arg1[%c0_35, %c2, %c0_36] : memref<1x456x96xbf16, #tpu.memory_space<vmem>>, vector<1x384x96xbf16>
    %36 = vector.shape_cast %35 : vector<1x384x96xbf16> to vector<384x96xbf16>
    %c2_37 = arith.constant 2 : index
    %c0_38 = arith.constant 0 : index
    %c0_39 = arith.constant 0 : index
    %37 = vector.load %arg2[%c2_37, %c0_38, %c0_39] : memref<9x96x128xbf16, #tpu.memory_space<vmem>>, vector<1x96x128xbf16>
    %38 = vector.shape_cast %37 : vector<1x96x128xbf16> to vector<96x128xbf16>
    %cst_40 = arith.constant dense<0.000000e+00> : vector<384x128xf32>
    %39 = tpu.matmul %36, %38, %cst_40 {dimension_numbers = #tpu.dot_dimension_numbers<[1], [0], [0], [1], [0, 0, 1, 1], [], []>} : vector<384x96xbf16>, vector<96x128xbf16>, vector<384x128xf32> -> vector<384x128xf32>
    %40 = arith.addf %34, %39 : vector<384x128xf32>
    %c0_41 = arith.constant 0 : index
    %c0_42 = arith.constant 0 : index
    %c0_43 = arith.constant 0 : index
    %41 = vector.load %arg5[%c0_41, %c0_42, %c0_43] : memref<1x384x128xf32, #tpu.memory_space<vmem>>, vector<1x384x128xf32>
    %42 = vector.shape_cast %41 : vector<1x384x128xf32> to vector<384x128xf32>
    %43 = vector.shape_cast %40 : vector<384x128xf32> to vector<1x384x128xf32>
    tpu.vector_store %arg5[%c0_41, %c0_42, %c0_43], %43 {strides = array<i32>} : memref<1x384x128xf32, #tpu.memory_space<vmem>>, vector<1x384x128xf32>,
    %c0_44 = arith.constant 0 : index
    %c0_45 = arith.constant 0 : index
    %c0_46 = arith.constant 0 : index
    %44 = vector.load %arg5[%c0_44, %c0_45, %c0_46] : memref<1x384x128xf32, #tpu.memory_space<vmem>>, vector<1x384x128xf32>
    %45 = vector.shape_cast %44 : vector<1x384x128xf32> to vector<384x128xf32>
    %c0_47 = arith.constant 0 : index
    %c24 = arith.constant 24 : index
    %c0_48 = arith.constant 0 : index
    %46 = vector.load %arg1[%c0_47, %c24, %c0_48] : memref<1x456x96xbf16, #tpu.memory_space<vmem>>, vector<1x384x96xbf16>
    %47 = vector.shape_cast %46 : vector<1x384x96xbf16> to vector<384x96xbf16>
    %c3 = arith.constant 3 : index
    %c0_49 = arith.constant 0 : index
    %c0_50 = arith.constant 0 : index
    %48 = vector.load %arg2[%c3, %c0_49, %c0_50] : memref<9x96x128xbf16, #tpu.memory_space<vmem>>, vector<1x96x128xbf16>
    %49 = vector.shape_cast %48 : vector<1x96x128xbf16> to vector<96x128xbf16>
    %cst_51 = arith.constant dense<0.000000e+00> : vector<384x128xf32>
    %50 = tpu.matmul %47, %49, %cst_51 {dimension_numbers = #tpu.dot_dimension_numbers<[1], [0], [0], [1], [0, 0, 1, 1], [], []>} : vector<384x96xbf16>, vector<96x128xbf16>, vector<384x128xf32> -> vector<384x128xf32>
    %51 = arith.addf %45, %50 : vector<384x128xf32>
    %c0_52 = arith.constant 0 : index
    %c0_53 = arith.constant 0 : index
    %c0_54 = arith.constant 0 : index
    %52 = vector.load %arg5[%c0_52, %c0_53, %c0_54] : memref<1x384x128xf32, #tpu.memory_space<vmem>>, vector<1x384x128xf32>
    %53 = vector.shape_cast %52 : vector<1x384x128xf32> to vector<384x128xf32>
    %54 = vector.shape_cast %51 : vector<384x128xf32> to vector<1x384x128xf32>
    tpu.vector_store %arg5[%c0_52, %c0_53, %c0_54], %54 {strides = array<i32>} : memref<1x384x128xf32, #tpu.memory_space<vmem>>, vector<1x384x128xf32>,
    %c0_55 = arith.constant 0 : index
    %c0_56 = arith.constant 0 : index
    %c0_57 = arith.constant 0 : index
    %55 = vector.load %arg5[%c0_55, %c0_56, %c0_57] : memref<1x384x128xf32, #tpu.memory_space<vmem>>, vector<1x384x128xf32>
    %56 = vector.shape_cast %55 : vector<1x384x128xf32> to vector<384x128xf32>
    %c0_58 = arith.constant 0 : index
    %c25 = arith.constant 25 : index
    %c0_59 = arith.constant 0 : index
    %57 = vector.load %arg1[%c0_58, %c25, %c0_59] : memref<1x456x96xbf16, #tpu.memory_space<vmem>>, vector<1x384x96xbf16>
    %58 = vector.shape_cast %57 : vector<1x384x96xbf16> to vector<384x96xbf16>
    %c4 = arith.constant 4 : index
    %c0_60 = arith.constant 0 : index
    %c0_61 = arith.constant 0 : index
    %59 = vector.load %arg2[%c4, %c0_60, %c0_61] : memref<9x96x128xbf16, #tpu.memory_space<vmem>>, vector<1x96x128xbf16>
    %60 = vector.shape_cast %59 : vector<1x96x128xbf16> to vector<96x128xbf16>
    %cst_62 = arith.constant dense<0.000000e+00> : vector<384x128xf32>
    %61 = tpu.matmul %58, %60, %cst_62 {dimension_numbers = #tpu.dot_dimension_numbers<[1], [0], [0], [1], [0, 0, 1, 1], [], []>} : vector<384x96xbf16>, vector<96x128xbf16>, vector<384x128xf32> -> vector<384x128xf32>
    %62 = arith.addf %56, %61 : vector<384x128xf32>
    %c0_63 = arith.constant 0 : index
    %c0_64 = arith.constant 0 : index
    %c0_65 = arith.constant 0 : index
    %63 = vector.load %arg5[%c0_63, %c0_64, %c0_65] : memref<1x384x128xf32, #tpu.memory_space<vmem>>, vector<1x384x128xf32>
    %64 = vector.shape_cast %63 : vector<1x384x128xf32> to vector<384x128xf32>
    %65 = vector.shape_cast %62 : vector<384x128xf32> to vector<1x384x128xf32>
    tpu.vector_store %arg5[%c0_63, %c0_64, %c0_65], %65 {strides = array<i32>} : memref<1x384x128xf32, #tpu.memory_space<vmem>>, vector<1x384x128xf32>,
    %c0_66 = arith.constant 0 : index
    %c0_67 = arith.constant 0 : index
    %c0_68 = arith.constant 0 : index
    %66 = vector.load %arg5[%c0_66, %c0_67, %c0_68] : memref<1x384x128xf32, #tpu.memory_space<vmem>>, vector<1x384x128xf32>
    %67 = vector.shape_cast %66 : vector<1x384x128xf32> to vector<384x128xf32>
    %c0_69 = arith.constant 0 : index
    %c26 = arith.constant 26 : index
    %c0_70 = arith.constant 0 : index
    %68 = vector.load %arg1[%c0_69, %c26, %c0_70] : memref<1x456x96xbf16, #tpu.memory_space<vmem>>, vector<1x384x96xbf16>
    %69 = vector.shape_cast %68 : vector<1x384x96xbf16> to vector<384x96xbf16>
    %c5 = arith.constant 5 : index
    %c0_71 = arith.constant 0 : index
    %c0_72 = arith.constant 0 : index
    %70 = vector.load %arg2[%c5, %c0_71, %c0_72] : memref<9x96x128xbf16, #tpu.memory_space<vmem>>, vector<1x96x128xbf16>
    %71 = vector.shape_cast %70 : vector<1x96x128xbf16> to vector<96x128xbf16>
    %cst_73 = arith.constant dense<0.000000e+00> : vector<384x128xf32>
    %72 = tpu.matmul %69, %71, %cst_73 {dimension_numbers = #tpu.dot_dimension_numbers<[1], [0], [0], [1], [0, 0, 1, 1], [], []>} : vector<384x96xbf16>, vector<96x128xbf16>, vector<384x128xf32> -> vector<384x128xf32>
    %73 = arith.addf %67, %72 : vector<384x128xf32>
    %c0_74 = arith.constant 0 : index
    %c0_75 = arith.constant 0 : index
    %c0_76 = arith.constant 0 : index
    %74 = vector.load %arg5[%c0_74, %c0_75, %c0_76] : memref<1x384x128xf32, #tpu.memory_space<vmem>>, vector<1x384x128xf32>
    %75 = vector.shape_cast %74 : vector<1x384x128xf32> to vector<384x128xf32>
    %76 = vector.shape_cast %73 : vector<384x128xf32> to vector<1x384x128xf32>
    tpu.vector_store %arg5[%c0_74, %c0_75, %c0_76], %76 {strides = array<i32>} : memref<1x384x128xf32, #tpu.memory_space<vmem>>, vector<1x384x128xf32>,
    %c0_77 = arith.constant 0 : index
    %c0_78 = arith.constant 0 : index
    %c0_79 = arith.constant 0 : index
    %77 = vector.load %arg5[%c0_77, %c0_78, %c0_79] : memref<1x384x128xf32, #tpu.memory_space<vmem>>, vector<1x384x128xf32>
    %78 = vector.shape_cast %77 : vector<1x384x128xf32> to vector<384x128xf32>
    %c0_80 = arith.constant 0 : index
    %c48 = arith.constant 48 : index
    %c0_81 = arith.constant 0 : index
    %79 = vector.load %arg1[%c0_80, %c48, %c0_81] : memref<1x456x96xbf16, #tpu.memory_space<vmem>>, vector<1x384x96xbf16>
    %80 = vector.shape_cast %79 : vector<1x384x96xbf16> to vector<384x96xbf16>
    %c6 = arith.constant 6 : index
    %c0_82 = arith.constant 0 : index
    %c0_83 = arith.constant 0 : index
    %81 = vector.load %arg2[%c6, %c0_82, %c0_83] : memref<9x96x128xbf16, #tpu.memory_space<vmem>>, vector<1x96x128xbf16>
    %82 = vector.shape_cast %81 : vector<1x96x128xbf16> to vector<96x128xbf16>
    %cst_84 = arith.constant dense<0.000000e+00> : vector<384x128xf32>
    %83 = tpu.matmul %80, %82, %cst_84 {dimension_numbers = #tpu.dot_dimension_numbers<[1], [0], [0], [1], [0, 0, 1, 1], [], []>} : vector<384x96xbf16>, vector<96x128xbf16>, vector<384x128xf32> -> vector<384x128xf32>
    %84 = arith.addf %78, %83 : vector<384x128xf32>
    %c0_85 = arith.constant 0 : index
    %c0_86 = arith.constant 0 : index
    %c0_87 = arith.constant 0 : index
    %85 = vector.load %arg5[%c0_85, %c0_86, %c0_87] : memref<1x384x128xf32, #tpu.memory_space<vmem>>, vector<1x384x128xf32>
    %86 = vector.shape_cast %85 : vector<1x384x128xf32> to vector<384x128xf32>
    %87 = vector.shape_cast %84 : vector<384x128xf32> to vector<1x384x128xf32>
    tpu.vector_store %arg5[%c0_85, %c0_86, %c0_87], %87 {strides = array<i32>} : memref<1x384x128xf32, #tpu.memory_space<vmem>>, vector<1x384x128xf32>,
    %c0_88 = arith.constant 0 : index
    %c0_89 = arith.constant 0 : index
    %c0_90 = arith.constant 0 : index
    %88 = vector.load %arg5[%c0_88, %c0_89, %c0_90] : memref<1x384x128xf32, #tpu.memory_space<vmem>>, vector<1x384x128xf32>
    %89 = vector.shape_cast %88 : vector<1x384x128xf32> to vector<384x128xf32>
    %c0_91 = arith.constant 0 : index
    %c49 = arith.constant 49 : index
    %c0_92 = arith.constant 0 : index
    %90 = vector.load %arg1[%c0_91, %c49, %c0_92] : memref<1x456x96xbf16, #tpu.memory_space<vmem>>, vector<1x384x96xbf16>
    %91 = vector.shape_cast %90 : vector<1x384x96xbf16> to vector<384x96xbf16>
    %c7 = arith.constant 7 : index
    %c0_93 = arith.constant 0 : index
    %c0_94 = arith.constant 0 : index
    %92 = vector.load %arg2[%c7, %c0_93, %c0_94] : memref<9x96x128xbf16, #tpu.memory_space<vmem>>, vector<1x96x128xbf16>
    %93 = vector.shape_cast %92 : vector<1x96x128xbf16> to vector<96x128xbf16>
    %cst_95 = arith.constant dense<0.000000e+00> : vector<384x128xf32>
    %94 = tpu.matmul %91, %93, %cst_95 {dimension_numbers = #tpu.dot_dimension_numbers<[1], [0], [0], [1], [0, 0, 1, 1], [], []>} : vector<384x96xbf16>, vector<96x128xbf16>, vector<384x128xf32> -> vector<384x128xf32>
    %95 = arith.addf %89, %94 : vector<384x128xf32>
    %c0_96 = arith.constant 0 : index
    %c0_97 = arith.constant 0 : index
    %c0_98 = arith.constant 0 : index
    %96 = vector.load %arg5[%c0_96, %c0_97, %c0_98] : memref<1x384x128xf32, #tpu.memory_space<vmem>>, vector<1x384x128xf32>
    %97 = vector.shape_cast %96 : vector<1x384x128xf32> to vector<384x128xf32>
    %98 = vector.shape_cast %95 : vector<384x128xf32> to vector<1x384x128xf32>
    tpu.vector_store %arg5[%c0_96, %c0_97, %c0_98], %98 {strides = array<i32>} : memref<1x384x128xf32, #tpu.memory_space<vmem>>, vector<1x384x128xf32>,
    %c0_99 = arith.constant 0 : index
    %c0_100 = arith.constant 0 : index
    %c0_101 = arith.constant 0 : index
    %99 = vector.load %arg5[%c0_99, %c0_100, %c0_101] : memref<1x384x128xf32, #tpu.memory_space<vmem>>, vector<1x384x128xf32>
    %100 = vector.shape_cast %99 : vector<1x384x128xf32> to vector<384x128xf32>
    %c0_102 = arith.constant 0 : index
    %c50 = arith.constant 50 : index
    %c0_103 = arith.constant 0 : index
    %101 = vector.load %arg1[%c0_102, %c50, %c0_103] : memref<1x456x96xbf16, #tpu.memory_space<vmem>>, vector<1x384x96xbf16>
    %102 = vector.shape_cast %101 : vector<1x384x96xbf16> to vector<384x96xbf16>
    %c8 = arith.constant 8 : index
    %c0_104 = arith.constant 0 : index
    %c0_105 = arith.constant 0 : index
    %103 = vector.load %arg2[%c8, %c0_104, %c0_105] : memref<9x96x128xbf16, #tpu.memory_space<vmem>>, vector<1x96x128xbf16>
    %104 = vector.shape_cast %103 : vector<1x96x128xbf16> to vector<96x128xbf16>
    %cst_106 = arith.constant dense<0.000000e+00> : vector<384x128xf32>
    %105 = tpu.matmul %102, %104, %cst_106 {dimension_numbers = #tpu.dot_dimension_numbers<[1], [0], [0], [1], [0, 0, 1, 1], [], []>} : vector<384x96xbf16>, vector<96x128xbf16>, vector<384x128xf32> -> vector<384x128xf32>
    %106 = arith.addf %100, %105 : vector<384x128xf32>
    %c0_107 = arith.constant 0 : index
    %c0_108 = arith.constant 0 : index
    %c0_109 = arith.constant 0 : index
    %107 = vector.load %arg5[%c0_107, %c0_108, %c0_109] : memref<1x384x128xf32, #tpu.memory_space<vmem>>, vector<1x384x128xf32>
    %108 = vector.shape_cast %107 : vector<1x384x128xf32> to vector<384x128xf32>
    %109 = vector.shape_cast %106 : vector<384x128xf32> to vector<1x384x128xf32>
    tpu.vector_store %arg5[%c0_107, %c0_108, %c0_109], %109 {strides = array<i32>} : memref<1x384x128xf32, #tpu.memory_space<vmem>>, vector<1x384x128xf32>,
    return
  }
  func.func @transform_0(%arg0: i32) -> (i32, i32, i32) {
    %c0_i32 = arith.constant 0 : i32
    %c0_i32_0 = arith.constant 0 : i32
    %c0_i32_1 = arith.constant 0 : i32
    return %arg0, %c0_i32, %c0_i32_0 : i32, i32, i32
  }
  func.func @transform_1(%arg0: i32) -> (i32, i32, i32) {
    %c0_i32 = arith.constant 0 : i32
    %c0_i32_0 = arith.constant 0 : i32
    %c0_i32_1 = arith.constant 0 : i32
    %c0_i32_2 = arith.constant 0 : i32
    return %c0_i32, %c0_i32_0, %c0_i32_1 : i32, i32, i32
  }
  func.func @transform_2(%arg0: i32) -> (i32, i32) {
    %c0_i32 = arith.constant 0 : i32
    %c0_i32_0 = arith.constant 0 : i32
    %c0_i32_1 = arith.constant 0 : i32
    return %c0_i32, %c0_i32_0 : i32, i32
  }
  func.func @transform_3(%arg0: i32) -> (i32, i32, i32) {
    %c0_i32 = arith.constant 0 : i32
    %c0_i32_0 = arith.constant 0 : i32
    %c0_i32_1 = arith.constant 0 : i32
    return %arg0, %c0_i32, %c0_i32_0 : i32, i32, i32
  }
  func.func @transform_4(%arg0: i32) -> (i32, i32, i32) {
    %c0_i32 = arith.constant 0 : i32
    %c0_i32_0 = arith.constant 0 : i32
    %c0_i32_1 = arith.constant 0 : i32
    return %arg0, %c0_i32, %c0_i32_0 : i32, i32, i32
  }
}

module attributes {stable_mosaic.version = 11 : i64} {
  func.func @_gn_silu_kernel(%arg0: i32, %arg1: memref<1x256x128xf32, #tpu.memory_space<vmem>>, %arg2: memref<1x128xf32, #tpu.memory_space<vmem>>, %arg3: memref<1x128xf32, #tpu.memory_space<vmem>>, %arg4: memref<128x128xf32, #tpu.memory_space<vmem>>, %arg5: memref<1x256x128xbf16, #tpu.memory_space<vmem>>) attributes {dimension_semantics = [#tpu.dimension_semantics<parallel>], iteration_bounds = array<i64: 2>, scalar_prefetch = 0 : i64, scratch_operands = 0 : i64, tpu.core_type = #tpu.core_type<tc>, window_params = [{transform_indices = @transform_0, window_bounds = array<i64: 1, 256, 128>}, {pipeline_mode = #tpu.pipeline_mode<synchronous>, transform_indices = @transform_1, window_bounds = array<i64: 1, 128>}, {pipeline_mode = #tpu.pipeline_mode<synchronous>, transform_indices = @transform_2, window_bounds = array<i64: 1, 128>}, {pipeline_mode = #tpu.pipeline_mode<synchronous>, transform_indices = @transform_3, window_bounds = array<i64: 128, 128>}, {transform_indices = @transform_4, window_bounds = array<i64: 1, 256, 128>}]} {
    %c0 = arith.constant 0 : index
    %c0_0 = arith.constant 0 : index
    %c0_1 = arith.constant 0 : index
    %0 = vector.load %arg1[%c0, %c0_0, %c0_1] : memref<1x256x128xf32, #tpu.memory_space<vmem>>, vector<1x256x128xf32>
    %1 = vector.shape_cast %0 : vector<1x256x128xf32> to vector<256x128xf32>
    %cst = arith.constant dense<0.000000e+00> : vector<128xf32>
    %2 = vector.multi_reduction <add>, %1, %cst [0] : vector<256x128xf32> to vector<128xf32>
    %3 = vector.shape_cast %2 : vector<128xf32> to vector<1x128xf32>
    %c0_2 = arith.constant 0 : index
    %c0_3 = arith.constant 0 : index
    %4 = vector.load %arg4[%c0_2, %c0_3] : memref<128x128xf32, #tpu.memory_space<vmem>>, vector<128x128xf32>
    %cst_4 = arith.constant dense<0.000000e+00> : vector<1x128xf32>
    %5 = tpu.matmul %3, %4, %cst_4 {dimension_numbers = #tpu.dot_dimension_numbers<[1], [0], [0], [1], [0, 0, 1, 1], [], []>} : vector<1x128xf32>, vector<128x128xf32>, vector<1x128xf32> -> vector<1x128xf32>
    %6 = vector.broadcast %5 : vector<1x128xf32> to vector<256x128xf32>
    %7 = arith.subf %1, %6 : vector<256x128xf32>
    %8 = arith.mulf %7, %7 : vector<256x128xf32>
    %cst_5 = arith.constant dense<0.000000e+00> : vector<128xf32>
    %9 = vector.multi_reduction <add>, %8, %cst_5 [0] : vector<256x128xf32> to vector<128xf32>
    %10 = vector.shape_cast %9 : vector<128xf32> to vector<1x128xf32>
    %c0_6 = arith.constant 0 : index
    %c0_7 = arith.constant 0 : index
    %11 = vector.load %arg4[%c0_6, %c0_7] : memref<128x128xf32, #tpu.memory_space<vmem>>, vector<128x128xf32>
    %cst_8 = arith.constant dense<0.000000e+00> : vector<1x128xf32>
    %12 = tpu.matmul %10, %11, %cst_8 {dimension_numbers = #tpu.dot_dimension_numbers<[1], [0], [0], [1], [0, 0, 1, 1], [], []>} : vector<1x128xf32>, vector<128x128xf32>, vector<1x128xf32> -> vector<1x128xf32>
    %cst_9 = arith.constant 9.99999974E-6 : f32
    %13 = vector.broadcast %cst_9 : f32 to vector<1x128xf32>
    %14 = arith.addf %12, %13 : vector<1x128xf32>
    %15 = math.rsqrt %14 : vector<1x128xf32>
    %16 = vector.broadcast %15 : vector<1x128xf32> to vector<256x128xf32>
    %17 = arith.mulf %7, %16 : vector<256x128xf32>
    %c0_10 = arith.constant 0 : index
    %c0_11 = arith.constant 0 : index
    %18 = vector.load %arg2[%c0_10, %c0_11] : memref<1x128xf32, #tpu.memory_space<vmem>>, vector<1x128xf32>
    %19 = vector.broadcast %18 : vector<1x128xf32> to vector<256x128xf32>
    %20 = arith.mulf %17, %19 : vector<256x128xf32>
    %c0_12 = arith.constant 0 : index
    %c0_13 = arith.constant 0 : index
    %21 = vector.load %arg3[%c0_12, %c0_13] : memref<1x128xf32, #tpu.memory_space<vmem>>, vector<1x128xf32>
    %22 = vector.broadcast %21 : vector<1x128xf32> to vector<256x128xf32>
    %23 = arith.addf %20, %22 : vector<256x128xf32>
    %24 = arith.negf %23 : vector<256x128xf32>
    %25 = math.exp %24 : vector<256x128xf32>
    %cst_14 = arith.constant 1.000000e+00 : f32
    %26 = vector.broadcast %cst_14 : f32 to vector<256x128xf32>
    %27 = arith.addf %26, %25 : vector<256x128xf32>
    %28 = arith.divf %26, %27 : vector<256x128xf32>
    %29 = arith.mulf %23, %28 : vector<256x128xf32>
    %30 = arith.truncf %29 : vector<256x128xf32> to vector<256x128xbf16>
    %c0_15 = arith.constant 0 : index
    %c0_16 = arith.constant 0 : index
    %c0_17 = arith.constant 0 : index
    %31 = vector.load %arg5[%c0_15, %c0_16, %c0_17] : memref<1x256x128xbf16, #tpu.memory_space<vmem>>, vector<1x256x128xbf16>
    %32 = vector.shape_cast %31 : vector<1x256x128xbf16> to vector<256x128xbf16>
    %33 = vector.shape_cast %30 : vector<256x128xbf16> to vector<1x256x128xbf16>
    tpu.vector_store %arg5[%c0_15, %c0_16, %c0_17], %33 {strides = array<i32>} : memref<1x256x128xbf16, #tpu.memory_space<vmem>>, vector<1x256x128xbf16>,
    return
  }
  func.func @transform_0(%arg0: i32) -> (i32, i32, i32) {
    %c0_i32 = arith.constant 0 : i32
    %c0_i32_0 = arith.constant 0 : i32
    %c0_i32_1 = arith.constant 0 : i32
    return %arg0, %c0_i32, %c0_i32_0 : i32, i32, i32
  }
  func.func @transform_1(%arg0: i32) -> (i32, i32) {
    %c0_i32 = arith.constant 0 : i32
    %c0_i32_0 = arith.constant 0 : i32
    %c0_i32_1 = arith.constant 0 : i32
    return %c0_i32, %c0_i32_0 : i32, i32
  }
  func.func @transform_2(%arg0: i32) -> (i32, i32) {
    %c0_i32 = arith.constant 0 : i32
    %c0_i32_0 = arith.constant 0 : i32
    %c0_i32_1 = arith.constant 0 : i32
    return %c0_i32, %c0_i32_0 : i32, i32
  }
  func.func @transform_3(%arg0: i32) -> (i32, i32) {
    %c0_i32 = arith.constant 0 : i32
    %c0_i32_0 = arith.constant 0 : i32
    %c0_i32_1 = arith.constant 0 : i32
    return %c0_i32, %c0_i32_0 : i32, i32
  }
  func.func @transform_4(%arg0: i32) -> (i32, i32, i32) {
    %c0_i32 = arith.constant 0 : i32
    %c0_i32_0 = arith.constant 0 : i32
    %c0_i32_1 = arith.constant 0 : i32
    return %arg0, %c0_i32, %c0_i32_0 : i32, i32, i32
  }
}

module attributes {stable_mosaic.version = 11 : i64} {
  func.func @_matmul_bias_kernel(%arg0: i32, %arg1: i32, %arg2: i32, %arg3: memref<256x128xbf16, #tpu.memory_space<vmem>>, %arg4: memref<128x128xbf16, #tpu.memory_space<vmem>>, %arg5: memref<1x128xf32, #tpu.memory_space<vmem>>, %arg6: memref<256x128xf32, #tpu.memory_space<vmem>>, %arg7: memref<256x128xf32, #tpu.memory_space<vmem>>) attributes {dimension_semantics = [#tpu.dimension_semantics<parallel>, #tpu.dimension_semantics<parallel>, #tpu.dimension_semantics<arbitrary>], iteration_bounds = array<i64: 2, 1, 1>, scalar_prefetch = 0 : i64, scratch_operands = 1 : i64, tpu.core_type = #tpu.core_type<tc>, window_params = [{transform_indices = @transform_0, window_bounds = array<i64: 256, 128>}, {transform_indices = @transform_1, window_bounds = array<i64: 128, 128>}, {transform_indices = @transform_2, window_bounds = array<i64: 1, 128>}, {transform_indices = @transform_3, window_bounds = array<i64: 256, 128>}]} {
    %c0_i32 = arith.constant 0 : i32
    %0 = arith.cmpi eq, %arg2, %c0_i32 : i32
    %1 = arith.extui %0 : i1 to i32
    %c0_i32_0 = arith.constant 0 : i32
    %2 = arith.cmpi ne, %1, %c0_i32_0 : i32
    scf.if %2 {
      %cst_10 = arith.constant 0.000000e+00 : f32
      %12 = vector.broadcast %cst_10 : f32 to vector<256x128xf32>
      %c0_11 = arith.constant 0 : index
      %c0_12 = arith.constant 0 : index
      %13 = vector.load %arg7[%c0_11, %c0_12] : memref<256x128xf32, #tpu.memory_space<vmem>>, vector<256x128xf32>
      tpu.vector_store %arg7[%c0_11, %c0_12], %12 {strides = array<i32>} : memref<256x128xf32, #tpu.memory_space<vmem>>, vector<256x128xf32>,
    } else {
    }
    %c0 = arith.constant 0 : index
    %c0_1 = arith.constant 0 : index
    %3 = vector.load %arg7[%c0, %c0_1] : memref<256x128xf32, #tpu.memory_space<vmem>>, vector<256x128xf32>
    %c0_2 = arith.constant 0 : index
    %c0_3 = arith.constant 0 : index
    %4 = vector.load %arg3[%c0_2, %c0_3] : memref<256x128xbf16, #tpu.memory_space<vmem>>, vector<256x128xbf16>
    %c0_4 = arith.constant 0 : index
    %c0_5 = arith.constant 0 : index
    %5 = vector.load %arg4[%c0_4, %c0_5] : memref<128x128xbf16, #tpu.memory_space<vmem>>, vector<128x128xbf16>
    %cst = arith.constant dense<0.000000e+00> : vector<256x128xf32>
    %6 = tpu.matmul %4, %5, %cst {dimension_numbers = #tpu.dot_dimension_numbers<[1], [0], [0], [1], [0, 0, 1, 1], [], []>} : vector<256x128xbf16>, vector<128x128xbf16>, vector<256x128xf32> -> vector<256x128xf32>
    %7 = arith.addf %3, %6 : vector<256x128xf32>
    %c0_6 = arith.constant 0 : index
    %c0_7 = arith.constant 0 : index
    %8 = vector.load %arg7[%c0_6, %c0_7] : memref<256x128xf32, #tpu.memory_space<vmem>>, vector<256x128xf32>
    tpu.vector_store %arg7[%c0_6, %c0_7], %7 {strides = array<i32>} : memref<256x128xf32, #tpu.memory_space<vmem>>, vector<256x128xf32>,
    %c0_i32_8 = arith.constant 0 : i32
    %9 = arith.cmpi eq, %arg2, %c0_i32_8 : i32
    %10 = arith.extui %9 : i1 to i32
    %c0_i32_9 = arith.constant 0 : i32
    %11 = arith.cmpi ne, %10, %c0_i32_9 : i32
    scf.if %11 {
      %c0_10 = arith.constant 0 : index
      %c0_11 = arith.constant 0 : index
      %12 = vector.load %arg7[%c0_10, %c0_11] : memref<256x128xf32, #tpu.memory_space<vmem>>, vector<256x128xf32>
      %c0_12 = arith.constant 0 : index
      %c0_13 = arith.constant 0 : index
      %13 = vector.load %arg5[%c0_12, %c0_13] : memref<1x128xf32, #tpu.memory_space<vmem>>, vector<1x128xf32>
      %14 = vector.broadcast %13 : vector<1x128xf32> to vector<256x128xf32>
      %15 = arith.addf %12, %14 : vector<256x128xf32>
      %c0_14 = arith.constant 0 : index
      %c0_15 = arith.constant 0 : index
      %16 = vector.load %arg6[%c0_14, %c0_15] : memref<256x128xf32, #tpu.memory_space<vmem>>, vector<256x128xf32>
      tpu.vector_store %arg6[%c0_14, %c0_15], %15 {strides = array<i32>} : memref<256x128xf32, #tpu.memory_space<vmem>>, vector<256x128xf32>,
    } else {
    }
    return
  }
  func.func @transform_0(%arg0: i32, %arg1: i32, %arg2: i32) -> (i32, i32) {
    %c0_i32 = arith.constant 0 : i32
    return %arg0, %arg2 : i32, i32
  }
  func.func @transform_1(%arg0: i32, %arg1: i32, %arg2: i32) -> (i32, i32) {
    %c0_i32 = arith.constant 0 : i32
    return %arg2, %arg1 : i32, i32
  }
  func.func @transform_2(%arg0: i32, %arg1: i32, %arg2: i32) -> (i32, i32) {
    %c0_i32 = arith.constant 0 : i32
    %c0_i32_0 = arith.constant 0 : i32
    return %c0_i32, %arg1 : i32, i32
  }
  func.func @transform_3(%arg0: i32, %arg1: i32, %arg2: i32) -> (i32, i32) {
    %c0_i32 = arith.constant 0 : i32
    return %arg0, %arg1 : i32, i32
  }
}

module attributes {stable_mosaic.version = 11 : i64} {
  func.func @_conv3x3_kernel(%arg0: i32, %arg1: memref<1x456x128xbf16, #tpu.memory_space<vmem>>, %arg2: memref<9x128x128xbf16, #tpu.memory_space<vmem>>, %arg3: memref<1x128xf32, #tpu.memory_space<vmem>>, %arg4: memref<1x384x128xf32, #tpu.memory_space<vmem>>, %arg5: memref<1x384x128xf32, #tpu.memory_space<vmem>>) attributes {dimension_semantics = [#tpu.dimension_semantics<parallel>], iteration_bounds = array<i64: 2>, scalar_prefetch = 0 : i64, scratch_operands = 0 : i64, tpu.core_type = #tpu.core_type<tc>, window_params = [{transform_indices = @transform_0, window_bounds = array<i64: 1, 456, 128>}, {pipeline_mode = #tpu.pipeline_mode<synchronous>, transform_indices = @transform_1, window_bounds = array<i64: 9, 128, 128>}, {pipeline_mode = #tpu.pipeline_mode<synchronous>, transform_indices = @transform_2, window_bounds = array<i64: 1, 128>}, {transform_indices = @transform_3, window_bounds = array<i64: 1, 384, 128>}, {transform_indices = @transform_4, window_bounds = array<i64: 1, 384, 128>}]} {
    %cst = arith.constant 0.000000e+00 : f32
    %0 = vector.broadcast %cst : f32 to vector<384x128xf32>
    %c0 = arith.constant 0 : index
    %c0_0 = arith.constant 0 : index
    %1 = vector.load %arg3[%c0, %c0_0] : memref<1x128xf32, #tpu.memory_space<vmem>>, vector<1x128xf32>
    %2 = vector.broadcast %1 : vector<1x128xf32> to vector<384x128xf32>
    %3 = arith.addf %0, %2 : vector<384x128xf32>
    %c0_1 = arith.constant 0 : index
    %c0_2 = arith.constant 0 : index
    %c0_3 = arith.constant 0 : index
    %4 = vector.load %arg4[%c0_1, %c0_2, %c0_3] : memref<1x384x128xf32, #tpu.memory_space<vmem>>, vector<1x384x128xf32>
    %5 = vector.shape_cast %4 : vector<1x384x128xf32> to vector<384x128xf32>
    %6 = arith.addf %3, %5 : vector<384x128xf32>
    %c0_4 = arith.constant 0 : index
    %c0_5 = arith.constant 0 : index
    %c0_6 = arith.constant 0 : index
    %7 = vector.load %arg5[%c0_4, %c0_5, %c0_6] : memref<1x384x128xf32, #tpu.memory_space<vmem>>, vector<1x384x128xf32>
    %8 = vector.shape_cast %7 : vector<1x384x128xf32> to vector<384x128xf32>
    %9 = vector.shape_cast %6 : vector<384x128xf32> to vector<1x384x128xf32>
    tpu.vector_store %arg5[%c0_4, %c0_5, %c0_6], %9 {strides = array<i32>} : memref<1x384x128xf32, #tpu.memory_space<vmem>>, vector<1x384x128xf32>,
    %c0_7 = arith.constant 0 : index
    %c0_8 = arith.constant 0 : index
    %c0_9 = arith.constant 0 : index
    %10 = vector.load %arg5[%c0_7, %c0_8, %c0_9] : memref<1x384x128xf32, #tpu.memory_space<vmem>>, vector<1x384x128xf32>
    %11 = vector.shape_cast %10 : vector<1x384x128xf32> to vector<384x128xf32>
    %c0_10 = arith.constant 0 : index
    %c0_11 = arith.constant 0 : index
    %c0_12 = arith.constant 0 : index
    %12 = vector.load %arg1[%c0_10, %c0_11, %c0_12] : memref<1x456x128xbf16, #tpu.memory_space<vmem>>, vector<1x384x128xbf16>
    %13 = vector.shape_cast %12 : vector<1x384x128xbf16> to vector<384x128xbf16>
    %c0_13 = arith.constant 0 : index
    %c0_14 = arith.constant 0 : index
    %c0_15 = arith.constant 0 : index
    %14 = vector.load %arg2[%c0_13, %c0_14, %c0_15] : memref<9x128x128xbf16, #tpu.memory_space<vmem>>, vector<1x128x128xbf16>
    %15 = vector.shape_cast %14 : vector<1x128x128xbf16> to vector<128x128xbf16>
    %cst_16 = arith.constant dense<0.000000e+00> : vector<384x128xf32>
    %16 = tpu.matmul %13, %15, %cst_16 {dimension_numbers = #tpu.dot_dimension_numbers<[1], [0], [0], [1], [0, 0, 1, 1], [], []>} : vector<384x128xbf16>, vector<128x128xbf16>, vector<384x128xf32> -> vector<384x128xf32>
    %17 = arith.addf %11, %16 : vector<384x128xf32>
    %c0_17 = arith.constant 0 : index
    %c0_18 = arith.constant 0 : index
    %c0_19 = arith.constant 0 : index
    %18 = vector.load %arg5[%c0_17, %c0_18, %c0_19] : memref<1x384x128xf32, #tpu.memory_space<vmem>>, vector<1x384x128xf32>
    %19 = vector.shape_cast %18 : vector<1x384x128xf32> to vector<384x128xf32>
    %20 = vector.shape_cast %17 : vector<384x128xf32> to vector<1x384x128xf32>
    tpu.vector_store %arg5[%c0_17, %c0_18, %c0_19], %20 {strides = array<i32>} : memref<1x384x128xf32, #tpu.memory_space<vmem>>, vector<1x384x128xf32>,
    %c0_20 = arith.constant 0 : index
    %c0_21 = arith.constant 0 : index
    %c0_22 = arith.constant 0 : index
    %21 = vector.load %arg5[%c0_20, %c0_21, %c0_22] : memref<1x384x128xf32, #tpu.memory_space<vmem>>, vector<1x384x128xf32>
    %22 = vector.shape_cast %21 : vector<1x384x128xf32> to vector<384x128xf32>
    %c0_23 = arith.constant 0 : index
    %c1 = arith.constant 1 : index
    %c0_24 = arith.constant 0 : index
    %23 = vector.load %arg1[%c0_23, %c1, %c0_24] : memref<1x456x128xbf16, #tpu.memory_space<vmem>>, vector<1x384x128xbf16>
    %24 = vector.shape_cast %23 : vector<1x384x128xbf16> to vector<384x128xbf16>
    %c1_25 = arith.constant 1 : index
    %c0_26 = arith.constant 0 : index
    %c0_27 = arith.constant 0 : index
    %25 = vector.load %arg2[%c1_25, %c0_26, %c0_27] : memref<9x128x128xbf16, #tpu.memory_space<vmem>>, vector<1x128x128xbf16>
    %26 = vector.shape_cast %25 : vector<1x128x128xbf16> to vector<128x128xbf16>
    %cst_28 = arith.constant dense<0.000000e+00> : vector<384x128xf32>
    %27 = tpu.matmul %24, %26, %cst_28 {dimension_numbers = #tpu.dot_dimension_numbers<[1], [0], [0], [1], [0, 0, 1, 1], [], []>} : vector<384x128xbf16>, vector<128x128xbf16>, vector<384x128xf32> -> vector<384x128xf32>
    %28 = arith.addf %22, %27 : vector<384x128xf32>
    %c0_29 = arith.constant 0 : index
    %c0_30 = arith.constant 0 : index
    %c0_31 = arith.constant 0 : index
    %29 = vector.load %arg5[%c0_29, %c0_30, %c0_31] : memref<1x384x128xf32, #tpu.memory_space<vmem>>, vector<1x384x128xf32>
    %30 = vector.shape_cast %29 : vector<1x384x128xf32> to vector<384x128xf32>
    %31 = vector.shape_cast %28 : vector<384x128xf32> to vector<1x384x128xf32>
    tpu.vector_store %arg5[%c0_29, %c0_30, %c0_31], %31 {strides = array<i32>} : memref<1x384x128xf32, #tpu.memory_space<vmem>>, vector<1x384x128xf32>,
    %c0_32 = arith.constant 0 : index
    %c0_33 = arith.constant 0 : index
    %c0_34 = arith.constant 0 : index
    %32 = vector.load %arg5[%c0_32, %c0_33, %c0_34] : memref<1x384x128xf32, #tpu.memory_space<vmem>>, vector<1x384x128xf32>
    %33 = vector.shape_cast %32 : vector<1x384x128xf32> to vector<384x128xf32>
    %c0_35 = arith.constant 0 : index
    %c2 = arith.constant 2 : index
    %c0_36 = arith.constant 0 : index
    %34 = vector.load %arg1[%c0_35, %c2, %c0_36] : memref<1x456x128xbf16, #tpu.memory_space<vmem>>, vector<1x384x128xbf16>
    %35 = vector.shape_cast %34 : vector<1x384x128xbf16> to vector<384x128xbf16>
    %c2_37 = arith.constant 2 : index
    %c0_38 = arith.constant 0 : index
    %c0_39 = arith.constant 0 : index
    %36 = vector.load %arg2[%c2_37, %c0_38, %c0_39] : memref<9x128x128xbf16, #tpu.memory_space<vmem>>, vector<1x128x128xbf16>
    %37 = vector.shape_cast %36 : vector<1x128x128xbf16> to vector<128x128xbf16>
    %cst_40 = arith.constant dense<0.000000e+00> : vector<384x128xf32>
    %38 = tpu.matmul %35, %37, %cst_40 {dimension_numbers = #tpu.dot_dimension_numbers<[1], [0], [0], [1], [0, 0, 1, 1], [], []>} : vector<384x128xbf16>, vector<128x128xbf16>, vector<384x128xf32> -> vector<384x128xf32>
    %39 = arith.addf %33, %38 : vector<384x128xf32>
    %c0_41 = arith.constant 0 : index
    %c0_42 = arith.constant 0 : index
    %c0_43 = arith.constant 0 : index
    %40 = vector.load %arg5[%c0_41, %c0_42, %c0_43] : memref<1x384x128xf32, #tpu.memory_space<vmem>>, vector<1x384x128xf32>
    %41 = vector.shape_cast %40 : vector<1x384x128xf32> to vector<384x128xf32>
    %42 = vector.shape_cast %39 : vector<384x128xf32> to vector<1x384x128xf32>
    tpu.vector_store %arg5[%c0_41, %c0_42, %c0_43], %42 {strides = array<i32>} : memref<1x384x128xf32, #tpu.memory_space<vmem>>, vector<1x384x128xf32>,
    %c0_44 = arith.constant 0 : index
    %c0_45 = arith.constant 0 : index
    %c0_46 = arith.constant 0 : index
    %43 = vector.load %arg5[%c0_44, %c0_45, %c0_46] : memref<1x384x128xf32, #tpu.memory_space<vmem>>, vector<1x384x128xf32>
    %44 = vector.shape_cast %43 : vector<1x384x128xf32> to vector<384x128xf32>
    %c0_47 = arith.constant 0 : index
    %c24 = arith.constant 24 : index
    %c0_48 = arith.constant 0 : index
    %45 = vector.load %arg1[%c0_47, %c24, %c0_48] : memref<1x456x128xbf16, #tpu.memory_space<vmem>>, vector<1x384x128xbf16>
    %46 = vector.shape_cast %45 : vector<1x384x128xbf16> to vector<384x128xbf16>
    %c3 = arith.constant 3 : index
    %c0_49 = arith.constant 0 : index
    %c0_50 = arith.constant 0 : index
    %47 = vector.load %arg2[%c3, %c0_49, %c0_50] : memref<9x128x128xbf16, #tpu.memory_space<vmem>>, vector<1x128x128xbf16>
    %48 = vector.shape_cast %47 : vector<1x128x128xbf16> to vector<128x128xbf16>
    %cst_51 = arith.constant dense<0.000000e+00> : vector<384x128xf32>
    %49 = tpu.matmul %46, %48, %cst_51 {dimension_numbers = #tpu.dot_dimension_numbers<[1], [0], [0], [1], [0, 0, 1, 1], [], []>} : vector<384x128xbf16>, vector<128x128xbf16>, vector<384x128xf32> -> vector<384x128xf32>
    %50 = arith.addf %44, %49 : vector<384x128xf32>
    %c0_52 = arith.constant 0 : index
    %c0_53 = arith.constant 0 : index
    %c0_54 = arith.constant 0 : index
    %51 = vector.load %arg5[%c0_52, %c0_53, %c0_54] : memref<1x384x128xf32, #tpu.memory_space<vmem>>, vector<1x384x128xf32>
    %52 = vector.shape_cast %51 : vector<1x384x128xf32> to vector<384x128xf32>
    %53 = vector.shape_cast %50 : vector<384x128xf32> to vector<1x384x128xf32>
    tpu.vector_store %arg5[%c0_52, %c0_53, %c0_54], %53 {strides = array<i32>} : memref<1x384x128xf32, #tpu.memory_space<vmem>>, vector<1x384x128xf32>,
    %c0_55 = arith.constant 0 : index
    %c0_56 = arith.constant 0 : index
    %c0_57 = arith.constant 0 : index
    %54 = vector.load %arg5[%c0_55, %c0_56, %c0_57] : memref<1x384x128xf32, #tpu.memory_space<vmem>>, vector<1x384x128xf32>
    %55 = vector.shape_cast %54 : vector<1x384x128xf32> to vector<384x128xf32>
    %c0_58 = arith.constant 0 : index
    %c25 = arith.constant 25 : index
    %c0_59 = arith.constant 0 : index
    %56 = vector.load %arg1[%c0_58, %c25, %c0_59] : memref<1x456x128xbf16, #tpu.memory_space<vmem>>, vector<1x384x128xbf16>
    %57 = vector.shape_cast %56 : vector<1x384x128xbf16> to vector<384x128xbf16>
    %c4 = arith.constant 4 : index
    %c0_60 = arith.constant 0 : index
    %c0_61 = arith.constant 0 : index
    %58 = vector.load %arg2[%c4, %c0_60, %c0_61] : memref<9x128x128xbf16, #tpu.memory_space<vmem>>, vector<1x128x128xbf16>
    %59 = vector.shape_cast %58 : vector<1x128x128xbf16> to vector<128x128xbf16>
    %cst_62 = arith.constant dense<0.000000e+00> : vector<384x128xf32>
    %60 = tpu.matmul %57, %59, %cst_62 {dimension_numbers = #tpu.dot_dimension_numbers<[1], [0], [0], [1], [0, 0, 1, 1], [], []>} : vector<384x128xbf16>, vector<128x128xbf16>, vector<384x128xf32> -> vector<384x128xf32>
    %61 = arith.addf %55, %60 : vector<384x128xf32>
    %c0_63 = arith.constant 0 : index
    %c0_64 = arith.constant 0 : index
    %c0_65 = arith.constant 0 : index
    %62 = vector.load %arg5[%c0_63, %c0_64, %c0_65] : memref<1x384x128xf32, #tpu.memory_space<vmem>>, vector<1x384x128xf32>
    %63 = vector.shape_cast %62 : vector<1x384x128xf32> to vector<384x128xf32>
    %64 = vector.shape_cast %61 : vector<384x128xf32> to vector<1x384x128xf32>
    tpu.vector_store %arg5[%c0_63, %c0_64, %c0_65], %64 {strides = array<i32>} : memref<1x384x128xf32, #tpu.memory_space<vmem>>, vector<1x384x128xf32>,
    %c0_66 = arith.constant 0 : index
    %c0_67 = arith.constant 0 : index
    %c0_68 = arith.constant 0 : index
    %65 = vector.load %arg5[%c0_66, %c0_67, %c0_68] : memref<1x384x128xf32, #tpu.memory_space<vmem>>, vector<1x384x128xf32>
    %66 = vector.shape_cast %65 : vector<1x384x128xf32> to vector<384x128xf32>
    %c0_69 = arith.constant 0 : index
    %c26 = arith.constant 26 : index
    %c0_70 = arith.constant 0 : index
    %67 = vector.load %arg1[%c0_69, %c26, %c0_70] : memref<1x456x128xbf16, #tpu.memory_space<vmem>>, vector<1x384x128xbf16>
    %68 = vector.shape_cast %67 : vector<1x384x128xbf16> to vector<384x128xbf16>
    %c5 = arith.constant 5 : index
    %c0_71 = arith.constant 0 : index
    %c0_72 = arith.constant 0 : index
    %69 = vector.load %arg2[%c5, %c0_71, %c0_72] : memref<9x128x128xbf16, #tpu.memory_space<vmem>>, vector<1x128x128xbf16>
    %70 = vector.shape_cast %69 : vector<1x128x128xbf16> to vector<128x128xbf16>
    %cst_73 = arith.constant dense<0.000000e+00> : vector<384x128xf32>
    %71 = tpu.matmul %68, %70, %cst_73 {dimension_numbers = #tpu.dot_dimension_numbers<[1], [0], [0], [1], [0, 0, 1, 1], [], []>} : vector<384x128xbf16>, vector<128x128xbf16>, vector<384x128xf32> -> vector<384x128xf32>
    %72 = arith.addf %66, %71 : vector<384x128xf32>
    %c0_74 = arith.constant 0 : index
    %c0_75 = arith.constant 0 : index
    %c0_76 = arith.constant 0 : index
    %73 = vector.load %arg5[%c0_74, %c0_75, %c0_76] : memref<1x384x128xf32, #tpu.memory_space<vmem>>, vector<1x384x128xf32>
    %74 = vector.shape_cast %73 : vector<1x384x128xf32> to vector<384x128xf32>
    %75 = vector.shape_cast %72 : vector<384x128xf32> to vector<1x384x128xf32>
    tpu.vector_store %arg5[%c0_74, %c0_75, %c0_76], %75 {strides = array<i32>} : memref<1x384x128xf32, #tpu.memory_space<vmem>>, vector<1x384x128xf32>,
    %c0_77 = arith.constant 0 : index
    %c0_78 = arith.constant 0 : index
    %c0_79 = arith.constant 0 : index
    %76 = vector.load %arg5[%c0_77, %c0_78, %c0_79] : memref<1x384x128xf32, #tpu.memory_space<vmem>>, vector<1x384x128xf32>
    %77 = vector.shape_cast %76 : vector<1x384x128xf32> to vector<384x128xf32>
    %c0_80 = arith.constant 0 : index
    %c48 = arith.constant 48 : index
    %c0_81 = arith.constant 0 : index
    %78 = vector.load %arg1[%c0_80, %c48, %c0_81] : memref<1x456x128xbf16, #tpu.memory_space<vmem>>, vector<1x384x128xbf16>
    %79 = vector.shape_cast %78 : vector<1x384x128xbf16> to vector<384x128xbf16>
    %c6 = arith.constant 6 : index
    %c0_82 = arith.constant 0 : index
    %c0_83 = arith.constant 0 : index
    %80 = vector.load %arg2[%c6, %c0_82, %c0_83] : memref<9x128x128xbf16, #tpu.memory_space<vmem>>, vector<1x128x128xbf16>
    %81 = vector.shape_cast %80 : vector<1x128x128xbf16> to vector<128x128xbf16>
    %cst_84 = arith.constant dense<0.000000e+00> : vector<384x128xf32>
    %82 = tpu.matmul %79, %81, %cst_84 {dimension_numbers = #tpu.dot_dimension_numbers<[1], [0], [0], [1], [0, 0, 1, 1], [], []>} : vector<384x128xbf16>, vector<128x128xbf16>, vector<384x128xf32> -> vector<384x128xf32>
    %83 = arith.addf %77, %82 : vector<384x128xf32>
    %c0_85 = arith.constant 0 : index
    %c0_86 = arith.constant 0 : index
    %c0_87 = arith.constant 0 : index
    %84 = vector.load %arg5[%c0_85, %c0_86, %c0_87] : memref<1x384x128xf32, #tpu.memory_space<vmem>>, vector<1x384x128xf32>
    %85 = vector.shape_cast %84 : vector<1x384x128xf32> to vector<384x128xf32>
    %86 = vector.shape_cast %83 : vector<384x128xf32> to vector<1x384x128xf32>
    tpu.vector_store %arg5[%c0_85, %c0_86, %c0_87], %86 {strides = array<i32>} : memref<1x384x128xf32, #tpu.memory_space<vmem>>, vector<1x384x128xf32>,
    %c0_88 = arith.constant 0 : index
    %c0_89 = arith.constant 0 : index
    %c0_90 = arith.constant 0 : index
    %87 = vector.load %arg5[%c0_88, %c0_89, %c0_90] : memref<1x384x128xf32, #tpu.memory_space<vmem>>, vector<1x384x128xf32>
    %88 = vector.shape_cast %87 : vector<1x384x128xf32> to vector<384x128xf32>
    %c0_91 = arith.constant 0 : index
    %c49 = arith.constant 49 : index
    %c0_92 = arith.constant 0 : index
    %89 = vector.load %arg1[%c0_91, %c49, %c0_92] : memref<1x456x128xbf16, #tpu.memory_space<vmem>>, vector<1x384x128xbf16>
    %90 = vector.shape_cast %89 : vector<1x384x128xbf16> to vector<384x128xbf16>
    %c7 = arith.constant 7 : index
    %c0_93 = arith.constant 0 : index
    %c0_94 = arith.constant 0 : index
    %91 = vector.load %arg2[%c7, %c0_93, %c0_94] : memref<9x128x128xbf16, #tpu.memory_space<vmem>>, vector<1x128x128xbf16>
    %92 = vector.shape_cast %91 : vector<1x128x128xbf16> to vector<128x128xbf16>
    %cst_95 = arith.constant dense<0.000000e+00> : vector<384x128xf32>
    %93 = tpu.matmul %90, %92, %cst_95 {dimension_numbers = #tpu.dot_dimension_numbers<[1], [0], [0], [1], [0, 0, 1, 1], [], []>} : vector<384x128xbf16>, vector<128x128xbf16>, vector<384x128xf32> -> vector<384x128xf32>
    %94 = arith.addf %88, %93 : vector<384x128xf32>
    %c0_96 = arith.constant 0 : index
    %c0_97 = arith.constant 0 : index
    %c0_98 = arith.constant 0 : index
    %95 = vector.load %arg5[%c0_96, %c0_97, %c0_98] : memref<1x384x128xf32, #tpu.memory_space<vmem>>, vector<1x384x128xf32>
    %96 = vector.shape_cast %95 : vector<1x384x128xf32> to vector<384x128xf32>
    %97 = vector.shape_cast %94 : vector<384x128xf32> to vector<1x384x128xf32>
    tpu.vector_store %arg5[%c0_96, %c0_97, %c0_98], %97 {strides = array<i32>} : memref<1x384x128xf32, #tpu.memory_space<vmem>>, vector<1x384x128xf32>,
    %c0_99 = arith.constant 0 : index
    %c0_100 = arith.constant 0 : index
    %c0_101 = arith.constant 0 : index
    %98 = vector.load %arg5[%c0_99, %c0_100, %c0_101] : memref<1x384x128xf32, #tpu.memory_space<vmem>>, vector<1x384x128xf32>
    %99 = vector.shape_cast %98 : vector<1x384x128xf32> to vector<384x128xf32>
    %c0_102 = arith.constant 0 : index
    %c50 = arith.constant 50 : index
    %c0_103 = arith.constant 0 : index
    %100 = vector.load %arg1[%c0_102, %c50, %c0_103] : memref<1x456x128xbf16, #tpu.memory_space<vmem>>, vector<1x384x128xbf16>
    %101 = vector.shape_cast %100 : vector<1x384x128xbf16> to vector<384x128xbf16>
    %c8 = arith.constant 8 : index
    %c0_104 = arith.constant 0 : index
    %c0_105 = arith.constant 0 : index
    %102 = vector.load %arg2[%c8, %c0_104, %c0_105] : memref<9x128x128xbf16, #tpu.memory_space<vmem>>, vector<1x128x128xbf16>
    %103 = vector.shape_cast %102 : vector<1x128x128xbf16> to vector<128x128xbf16>
    %cst_106 = arith.constant dense<0.000000e+00> : vector<384x128xf32>
    %104 = tpu.matmul %101, %103, %cst_106 {dimension_numbers = #tpu.dot_dimension_numbers<[1], [0], [0], [1], [0, 0, 1, 1], [], []>} : vector<384x128xbf16>, vector<128x128xbf16>, vector<384x128xf32> -> vector<384x128xf32>
    %105 = arith.addf %99, %104 : vector<384x128xf32>
    %c0_107 = arith.constant 0 : index
    %c0_108 = arith.constant 0 : index
    %c0_109 = arith.constant 0 : index
    %106 = vector.load %arg5[%c0_107, %c0_108, %c0_109] : memref<1x384x128xf32, #tpu.memory_space<vmem>>, vector<1x384x128xf32>
    %107 = vector.shape_cast %106 : vector<1x384x128xf32> to vector<384x128xf32>
    %108 = vector.shape_cast %105 : vector<384x128xf32> to vector<1x384x128xf32>
    tpu.vector_store %arg5[%c0_107, %c0_108, %c0_109], %108 {strides = array<i32>} : memref<1x384x128xf32, #tpu.memory_space<vmem>>, vector<1x384x128xf32>,
    return
  }
  func.func @transform_0(%arg0: i32) -> (i32, i32, i32) {
    %c0_i32 = arith.constant 0 : i32
    %c0_i32_0 = arith.constant 0 : i32
    %c0_i32_1 = arith.constant 0 : i32
    return %arg0, %c0_i32, %c0_i32_0 : i32, i32, i32
  }
  func.func @transform_1(%arg0: i32) -> (i32, i32, i32) {
    %c0_i32 = arith.constant 0 : i32
    %c0_i32_0 = arith.constant 0 : i32
    %c0_i32_1 = arith.constant 0 : i32
    %c0_i32_2 = arith.constant 0 : i32
    return %c0_i32, %c0_i32_0, %c0_i32_1 : i32, i32, i32
  }
  func.func @transform_2(%arg0: i32) -> (i32, i32) {
    %c0_i32 = arith.constant 0 : i32
    %c0_i32_0 = arith.constant 0 : i32
    %c0_i32_1 = arith.constant 0 : i32
    return %c0_i32, %c0_i32_0 : i32, i32
  }
  func.func @transform_3(%arg0: i32) -> (i32, i32, i32) {
    %c0_i32 = arith.constant 0 : i32
    %c0_i32_0 = arith.constant 0 : i32
    %c0_i32_1 = arith.constant 0 : i32
    return %arg0, %c0_i32, %c0_i32_0 : i32, i32, i32
  }
  func.func @transform_4(%arg0: i32) -> (i32, i32, i32) {
    %c0_i32 = arith.constant 0 : i32
    %c0_i32_0 = arith.constant 0 : i32
    %c0_i32_1 = arith.constant 0 : i32
    return %arg0, %c0_i32, %c0_i32_0 : i32, i32, i32
  }
}

</mosaic_0001>

<bundles_post_ra>
// kernel: res_block.7
= control target key start
LH: loop header
LB: loop body
LE: loop exit
PB: predicated region body
PF: predicated region fallthrough
CT: control target
= control target key end

     0   :  { %v433_v0 = vmov 0.0   ;;  %vm434_vm0 = vmmov 0   ;;  %s539_s1 = inlined_call_operand.vmem [shape: bf16[384,128], index: 1, kind: input, shape index: {}]   ;;  %s540_s0 = inlined_call_operand.vmem [shape: bf16[8,384], index: 0, kind: input, shape index: {}]   ;;  %s541_s2 = inlined_call_operand.vmem [shape: f32[1,128], index: 2, kind: input, shape index: {}]   ;;  %s542_s3 = inlined_call_operand.vmem [shape: f32[8,128], index: 3, kind: output, shape index: {}]  }
   0x1   :  { %384 = vmatprep.subr.bf16.mxu1 %v433_v0  ;;  %v406_v1 = vld [vmem:[%s539_s1 + $0x78] sm:$0xff]   ;;  %400 = vmatprep.mubr.msk.bf16.mxu1 %vm434_vm0, %v433_v0  ;;  %v409_v4 = vld [vmem:[%s539_s1 + $0x70] sm:$0xff]   ;;  %v412_v7 = vld [vmem:[%s539_s1 + $0x68] sm:$0xff]  }
   0x2   :  { %v407_v2 = vld [vmem:[%s539_s1 + $0xb8] sm:$0xff]   ;;  %353 = vmatprep.subr.bf16.mxu0 %v406_v1  ;;  %v410_v5 = vld [vmem:[%s539_s1 + $0xb0] sm:$0xff]   ;;  %v413_v8 = vld [vmem:[%s539_s1 + $0xa8] sm:$0xff]  }
   0x3   :  { %v408_v3 = vld [vmem:[%s539_s1 + $0x38] sm:$0xff]   ;;  %385 = vmatpush3.bf16.msra.mxu1 %v407_v2  ;;  %v411_v6 = vld [vmem:[%s539_s1 + $0x30] sm:$0xff]   ;;  %v414_v9 = vld [vmem:[%s539_s1 + $0x28] sm:$0xff]  }
   0x4   :  { %354 = vmatpush3.bf16.msra.mxu0 %v408_v3  ;;  %386 = vmatprep.subr.bf16.mxu1 %v433_v0  ;;  %v415_v10 = vld [vmem:[%s539_s1 + $0x60] sm:$0xff]   ;;  %v418_v13 = vld [vmem:[%s539_s1 + $0x58] sm:$0xff]   ;;  %v421_v16 = vld [vmem:[%s539_s1 + $0x50] sm:$0xff]  }
   0x5   :  { %355 = vmatprep.subr.bf16.mxu0 %v409_v4  ;;  %v416_v11 = vld [vmem:[%s539_s1 + $0xa0] sm:$0xff]   ;;  %v419_v14 = vld [vmem:[%s539_s1 + $0x98] sm:$0xff]   ;;  %v422_v17 = vld [vmem:[%s539_s1 + $0x90] sm:$0xff]  }
   0x6   :  { %v417_v12 = vld [vmem:[%s539_s1 + $0x20] sm:$0xff]   ;;  %v420_v15 = vld [vmem:[%s539_s1 + $0x18] sm:$0xff]   ;;  %v423_v18 = vld [vmem:[%s539_s1 + $0x10] sm:$0xff]  }
   0x7   :  { %387 = vmatpush3.bf16.msra.mxu1 %v410_v5  ;;  %v424_v19 = vld [vmem:[%s539_s1 + $0x48] sm:$0xff]   ;;  %v21_v22 = vld [vmem:[%s540_s0] sm:$0xff] }
   0x8   :  { %356 = vmatpush3.bf16.msra.mxu0 %v411_v6  ;;  %388 = vmatprep.subr.bf16.mxu1 %v433_v0  ;;  %v425_v20 = vld [vmem:[%s539_s1 + $0x88] sm:$0xff]   ;;  %v427_v23 = vld [vmem:[%s539_s1 + $0x40] sm:$0xff]   ;;  %v326_v24 = vcombine.high %v21_v22, %v21_v22  ;;  %v325_v28 = vcombine.low %v21_v22, %v21_v22 }
   0x9   :  { %357 = vmatprep.subr.bf16.mxu0 %v412_v7  ;;  %v426_v21 = vld [vmem:[%s539_s1 + $0x8] sm:$0xff]   ;;  %v428_v25 = vld [vmem:[%s539_s1 + $0x80] sm:$0xff]  }
   0xa   :  { %258 = vmatprep.mubr.bf16.mxu0 %v326_v24  ;;  %v429_v26 = vld [vmem:[%s539_s1] sm:$0xff]   ;;  %v432_v27 = vld [vmem:[%s540_s0 + $0x8] ss:$0 sps:$4 sm:$0xff]  }
   0xb   :  { %389 = vmatpush3.bf16.msra.mxu1 %v413_v8  ;;  %v352_v35 = vld [vmem:[%s541_s2] ss:$0 sm:$0xff] }
   0xc   :  { %358 = vmatpush3.bf16.msra.mxu0 %v414_v9  ;;  %390 = vmatprep.subr.bf16.mxu1 %v433_v0 }
   0xd   :  { %359 = vmatprep.subr.bf16.mxu0 %v415_v10 }
   0xf   :  { %391 = vmatpush3.bf16.msra.mxu1 %v416_v11 }
  0x10   :  { %360 = vmatpush3.bf16.msra.mxu0 %v417_v12  ;;  %392 = vmatprep.subr.bf16.mxu1 %v433_v0 }
  0x11   :  { %361 = vmatprep.subr.bf16.mxu0 %v418_v13 }
  0x13   :  { %393 = vmatpush3.bf16.msra.mxu1 %v419_v14 }
  0x14   :  { %362 = vmatpush3.bf16.msra.mxu0 %v420_v15  ;;  %394 = vmatprep.subr.bf16.mxu1 %v433_v0 }
  0x15   :  { %363 = vmatprep.subr.bf16.mxu0 %v421_v16 }
  0x17   :  { %395 = vmatpush3.bf16.msra.mxu1 %v422_v17 }
  0x18   :  { %364 = vmatpush3.bf16.msra.mxu0 %v423_v18  ;;  %396 = vmatprep.subr.bf16.mxu1 %v433_v0 }
  0x19   :  { %365 = vmatprep.subr.bf16.mxu0 %v424_v19 }
  0x1b   :  { %397 = vmatpush3.bf16.msra.mxu1 %v425_v20 }
  0x1c   :  { %366 = vmatpush3.bf16.msra.mxu0 %v426_v21  ;;  %398 = vmatprep.subr.bf16.mxu1 %v433_v0 }
  0x1d   :  { %367 = vmatprep.subr.bf16.mxu0 %v427_v23 }
  0x1f   :  { %399 = vmatpush3.bf16.msra.mxu1 %v428_v25 }
  0x20   :  { %368 = vmatpush3.bf16.msra.mxu0 %v429_v26 }
  0x22   :  { %401 = vmatmul.mubr.bf16.vlgmr.msra.gmra.mxu1 %v432_v27 }
  0x23   :  { %259 = vmatmul.mubr.bf16.vlgmr.msra.gmra.mxu0 %v325_v28 }
  0xe2   :  { %v300_v29 = vpop.f32.mrf.mxu1 }
  0xe3   :  { %v369_v30 = vpop.f32.mrf.mxu0 }
  0xe4   :  { %v402_v31 = vpop.f32.mrf.mxu1 }
  0xe5   :  { %v370_v32 = vpop.f32.mrf.mxu0 }
  0xe6   :  { %v371_v33 = vadd.f32 %v370_v32, %v369_v30  ;;  %v303_v34 = vpop.f32.mrf.mxu1 }
  0xe7   :  { %v372_v36 = vpop.f32.mrf.mxu0 }
  0xe8   :  { %v301_v37 = vadd.f32 %v371_v33, %v300_v29  ;;  %v403_v38 = vpop.f32.mrf.mxu1 }
  0xe9   :  { %v373_v39 = vpop.f32.mrf.mxu0 }
  0xea   :  { %v319_v40 = vadd.f32 %v352_v35, %v301_v37 }
  0xec   :  { %320 = vst [vmem:[%s542_s3] sm:$0xff] %v319_v40 }

// kernel: res_block.6
= control target key start
LH: loop header
LB: loop body
LE: loop exit
PB: predicated region body
PF: predicated region fallthrough
CT: control target
= control target key end

     0   :  { %9 = vsyncpa [#allocation3], 0  ;;  %s2566_s0 = inlined_call_operand.hbm [shape: f32[2,256,96], index: 0, kind: input, shape index: {}]   ;;  %s2567_s1 = inlined_call_operand.vmem [shape: f32[1,96], index: 1, kind: input, shape index: {}]   ;;  %s2568_s2 = inlined_call_operand.vmem [shape: f32[1,96], index: 2, kind: input, shape index: {}]   ;;  %s2569_s3 = inlined_call_operand.vmem [shape: f32[96,96], index: 3, kind: input, shape index: {}]   ;;  %s2570_s4 = inlined_call_operand.vmem [shape: bf16[2,256,96], index: 4, kind: output, shape index: {}]  }
   0x1   :  { %11 = vsyncpa [#allocation3 + $0x1], 0  ;;  %s1643_s15 = smov 0   ;;  %s1645_s16 = smov 0  }
   0x2   :  { %s1647_s17 = smov 0   ;;  %s1649_s18 = smov 0  }
   0x3 LB: > { %s1662_s19 = sadd.s32 4294967295, %s1611_s18   ;;  %s1665_s20 = sadd.s32 1, %s1611_s18   ;;  %s1611_s18 = sphi %s1649_s18, %s2582_s18   ;;  %s1607_s17 = sphi %s1647_s17, %s2581_s17   ;;  %s1603_s16 = sphi %s1645_s16, %s2580_s16   ;;  %s1599_s15 = sphi %s1643_s15, %s2579_s15  }
   0x4   : > { %s21_s21 = ssub.s32 %s1611_s18, %s1665_s20  ;;  %s24_s22 = sadd.s32 1, %s1607_s17 }
   0x5   : > { %p22_p0 = scmp.eq.s32.totalorder %s21_s21, 0  ;;  %p31_p1 = scmp.ne.s32.totalorder %s1607_s17, %s1603_s16 }
   0x6   : > { %p32_p2 = scmp.eq.s32.totalorder %s1611_s18, 0  ;;  %p37_p3 = scmp.ne.s32.totalorder %s1603_s16, %s1599_s15 }
   0x7   : > { %s1675_s23 = scalar_select %p22_p0, %s1607_s17, %s24_s22  }
   0x8   : > { %p33_p4 = por %p32_p2, %p31_p1  ;;  %p38_p5 = scmp.eq.s32.totalorder %s1662_s19, 0 }
   0x9   : > { %p1382_p6 = scmp.lt.s32.totalorder %s1611_s18, 2  ;;  %s159_s25 = sand.u32 1, %s1607_s17  }
   0xa   : > { %p1679_p7 = por %p38_p5, %p37_p3  ;;  %s1185_s26 = sshll.u32 %s159_s25, 8 }
   0xb   : > { %s1262_s27 = sshll.u32 %s1611_s18, 12  ;;  %s163_s5 = scalar_lea.vmem [#allocation2], %s1185_s26 }
   0xc   : > { %s2573_s24 = scalar_select %p1679_p7, 1, 0 }
   0xd   : > { %s1688_s30 = scalar_lea.hbm %s2566_s0, %s1262_s27  ;;  %s170_s6 = sshll.u32 %s163_s5, 4  ;;  %s1690_s6 = int_to_ptr.vmem [resolvable:$true] %s170_s6 }
   0xe   : > { %p1692_p8 = pnand %p1382_p6, %p33_p4  ;;  %s1697_s8 = scalar_lea.sflag [#allocation3], %s159_s25 }
   0xf   : > { %s1549_s9 = scalar_lea.hbm %s1688_s30, 4096  ;;  %s1554_s12 = scalar_lea.hbm %s2566_s0, 8192 }
  0x10   : > { %p1550_p10 = scmp.ne.s32.totalorder %s1688_s30, %s1549_s9  ;;  %p1551_p11 = pneg %p1692_p8 }
  0x11   : > { %p1555_p0 = scmp.lt.s32.totalorder %s1688_s30, %s2566_s0  ;;  %p1556_p1 = scmp.lt.s32.totalorder %s1554_s12, %s1549_s9 }
  0x12   : > { %p1552_p12 = pnand %p1551_p11, %p1550_p10 }
  0x13   : > { %p1557_p2 = por %p1556_p1, %p1555_p0 }
  0x14   : > { %p1553_p13 = pneg %p1552_p12 }
  0x16   : > { %p1558_p3 = pnand %p1557_p2, %p1553_p13 }
  0x18   : > { %1561 = shalt.err (!%p1558_p3)
}
  0x19   : > { %s1562_s15 = scalar_lea.vmem %s1690_s6, 4096  ;;  %s1613_s21 = smov [#allocation2]  }
  0x1a   : > { %p1563_p4 = scmp.ne.s32.totalorder %s1690_s6, %s1562_s15  ;;  %s1567_s22 = sshll.u32 %s1613_s21, 4  ;;  %s1568_s22 = int_to_ptr.vmem [resolvable:$false] %s1567_s22 }
  0x1b   : > { %s1569_s25 = scalar_lea.vmem %s1568_s22, 8192  ;;  %p1570_p10 = scmp.lt.s32.totalorder %s1690_s6, %s1568_s22 }
  0x1c   : > { %p1565_p5 = pnand %p1563_p4, %p1551_p11  ;;  %p1571_p12 = scmp.lt.s32.totalorder %s1569_s25, %s1562_s15 }
  0x1e   : > { %p1566_p6 = pneg %p1565_p5  ;;  %p1572_p9 = por %p1571_p12, %p1570_p10 }
  0x20   : > { %p1573_p7 = pnand %p1572_p9, %p1566_p6 }
  0x22   : > { %1576 = shalt.err (!%p1573_p7)
}
  0x23   : > { %s1614_s26 = smov 128   ;;  %s1615_s27 = smov 8  }
  0x24   : > { %1381 = dma.hbm_to_vmem [thread:$0]  (!%p1692_p8), %s1688_s30, 4096, %s1690_s6, %s1697_s8, %s1614_s26, %s1614_s26, %s1615_s27  }
  0x25   : > { %p178_p11 = scmp.lt.s32.totalorder %s1611_s18, 3  ;;  %p2575_p13 = scmp.ge.s32.totalorder %s1611_s18, 1 }
  0x27   : > { %p179_p0 = pnand %p2575_p13, %p178_p11 }
  0x29   : > { %182 = sbr.rel (%p179_p0) target bundleno = 709 (0x2c5), region = 36 }
  0x2e   : > { %s184_s28 = sand.u32 1, %s1603_s16   ;;  %p2576_p7 = scmp.ne.s32.totalorder %s2573_s24, 0 }
  0x2f   : > { %s1189_s29 = sshll.u32 %s184_s28, 8  ;;  %s185_s5 = scalar_lea.sflag [#allocation3], %s184_s28 }
  0x30   : > { %s1722_s9 = scalar_lea.vmem [#allocation2], %s1189_s29 }
  0x31   : > { %1594 = dma.done.wait (%p2576_p7), %s185_s5, 4096  }
  0x32   : > { %1596 = vsyncadd (%p2576_p7), %s185_s5, 4294963200  ;;  %v1616_v0 = vmov 0.0   ;;  %vm1617_vm0 = vmmov 0   ;;  %v331_v1 = vld [vmem:[%s2569_s3 + $0x58] sm:$0xff]  ;;  %v330_v2 = vld [vmem:[%s2569_s3 + $0x50] sm:$0xff]  ;;  %vm250_vm1 = vcmask 785408  }
  0x33   : > { %1322 = vmatprep.subr.mxu0 %v1616_v0  ;;  %1346 = vmatprep.mubr.msk.f32.mxu0 %vm1617_vm0, %v1616_v0  ;;  %v329_v3 = vld [vmem:[%s2569_s3 + $0x48] sm:$0xff]  ;;  %v328_v4 = vld [vmem:[%s2569_s3 + $0x40] sm:$0xff]  ;;  %v1754_v7 = vld [vmem:[%s1722_s9 + $0x10] sm:$0xff]  ;;  %p213_p8 = scmp.lt.s32.totalorder %s1662_s19, 1  ;;  %vm1082_vm2 = vcmask 781312  }
  0x34   : > { %1349 = vmatprep.subr.mxu1 %v1616_v0  ;;  %1373 = vmatprep.mubr.msk.f32.mxu1 %vm1617_vm0, %v1616_v0  ;;  %v1748_v5 = vld [vmem:[%s1722_s9] sm:$0xff]  ;;  %v1751_v6 = vld [vmem:[%s1722_s9 + $0x8] sm:$0xff]  ;;  %v1758_v8 = vld [vmem:[%s1722_s9 + $0x18] sm:$0xff]  ;;  %v254_v11 = vsel %vm250_vm1, %v1754_v7, 0.0 }
  0x35   : > { %1323 = vmatpush3.msra.mxu0 %v331_v1  ;;  %1350 = vmatpush3.msra.mxu1 %v331_v1  ;;  %v251_v9 = vsel %vm250_vm1, %v1748_v5, 0.0  ;;  %v252_v10 = vsel %vm250_vm1, %v1751_v6, 0.0  ;;  %v327_v12 = vld [vmem:[%s2569_s3 + $0x38] sm:$0xff]  ;;  %v1771_v13 = vld [vmem:[%s1722_s9 + $0x20] sm:$0xff]  ;;  %v256_v15 = vsel %vm250_vm1, %v1758_v8, 0.0  ;;  %v326_v16 = vld [vmem:[%s2569_s3 + $0x30] sm:$0xff] }
  0x36   : > { %1324 = vmatprep.subr.mxu0 %v1616_v0  ;;  %1351 = vmatprep.subr.mxu1 %v1616_v0  ;;  %v253_v14 = vadd.f32 %v252_v10, %v251_v9  ;;  %v1781_v17 = vld [vmem:[%s1722_s9 + $0x28] sm:$0xff]  ;;  %v258_v19 = vsel %vm250_vm1, %v1771_v13, 0.0  ;;  %v1791_v21 = vld [vmem:[%s1722_s9 + $0x30] sm:$0xff]  ;;  %v324_v24 = vld [vmem:[%s2569_s3 + $0x20] sm:$0xff]  ;;  %s2584_s19 = smov (!%p213_p8, %s1662_s19), 1 }
  0x37   : > { %1325 = vmatpush3.msra.mxu0 %v330_v2  ;;  %1352 = vmatpush3.msra.mxu1 %v330_v2  ;;  %v325_v20 = vld [vmem:[%s2569_s3 + $0x28] sm:$0xff]  ;;  %v260_v23 = vsel %vm250_vm1, %v1781_v17, 0.0  ;;  %v1801_v25 = vld [vmem:[%s1722_s9 + $0x38] sm:$0xff]  ;;  %v262_v27 = vsel %vm250_vm1, %v1791_v21, 0.0  ;;  %v1811_v29 = vld [vmem:[%s1722_s9 + $0x40] sm:$0xff]  ;;  %s1263_s11 = sshll.u32 %s2584_s19, 7 }
  0x38   : > { %1326 = vmatprep.subr.mxu0 %v1616_v0  ;;  %1353 = vmatprep.subr.mxu1 %v1616_v0  ;;  %v255_v18 = vadd.f32 %v254_v11, %v253_v14  ;;  %v323_v28 = vld [vmem:[%s2569_s3 + $0x18] sm:$0xff]  ;;  %v264_v31 = vsel %vm250_vm1, %v1801_v25, 0.0  ;;  %v322_v32 = vld [vmem:[%s2569_s3 + $0x10] sm:$0xff]  ;;  %v1821_v33 = vld [vmem:[%s1722_s9 + $0x48] sm:$0xff]  ;;  %v266_v35 = vsel %vm250_vm1, %v1811_v29, 0.0  ;;  %s2449_s14 = scalar_lea.vmem %s2570_s4, %s1263_s11 }
  0x39   : > { %1327 = vmatpush3.msra.mxu0 %v329_v3  ;;  %1354 = vmatpush3.msra.mxu1 %v329_v3  ;;  %v321_v36 = vld [vmem:[%s2569_s3 + $0x8] sm:$0xff]  ;;  %v1831_v37 = vld [vmem:[%s1722_s9 + $0x50] sm:$0xff]  ;;  %v268_v39 = vsel %vm250_vm1, %v1821_v33, 0.0  ;;  %v320_v40 = vld [vmem:[%s2569_s3] sm:$0xff] }
  0x3a   : > { %1328 = vmatprep.subr.mxu0 %v1616_v0  ;;  %1355 = vmatprep.subr.mxu1 %v1616_v0  ;;  %v257_v22 = vadd.f32 %v256_v15, %v255_v18  ;;  %v1841_v41 = vld [vmem:[%s1722_s9 + $0x58] sm:$0xff]  ;;  %v270_v43 = vsel %vm250_vm1, %v1831_v37, 0.0  ;;  %v1848_v44 = vld [vmem:[%s1722_s9 + $0x60] sm:$0xff]  ;;  %v1854_v47 = vld [vmem:[%s1722_s9 + $0x68] sm:$0xff] }
  0x3b   : > { %1329 = vmatpush3.msra.mxu0 %v328_v4  ;;  %1356 = vmatpush3.msra.mxu1 %v328_v4  ;;  %v272_v46 = vsel %vm250_vm1, %v1841_v41, 0.0  ;;  %v274_v49 = vsel %vm250_vm1, %v1848_v44, 0.0  ;;  %v1859_v50 = vld [vmem:[%s1722_s9 + $0x70] sm:$0xff]  ;;  %v276_v52 = vsel %vm250_vm1, %v1854_v47, 0.0  ;;  %v1864_v53 = vld [vmem:[%s1722_s9 + $0x78] sm:$0xff]  ;;  %v1869_v56 = vld [vmem:[%s1722_s9 + $0x80] sm:$0xff] }
  0x3c   : > { %1330 = vmatprep.subr.mxu0 %v1616_v0  ;;  %1357 = vmatprep.subr.mxu1 %v1616_v0  ;;  %v259_v26 = vadd.f32 %v258_v19, %v257_v22  ;;  %v278_v55 = vsel %vm250_vm1, %v1859_v50, 0.0  ;;  %v280_v58 = vsel %vm250_vm1, %v1864_v53, 0.0  ;;  %v1874_v59 = vld [vmem:[%s1722_s9 + $0x88] sm:$0xff]  ;;  %v282_v61 = vsel %vm250_vm1, %v1869_v56, 0.0  ;;  %v1879_v62 = vld [vmem:[%s1722_s9 + $0x90] sm:$0xff]  ;;  %v1884_v1 = vld [vmem:[%s1722_s9 + $0x98] sm:$0xff] }
  0x3d   : > { %1331 = vmatpush3.msra.mxu0 %v327_v12  ;;  %1358 = vmatpush3.msra.mxu1 %v327_v12  ;;  %v286_v3 = vsel %vm250_vm1, %v1879_v62, 0.0  ;;  %v1889_v4 = vld [vmem:[%s1722_s9 + $0xa0] sm:$0xff]  ;;  %v288_v10 = vsel %vm250_vm1, %v1884_v1, 0.0  ;;  %v1894_v11 = vld [vmem:[%s1722_s9 + $0xa8] sm:$0xff]  ;;  %v1899_v15 = vld [vmem:[%s1722_s9 + $0xb0] sm:$0xff] }
  0x3e   : > { %1332 = vmatprep.subr.mxu0 %v1616_v0  ;;  %1359 = vmatprep.subr.mxu1 %v1616_v0  ;;  %v261_v30 = vadd.f32 %v260_v23, %v259_v26  ;;  %v290_v14 = vsel %vm250_vm1, %v1889_v4, 0.0  ;;  %v292_v18 = vsel %vm250_vm1, %v1894_v11, 0.0  ;;  %v1904_v19 = vld [vmem:[%s1722_s9 + $0xb8] sm:$0xff]  ;;  %v294_v22 = vsel %vm250_vm1, %v1899_v15, 0.0  ;;  %v1909_v23 = vld [vmem:[%s1722_s9 + $0xc0] sm:$0xff] }
  0x3f   : > { %1333 = vmatpush3.msra.mxu0 %v326_v16  ;;  %1360 = vmatpush3.msra.mxu1 %v326_v16  ;;  %v296_v26 = vsel %vm250_vm1, %v1904_v19, 0.0 }
  0x40   : > { %1334 = vmatprep.subr.mxu0 %v1616_v0  ;;  %1361 = vmatprep.subr.mxu1 %v1616_v0  ;;  %v263_v34 = vadd.f32 %v262_v27, %v261_v30  ;;  %v1914_v27 = vld [vmem:[%s1722_s9 + $0xc8] sm:$0xff]  ;;  %v298_v30 = vsel %vm250_vm1, %v1909_v23, 0.0 }
  0x41   : > { %1335 = vmatpush3.msra.mxu0 %v325_v20  ;;  %1362 = vmatpush3.msra.mxu1 %v325_v20 }
  0x42   : > { %1336 = vmatprep.subr.mxu0 %v1616_v0  ;;  %1363 = vmatprep.subr.mxu1 %v1616_v0  ;;  %v265_v38 = vadd.f32 %v264_v31, %v263_v34  ;;  %v1919_v31 = vld [vmem:[%s1722_s9 + $0xd0] sm:$0xff]  ;;  %v300_v34 = vsel %vm250_vm1, %v1914_v27, 0.0 }
  0x43   : > { %1337 = vmatpush3.msra.mxu0 %v324_v24  ;;  %1364 = vmatpush3.msra.mxu1 %v324_v24 }
  0x44   : > { %1338 = vmatprep.subr.mxu0 %v1616_v0  ;;  %1365 = vmatprep.subr.mxu1 %v1616_v0  ;;  %v267_v42 = vadd.f32 %v266_v35, %v265_v38  ;;  %v1924_v35 = vld [vmem:[%s1722_s9 + $0xd8] sm:$0xff]  ;;  %v302_v38 = vsel %vm250_vm1, %v1919_v31, 0.0 }
  0x45   : > { %1339 = vmatpush3.msra.mxu0 %v323_v28  ;;  %1366 = vmatpush3.msra.mxu1 %v323_v28 }
  0x46   : > { %1340 = vmatprep.subr.mxu0 %v1616_v0  ;;  %1367 = vmatprep.subr.mxu1 %v1616_v0  ;;  %v269_v45 = vadd.f32 %v268_v39, %v267_v42  ;;  %v1929_v39 = vld [vmem:[%s1722_s9 + $0xe0] sm:$0xff]  ;;  %v304_v42 = vsel %vm250_vm1, %v1924_v35, 0.0 }
  0x47   : > { %1341 = vmatpush3.msra.mxu0 %v322_v32  ;;  %1368 = vmatpush3.msra.mxu1 %v322_v32 }
  0x48   : > { %1342 = vmatprep.subr.mxu0 %v1616_v0  ;;  %1369 = vmatprep.subr.mxu1 %v1616_v0  ;;  %v271_v48 = vadd.f32 %v270_v43, %v269_v45  ;;  %v1934_v43 = vld [vmem:[%s1722_s9 + $0xe8] sm:$0xff] }
  0x49   : > { %1343 = vmatpush3.msra.mxu0 %v321_v36  ;;  %1370 = vmatpush3.msra.mxu1 %v321_v36 }
  0x4a   : > { %1344 = vmatprep.subr.mxu0 %v1616_v0  ;;  %1371 = vmatprep.subr.mxu1 %v1616_v0  ;;  %v273_v51 = vadd.f32 %v272_v46, %v271_v48  ;;  %v284_v0 = vsel %vm250_vm1, %v1874_v59, 0.0  ;;  %v306_v46 = vsel %vm250_vm1, %v1929_v39, 0.0  ;;  %v1939_v48 = vld [vmem:[%s1722_s9 + $0xf0] sm:$0xff] }
  0x4b   : > { %1345 = vmatpush3.msra.mxu0 %v320_v40  ;;  %1372 = vmatpush3.msra.mxu1 %v320_v40 }
  0x4c   : > { %v275_v54 = vadd.f32 %v274_v49, %v273_v51  ;;  %v308_v51 = vsel %vm250_vm1, %v1934_v43, 0.0 }
  0x4e   : > { %v277_v57 = vadd.f32 %v276_v52, %v275_v54  ;;  %v1944_v52 = vld [vmem:[%s1722_s9 + $0xf8] sm:$0xff] }
  0x50   : > { %v279_v60 = vadd.f32 %v278_v55, %v277_v57  ;;  %v310_v55 = vsel %vm250_vm1, %v1939_v48, 0.0 }
  0x52   : > { %v281_v63 = vadd.f32 %v280_v58, %v279_v60  ;;  %v312_v58 = vsel %vm250_vm1, %v1944_v52, 0.0 }
  0x54   : > { %v283_v2 = vadd.f32 %v282_v61, %v281_v63 }
  0x56   : > { %v285_v9 = vadd.f32 %v284_v0, %v283_v2 }
  0x58   : > { %v287_v12 = vadd.f32 %v286_v3, %v285_v9 }
  0x5a   : > { %v289_v16 = vadd.f32 %v288_v10, %v287_v12  ;;  %v405_v12 = vlaneseq }
  0x5c   : > { %v291_v20 = vadd.f32 %v290_v14, %v289_v16  ;;  %v1951_v14 = vshrl.u32 %v405_v12, 7 }
  0x5e   : > { %v293_v24 = vadd.f32 %v292_v18, %v291_v20  ;;  %v407_v20 = vsub.s32 0, %v1951_v14  ;;  %v2196_v14 = vld [vmem:[%s2567_s1] ss:$0 sm:$0xff] }
  0x60   : > { %v295_v28 = vadd.f32 %v294_v22, %v293_v24 }
  0x62   : > { %v297_v32 = vadd.f32 %v296_v26, %v295_v28 }
  0x64   : > { %v299_v36 = vadd.f32 %v298_v30, %v297_v32 }
  0x66   : > { %v301_v40 = vadd.f32 %v300_v34, %v299_v36 }
  0x68   : > { %v303_v45 = vadd.f32 %v302_v38, %v301_v40 }
  0x6a   : > { %v305_v49 = vadd.f32 %v304_v42, %v303_v45 }
  0x6c   : > { %v307_v54 = vadd.f32 %v306_v46, %v305_v49 }
  0x6e   : > { %v309_v57 = vadd.f32 %v308_v51, %v307_v54 }
  0x70   : > { %v311_v60 = vadd.f32 %v310_v55, %v309_v57 }
  0x72   : > { %v313_v61 = vadd.f32 %v312_v58, %v311_v60 }
  0x74   : > { %v314_v63 = vrot.slane %v313_v61, 4 }
  0x76   : > { %v315_v0 = vadd.f32 %v314_v63, %v313_v61 }
  0x78   : > { %v316_v2 = vrot.slane %v315_v0, 2 }
  0x7a   : > { %v317_v3 = vadd.f32 %v316_v2, %v315_v0 }
  0x7c   : > { %v318_v9 = vrot.slane %v317_v3, 1 }
  0x7e   : > { %v319_v10 = vadd.f32 %v318_v9, %v317_v3 }
  0x80   : > { %1347 = vmatmul.mubr.msk.f32.vlgmr.msra.gmra.mxu0 %vm250_vm1, %v319_v10 }
 0x140   : > { %v401_v16 = vpop.f32.mrf.mxu0 }
 0x141   : > { %v1956_v22 = vrot.slane %v401_v16, %v407_v20 }
 0x142   : > { %v1348_v18 = vpop.f32.mrf.mxu0 }
 0x143   : > { %v1960_v24 = vsub.f32 %v1748_v5, %v1956_v22  ;;  %v1964_v26 = vsub.f32 %v1751_v6, %v1956_v22  ;;  %v1968_v28 = vsub.f32 %v1754_v7, %v1956_v22  ;;  %v1972_v30 = vsub.f32 %v1758_v8, %v1956_v22 }
 0x144   : > { %v1980_v5 = vsub.f32 %v1771_v13, %v1956_v22  ;;  %v1986_v7 = vsub.f32 %v1781_v17, %v1956_v22  ;;  %v1994_v42 = vsub.f32 %v1791_v21, %v1956_v22  ;;  %v2001_v17 = vsub.f32 %v1801_v25, %v1956_v22 }
 0x145   : > { %v441_v32 = vmul.f32 %v1960_v24, %v1960_v24  ;;  %v442_v34 = vmul.f32 %v1964_v26, %v1964_v26  ;;  %v443_v6 = vmul.f32 %v1968_v28, %v1968_v28  ;;  %v444_v8 = vmul.f32 %v1972_v30, %v1972_v30 }
 0x146   : > { %v445_v13 = vmul.f32 %v1980_v5, %v1980_v5  ;;  %v446_v49 = vmul.f32 %v1986_v7, %v1986_v7  ;;  %v2008_v21 = vsub.f32 %v1811_v29, %v1956_v22  ;;  %v447_v55 = vmul.f32 %v1994_v42, %v1994_v42 }
 0x147   : > { %v473_v36 = vsel %vm250_vm1, %v441_v32, 0.0  ;;  %v474_v38 = vsel %vm250_vm1, %v442_v34, 0.0  ;;  %v476_v45 = vsel %vm250_vm1, %v443_v6, 0.0  ;;  %v478_v51 = vsel %vm250_vm1, %v444_v8, 0.0 }
 0x148   : > { %v475_v40 = vadd.f32 %v474_v38, %v473_v36  ;;  %v480_v57 = vsel %vm250_vm1, %v445_v13, 0.0  ;;  %v2015_v25 = vsub.f32 %v1821_v33, %v1956_v22  ;;  %v448_v60 = vmul.f32 %v2001_v17, %v2001_v17 }
 0x149   : > { %v482_v61 = vsel %vm250_vm1, %v446_v49, 0.0  ;;  %v2022_v29 = vsub.f32 %v1831_v37, %v1956_v22  ;;  %v449_v0 = vmul.f32 %v2008_v21, %v2008_v21  ;;  %v484_v2 = vsel %vm250_vm1, %v447_v55, 0.0 }
 0x14a   : > { %v477_v46 = vadd.f32 %v476_v45, %v475_v40  ;;  %v2029_v33 = vsub.f32 %v1841_v41, %v1956_v22  ;;  %v450_v9 = vmul.f32 %v2015_v25, %v2015_v25  ;;  %v486_v10 = vsel %vm250_vm1, %v448_v60, 0.0 }
 0x14b   : > { %v2036_v37 = vsub.f32 %v1848_v44, %v1956_v22  ;;  %v451_v16 = vmul.f32 %v2022_v29, %v2022_v29  ;;  %v488_v18 = vsel %vm250_vm1, %v449_v0, 0.0  ;;  %v2043_v41 = vsub.f32 %v1854_v47, %v1956_v22 }
 0x14c   : > { %v479_v54 = vadd.f32 %v478_v51, %v477_v46  ;;  %v452_v34 = vmul.f32 %v2029_v33, %v2029_v33  ;;  %v490_v6 = vsel %vm250_vm1, %v450_v9, 0.0  ;;  %v2050_v44 = vsub.f32 %v1859_v50, %v1956_v22 }
 0x14d   : > { %v453_v36 = vmul.f32 %v2036_v37, %v2036_v37  ;;  %v492_v38 = vsel %vm250_vm1, %v451_v16, 0.0  ;;  %v2057_v47 = vsub.f32 %v1864_v53, %v1956_v22  ;;  %v454_v13 = vmul.f32 %v2043_v41, %v2043_v41 }
 0x14e   : > { %v481_v58 = vadd.f32 %v480_v57, %v479_v54  ;;  %v494_v45 = vsel %vm250_vm1, %v452_v34, 0.0  ;;  %v2064_v50 = vsub.f32 %v1869_v56, %v1956_v22  ;;  %v455_v49 = vmul.f32 %v2050_v44, %v2050_v44 }
 0x14f   : > { %v496_v51 = vsel %vm250_vm1, %v453_v36, 0.0  ;;  %v2071_v53 = vsub.f32 %v1874_v59, %v1956_v22  ;;  %v456_v55 = vmul.f32 %v2057_v47, %v2057_v47  ;;  %v498_v57 = vsel %vm250_vm1, %v454_v13, 0.0 }
 0x150   : > { %v483_v63 = vadd.f32 %v482_v61, %v481_v58  ;;  %v2078_v56 = vsub.f32 %v1879_v62, %v1956_v22  ;;  %v457_v60 = vmul.f32 %v2064_v50, %v2064_v50  ;;  %v500_v61 = vsel %vm250_vm1, %v455_v49, 0.0 }
 0x151   : > { %v2085_v59 = vsub.f32 %v1884_v1, %v1956_v22  ;;  %v458_v0 = vmul.f32 %v2071_v53, %v2071_v53  ;;  %v2092_v62 = vsub.f32 %v1889_v4, %v1956_v22  ;;  %v2099_v1 = vsub.f32 %v1894_v11, %v1956_v22 }
 0x152   : > { %v485_v3 = vadd.f32 %v484_v2, %v483_v63  ;;  %v502_v2 = vsel %vm250_vm1, %v456_v55, 0.0  ;;  %v459_v9 = vmul.f32 %v2078_v56, %v2078_v56  ;;  %v2106_v4 = vsub.f32 %v1899_v15, %v1956_v22 }
 0x153   : > { %v460_v16 = vmul.f32 %v2085_v59, %v2085_v59  ;;  %v461_v34 = vmul.f32 %v2092_v62, %v2092_v62  ;;  %v2113_v11 = vsub.f32 %v1904_v19, %v1956_v22  ;;  %v462_v36 = vmul.f32 %v2099_v1, %v2099_v1 }
 0x154   : > { %v487_v12 = vadd.f32 %v486_v10, %v485_v3  ;;  %v504_v10 = vsel %vm250_vm1, %v457_v60, 0.0  ;;  %v2120_v15 = vsub.f32 %v1909_v23, %v1956_v22  ;;  %v463_v13 = vmul.f32 %v2106_v4, %v2106_v4 }
 0x155   : > { %v2127_v19 = vsub.f32 %v1914_v27, %v1956_v22  ;;  %v464_v49 = vmul.f32 %v2113_v11, %v2113_v11  ;;  %v2134_v23 = vsub.f32 %v1919_v31, %v1956_v22  ;;  %v2141_v27 = vsub.f32 %v1924_v35, %v1956_v22 }
 0x156   : > { %v489_v32 = vadd.f32 %v488_v18, %v487_v12  ;;  %v506_v18 = vsel %vm250_vm1, %v458_v0, 0.0  ;;  %v465_v55 = vmul.f32 %v2120_v15, %v2120_v15  ;;  %v2148_v31 = vsub.f32 %v1929_v39, %v1956_v22 }
 0x157   : > { %v466_v60 = vmul.f32 %v2127_v19, %v2127_v19  ;;  %v467_v0 = vmul.f32 %v2134_v23, %v2134_v23  ;;  %v2155_v35 = vsub.f32 %v1934_v43, %v1956_v22  ;;  %v2162_v39 = vsub.f32 %v1939_v48, %v1956_v22 }
 0x158   : > { %v491_v8 = vadd.f32 %v490_v6, %v489_v32  ;;  %v508_v6 = vsel %vm250_vm1, %v459_v9, 0.0  ;;  %v468_v9 = vmul.f32 %v2141_v27, %v2141_v27  ;;  %v2169_v43 = vsub.f32 %v1944_v52, %v1956_v22 }
 0x159   : > { %v471_v48 = vmul.f32 %v2162_v39, %v2162_v39 }
 0x15a   : > { %v493_v40 = vadd.f32 %v492_v38, %v491_v8  ;;  %v510_v38 = vsel %vm250_vm1, %v460_v16, 0.0  ;;  %v469_v16 = vmul.f32 %v2148_v31, %v2148_v31 }
 0x15b   : > { %v532_v52 = vsel %vm250_vm1, %v471_v48, 0.0 }
 0x15c   : > { %v495_v46 = vadd.f32 %v494_v45, %v493_v40  ;;  %v512_v45 = vsel %vm250_vm1, %v461_v34, 0.0  ;;  %v470_v34 = vmul.f32 %v2155_v35, %v2155_v35 }
 0x15e   : > { %v497_v54 = vadd.f32 %v496_v51, %v495_v46  ;;  %v514_v51 = vsel %vm250_vm1, %v462_v36, 0.0  ;;  %v528_v36 = vsel %vm250_vm1, %v469_v16, 0.0 }
 0x160   : > { %v499_v58 = vadd.f32 %v498_v57, %v497_v54  ;;  %v516_v57 = vsel %vm250_vm1, %v463_v13, 0.0  ;;  %v530_v13 = vsel %vm250_vm1, %v470_v34, 0.0 }
 0x162   : > { %v501_v63 = vadd.f32 %v500_v61, %v499_v58  ;;  %v518_v61 = vsel %vm250_vm1, %v464_v49, 0.0 }
 0x164   : > { %v503_v3 = vadd.f32 %v502_v2, %v501_v63  ;;  %v520_v2 = vsel %vm250_vm1, %v465_v55, 0.0 }
 0x166   : > { %v505_v12 = vadd.f32 %v504_v10, %v503_v3  ;;  %v522_v10 = vsel %vm250_vm1, %v466_v60, 0.0 }
 0x168   : > { %v507_v32 = vadd.f32 %v506_v18, %v505_v12  ;;  %v524_v18 = vsel %vm250_vm1, %v467_v0, 0.0 }
 0x16a   : > { %v509_v8 = vadd.f32 %v508_v6, %v507_v32  ;;  %v526_v6 = vsel %vm250_vm1, %v468_v9, 0.0 }
 0x16c   : > { %v511_v40 = vadd.f32 %v510_v38, %v509_v8 }
 0x16e   : > { %v513_v46 = vadd.f32 %v512_v45, %v511_v40  ;;  %v472_v40 = vmul.f32 %v2169_v43, %v2169_v43 }
 0x170   : > { %v515_v54 = vadd.f32 %v514_v51, %v513_v46  ;;  %v534_v46 = vsel %vm250_vm1, %v472_v40, 0.0 }
 0x172   : > { %v517_v58 = vadd.f32 %v516_v57, %v515_v54 }
 0x174   : > { %v519_v63 = vadd.f32 %v518_v61, %v517_v58 }
 0x176   : > { %v521_v3 = vadd.f32 %v520_v2, %v519_v63 }
 0x178   : > { %v523_v12 = vadd.f32 %v522_v10, %v521_v3 }
 0x17a   : > { %v525_v32 = vadd.f32 %v524_v18, %v523_v12 }
 0x17c   : > { %v527_v8 = vadd.f32 %v526_v6, %v525_v32 }
 0x17e   : > { %v529_v38 = vadd.f32 %v528_v36, %v527_v8 }
 0x180   : > { %v531_v45 = vadd.f32 %v530_v13, %v529_v38 }
 0x182   : > { %v533_v22 = vadd.f32 %v532_v52, %v531_v45 }
 0x184   : > { %v535_v49 = vadd.f32 %v534_v46, %v533_v22 }
 0x186   : > { %v536_v51 = vrot.slane %v535_v49, 4 }
 0x188   : > { %v537_v54 = vadd.f32 %v536_v51, %v535_v49 }
 0x18a   : > { %v538_v55 = vrot.slane %v537_v54, 2 }
 0x18c   : > { %v539_v57 = vadd.f32 %v538_v55, %v537_v54 }
 0x18e   : > { %v540_v58 = vrot.slane %v539_v57, 1 }
 0x190   : > { %v541_v60 = vadd.f32 %v540_v58, %v539_v57 }
 0x192   : > { %1374 = vmatmul.mubr.msk.f32.vlgmr.msra.gmra.mxu1 %vm250_vm1, %v541_v60 }
 0x252   : > { %v611_v61 = vpop.f32.mrf.mxu1 }
 0x253   : > { %v612_v0 = vadd.f32 1e-05, %v611_v61 }
 0x254   : > { %v1375_v63 = vpop.f32.mrf.mxu1 }
 0x255   : > { %1419 = vrsqrt.f32 %v612_v0 }
 0x262   : > { %v1420_v2 = vpop.eup %1419 }
 0x263   : > { %v619_v3 = vrot.slane %v1420_v2, %v407_v20 }
 0x265   : > { %v620_v9 = vmul.f32 %v619_v3, %v1960_v24  ;;  %v621_v10 = vmul.f32 %v619_v3, %v1964_v26  ;;  %v622_v12 = vmul.f32 %v619_v3, %v1968_v28  ;;  %v623_v16 = vmul.f32 %v619_v3, %v1972_v30 }
 0x266   : > { %v624_v18 = vmul.f32 %v619_v3, %v1980_v5  ;;  %v625_v32 = vmul.f32 %v619_v3, %v1986_v7  ;;  %v626_v34 = vmul.f32 %v619_v3, %v1994_v42  ;;  %v627_v6 = vmul.f32 %v619_v3, %v2001_v17 }
 0x267   : > { %v628_v20 = vmul.f32 %v619_v3, %v2008_v21  ;;  %v629_v24 = vmul.f32 %v619_v3, %v2015_v25  ;;  %v630_v26 = vmul.f32 %v619_v3, %v2022_v29  ;;  %v631_v28 = vmul.f32 %v619_v3, %v2029_v33 }
 0x268   : > { %v632_v30 = vmul.f32 %v619_v3, %v2036_v37  ;;  %v633_v5 = vmul.f32 %v619_v3, %v2043_v41  ;;  %v634_v7 = vmul.f32 %v619_v3, %v2050_v44  ;;  %v635_v42 = vmul.f32 %v619_v3, %v2057_v47  ;;  %v2219_v44 = vld [vmem:[%s2568_s2] ss:$0 sm:$0xff] }
 0x269   : > { %v636_v17 = vmul.f32 %v619_v3, %v2064_v50  ;;  %v659_v8 = vmul.f32 %v2196_v14, %v620_v9  ;;  %v660_v21 = vmul.f32 %v2196_v14, %v621_v10  ;;  %v661_v25 = vmul.f32 %v2196_v14, %v622_v12 }
 0x26a   : > { %v637_v29 = vmul.f32 %v619_v3, %v2071_v53  ;;  %v638_v33 = vmul.f32 %v619_v3, %v2078_v56  ;;  %v2213_v37 = vmul.f32 %v619_v3, %v2085_v59  ;;  %v662_v41 = vmul.f32 %v2196_v14, %v623_v16 }
 0x26b   : > { %v2222_v47 = vmul.f32 %v619_v3, %v2092_v62  ;;  %v2225_v50 = vmul.f32 %v619_v3, %v2099_v1  ;;  %v2228_v53 = vmul.f32 %v619_v3, %v2106_v4  ;;  %v663_v56 = vmul.f32 %v2196_v14, %v624_v18 }
 0x26c   : > { %v2232_v59 = vmul.f32 %v619_v3, %v2113_v11  ;;  %v2235_v48 = vmul.f32 %v619_v3, %v2120_v15  ;;  %v2238_v36 = vmul.f32 %v619_v3, %v2127_v19  ;;  %v664_v62 = vmul.f32 %v2196_v14, %v625_v32 }
 0x26d   : > { %v665_v38 = vmul.f32 %v2196_v14, %v626_v34  ;;  %v2243_v1 = vadd.f32 %v2219_v44, %v659_v8  ;;  %v2246_v4 = vadd.f32 %v2219_v44, %v660_v21  ;;  %v2249_v40 = vadd.f32 %v2219_v44, %v661_v25 }
 0x26e   : > { %v2252_v11 = vmul.f32 %v619_v3, %v2134_v23  ;;  %v2255_v15 = vmul.f32 %v619_v3, %v2141_v27  ;;  %v666_v19 = vmul.f32 %v2196_v14, %v627_v6  ;;  %v2259_v13 = vadd.f32 %v2219_v44, %v662_v41 }
 0x26f   : > { %v2262_v45 = vmul.f32 %v619_v3, %v2148_v31  ;;  %v2265_v52 = vmul.f32 %v619_v3, %v2155_v35  ;;  %v667_v22 = vmul.f32 %v2196_v14, %v628_v20  ;;  %v2269_v46 = vadd.f32 %v2219_v44, %v663_v56 }
 0x270   : > { %v2272_v23 = vmul.f32 %v619_v3, %v2162_v39  ;;  %v668_v27 = vmul.f32 %v2196_v14, %v629_v24  ;;  %v669_v49 = vmul.f32 %v2196_v14, %v630_v26  ;;  %v2277_v51 = vadd.f32 %v2219_v44, %v664_v62 }
 0x271   : > { %v2280_v31 = vadd.f32 %v2219_v44, %v665_v38  ;;  %v1196_v35 = vmul.f32 -1.442695, %v2243_v1  ;;  %v1197_v54 = vmul.f32 -1.442695, %v2246_v4  ;;  %v1198_v55 = vmul.f32 -1.442695, %v2249_v40 }
 0x272   : > { %v2286_v57 = vmul.f32 %v619_v3, %v2169_v43  ;;  %v670_v39 = vmul.f32 %v2196_v14, %v631_v28  ;;  %v2290_v58 = vadd.f32 %v2219_v44, %v666_v19  ;;  %v1199_v60 = vmul.f32 -1.442695, %v2259_v13 }
 0x273   : > { %v671_v61 = vmul.f32 %v2196_v14, %v632_v30  ;;  %v2295_v63 = vadd.f32 %v2219_v44, %v667_v22  ;;  %1421 = vpow2.f32 %v1196_v35  ;;  %v1200_v0 = vmul.f32 -1.442695, %v2269_v46 }
 0x274   : > { %v672_v2 = vmul.f32 %v2196_v14, %v633_v5  ;;  %v2300_v43 = vadd.f32 %v2219_v44, %v668_v27  ;;  %1423 = vpow2.f32 %v1197_v54  ;;  %v1201_v3 = vmul.f32 -1.442695, %v2277_v51 }
 0x275   : > { %v673_v9 = vmul.f32 %v2196_v14, %v634_v7  ;;  %v2305_v10 = vadd.f32 %v2219_v44, %v669_v49  ;;  %1425 = vpow2.f32 %v1198_v55  ;;  %v1202_v12 = vmul.f32 -1.442695, %v2280_v31 }
 0x276   : > { %v674_v16 = vmul.f32 %v2196_v14, %v635_v42  ;;  %v2310_v18 = vadd.f32 %v2219_v44, %v670_v39  ;;  %1427 = vpow2.f32 %v1199_v60  ;;  %v1203_v32 = vmul.f32 -1.442695, %v2290_v58 }
 0x277   : > { %v675_v34 = vmul.f32 %v2196_v14, %v636_v17  ;;  %v2315_v6 = vadd.f32 %v2219_v44, %v671_v61  ;;  %1429 = vpow2.f32 %v1200_v0  ;;  %v1204_v20 = vmul.f32 -1.442695, %v2295_v63 }
 0x278   : > { %v676_v24 = vmul.f32 %v2196_v14, %v637_v29  ;;  %v2320_v26 = vadd.f32 %v2219_v44, %v672_v2  ;;  %1431 = vpow2.f32 %v1201_v3  ;;  %v1205_v28 = vmul.f32 -1.442695, %v2300_v43 }
 0x279   : > { %v677_v30 = vmul.f32 %v2196_v14, %v638_v33  ;;  %v2325_v5 = vadd.f32 %v2219_v44, %v673_v9  ;;  %1433 = vpow2.f32 %v1202_v12  ;;  %v1206_v7 = vmul.f32 -1.442695, %v2305_v10 }
 0x27a   : > { %v678_v42 = vmul.f32 %v2196_v14, %v2213_v37  ;;  %v2331_v17 = vadd.f32 %v2219_v44, %v674_v16  ;;  %1435 = vpow2.f32 %v1203_v32  ;;  %v1207_v8 = vmul.f32 -1.442695, %v2310_v18 }
 0x27b   : > { %v679_v21 = vmul.f32 %v2196_v14, %v2222_v47  ;;  %v2337_v25 = vadd.f32 %v2219_v44, %v675_v34  ;;  %1437 = vpow2.f32 %v1204_v20  ;;  %v1208_v29 = vmul.f32 -1.442695, %v2315_v6 }
 0x27c   : > { %v680_v33 = vmul.f32 %v2196_v14, %v2225_v50  ;;  %v2343_v37 = vadd.f32 %v2219_v44, %v676_v24  ;;  %1439 = vpow2.f32 %v1205_v28  ;;  %v1209_v41 = vmul.f32 -1.442695, %v2320_v26 }
 0x27d   : > { %v681_v56 = vmul.f32 %v2196_v14, %v2228_v53  ;;  %v2349_v47 = vadd.f32 %v2219_v44, %v677_v30  ;;  %1441 = vpow2.f32 %v1206_v7  ;;  %v1210_v62 = vmul.f32 -1.442695, %v2325_v5 }
 0x27e   : > { %v682_v38 = vmul.f32 %v2196_v14, %v2232_v59  ;;  %v2355_v50 = vadd.f32 %v2219_v44, %v678_v42  ;;  %1443 = vpow2.f32 %v1207_v8  ;;  %v1211_v19 = vmul.f32 -1.442695, %v2331_v17 }
 0x27f   : > { %v683_v22 = vmul.f32 %v2196_v14, %v2235_v48  ;;  %v2361_v53 = vadd.f32 %v2219_v44, %v679_v21  ;;  %1445 = vpow2.f32 %v1208_v29  ;;  %v1212_v27 = vmul.f32 -1.442695, %v2337_v25 }
 0x280   : > { %v2364_v49 = vpop.eup %1421  ;;  %v684_v59 = vmul.f32 %v2196_v14, %v2238_v36  ;;  %v2369_v35 = vadd.f32 %v2219_v44, %v680_v33  ;;  %1447 = vpow2.f32 %v1209_v41  ;;  %v1213_v54 = vmul.f32 -1.442695, %v2343_v37 }
 0x281   : > { %v1424_v55 = vpop.eup %1423  ;;  %v685_v48 = vmul.f32 %v2196_v14, %v2252_v11  ;;  %v2375_v39 = vadd.f32 %v2219_v44, %v681_v56  ;;  %1449 = vpow2.f32 %v1210_v62  ;;  %v1214_v60 = vmul.f32 -1.442695, %v2349_v47 }
 0x282   : > { %v1426_v61 = vpop.eup %1425  ;;  %v686_v36 = vmul.f32 %v2196_v14, %v2255_v15  ;;  %v2381_v0 = vadd.f32 %v2219_v44, %v682_v38  ;;  %1451 = vpow2.f32 %v1211_v19  ;;  %v1215_v2 = vmul.f32 -1.442695, %v2355_v50 }
 0x283   : > { %v1428_v3 = vpop.eup %1427  ;;  %v687_v11 = vmul.f32 %v2196_v14, %v2262_v45  ;;  %v2387_v9 = vadd.f32 %v2219_v44, %v683_v22  ;;  %1453 = vpow2.f32 %v1212_v27  ;;  %v1216_v12 = vmul.f32 -1.442695, %v2361_v53 }
 0x284   : > { %v1430_v16 = vpop.eup %1429  ;;  %v688_v15 = vmul.f32 %v2196_v14, %v2265_v52  ;;  %v2393_v32 = vadd.f32 %v2219_v44, %v684_v59  ;;  %1455 = vpow2.f32 %v1213_v54  ;;  %v1217_v34 = vmul.f32 -1.442695, %v2369_v35 }
 0x285   : > { %v1432_v20 = vpop.eup %1431  ;;  %v689_v45 = vmul.f32 %v2196_v14, %v2272_v23  ;;  %v2399_v24 = vadd.f32 %v2219_v44, %v685_v48  ;;  %1457 = vpow2.f32 %v1214_v60  ;;  %v1218_v28 = vmul.f32 -1.442695, %v2375_v39 }
 0x286   : > { %v1434_v30 = vpop.eup %1433  ;;  %v690_v52 = vmul.f32 %v2196_v14, %v2286_v57  ;;  %v2405_v7 = vadd.f32 %v2219_v44, %v686_v36  ;;  %1459 = vpow2.f32 %v1215_v2  ;;  %v1219_v42 = vmul.f32 -1.442695, %v2381_v0 }
 0x287   : > { %v1436_v8 = vpop.eup %1435  ;;  %v2409_v21 = vadd.f32 %v2219_v44, %v687_v11  ;;  %1461 = vpow2.f32 %v1216_v12  ;;  %v1220_v23 = vmul.f32 -1.442695, %v2387_v9  ;;  %v2413_v33 = vadd.f32 %v2219_v44, %v688_v15 }
 0x288   : > { %v1438_v29 = vpop.eup %1437  ;;  %1463 = vpow2.f32 %v1217_v34  ;;  %v1221_v14 = vmul.f32 -1.442695, %v2393_v32  ;;  %v2417_v41 = vadd.f32 %v2219_v44, %v689_v45  ;;  %v1222_v56 = vmul.f32 -1.442695, %v2399_v24 }
 0x289   : > { %v1440_v57 = vpop.eup %1439  ;;  %1465 = vpow2.f32 %v1218_v28  ;;  %v2421_v38 = vadd.f32 %v2219_v44, %v690_v52  ;;  %v1223_v19 = vmul.f32 -1.442695, %v2405_v7  ;;  %v1224_v27 = vmul.f32 -1.442695, %v2409_v21 }
 0x28a   : > { %v1442_v62 = vpop.eup %1441  ;;  %1467 = vpow2.f32 %v1219_v42  ;;  %v1225_v54 = vmul.f32 -1.442695, %v2413_v33  ;;  %v1226_v60 = vmul.f32 -1.442695, %v2417_v41  ;;  %v826_v11 = vadd.f32 1.0, %v2364_v49 }
 0x28b   : > { %2577 = vst [vmem:[#allocation5_spill] sm:$0xff] %v2421_v38  ;;  %v1444_v22 = vpop.eup %1443  ;;  %1469 = vpow2.f32 %v1220_v23  ;;  %v1227_v44 = vmul.f32 -1.442695, %v2421_v38  ;;  %v827_v15 = vadd.f32 1.0, %v1424_v55  ;;  %v828_v45 = vadd.f32 1.0, %v1426_v61 }
 0x28c   : > { %v1446_v59 = vpop.eup %1445  ;;  %1471 = vpow2.f32 %v1221_v14  ;;  %v829_v52 = vadd.f32 1.0, %v1428_v3  ;;  %v830_v23 = vadd.f32 1.0, %v1430_v16  ;;  %v833_v38 = vadd.f32 1.0, %v1436_v8 }
 0x28d   : > { %v1448_v48 = vpop.eup %1447  ;;  %1473 = vpow2.f32 %v1222_v56  ;;  %v831_v56 = vadd.f32 1.0, %v1432_v20  ;;  %v834_v61 = vadd.f32 1.0, %v1438_v29  ;;  %v836_v16 = vadd.f32 1.0, %v1442_v62 }
 0x28e   : > { %v1450_v36 = vpop.eup %1449  ;;  %1475 = vpow2.f32 %v1223_v19  ;;  %v838_v8 = vadd.f32 1.0, %v1446_v59  ;;  %v839_v29 = vadd.f32 1.0, %v1448_v48 }
 0x28f   : > { %v1452_v2 = vpop.eup %1451  ;;  %1477 = vpow2.f32 %v1224_v27  ;;  %v832_v27 = vadd.f32 1.0, %v1434_v30 }
 0x290   : > { %v1454_v12 = vpop.eup %1453  ;;  %1479 = vpow2.f32 %v1225_v54  ;;  %v841_v62 = vadd.f32 1.0, %v1452_v2 }
 0x291   : > { %v1456_v34 = vpop.eup %1455  ;;  %1481 = vpow2.f32 %v1226_v60  ;;  %v835_v60 = vadd.f32 1.0, %v1440_v57  ;;  %v840_v57 = vadd.f32 1.0, %v1450_v36 }
 0x292   : > { %v1458_v28 = vpop.eup %1457  ;;  %1483 = vpow2.f32 %v1227_v44  ;;  %v837_v44 = vadd.f32 1.0, %v1444_v22  ;;  %v843_v59 = vadd.f32 1.0, %v1456_v34 }
 0x293   : > { %v1460_v42 = vpop.eup %1459  ;;  %1485 = vrcp.f32 %v826_v11 }
 0x294   : > { %v1462_v14 = vpop.eup %1461  ;;  %1487 = vrcp.f32 %v827_v15  ;;  %v845_v36 = vadd.f32 1.0, %v1460_v42 }
 0x295   : > { %v1464_v19 = vpop.eup %1463  ;;  %1489 = vrcp.f32 %v828_v45  ;;  %v846_v34 = vadd.f32 1.0, %v1462_v14 }
 0x296   : > { %v1466_v49 = vpop.eup %1465  ;;  %1491 = vrcp.f32 %v829_v52 }
 0x297   : > { %v1468_v55 = vpop.eup %1467  ;;  %1493 = vrcp.f32 %v830_v23  ;;  %v848_v42 = vadd.f32 1.0, %v1466_v49 }
 0x298   : > { %v1470_v54 = vpop.eup %1469  ;;  %1495 = vrcp.f32 %v831_v56  ;;  %v844_v56 = vadd.f32 1.0, %v1458_v28 }
 0x299   : > { %v2430_v3 = vpop.eup %1471  ;;  %1497 = vrcp.f32 %v832_v27 }
 0x29a   : > { %v2432_v20 = vpop.eup %1473  ;;  %1499 = vrcp.f32 %v833_v38  ;;  %v842_v38 = vadd.f32 1.0, %v1454_v12 }
 0x29b   : > { %v2434_v30 = vpop.eup %1475  ;;  %1501 = vrcp.f32 %v834_v61 }
 0x29c   : > { %v2437_v11 = vpop.eup %1477  ;;  %1503 = vrcp.f32 %v835_v60 }
 0x29d   : > { %v2439_v15 = vpop.eup %1479  ;;  %1505 = vrcp.f32 %v836_v16 }
 0x29e   : > { %v2441_v45 = vpop.eup %1481  ;;  %1507 = vrcp.f32 %v837_v44 }
 0x29f   : > { %v2443_v52 = vpop.eup %1483  ;;  %1509 = vrcp.f32 %v838_v8 }
 0x2a0   : > { %v1486_v22 = vpop.eup %1485  ;;  %1511 = vrcp.f32 %v839_v29 }
 0x2a1   : > { %v1488_v23 = vpop.eup %1487  ;;  %1513 = vrcp.f32 %v840_v57  ;;  %v922_v48 = vmul.f32 %v1486_v22, %v2243_v1  ;;  %v847_v1 = vadd.f32 1.0, %v1464_v19  ;;  %v849_v57 = vadd.f32 1.0, %v1468_v55 }
 0x2a2   : > { %v1490_v27 = vpop.eup %1489  ;;  %1515 = vrcp.f32 %v841_v62  ;;  %v923_v2 = vmul.f32 %v1488_v23, %v2246_v4  ;;  %v850_v62 = vadd.f32 1.0, %v1470_v54  ;;  %v851_v22 = vadd.f32 1.0, %v2430_v3 }
 0x2a3   : > { %v1492_v12 = vpop.eup %1491  ;;  %1517 = vrcp.f32 %v842_v38  ;;  %v924_v28 = vmul.f32 %v1490_v27, %v2249_v40  ;;  %v1264_v61 = vpack.c.bf16 %v922_v48, %v922_v48  ;;  %v852_v54 = vadd.f32 1.0, %v2432_v20 }
 0x2a4   : > { %v1494_v60 = vpop.eup %1493  ;;  %1519 = vrcp.f32 %v843_v59  ;;  %v925_v16 = vmul.f32 %v1492_v12, %v2259_v13  ;;  %v1265_v44 = vpack.c.bf16 %v923_v2, %v923_v2  ;;  %v853_v3 = vadd.f32 1.0, %v2434_v30 }
 0x2a5   : > { %v1496_v8 = vpop.eup %1495  ;;  %1521 = vrcp.f32 %v844_v56  ;;  %v926_v4 = vmul.f32 %v1494_v60, %v2269_v46  ;;  %v1266_v29 = vpack.c.bf16 %v924_v28, %v924_v28  ;;  %1083 = vst.msk [vmem:[%s2449_s14] sm:$0xf] %vm1082_vm2, %v1264_v61  ;;  %v854_v20 = vadd.f32 1.0, %v2437_v11 }
 0x2a6   : > { %v1498_v14 = vpop.eup %1497  ;;  %1523 = vrcp.f32 %v845_v36  ;;  %v927_v40 = vmul.f32 %v1496_v8, %v2277_v51  ;;  %v1267_v19 = vpack.c.bf16 %v925_v16, %v925_v16  ;;  %1084 = vst.msk [vmem:[%s2449_s14 + $0x4] sm:$0xf] %vm1082_vm2, %v1265_v44  ;;  %v855_v30 = vadd.f32 1.0, %v2439_v15 }
 0x2a7   : > { %v1500_v13 = vpop.eup %1499  ;;  %1525 = vrcp.f32 %v846_v34  ;;  %v928_v49 = vmul.f32 %v1498_v14, %v2280_v31  ;;  %v1268_v38 = vpack.c.bf16 %v926_v4, %v926_v4  ;;  %1085 = vst.msk [vmem:[%s2449_s14 + $0x8] sm:$0xf] %vm1082_vm2, %v1266_v29  ;;  %v856_v11 = vadd.f32 1.0, %v2441_v45 }
 0x2a8   : > { %v1502_v46 = vpop.eup %1501  ;;  %1527 = vrcp.f32 %v847_v1  ;;  %v929_v55 = vmul.f32 %v1500_v13, %v2290_v58  ;;  %v1269_v51 = vpack.c.bf16 %v927_v40, %v927_v40  ;;  %1086 = vst.msk [vmem:[%s2449_s14 + $0xc] sm:$0xf] %vm1082_vm2, %v1267_v19  ;;  %v857_v15 = vadd.f32 1.0, %v2443_v52 }
 0x2a9   : > { %v1504_v59 = vpop.eup %1503  ;;  %1529 = vrcp.f32 %v848_v42  ;;  %v930_v31 = vmul.f32 %v1502_v46, %v2295_v63  ;;  %v1270_v23 = vpack.c.bf16 %v928_v49, %v928_v49  ;;  %1087 = vst.msk [vmem:[%s2449_s14 + $0x10] sm:$0xf] %vm1082_vm2, %v1268_v38 }
 0x2aa   : > { %v1506_v56 = vpop.eup %1505  ;;  %1531 = vrcp.f32 %v849_v57  ;;  %v931_v58 = vmul.f32 %v1504_v59, %v2300_v43  ;;  %v1271_v48 = vpack.c.bf16 %v929_v55, %v929_v55  ;;  %1088 = vst.msk [vmem:[%s2449_s14 + $0x14] sm:$0xf] %vm1082_vm2, %v1269_v51 }
 0x2ab   : > { %v1508_v27 = vpop.eup %1507  ;;  %1533 = vrcp.f32 %v850_v62  ;;  %v932_v63 = vmul.f32 %v1506_v56, %v2305_v10  ;;  %v1272_v36 = vpack.c.bf16 %v930_v31, %v930_v31  ;;  %1089 = vst.msk [vmem:[%s2449_s14 + $0x18] sm:$0xf] %vm1082_vm2, %v1270_v23 }
 0x2ac   : > { %v1510_v2 = vpop.eup %1509  ;;  %1535 = vrcp.f32 %v851_v22  ;;  %v933_v43 = vmul.f32 %v1508_v27, %v2310_v18  ;;  %v1273_v12 = vpack.c.bf16 %v931_v58, %v931_v58  ;;  %1090 = vst.msk [vmem:[%s2449_s14 + $0x1c] sm:$0xf] %vm1082_vm2, %v1271_v48 }
 0x2ad   : > { %v1512_v34 = vpop.eup %1511  ;;  %1537 = vrcp.f32 %v852_v54  ;;  %v934_v10 = vmul.f32 %v1510_v2, %v2315_v6  ;;  %v1274_v28 = vpack.c.bf16 %v932_v63, %v932_v63  ;;  %1091 = vst.msk [vmem:[%s2449_s14 + $0x20] sm:$0xf] %vm1082_vm2, %v1272_v36 }
 0x2ae   : > { %v1514_v61 = vpop.eup %1513  ;;  %1539 = vrcp.f32 %v853_v3  ;;  %v935_v18 = vmul.f32 %v1512_v34, %v2320_v26  ;;  %v1275_v60 = vpack.c.bf16 %v933_v43, %v933_v43  ;;  %1092 = vst.msk [vmem:[%s2449_s14 + $0x24] sm:$0xf] %vm1082_vm2, %v1273_v12  ;;  %v2578_v43 = vld [vmem:[#allocation5_spill] sm:$0xff] }
 0x2af   : > { %v1516_v1 = vpop.eup %1515  ;;  %1541 = vrcp.f32 %v854_v20  ;;  %v936_v45 = vmul.f32 %v1514_v61, %v2325_v5  ;;  %v1276_v16 = vpack.c.bf16 %v934_v10, %v934_v10  ;;  %1093 = vst.msk [vmem:[%s2449_s14 + $0x28] sm:$0xf] %vm1082_vm2, %v1274_v28 }
 0x2b0   : > { %v1518_v6 = vpop.eup %1517  ;;  %1543 = vrcp.f32 %v855_v30  ;;  %v937_v44 = vmul.f32 %v1516_v1, %v2331_v17  ;;  %v1277_v52 = vpack.c.bf16 %v935_v18, %v935_v18  ;;  %1094 = vst.msk [vmem:[%s2449_s14 + $0x2c] sm:$0xf] %vm1082_vm2, %v1275_v60 }
 0x2b1   : > { %v1520_v26 = vpop.eup %1519  ;;  %1545 = vrcp.f32 %v856_v11  ;;  %v938_v8 = vmul.f32 %v1518_v6, %v2337_v25  ;;  %v1278_v42 = vpack.c.bf16 %v936_v45, %v936_v45  ;;  %1095 = vst.msk [vmem:[%s2449_s14 + $0x30] sm:$0xf] %vm1082_vm2, %v1276_v16 }
 0x2b2   : > { %v1522_v5 = vpop.eup %1521  ;;  %1547 = vrcp.f32 %v857_v15  ;;  %v939_v4 = vmul.f32 %v1520_v26, %v2343_v37  ;;  %v1279_v29 = vpack.c.bf16 %v937_v44, %v937_v44  ;;  %1096 = vst.msk [vmem:[%s2449_s14 + $0x34] sm:$0xf] %vm1082_vm2, %v1277_v52 }
 0x2b3   : > { %v1524_v17 = vpop.eup %1523  ;;  %v940_v14 = vmul.f32 %v1522_v5, %v2349_v47  ;;  %v1280_v57 = vpack.c.bf16 %v938_v8, %v938_v8  ;;  %1097 = vst.msk [vmem:[%s2449_s14 + $0x38] sm:$0xf] %vm1082_vm2, %v1278_v42 }
 0x2b4   : > { %v1526_v25 = vpop.eup %1525  ;;  %v941_v40 = vmul.f32 %v1524_v17, %v2355_v50  ;;  %v1281_v19 = vpack.c.bf16 %v939_v4, %v939_v4  ;;  %1098 = vst.msk [vmem:[%s2449_s14 + $0x3c] sm:$0xf] %vm1082_vm2, %v1279_v29 }
 0x2b5   : > { %v1528_v13 = vpop.eup %1527  ;;  %v942_v37 = vmul.f32 %v1526_v25, %v2361_v53  ;;  %v1282_v62 = vpack.c.bf16 %v940_v14, %v940_v14  ;;  %1099 = vst.msk [vmem:[%s2449_s14 + $0x40] sm:$0xf] %vm1082_vm2, %v1280_v57 }
 0x2b6   : > { %v1530_v49 = vpop.eup %1529  ;;  %v943_v47 = vmul.f32 %v1528_v13, %v2369_v35  ;;  %v1283_v38 = vpack.c.bf16 %v941_v40, %v941_v40  ;;  %1100 = vst.msk [vmem:[%s2449_s14 + $0x44] sm:$0xf] %vm1082_vm2, %v1281_v19 }
 0x2b7   : > { %v1532_v46 = vpop.eup %1531  ;;  %v944_v50 = vmul.f32 %v1530_v49, %v2375_v39  ;;  %v1284_v22 = vpack.c.bf16 %v942_v37, %v942_v37  ;;  %1101 = vst.msk [vmem:[%s2449_s14 + $0x48] sm:$0xf] %vm1082_vm2, %v1282_v62 }
 0x2b8   : > { %v1534_v55 = vpop.eup %1533  ;;  %v945_v53 = vmul.f32 %v1532_v46, %v2381_v0  ;;  %v1285_v51 = vpack.c.bf16 %v943_v47, %v943_v47  ;;  %1102 = vst.msk [vmem:[%s2449_s14 + $0x4c] sm:$0xf] %vm1082_vm2, %v1283_v38 }
 0x2b9   : > { %v1536_v59 = vpop.eup %1535  ;;  %v946_v35 = vmul.f32 %v1534_v55, %v2387_v9  ;;  %v1286_v54 = vpack.c.bf16 %v944_v50, %v944_v50  ;;  %1103 = vst.msk [vmem:[%s2449_s14 + $0x50] sm:$0xf] %vm1082_vm2, %v1284_v22 }
 0x2ba   : > { %v1538_v31 = vpop.eup %1537  ;;  %v947_v39 = vmul.f32 %v1536_v59, %v2393_v32  ;;  %v1287_v23 = vpack.c.bf16 %v945_v53, %v945_v53  ;;  %1104 = vst.msk [vmem:[%s2449_s14 + $0x54] sm:$0xf] %vm1082_vm2, %v1285_v51 }
 0x2bb   : > { %v1540_v56 = vpop.eup %1539  ;;  %v948_v0 = vmul.f32 %v1538_v31, %v2399_v24  ;;  %v1288_v3 = vpack.c.bf16 %v946_v35, %v946_v35  ;;  %1105 = vst.msk [vmem:[%s2449_s14 + $0x58] sm:$0xf] %vm1082_vm2, %v1286_v54 }
 0x2bc   : > { %v1542_v58 = vpop.eup %1541  ;;  %v949_v9 = vmul.f32 %v1540_v56, %v2405_v7  ;;  %v1289_v48 = vpack.c.bf16 %v947_v39, %v947_v39  ;;  %1106 = vst.msk [vmem:[%s2449_s14 + $0x5c] sm:$0xf] %vm1082_vm2, %v1287_v23 }
 0x2bd   : > { %v1544_v27 = vpop.eup %1543  ;;  %v950_v32 = vmul.f32 %v1542_v58, %v2409_v21  ;;  %v1290_v20 = vpack.c.bf16 %v948_v0, %v948_v0  ;;  %1107 = vst.msk [vmem:[%s2449_s14 + $0x60] sm:$0xf] %vm1082_vm2, %v1288_v3 }
 0x2be   : > { %v1546_v24 = vpop.eup %1545  ;;  %v951_v63 = vmul.f32 %v1544_v27, %v2413_v33  ;;  %v1291_v36 = vpack.c.bf16 %v949_v9, %v949_v9  ;;  %1108 = vst.msk [vmem:[%s2449_s14 + $0x64] sm:$0xf] %vm1082_vm2, %v1289_v48 }
 0x2bf   : > { %v1548_v7 = vpop.eup %1547  ;;  %v952_v2 = vmul.f32 %v1546_v24, %v2417_v41  ;;  %v1292_v30 = vpack.c.bf16 %v950_v32, %v950_v32  ;;  %1109 = vst.msk [vmem:[%s2449_s14 + $0x68] sm:$0xf] %vm1082_vm2, %v1290_v20 }
 0x2c0   : > { %v953_v21 = vmul.f32 %v1548_v7, %v2578_v43  ;;  %v1293_v12 = vpack.c.bf16 %v951_v63, %v951_v63  ;;  %1110 = vst.msk [vmem:[%s2449_s14 + $0x6c] sm:$0xf] %vm1082_vm2, %v1291_v36 }
 0x2c1   : > { %v1294_v34 = vpack.c.bf16 %v952_v2, %v952_v2  ;;  %1111 = vst.msk [vmem:[%s2449_s14 + $0x70] sm:$0xf] %vm1082_vm2, %v1292_v30 }
 0x2c2   : > { %v1295_v11 = vpack.c.bf16 %v953_v21, %v953_v21  ;;  %1112 = vst.msk [vmem:[%s2449_s14 + $0x74] sm:$0xf] %vm1082_vm2, %v1293_v12 }
 0x2c3   : > { %1113 = vst.msk [vmem:[%s2449_s14 + $0x78] sm:$0xf] %vm1082_vm2, %v1294_v34 }
 0x2c4   : > { %1114 = vst.msk [vmem:[%s2449_s14 + $0x7c] sm:$0xf] %vm1082_vm2, %v1295_v11 }
 0x2c5 PF: > { %p14_p9 = scmp.ge.s32.totalorder %s1665_s20, 4   ;;  %s2579_s15 = smov %s1603_s16 }
 0x2c6   : > { %s2580_s16 = smov %s1607_s17  ;;  %s2581_s17 = smov %s1675_s23 }
 0x2c7   : > { %s2582_s18 = smov %s1665_s20  ;;  %16 = sbr.rel (!%p14_p9) target bundleno = 3 (0x3), region = 76 }
 0x2cc   :  { %1136 = vsyncpa [#allocation3], 1 }
 0x2cd   :  { %1138 = vsyncpa [#allocation3 + $0x1], 1 }

// kernel: res_block.10
= control target key start
LH: loop header
LB: loop body
LE: loop exit
PB: predicated region body
PF: predicated region fallthrough
CT: control target
= control target key end

     0   :  { %s1567_s15 = smov 0   ;;  %s2309_s0 = inlined_call_operand.vmem [shape: f32[2,256,128], index: 0, kind: input, shape index: {}]   ;;  %s2310_s1 = inlined_call_operand.vmem [shape: f32[1,128], index: 1, kind: input, shape index: {}]   ;;  %s2311_s2 = inlined_call_operand.vmem [shape: f32[1,128], index: 2, kind: input, shape index: {}]   ;;  %s2312_s3 = inlined_call_operand.vmem [shape: f32[128,128], index: 3, kind: input, shape index: {}]   ;;  %s2313_s4 = inlined_call_operand.vmem [shape: bf16[2,256,128], index: 4, kind: output, shape index: {}]  }
   0x1 LB: > { %s1082_s16 = sadd.s32 4294967295, %s1538_s15   ;;  %p1086_p0 = scmp.ge.s32.totalorder %s1538_s15, 1  ;;  %s1538_s15 = sphi %s1567_s15, %s14_s15  }
   0x2   : > { %p162_p1 = scmp.lt.s32.totalorder %s1538_s15, 3 }
   0x4   : > { %p163_p2 = pnand %p1086_p0, %p162_p1 }
   0x6   : > { %166 = sbr.rel (%p163_p2) target bundleno = 671 (0x29f), region = 36 }
   0xb   : > { %v282_v0 = vld [vmem:[%s2312_s3 + $0x78] sm:$0xff]  ;;  %p188_p3 = scmp.lt.s32.totalorder %s1082_s16, 1  ;;  %v1540_v1 = vmov 0.0   ;;  %v281_v2 = vld [vmem:[%s2312_s3 + $0x70] sm:$0xff]  ;;  %vm1541_vm0 = vmmov 0   ;;  %v280_v3 = vld [vmem:[%s2312_s3 + $0x68] sm:$0xff] }
   0xc   : > { %1322 = vmatprep.subr.mxu0 %v1540_v1  ;;  %1354 = vmatprep.mubr.msk.f32.mxu0 %vm1541_vm0, %v1540_v1  ;;  %v279_v4 = vld [vmem:[%s2312_s3 + $0x60] sm:$0xff]  ;;  %v278_v8 = vld [vmem:[%s2312_s3 + $0x58] sm:$0xff]  ;;  %v277_v11 = vld [vmem:[%s2312_s3 + $0x50] sm:$0xff] }
   0xd   : > { %1323 = vmatpush3.msra.mxu0 %v282_v0  ;;  %s2318_s16 = smov (!%p188_p3, %s1082_s16), 1  ;;  %1357 = vmatprep.subr.mxu1 %v1540_v1  ;;  %v276_v14 = vld [vmem:[%s2312_s3 + $0x48] sm:$0xff]  ;;  %v275_v17 = vld [vmem:[%s2312_s3 + $0x40] sm:$0xff]  ;;  %v274_v20 = vld [vmem:[%s2312_s3 + $0x38] sm:$0xff] }
   0xe   : > { %1324 = vmatprep.subr.mxu0 %v1540_v1  ;;  %1358 = vmatpush3.msra.mxu1 %v282_v0  ;;  %s1159_s23 = sshll.u32 %s2318_s16, 8  ;;  %v273_v23 = vld [vmem:[%s2312_s3 + $0x30] sm:$0xff]  ;;  %v272_v26 = vld [vmem:[%s2312_s3 + $0x28] sm:$0xff]  ;;  %v271_v29 = vld [vmem:[%s2312_s3 + $0x20] sm:$0xff]  ;;  %s1160_s7 = sshll.u32 %s2318_s16, 7 }
   0xf   : > { %1325 = vmatpush3.msra.mxu0 %v281_v2  ;;  %1359 = vmatprep.subr.mxu1 %v1540_v1  ;;  %s1600_s28 = scalar_lea.vmem %s2309_s0, %s1159_s23  ;;  %v270_v32 = vld [vmem:[%s2312_s3 + $0x18] sm:$0xff]  ;;  %v269_v35 = vld [vmem:[%s2312_s3 + $0x10] sm:$0xff]  ;;  %v268_v38 = vld [vmem:[%s2312_s3 + $0x8] sm:$0xff]  ;;  %s2254_s10 = scalar_lea.vmem %s2313_s4, %s1160_s7 }
  0x10   : > { %1326 = vmatprep.subr.mxu0 %v1540_v1  ;;  %1360 = vmatpush3.msra.mxu1 %v281_v2  ;;  %v1603_v5 = vld [vmem:[%s1600_s28] sm:$0xff]  ;;  %v1606_v6 = vld [vmem:[%s1600_s28 + $0x8] sm:$0xff]  ;;  %v1609_v7 = vld [vmem:[%s1600_s28 + $0x10] sm:$0xff] }
  0x11   : > { %1327 = vmatpush3.msra.mxu0 %v280_v3  ;;  %1361 = vmatprep.subr.mxu1 %v1540_v1  ;;  %v230_v9 = vadd.f32 %v1606_v6, %v1603_v5  ;;  %v1619_v10 = vld [vmem:[%s1600_s28 + $0x18] sm:$0xff]  ;;  %v1628_v13 = vld [vmem:[%s1600_s28 + $0x20] sm:$0xff]  ;;  %v1637_v16 = vld [vmem:[%s1600_s28 + $0x28] sm:$0xff] }
  0x12   : > { %1328 = vmatprep.subr.mxu0 %v1540_v1  ;;  %1362 = vmatpush3.msra.mxu1 %v280_v3  ;;  %v1646_v19 = vld [vmem:[%s1600_s28 + $0x30] sm:$0xff]  ;;  %v1655_v22 = vld [vmem:[%s1600_s28 + $0x38] sm:$0xff]  ;;  %v1664_v25 = vld [vmem:[%s1600_s28 + $0x40] sm:$0xff] }
  0x13   : > { %1329 = vmatpush3.msra.mxu0 %v279_v4  ;;  %1363 = vmatprep.subr.mxu1 %v1540_v1  ;;  %v231_v12 = vadd.f32 %v230_v9, %v1609_v7  ;;  %v1673_v28 = vld [vmem:[%s1600_s28 + $0x48] sm:$0xff]  ;;  %v1682_v31 = vld [vmem:[%s1600_s28 + $0x50] sm:$0xff]  ;;  %v1691_v34 = vld [vmem:[%s1600_s28 + $0x58] sm:$0xff] }
  0x14   : > { %1330 = vmatprep.subr.mxu0 %v1540_v1  ;;  %1364 = vmatpush3.msra.mxu1 %v279_v4  ;;  %v1700_v37 = vld [vmem:[%s1600_s28 + $0x60] sm:$0xff]  ;;  %v1709_v40 = vld [vmem:[%s1600_s28 + $0x68] sm:$0xff]  ;;  %v1718_v43 = vld [vmem:[%s1600_s28 + $0x70] sm:$0xff] }
  0x15   : > { %1331 = vmatpush3.msra.mxu0 %v278_v8  ;;  %1365 = vmatprep.subr.mxu1 %v1540_v1  ;;  %v232_v15 = vadd.f32 %v231_v12, %v1619_v10  ;;  %v267_v41 = vld [vmem:[%s2312_s3] sm:$0xff]  ;;  %v1724_v45 = vld [vmem:[%s1600_s28 + $0x78] sm:$0xff]  ;;  %v1735_v49 = vld [vmem:[%s1600_s28 + $0x88] sm:$0xff] }
  0x16   : > { %1332 = vmatprep.subr.mxu0 %v1540_v1  ;;  %1366 = vmatpush3.msra.mxu1 %v278_v8  ;;  %v1731_v47 = vld [vmem:[%s1600_s28 + $0x80] sm:$0xff]  ;;  %v1739_v51 = vld [vmem:[%s1600_s28 + $0x90] sm:$0xff]  ;;  %v1743_v53 = vld [vmem:[%s1600_s28 + $0x98] sm:$0xff] }
  0x17   : > { %1333 = vmatpush3.msra.mxu0 %v277_v11  ;;  %1367 = vmatprep.subr.mxu1 %v1540_v1  ;;  %v233_v18 = vadd.f32 %v232_v15, %v1628_v13  ;;  %v1747_v55 = vld [vmem:[%s1600_s28 + $0xa0] sm:$0xff]  ;;  %v1751_v57 = vld [vmem:[%s1600_s28 + $0xa8] sm:$0xff]  ;;  %v1755_v59 = vld [vmem:[%s1600_s28 + $0xb0] sm:$0xff] }
  0x18   : > { %1334 = vmatprep.subr.mxu0 %v1540_v1  ;;  %1368 = vmatpush3.msra.mxu1 %v277_v11  ;;  %v1759_v61 = vld [vmem:[%s1600_s28 + $0xb8] sm:$0xff]  ;;  %v1763_v63 = vld [vmem:[%s1600_s28 + $0xc0] sm:$0xff]  ;;  %v1771_v3 = vld [vmem:[%s1600_s28 + $0xd0] sm:$0xff] }
  0x19   : > { %1335 = vmatpush3.msra.mxu0 %v276_v14  ;;  %1369 = vmatprep.subr.mxu1 %v1540_v1  ;;  %v234_v21 = vadd.f32 %v233_v18, %v1637_v16  ;;  %v1775_v8 = vld [vmem:[%s1600_s28 + $0xd8] sm:$0xff]  ;;  %v1779_v11 = vld [vmem:[%s1600_s28 + $0xe0] sm:$0xff] }
  0x1a   : > { %1336 = vmatprep.subr.mxu0 %v1540_v1  ;;  %1370 = vmatpush3.msra.mxu1 %v276_v14  ;;  %v1783_v14 = vld [vmem:[%s1600_s28 + $0xe8] sm:$0xff] }
  0x1b   : > { %1337 = vmatpush3.msra.mxu0 %v275_v17  ;;  %1371 = vmatprep.subr.mxu1 %v1540_v1  ;;  %v235_v24 = vadd.f32 %v234_v21, %v1646_v19 }
  0x1c   : > { %1338 = vmatprep.subr.mxu0 %v1540_v1  ;;  %1372 = vmatpush3.msra.mxu1 %v275_v17  ;;  %v1787_v17 = vld [vmem:[%s1600_s28 + $0xf0] sm:$0xff] }
  0x1d   : > { %1339 = vmatpush3.msra.mxu0 %v274_v20  ;;  %1373 = vmatprep.subr.mxu1 %v1540_v1  ;;  %v236_v27 = vadd.f32 %v235_v24, %v1655_v22 }
  0x1e   : > { %1340 = vmatprep.subr.mxu0 %v1540_v1  ;;  %1374 = vmatpush3.msra.mxu1 %v274_v20  ;;  %v1791_v20 = vld [vmem:[%s1600_s28 + $0xf8] sm:$0xff] }
  0x1f   : > { %1341 = vmatpush3.msra.mxu0 %v273_v23  ;;  %1375 = vmatprep.subr.mxu1 %v1540_v1  ;;  %v237_v30 = vadd.f32 %v236_v27, %v1664_v25 }
  0x20   : > { %1342 = vmatprep.subr.mxu0 %v1540_v1  ;;  %1376 = vmatpush3.msra.mxu1 %v273_v23 }
  0x21   : > { %1343 = vmatpush3.msra.mxu0 %v272_v26  ;;  %1377 = vmatprep.subr.mxu1 %v1540_v1  ;;  %v238_v33 = vadd.f32 %v237_v30, %v1673_v28 }
  0x22   : > { %1344 = vmatprep.subr.mxu0 %v1540_v1  ;;  %1378 = vmatpush3.msra.mxu1 %v272_v26 }
  0x23   : > { %1345 = vmatpush3.msra.mxu0 %v271_v29  ;;  %1379 = vmatprep.subr.mxu1 %v1540_v1  ;;  %v239_v36 = vadd.f32 %v238_v33, %v1682_v31  ;;  %v353_v33 = vlaneseq }
  0x24   : > { %1346 = vmatprep.subr.mxu0 %v1540_v1  ;;  %1380 = vmatpush3.msra.mxu1 %v271_v29 }
  0x25   : > { %1347 = vmatpush3.msra.mxu0 %v270_v32  ;;  %1381 = vmatprep.subr.mxu1 %v1540_v1  ;;  %v240_v39 = vadd.f32 %v239_v36, %v1691_v34 }
  0x26   : > { %1348 = vmatprep.subr.mxu0 %v1540_v1  ;;  %1382 = vmatpush3.msra.mxu1 %v270_v32 }
  0x27   : > { %1349 = vmatpush3.msra.mxu0 %v269_v35  ;;  %1383 = vmatprep.subr.mxu1 %v1540_v1  ;;  %v241_v42 = vadd.f32 %v240_v39, %v1700_v37 }
  0x28   : > { %1350 = vmatprep.subr.mxu0 %v1540_v1  ;;  %1384 = vmatpush3.msra.mxu1 %v269_v35  ;;  %v1795_v35 = vshrl.u32 %v353_v33, 7 }
  0x29   : > { %1351 = vmatpush3.msra.mxu0 %v268_v38  ;;  %1385 = vmatprep.subr.mxu1 %v1540_v1  ;;  %v242_v44 = vadd.f32 %v241_v42, %v1709_v40 }
  0x2a   : > { %1352 = vmatprep.subr.mxu0 %v1540_v1  ;;  %1386 = vmatpush3.msra.mxu1 %v268_v38  ;;  %v355_v39 = vsub.s32 0, %v1795_v35  ;;  %v2007_v35 = vld [vmem:[%s2310_s1] ss:$0 sm:$0xff] }
  0x2b   : > { %1353 = vmatpush3.msra.mxu0 %v267_v41  ;;  %1387 = vmatprep.subr.mxu1 %v1540_v1  ;;  %v243_v46 = vadd.f32 %v242_v44, %v1718_v43 }
  0x2c   : > { %1388 = vmatpush3.msra.mxu1 %v267_v41  ;;  %1389 = vmatprep.mubr.msk.f32.mxu1 %vm1541_vm0, %v1540_v1  ;;  %v1767_v1 = vld [vmem:[%s1600_s28 + $0xc8] sm:$0xff] }
  0x2d   : > { %v244_v48 = vadd.f32 %v243_v46, %v1724_v45 }
  0x2f   : > { %v245_v50 = vadd.f32 %v244_v48, %v1731_v47 }
  0x31   : > { %v246_v52 = vadd.f32 %v245_v50, %v1735_v49 }
  0x33   : > { %v247_v54 = vadd.f32 %v246_v52, %v1739_v51 }
  0x35   : > { %v248_v56 = vadd.f32 %v247_v54, %v1743_v53 }
  0x37   : > { %v249_v58 = vadd.f32 %v248_v56, %v1747_v55 }
  0x39   : > { %v250_v60 = vadd.f32 %v249_v58, %v1751_v57 }
  0x3b   : > { %v251_v62 = vadd.f32 %v250_v60, %v1755_v59 }
  0x3d   : > { %v252_v0 = vadd.f32 %v251_v62, %v1759_v61 }
  0x3f   : > { %v253_v2 = vadd.f32 %v252_v0, %v1763_v63 }
  0x41   : > { %v254_v4 = vadd.f32 %v253_v2, %v1767_v1 }
  0x43   : > { %v255_v9 = vadd.f32 %v254_v4, %v1771_v3 }
  0x45   : > { %v256_v12 = vadd.f32 %v255_v9, %v1775_v8 }
  0x47   : > { %v257_v15 = vadd.f32 %v256_v12, %v1779_v11 }
  0x49   : > { %v258_v18 = vadd.f32 %v257_v15, %v1783_v14 }
  0x4b   : > { %v259_v21 = vadd.f32 %v258_v18, %v1787_v17 }
  0x4d   : > { %v260_v23 = vadd.f32 %v259_v21, %v1791_v20 }
  0x4f   : > { %v261_v24 = vrot.slane %v260_v23, 4 }
  0x51   : > { %v262_v26 = vadd.f32 %v261_v24, %v260_v23 }
  0x53   : > { %v263_v27 = vrot.slane %v262_v26, 2 }
  0x55   : > { %v264_v29 = vadd.f32 %v263_v27, %v262_v26 }
  0x57   : > { %v265_v30 = vrot.slane %v264_v29, 1 }
  0x59   : > { %v266_v32 = vadd.f32 %v265_v30, %v264_v29 }
  0x5b   : > { %1355 = vmatmul.mubr.f32.vlgmr.msra.gmra.mxu0 %v266_v32 }
 0x11b   : > { %v349_v36 = vpop.f32.mrf.mxu0 }
 0x11c   : > { %v1800_v41 = vrot.slane %v349_v36, %v355_v39 }
 0x11d   : > { %v1356_v38 = vpop.f32.mrf.mxu0 }
 0x11e   : > { %v1804_v42 = vsub.f32 %v1603_v5, %v1800_v41  ;;  %v1808_v44 = vsub.f32 %v1606_v6, %v1800_v41  ;;  %v1812_v46 = vsub.f32 %v1609_v7, %v1800_v41  ;;  %v1820_v52 = vsub.f32 %v1619_v10, %v1800_v41 }
 0x11f   : > { %v1824_v5 = vsub.f32 %v1628_v13, %v1800_v41  ;;  %v1830_v7 = vsub.f32 %v1637_v16, %v1800_v41  ;;  %v1836_v10 = vsub.f32 %v1646_v19, %v1800_v41  ;;  %v1842_v62 = vsub.f32 %v1655_v22, %v1800_v41 }
 0x120   : > { %v389_v48 = vmul.f32 %v1804_v42, %v1804_v42  ;;  %v390_v50 = vmul.f32 %v1808_v44, %v1808_v44  ;;  %v391_v6 = vmul.f32 %v1812_v46, %v1812_v46  ;;  %v392_v56 = vmul.f32 %v1820_v52, %v1820_v52 }
 0x121   : > { %v393_v13 = vmul.f32 %v1824_v5, %v1824_v5  ;;  %v394_v16 = vmul.f32 %v1830_v7, %v1830_v7  ;;  %v1848_v2 = vsub.f32 %v1664_v25, %v1800_v41  ;;  %v395_v19 = vmul.f32 %v1836_v10, %v1836_v10 }
 0x122   : > { %v421_v54 = vadd.f32 %v390_v50, %v389_v48  ;;  %v1854_v9 = vsub.f32 %v1673_v28, %v1800_v41  ;;  %v396_v22 = vmul.f32 %v1842_v62, %v1842_v62  ;;  %v1860_v15 = vsub.f32 %v1682_v31, %v1800_v41 }
 0x123   : > { %v397_v25 = vmul.f32 %v1848_v2, %v1848_v2  ;;  %v1866_v21 = vsub.f32 %v1691_v34, %v1800_v41  ;;  %v1872_v24 = vsub.f32 %v1700_v37, %v1800_v41  ;;  %v1878_v27 = vsub.f32 %v1709_v40, %v1800_v41 }
 0x124   : > { %v422_v58 = vadd.f32 %v421_v54, %v391_v6  ;;  %v398_v28 = vmul.f32 %v1854_v9, %v1854_v9  ;;  %v399_v31 = vmul.f32 %v1860_v15, %v1860_v15  ;;  %v1884_v30 = vsub.f32 %v1718_v43, %v1800_v41 }
 0x125   : > { %v400_v34 = vmul.f32 %v1866_v21, %v1866_v21  ;;  %v401_v37 = vmul.f32 %v1872_v24, %v1872_v24  ;;  %v1890_v33 = vsub.f32 %v1724_v45, %v1800_v41  ;;  %v402_v40 = vmul.f32 %v1878_v27, %v1878_v27 }
 0x126   : > { %v423_v60 = vadd.f32 %v422_v58, %v392_v56  ;;  %v1896_v38 = vsub.f32 %v1731_v47, %v1800_v41  ;;  %v403_v43 = vmul.f32 %v1884_v30, %v1884_v30  ;;  %v1902_v50 = vsub.f32 %v1735_v49, %v1800_v41 }
 0x127   : > { %v404_v45 = vmul.f32 %v1890_v33, %v1890_v33  ;;  %v1908_v54 = vsub.f32 %v1739_v51, %v1800_v41  ;;  %v1914_v58 = vsub.f32 %v1743_v53, %v1800_v41 }
 0x128   : > { %v424_v0 = vadd.f32 %v423_v60, %v393_v13  ;;  %v405_v47 = vmul.f32 %v1896_v38, %v1896_v38  ;;  %v406_v49 = vmul.f32 %v1902_v50, %v1902_v50  ;;  %v1920_v60 = vsub.f32 %v1747_v55, %v1800_v41 }
 0x129   : > { %v407_v51 = vmul.f32 %v1908_v54, %v1908_v54  ;;  %v408_v53 = vmul.f32 %v1914_v58, %v1914_v58 }
 0x12a   : > { %v425_v4 = vadd.f32 %v424_v0, %v394_v16  ;;  %v1926_v0 = vsub.f32 %v1751_v57, %v1800_v41  ;;  %v409_v55 = vmul.f32 %v1920_v60, %v1920_v60 }
 0x12c   : > { %v426_v12 = vadd.f32 %v425_v4, %v395_v19  ;;  %v1932_v4 = vsub.f32 %v1755_v59, %v1800_v41  ;;  %v410_v57 = vmul.f32 %v1926_v0, %v1926_v0 }
 0x12e   : > { %v427_v18 = vadd.f32 %v426_v12, %v396_v22  ;;  %v1938_v12 = vsub.f32 %v1759_v61, %v1800_v41  ;;  %v411_v59 = vmul.f32 %v1932_v4, %v1932_v4 }
 0x130   : > { %v428_v23 = vadd.f32 %v427_v18, %v397_v25  ;;  %v1944_v18 = vsub.f32 %v1763_v63, %v1800_v41  ;;  %v412_v61 = vmul.f32 %v1938_v12, %v1938_v12 }
 0x132   : > { %v429_v26 = vadd.f32 %v428_v23, %v398_v28  ;;  %v1950_v23 = vsub.f32 %v1767_v1, %v1800_v41  ;;  %v413_v63 = vmul.f32 %v1944_v18, %v1944_v18 }
 0x134   : > { %v430_v29 = vadd.f32 %v429_v26, %v399_v31  ;;  %v1956_v26 = vsub.f32 %v1771_v3, %v1800_v41  ;;  %v414_v1 = vmul.f32 %v1950_v23, %v1950_v23 }
 0x136   : > { %v431_v32 = vadd.f32 %v430_v29, %v400_v34  ;;  %v1962_v29 = vsub.f32 %v1775_v8, %v1800_v41  ;;  %v415_v3 = vmul.f32 %v1956_v26, %v1956_v26 }
 0x138   : > { %v432_v36 = vadd.f32 %v431_v32, %v401_v37  ;;  %v1968_v32 = vsub.f32 %v1779_v11, %v1800_v41  ;;  %v416_v8 = vmul.f32 %v1962_v29, %v1962_v29 }
 0x13a   : > { %v433_v48 = vadd.f32 %v432_v36, %v402_v40  ;;  %v1974_v36 = vsub.f32 %v1783_v14, %v1800_v41  ;;  %v417_v11 = vmul.f32 %v1968_v32, %v1968_v32 }
 0x13c   : > { %v434_v6 = vadd.f32 %v433_v48, %v403_v43  ;;  %v1980_v48 = vsub.f32 %v1787_v17, %v1800_v41  ;;  %v418_v14 = vmul.f32 %v1974_v36, %v1974_v36 }
 0x13e   : > { %v435_v56 = vadd.f32 %v434_v6, %v404_v45  ;;  %v1986_v6 = vsub.f32 %v1791_v20, %v1800_v41 }
 0x140   : > { %v436_v13 = vadd.f32 %v435_v56, %v405_v47  ;;  %v419_v56 = vmul.f32 %v1980_v48, %v1980_v48  ;;  %v420_v17 = vmul.f32 %v1986_v6, %v1986_v6 }
 0x142   : > { %v437_v16 = vadd.f32 %v436_v13, %v406_v49 }
 0x144   : > { %v438_v19 = vadd.f32 %v437_v16, %v407_v51 }
 0x146   : > { %v439_v22 = vadd.f32 %v438_v19, %v408_v53 }
 0x148   : > { %v440_v25 = vadd.f32 %v439_v22, %v409_v55 }
 0x14a   : > { %v441_v28 = vadd.f32 %v440_v25, %v410_v57 }
 0x14c   : > { %v442_v31 = vadd.f32 %v441_v28, %v411_v59 }
 0x14e   : > { %v443_v34 = vadd.f32 %v442_v31, %v412_v61 }
 0x150   : > { %v444_v37 = vadd.f32 %v443_v34, %v413_v63 }
 0x152   : > { %v445_v40 = vadd.f32 %v444_v37, %v414_v1 }
 0x154   : > { %v446_v43 = vadd.f32 %v445_v40, %v415_v3 }
 0x156   : > { %v447_v45 = vadd.f32 %v446_v43, %v416_v8 }
 0x158   : > { %v448_v47 = vadd.f32 %v447_v45, %v417_v11 }
 0x15a   : > { %v449_v49 = vadd.f32 %v448_v47, %v418_v14 }
 0x15c   : > { %v450_v13 = vadd.f32 %v449_v49, %v419_v56 }
 0x15e   : > { %v451_v51 = vadd.f32 %v450_v13, %v420_v17 }
 0x160   : > { %v452_v16 = vrot.slane %v451_v51, 4 }
 0x162   : > { %v453_v53 = vadd.f32 %v452_v16, %v451_v51 }
 0x164   : > { %v454_v19 = vrot.slane %v453_v53, 2 }
 0x166   : > { %v455_v55 = vadd.f32 %v454_v19, %v453_v53 }
 0x168   : > { %v456_v22 = vrot.slane %v455_v55, 1 }
 0x16a   : > { %v457_v20 = vadd.f32 %v456_v22, %v455_v55 }
 0x16c   : > { %1390 = vmatmul.mubr.f32.vlgmr.msra.gmra.mxu1 %v457_v20 }
 0x22c   : > { %v524_v41 = vpop.f32.mrf.mxu1 }
 0x22d   : > { %v525_v25 = vadd.f32 1e-05, %v524_v41 }
 0x22e   : > { %v1391_v57 = vpop.f32.mrf.mxu1 }
 0x22f   : > { %1402 = vrsqrt.f32 %v525_v25 }
 0x23c   : > { %v1403_v59 = vpop.eup %1402 }
 0x23d   : > { %v532_v28 = vrot.slane %v1403_v59, %v355_v39 }
 0x23f   : > { %v533_v61 = vmul.f32 %v532_v28, %v1804_v42  ;;  %v534_v31 = vmul.f32 %v532_v28, %v1808_v44  ;;  %v535_v63 = vmul.f32 %v532_v28, %v1812_v46  ;;  %v536_v34 = vmul.f32 %v532_v28, %v1820_v52 }
 0x240   : > { %v537_v1 = vmul.f32 %v532_v28, %v1824_v5  ;;  %v538_v37 = vmul.f32 %v532_v28, %v1830_v7  ;;  %v539_v3 = vmul.f32 %v532_v28, %v1836_v10  ;;  %v540_v40 = vmul.f32 %v532_v28, %v1842_v62 }
 0x241   : > { %v541_v39 = vmul.f32 %v532_v28, %v1848_v2  ;;  %v542_v42 = vmul.f32 %v532_v28, %v1854_v9  ;;  %v543_v44 = vmul.f32 %v532_v28, %v1860_v15  ;;  %v544_v46 = vmul.f32 %v532_v28, %v1866_v21 }
 0x242   : > { %v545_v52 = vmul.f32 %v532_v28, %v1872_v24  ;;  %v546_v5 = vmul.f32 %v532_v28, %v1878_v27  ;;  %v547_v7 = vmul.f32 %v532_v28, %v1884_v30  ;;  %v548_v10 = vmul.f32 %v532_v28, %v1890_v33  ;;  %v2030_v30 = vld [vmem:[%s2311_s2] ss:$0 sm:$0xff] }
 0x243   : > { %v549_v62 = vmul.f32 %v532_v28, %v1896_v38  ;;  %v572_v8 = vmul.f32 %v2007_v35, %v533_v61  ;;  %v573_v2 = vmul.f32 %v2007_v35, %v534_v31  ;;  %v574_v9 = vmul.f32 %v2007_v35, %v535_v63 }
 0x244   : > { %v550_v15 = vmul.f32 %v532_v28, %v1902_v50  ;;  %v551_v21 = vmul.f32 %v532_v28, %v1908_v54  ;;  %v2024_v24 = vmul.f32 %v532_v28, %v1914_v58  ;;  %v575_v27 = vmul.f32 %v2007_v35, %v536_v34 }
 0x245   : > { %v2033_v33 = vmul.f32 %v532_v28, %v1920_v60  ;;  %v2036_v38 = vmul.f32 %v532_v28, %v1926_v0  ;;  %v2039_v50 = vmul.f32 %v532_v28, %v1932_v4  ;;  %v576_v54 = vmul.f32 %v2007_v35, %v537_v1 }
 0x246   : > { %v2043_v58 = vmul.f32 %v532_v28, %v1938_v12  ;;  %v2046_v43 = vmul.f32 %v532_v28, %v1944_v18  ;;  %v2049_v11 = vmul.f32 %v532_v28, %v1950_v23  ;;  %v577_v60 = vmul.f32 %v2007_v35, %v538_v37 }
 0x247   : > { %v578_v45 = vmul.f32 %v2007_v35, %v539_v3  ;;  %v2054_v0 = vadd.f32 %v2030_v30, %v572_v8  ;;  %v2057_v4 = vadd.f32 %v2030_v30, %v573_v2  ;;  %v2060_v14 = vadd.f32 %v2030_v30, %v574_v9 }
 0x248   : > { %v2063_v12 = vmul.f32 %v532_v28, %v1956_v26  ;;  %v2066_v18 = vmul.f32 %v532_v28, %v1962_v29  ;;  %v579_v23 = vmul.f32 %v2007_v35, %v540_v40  ;;  %v2070_v47 = vadd.f32 %v2030_v30, %v575_v27 }
 0x249   : > { %v2073_v56 = vmul.f32 %v532_v28, %v1968_v32  ;;  %v2076_v49 = vmul.f32 %v532_v28, %v1974_v36  ;;  %v580_v17 = vmul.f32 %v2007_v35, %v541_v39  ;;  %v2080_v13 = vadd.f32 %v2030_v30, %v576_v54 }
 0x24a   : > { %v2083_v26 = vmul.f32 %v532_v28, %v1980_v48  ;;  %v581_v29 = vmul.f32 %v2007_v35, %v542_v42  ;;  %v582_v51 = vmul.f32 %v2007_v35, %v543_v44  ;;  %v2088_v16 = vadd.f32 %v2030_v30, %v577_v60 }
 0x24b   : > { %v2091_v32 = vadd.f32 %v2030_v30, %v578_v45  ;;  %v1093_v36 = vmul.f32 -1.442695, %v2054_v0  ;;  %v1094_v53 = vmul.f32 -1.442695, %v2057_v4  ;;  %v1095_v19 = vmul.f32 -1.442695, %v2060_v14 }
 0x24c   : > { %v2097_v55 = vmul.f32 %v532_v28, %v1986_v6  ;;  %v583_v48 = vmul.f32 %v2007_v35, %v544_v46  ;;  %v2101_v22 = vadd.f32 %v2030_v30, %v579_v23  ;;  %v1096_v20 = vmul.f32 -1.442695, %v2070_v47 }
 0x24d   : > { %v584_v41 = vmul.f32 %v2007_v35, %v545_v52  ;;  %v2106_v57 = vadd.f32 %v2030_v30, %v580_v17  ;;  %1404 = vpow2.f32 %v1093_v36  ;;  %v1097_v25 = vmul.f32 -1.442695, %v2080_v13 }
 0x24e   : > { %v585_v59 = vmul.f32 %v2007_v35, %v546_v5  ;;  %v2111_v6 = vadd.f32 %v2030_v30, %v581_v29  ;;  %1406 = vpow2.f32 %v1094_v53  ;;  %v1098_v28 = vmul.f32 -1.442695, %v2088_v16 }
 0x24f   : > { %v586_v61 = vmul.f32 %v2007_v35, %v547_v7  ;;  %v2116_v31 = vadd.f32 %v2030_v30, %v582_v51  ;;  %1408 = vpow2.f32 %v1095_v19  ;;  %v1099_v63 = vmul.f32 -1.442695, %v2091_v32 }
 0x250   : > { %v587_v34 = vmul.f32 %v2007_v35, %v548_v10  ;;  %v2121_v1 = vadd.f32 %v2030_v30, %v583_v48  ;;  %1410 = vpow2.f32 %v1096_v20  ;;  %v1100_v37 = vmul.f32 -1.442695, %v2101_v22 }
 0x251   : > { %v588_v3 = vmul.f32 %v2007_v35, %v549_v62  ;;  %v2126_v40 = vadd.f32 %v2030_v30, %v584_v41  ;;  %1412 = vpow2.f32 %v1097_v25  ;;  %v1101_v39 = vmul.f32 -1.442695, %v2106_v57 }
 0x252   : > { %v589_v42 = vmul.f32 %v2007_v35, %v550_v15  ;;  %v2131_v44 = vadd.f32 %v2030_v30, %v585_v59  ;;  %1414 = vpow2.f32 %v1098_v28  ;;  %v1102_v46 = vmul.f32 -1.442695, %v2111_v6 }
 0x253   : > { %v590_v52 = vmul.f32 %v2007_v35, %v551_v21  ;;  %v2136_v5 = vadd.f32 %v2030_v30, %v586_v61  ;;  %1416 = vpow2.f32 %v1099_v63  ;;  %v1103_v7 = vmul.f32 -1.442695, %v2116_v31 }
 0x254   : > { %v591_v10 = vmul.f32 %v2007_v35, %v2024_v24  ;;  %v2142_v62 = vadd.f32 %v2030_v30, %v587_v34  ;;  %1418 = vpow2.f32 %v1100_v37  ;;  %v1104_v8 = vmul.f32 -1.442695, %v2121_v1 }
 0x255   : > { %v592_v2 = vmul.f32 %v2007_v35, %v2033_v33  ;;  %v2148_v9 = vadd.f32 %v2030_v30, %v588_v3  ;;  %1420 = vpow2.f32 %v1101_v39  ;;  %v1105_v15 = vmul.f32 -1.442695, %v2126_v40 }
 0x256   : > { %v593_v21 = vmul.f32 %v2007_v35, %v2036_v38  ;;  %v2154_v24 = vadd.f32 %v2030_v30, %v589_v42  ;;  %1422 = vpow2.f32 %v1102_v46  ;;  %v1106_v27 = vmul.f32 -1.442695, %v2131_v44 }
 0x257   : > { %v594_v54 = vmul.f32 %v2007_v35, %v2039_v50  ;;  %v2160_v33 = vadd.f32 %v2030_v30, %v590_v52  ;;  %1424 = vpow2.f32 %v1103_v7  ;;  %v1107_v60 = vmul.f32 -1.442695, %v2136_v5 }
 0x258   : > { %v595_v45 = vmul.f32 %v2007_v35, %v2043_v58  ;;  %v2166_v38 = vadd.f32 %v2030_v30, %v591_v10  ;;  %1426 = vpow2.f32 %v1104_v8  ;;  %v1108_v23 = vmul.f32 -1.442695, %v2142_v62 }
 0x259   : > { %v596_v17 = vmul.f32 %v2007_v35, %v2046_v43  ;;  %v2172_v50 = vadd.f32 %v2030_v30, %v592_v2  ;;  %1428 = vpow2.f32 %v1105_v15  ;;  %v1109_v29 = vmul.f32 -1.442695, %v2148_v9 }
 0x25a   : > { %v2175_v51 = vpop.eup %1404  ;;  %v597_v58 = vmul.f32 %v2007_v35, %v2049_v11  ;;  %v2180_v36 = vadd.f32 %v2030_v30, %v593_v21  ;;  %1430 = vpow2.f32 %v1106_v27  ;;  %v1110_v53 = vmul.f32 -1.442695, %v2154_v24 }
 0x25b   : > { %v1407_v19 = vpop.eup %1406  ;;  %v598_v43 = vmul.f32 %v2007_v35, %v2063_v12  ;;  %v2186_v48 = vadd.f32 %v2030_v30, %v594_v54  ;;  %1432 = vpow2.f32 %v1107_v60  ;;  %v1111_v20 = vmul.f32 -1.442695, %v2160_v33 }
 0x25c   : > { %v1409_v41 = vpop.eup %1408  ;;  %v599_v11 = vmul.f32 %v2007_v35, %v2066_v18  ;;  %v2192_v25 = vadd.f32 %v2030_v30, %v595_v45  ;;  %1434 = vpow2.f32 %v1108_v23  ;;  %v1112_v59 = vmul.f32 -1.442695, %v2166_v38 }
 0x25d   : > { %v1411_v28 = vpop.eup %1410  ;;  %v600_v12 = vmul.f32 %v2007_v35, %v2073_v56  ;;  %v2198_v61 = vadd.f32 %v2030_v30, %v596_v17  ;;  %1436 = vpow2.f32 %v1109_v29  ;;  %v1113_v63 = vmul.f32 -1.442695, %v2172_v50 }
 0x25e   : > { %v1413_v34 = vpop.eup %1412  ;;  %v601_v18 = vmul.f32 %v2007_v35, %v2076_v49  ;;  %v2204_v37 = vadd.f32 %v2030_v30, %v597_v58  ;;  %1438 = vpow2.f32 %v1110_v53  ;;  %v1114_v3 = vmul.f32 -1.442695, %v2180_v36 }
 0x25f   : > { %v1415_v39 = vpop.eup %1414  ;;  %v602_v56 = vmul.f32 %v2007_v35, %v2083_v26  ;;  %v2210_v42 = vadd.f32 %v2030_v30, %v598_v43  ;;  %1440 = vpow2.f32 %v1111_v20  ;;  %v1115_v46 = vmul.f32 -1.442695, %v2186_v48 }
 0x260   : > { %v1417_v52 = vpop.eup %1416  ;;  %v603_v49 = vmul.f32 %v2007_v35, %v2097_v55  ;;  %v2216_v7 = vadd.f32 %v2030_v30, %v599_v11  ;;  %1442 = vpow2.f32 %v1112_v59  ;;  %v1116_v10 = vmul.f32 -1.442695, %v2192_v25 }
 0x261   : > { %v1419_v8 = vpop.eup %1418  ;;  %v2220_v2 = vadd.f32 %v2030_v30, %v600_v12  ;;  %1444 = vpow2.f32 %v1113_v63  ;;  %v1117_v26 = vmul.f32 -1.442695, %v2198_v61  ;;  %v2224_v21 = vadd.f32 %v2030_v30, %v601_v18 }
 0x262   : > { %v1421_v15 = vpop.eup %1420  ;;  %1446 = vpow2.f32 %v1114_v3  ;;  %v1118_v35 = vmul.f32 -1.442695, %v2204_v37  ;;  %v2228_v27 = vadd.f32 %v2030_v30, %v602_v56  ;;  %v1119_v54 = vmul.f32 -1.442695, %v2210_v42 }
 0x263   : > { %v1423_v55 = vpop.eup %1422  ;;  %1448 = vpow2.f32 %v1115_v46  ;;  %v2232_v45 = vadd.f32 %v2030_v30, %v603_v49  ;;  %v1120_v23 = vmul.f32 -1.442695, %v2216_v7  ;;  %v1121_v29 = vmul.f32 -1.442695, %v2220_v2 }
 0x264   : > { %v1425_v60 = vpop.eup %1424  ;;  %1450 = vpow2.f32 %v1116_v10  ;;  %v1122_v53 = vmul.f32 -1.442695, %v2224_v21  ;;  %v1123_v20 = vmul.f32 -1.442695, %v2228_v27  ;;  %v739_v12 = vadd.f32 1.0, %v2175_v51 }
 0x265   : > { %2315 = vst [vmem:[#allocation2_spill] sm:$0xff] %v2232_v45  ;;  %v1427_v17 = vpop.eup %1426  ;;  %1452 = vpow2.f32 %v1117_v26  ;;  %v1124_v30 = vmul.f32 -1.442695, %v2232_v45  ;;  %v740_v18 = vadd.f32 1.0, %v1407_v19  ;;  %v741_v56 = vadd.f32 1.0, %v1409_v41 }
 0x266   : > { %v1429_v58 = vpop.eup %1428  ;;  %1454 = vpow2.f32 %v1118_v35  ;;  %v742_v49 = vadd.f32 1.0, %v1411_v28  ;;  %v743_v26 = vadd.f32 1.0, %v1413_v34  ;;  %v745_v45 = vadd.f32 1.0, %v1417_v52 }
 0x267   : > { %v1431_v43 = vpop.eup %1430  ;;  %1456 = vpow2.f32 %v1119_v54  ;;  %v744_v54 = vadd.f32 1.0, %v1415_v39  ;;  %v746_v51 = vadd.f32 1.0, %v1419_v8  ;;  %v747_v19 = vadd.f32 1.0, %v1421_v15 }
 0x268   : > { %v1433_v11 = vpop.eup %1432  ;;  %1458 = vpow2.f32 %v1120_v23  ;;  %v748_v41 = vadd.f32 1.0, %v1423_v55  ;;  %v749_v28 = vadd.f32 1.0, %v1425_v60  ;;  %v752_v8 = vadd.f32 1.0, %v1431_v43 }
 0x269   : > { %v1435_v59 = vpop.eup %1434  ;;  %1460 = vpow2.f32 %v1121_v29  ;;  %v753_v15 = vadd.f32 1.0, %v1433_v11 }
 0x26a   : > { %v1437_v63 = vpop.eup %1436  ;;  %1462 = vpow2.f32 %v1122_v53 }
 0x26b   : > { %v1439_v3 = vpop.eup %1438  ;;  %1464 = vpow2.f32 %v1123_v20 }
 0x26c   : > { %v1441_v46 = vpop.eup %1440  ;;  %1466 = vpow2.f32 %v1124_v30 }
 0x26d   : > { %v1443_v10 = vpop.eup %1442  ;;  %1468 = vrcp.f32 %v739_v12  ;;  %v750_v12 = vadd.f32 1.0, %v1427_v17 }
 0x26e   : > { %v1445_v35 = vpop.eup %1444  ;;  %1470 = vrcp.f32 %v740_v18  ;;  %v751_v18 = vadd.f32 1.0, %v1429_v58  ;;  %v756_v58 = vadd.f32 1.0, %v1439_v3  ;;  %v758_v11 = vadd.f32 1.0, %v1443_v10 }
 0x26f   : > { %v1447_v23 = vpop.eup %1446  ;;  %1472 = vrcp.f32 %v741_v56 }
 0x270   : > { %v1449_v29 = vpop.eup %1448  ;;  %1474 = vrcp.f32 %v742_v49  ;;  %v754_v49 = vadd.f32 1.0, %v1435_v59 }
 0x271   : > { %v1451_v53 = vpop.eup %1450  ;;  %1476 = vrcp.f32 %v743_v26 }
 0x272   : > { %v1453_v20 = vpop.eup %1452  ;;  %1478 = vrcp.f32 %v744_v54  ;;  %v757_v54 = vadd.f32 1.0, %v1441_v46 }
 0x273   : > { %v1455_v30 = vpop.eup %1454  ;;  %1480 = vrcp.f32 %v745_v45  ;;  %v755_v45 = vadd.f32 1.0, %v1437_v63  ;;  %v759_v63 = vadd.f32 1.0, %v1445_v35 }
 0x274   : > { %v1457_v34 = vpop.eup %1456  ;;  %1482 = vrcp.f32 %v746_v51 }
 0x275   : > { %v1459_v39 = vpop.eup %1458  ;;  %1484 = vrcp.f32 %v747_v19 }
 0x276   : > { %v2240_v52 = vpop.eup %1460  ;;  %1486 = vrcp.f32 %v748_v41  ;;  %v760_v41 = vadd.f32 1.0, %v1447_v23 }
 0x277   : > { %v2242_v56 = vpop.eup %1462  ;;  %1488 = vrcp.f32 %v749_v28 }
 0x278   : > { %v2244_v55 = vpop.eup %1464  ;;  %1490 = vrcp.f32 %v750_v12  ;;  %v761_v12 = vadd.f32 1.0, %v1449_v29 }
 0x279   : > { %v2246_v60 = vpop.eup %1466  ;;  %1492 = vrcp.f32 %v751_v18 }
 0x27a   : > { %v1469_v17 = vpop.eup %1468  ;;  %1494 = vrcp.f32 %v752_v8  ;;  %v762_v8 = vadd.f32 1.0, %v1451_v53  ;;  %v765_v53 = vadd.f32 1.0, %v1457_v34  ;;  %v768_v34 = vadd.f32 1.0, %v2242_v56 }
 0x27b   : > { %v1471_v26 = vpop.eup %1470  ;;  %1496 = vrcp.f32 %v753_v15  ;;  %v835_v43 = vmul.f32 %v1469_v17, %v2054_v0 }
 0x27c   : > { %v1473_v51 = vpop.eup %1472  ;;  %1498 = vrcp.f32 %v754_v49  ;;  %v836_v19 = vmul.f32 %v1471_v26, %v2057_v4  ;;  %v763_v49 = vadd.f32 1.0, %v1453_v20  ;;  %v766_v26 = vadd.f32 1.0, %v1459_v39 }
 0x27d   : > { %v1475_v59 = vpop.eup %1474  ;;  %1500 = vrcp.f32 %v755_v45  ;;  %v837_v3 = vmul.f32 %v1473_v51, %v2060_v14  ;;  %v764_v45 = vadd.f32 1.0, %v1455_v30  ;;  %v767_v30 = vadd.f32 1.0, %v2240_v52 }
 0x27e   : > { %v1477_v46 = vpop.eup %1476  ;;  %1502 = vrcp.f32 %v756_v58  ;;  %v838_v0 = vmul.f32 %v1475_v59, %v2070_v47  ;;  %v1196_v10 = vpack.c.bf16 %v836_v19, %v835_v43  ;;  %v770_v19 = vadd.f32 1.0, %v2246_v60 }
 0x27f   : > { %v1479_v28 = vpop.eup %1478  ;;  %1504 = vrcp.f32 %v757_v54  ;;  %v839_v4 = vmul.f32 %v1477_v46, %v2080_v13 }
 0x280   : > { %v1481_v18 = vpop.eup %1480  ;;  %1506 = vrcp.f32 %v758_v11  ;;  %v840_v35 = vmul.f32 %v1479_v28, %v2088_v16  ;;  %1197 = vst [vmem:[%s2254_s10] sm:$0xff] %v1196_v10   ;;  %v1201_v15 = vpack.c.bf16 %v838_v0, %v837_v3 }
 0x281   : > { %v1483_v14 = vpop.eup %1482  ;;  %1508 = vrcp.f32 %v759_v63  ;;  %v841_v47 = vmul.f32 %v1481_v18, %v2091_v32 }
 0x282   : > { %v1485_v23 = vpop.eup %1484  ;;  %1510 = vrcp.f32 %v760_v41  ;;  %v842_v29 = vmul.f32 %v1483_v14, %v2101_v22  ;;  %1273 = vst [vmem:[%s2254_s10 + $0x8] sm:$0xff] %v1201_v15   ;;  %v1206_v13 = vpack.c.bf16 %v840_v35, %v839_v4 }
 0x283   : > { %v1487_v17 = vpop.eup %1486  ;;  %1512 = vrcp.f32 %v761_v12  ;;  %v843_v16 = vmul.f32 %v1485_v23, %v2106_v57 }
 0x284   : > { %v1489_v58 = vpop.eup %1488  ;;  %1514 = vrcp.f32 %v762_v8  ;;  %v844_v20 = vmul.f32 %v1487_v17, %v2111_v6  ;;  %1274 = vst [vmem:[%s2254_s10 + $0x10] sm:$0xff] %v1206_v13   ;;  %v1211_v32 = vpack.c.bf16 %v842_v29, %v841_v47  ;;  %v769_v6 = vadd.f32 1.0, %v2244_v55 }
 0x285   : > { %v1491_v54 = vpop.eup %1490  ;;  %1516 = vrcp.f32 %v763_v49  ;;  %v845_v22 = vmul.f32 %v1489_v58, %v2116_v31 }
 0x286   : > { %v1493_v43 = vpop.eup %1492  ;;  %1518 = vrcp.f32 %v764_v45  ;;  %v846_v57 = vmul.f32 %v1491_v54, %v2121_v1  ;;  %1275 = vst [vmem:[%s2254_s10 + $0x18] sm:$0xff] %v1211_v32   ;;  %v1216_v39 = vpack.c.bf16 %v844_v20, %v843_v16 }
 0x287   : > { %v1495_v51 = vpop.eup %1494  ;;  %1520 = vrcp.f32 %v765_v53  ;;  %v847_v11 = vmul.f32 %v1493_v43, %v2126_v40 }
 0x288   : > { %v1497_v52 = vpop.eup %1496  ;;  %1522 = vrcp.f32 %v766_v26  ;;  %v848_v31 = vmul.f32 %v1495_v51, %v2131_v44  ;;  %1276 = vst [vmem:[%s2254_s10 + $0x20] sm:$0xff] %v1216_v39   ;;  %v1221_v56 = vpack.c.bf16 %v846_v57, %v845_v22  ;;  %v2316_v26 = vld [vmem:[#allocation2_spill] sm:$0xff] }
 0x289   : > { %v1499_v59 = vpop.eup %1498  ;;  %1524 = vrcp.f32 %v767_v30  ;;  %v849_v1 = vmul.f32 %v1497_v52, %v2136_v5 }
 0x28a   : > { %v1501_v63 = vpop.eup %1500  ;;  %1526 = vrcp.f32 %v768_v34  ;;  %v850_v55 = vmul.f32 %v1499_v59, %v2142_v62  ;;  %1277 = vst [vmem:[%s2254_s10 + $0x28] sm:$0xff] %v1221_v56   ;;  %v1226_v40 = vpack.c.bf16 %v848_v31, %v847_v11 }
 0x28b   : > { %v1503_v3 = vpop.eup %1502  ;;  %1528 = vrcp.f32 %v769_v6  ;;  %v851_v60 = vmul.f32 %v1501_v63, %v2148_v9 }
 0x28c   : > { %v1505_v44 = vpop.eup %1504  ;;  %1530 = vrcp.f32 %v770_v19  ;;  %v852_v46 = vmul.f32 %v1503_v3, %v2154_v24  ;;  %1278 = vst [vmem:[%s2254_s10 + $0x30] sm:$0xff] %v1226_v40   ;;  %v1231_v41 = vpack.c.bf16 %v850_v55, %v849_v1 }
 0x28d   : > { %v1507_v0 = vpop.eup %1506  ;;  %v853_v5 = vmul.f32 %v1505_v44, %v2160_v33 }
 0x28e   : > { %v1509_v10 = vpop.eup %1508  ;;  %v854_v62 = vmul.f32 %v1507_v0, %v2166_v38  ;;  %1279 = vst [vmem:[%s2254_s10 + $0x38] sm:$0xff] %v1231_v41   ;;  %v1236_v28 = vpack.c.bf16 %v852_v46, %v851_v60 }
 0x28f   : > { %v1511_v12 = vpop.eup %1510  ;;  %v855_v9 = vmul.f32 %v1509_v10, %v2172_v50 }
 0x290   : > { %v1513_v4 = vpop.eup %1512  ;;  %v856_v18 = vmul.f32 %v1511_v12, %v2180_v36  ;;  %1280 = vst [vmem:[%s2254_s10 + $0x40] sm:$0xff] %v1236_v28   ;;  %v1241_v24 = vpack.c.bf16 %v854_v62, %v853_v5 }
 0x291   : > { %v1515_v8 = vpop.eup %1514  ;;  %v857_v35 = vmul.f32 %v1513_v4, %v2186_v48 }
 0x292   : > { %v1517_v15 = vpop.eup %1516  ;;  %v858_v33 = vmul.f32 %v1515_v8, %v2192_v25  ;;  %1281 = vst [vmem:[%s2254_s10 + $0x48] sm:$0xff] %v1241_v24   ;;  %v1246_v38 = vpack.c.bf16 %v856_v18, %v855_v9 }
 0x293   : > { %v1519_v14 = vpop.eup %1518  ;;  %v859_v49 = vmul.f32 %v1517_v15, %v2198_v61 }
 0x294   : > { %v1521_v47 = vpop.eup %1520  ;;  %v860_v50 = vmul.f32 %v1519_v14, %v2204_v37  ;;  %1282 = vst [vmem:[%s2254_s10 + $0x50] sm:$0xff] %v1246_v38   ;;  %v1251_v36 = vpack.c.bf16 %v858_v33, %v857_v35 }
 0x295   : > { %v1523_v23 = vpop.eup %1522  ;;  %v861_v45 = vmul.f32 %v1521_v47, %v2210_v42 }
 0x296   : > { %v1525_v48 = vpop.eup %1524  ;;  %v862_v29 = vmul.f32 %v1523_v23, %v2216_v7  ;;  %1283 = vst [vmem:[%s2254_s10 + $0x58] sm:$0xff] %v1251_v36   ;;  %v1256_v25 = vpack.c.bf16 %v860_v50, %v859_v49 }
 0x297   : > { %v1527_v13 = vpop.eup %1526  ;;  %v863_v17 = vmul.f32 %v1525_v48, %v2220_v2 }
 0x298   : > { %v1529_v61 = vpop.eup %1528  ;;  %v864_v53 = vmul.f32 %v1527_v13, %v2224_v21  ;;  %1284 = vst [vmem:[%s2254_s10 + $0x60] sm:$0xff] %v1256_v25   ;;  %v1261_v37 = vpack.c.bf16 %v862_v29, %v861_v45 }
 0x299   : > { %v1531_v16 = vpop.eup %1530  ;;  %v865_v58 = vmul.f32 %v1529_v61, %v2228_v27 }
 0x29a   : > { %v866_v42 = vmul.f32 %v1531_v16, %v2316_v26  ;;  %1285 = vst [vmem:[%s2254_s10 + $0x68] sm:$0xff] %v1261_v37   ;;  %v1266_v20 = vpack.c.bf16 %v864_v53, %v863_v17 }
 0x29c   : > { %1286 = vst [vmem:[%s2254_s10 + $0x70] sm:$0xff] %v1266_v20   ;;  %v1271_v7 = vpack.c.bf16 %v866_v42, %v865_v58 }
 0x29e   : > { %1287 = vst [vmem:[%s2254_s10 + $0x78] sm:$0xff] %v1271_v7  }
 0x29f PF: > { %s14_s15 = sadd.s32 1, %s1538_s15  }
 0x2a0   : > { %p11_p4 = scmp.ge.s32.totalorder %s14_s15, 4  }
 0x2a2   :  { %13 = sbr.rel (!%p11_p4) target bundleno = 1 (0x1), region = 66 }

// kernel: res_block.9
= control target key start
LH: loop header
LB: loop body
LE: loop exit
PB: predicated region body
PF: predicated region fallthrough
CT: control target
= control target key end

     0   :  { %s1180_s12 = smov 0   ;;  %s1182_s13 = smov 0   ;;  %s1330_s0 = inlined_call_operand.vmem [shape: bf16[512,128], index: 0, kind: input, shape index: {}]   ;;  %s1331_s1 = inlined_call_operand.vmem [shape: bf16[128,128], index: 1, kind: input, shape index: {}]   ;;  %s1332_s2 = inlined_call_operand.vmem [shape: f32[1,128], index: 2, kind: input, shape index: {}]   ;;  %s1333_s3 = inlined_call_operand.vmem [shape: f32[512,128], index: 3, kind: output, shape index: {}]  }
   0x1   :  { %s1184_s14 = smov 0  }
   0x2 LB: > { %s32_s15 = sadd.s32 1, %s1154_s13  ;;  %p968_p0 = scmp.ge.s32.totalorder %s1158_s14, 1  ;;  %s1158_s14 = sphi %s1184_s14, %s13_s14   ;;  %s1154_s13 = sphi %s1182_s13, %s1335_s13   ;;  %s1150_s12 = sphi %s1180_s12, %s1334_s12  }
   0x3   : > { %p34_p1 = scmp.ge.s32.totalorder %s32_s15, 2  ;;  %p188_p2 = scmp.lt.s32.totalorder %s1158_s14, 3 }
   0x5   : > { %s1337_s15 = smov (%p34_p1, %s32_s15), 0  ;;  %p189_p3 = pnand %p968_p0, %p188_p2 }
   0x6   : > { %s969_s18 = sshll.u32 (!%p189_p3), %s1150_s12, 5 }
   0x7   : > { %192 = sbr.rel (%p189_p3) target bundleno = 271 (0x10f), region = 32  ;;  %p230_p4 = scmp.lt.s32.totalorder (!%p189_p3), %s969_s18, 63 }
   0xc   : > { %v1112_v0 = vld [vmem:[%s1331_s1 + $0x38] sm:$0xff]   ;;  %v1113_v1 = vld [vmem:[%s1331_s1 + $0x30] sm:$0xff]   ;;  %s1339_s18 = smov (!%p230_p4, %s969_s18), 63  ;;  %v1114_v2 = vld [vmem:[%s1331_s1 + $0x28] sm:$0xff]  }
   0xd   : > { %1024 = vmatprep.subr.bf16.mxu0 %v1112_v0  ;;  %1072 = vmatprep.subr.bf16.mxu1 %v1112_v0  ;;  %s970_s23 = sshll.u32 %s1339_s18, 2  ;;  %v1115_v3 = vld [vmem:[%s1331_s1 + $0x20] sm:$0xff]   ;;  %v1116_v6 = vld [vmem:[%s1331_s1 + $0x18] sm:$0xff]   ;;  %v1117_v7 = vld [vmem:[%s1331_s1 + $0x10] sm:$0xff]   ;;  %s972_s10 = sshll.u32 %s1339_s18, 3 }
   0xe   : > { %1025 = vmatpush3.bf16.msra.mxu0 %v1112_v0  ;;  %1080 = vmatpush3.bf16.msra.mxu1 %v1112_v0  ;;  %s1213_s26 = scalar_lea.vmem %s1330_s0, %s970_s23  ;;  %v1118_v8 = vld [vmem:[%s1331_s1 + $0x8] sm:$0xff]   ;;  %v1119_v9 = vld [vmem:[%s1331_s1] sm:$0xff]   ;;  %s1255_s19 = scalar_lea.vmem %s1333_s3, %s972_s10 }
   0xf   : > { %1026 = vmatprep.subr.bf16.mxu0 %v1113_v1  ;;  %1073 = vmatprep.subr.bf16.mxu1 %v1113_v1  ;;  %v1120_v4 = vld [vmem:[%s1213_s26] sm:$0xff]   ;;  %v1122_v10 = vld [vmem:[%s1213_s26 + $0x8] sm:$0xff]   ;;  %v1124_v12 = vld [vmem:[%s1213_s26 + $0x10] sm:$0xff]  }
  0x10   : > { %v1121_v5 = vld [vmem:[%s1213_s26 + $0x40] sm:$0xff]   ;;  %1040 = vmatprep.mubr.bf16.mxu0 %v1120_v4  ;;  %v1123_v11 = vld [vmem:[%s1213_s26 + $0x48] sm:$0xff]   ;;  %v1125_v13 = vld [vmem:[%s1213_s26 + $0x50] sm:$0xff]  }
  0x11   : > { %1056 = vmatprep.mubr.bf16.mxu1 %v1121_v5  ;;  %v1126_v14 = vld [vmem:[%s1213_s26 + $0x18] sm:$0xff]   ;;  %v1128_v16 = vld [vmem:[%s1213_s26 + $0x20] sm:$0xff]   ;;  %v1130_v18 = vld [vmem:[%s1213_s26 + $0x28] sm:$0xff]  }
  0x12   : > { %1027 = vmatpush3.bf16.msra.mxu0 %v1113_v1  ;;  %1081 = vmatpush3.bf16.msra.mxu1 %v1113_v1  ;;  %v1127_v15 = vld [vmem:[%s1213_s26 + $0x58] sm:$0xff]   ;;  %v1129_v17 = vld [vmem:[%s1213_s26 + $0x60] sm:$0xff]   ;;  %v1131_v19 = vld [vmem:[%s1213_s26 + $0x68] sm:$0xff]  }
  0x13   : > { %1028 = vmatprep.subr.bf16.mxu0 %v1114_v2  ;;  %1074 = vmatprep.subr.bf16.mxu1 %v1114_v2  ;;  %v1132_v20 = vld [vmem:[%s1213_s26 + $0x30] sm:$0xff]   ;;  %v1134_v22 = vld [vmem:[%s1213_s26 + $0x38] sm:$0xff]   ;;  %v1250_v24 = vld [vmem:[%s1332_s2] ss:$0 sm:$0xff] }
  0x14   : > { %v1133_v21 = vld [vmem:[%s1213_s26 + $0x70] sm:$0xff]   ;;  %v1135_v23 = vld [vmem:[%s1213_s26 + $0x78] sm:$0xff]  }
  0x16   : > { %1029 = vmatpush3.bf16.msra.mxu0 %v1114_v2  ;;  %1082 = vmatpush3.bf16.msra.mxu1 %v1114_v2 }
  0x17   : > { %1030 = vmatprep.subr.bf16.mxu0 %v1115_v3  ;;  %1075 = vmatprep.subr.bf16.mxu1 %v1115_v3 }
  0x1a   : > { %1031 = vmatpush3.bf16.msra.mxu0 %v1115_v3  ;;  %1083 = vmatpush3.bf16.msra.mxu1 %v1115_v3 }
  0x1b   : > { %1032 = vmatprep.subr.bf16.mxu0 %v1116_v6  ;;  %1076 = vmatprep.subr.bf16.mxu1 %v1116_v6 }
  0x1e   : > { %1033 = vmatpush3.bf16.msra.mxu0 %v1116_v6  ;;  %1084 = vmatpush3.bf16.msra.mxu1 %v1116_v6 }
  0x1f   : > { %1034 = vmatprep.subr.bf16.mxu0 %v1117_v7  ;;  %1077 = vmatprep.subr.bf16.mxu1 %v1117_v7 }
  0x22   : > { %1035 = vmatpush3.bf16.msra.mxu0 %v1117_v7  ;;  %1085 = vmatpush3.bf16.msra.mxu1 %v1117_v7 }
  0x23   : > { %1036 = vmatprep.subr.bf16.mxu0 %v1118_v8  ;;  %1078 = vmatprep.subr.bf16.mxu1 %v1118_v8 }
  0x26   : > { %1037 = vmatpush3.bf16.msra.mxu0 %v1118_v8  ;;  %1086 = vmatpush3.bf16.msra.mxu1 %v1118_v8 }
  0x27   : > { %1038 = vmatprep.subr.bf16.mxu0 %v1119_v9  ;;  %1079 = vmatprep.subr.bf16.mxu1 %v1119_v9 }
  0x2a   : > { %1039 = vmatpush3.bf16.msra.mxu0 %v1119_v9  ;;  %1087 = vmatpush3.bf16.msra.mxu1 %v1119_v9 }
  0x2d   : > { %1041 = vmatmul.mubr.bf16.vlgmr.msra.gmra.mxu0 %v1122_v10  ;;  %1057 = vmatmul.mubr.bf16.vlgmr.msra.gmra.mxu1 %v1123_v11 }
  0x2e   : > { %1044 = vmatprep.mubr.bf16.mxu0 %v1124_v12  ;;  %1060 = vmatprep.mubr.bf16.mxu1 %v1125_v13 }
  0x35   : > { %1045 = vmatmul.mubr.bf16.gmra.mxu0 %v1126_v14  ;;  %1061 = vmatmul.mubr.bf16.gmra.mxu1 %v1127_v15 }
  0x36   : > { %1048 = vmatprep.mubr.bf16.mxu0 %v1128_v16  ;;  %1064 = vmatprep.mubr.bf16.mxu1 %v1129_v17 }
  0x3d   : > { %1049 = vmatmul.mubr.bf16.gmra.mxu0 %v1130_v18  ;;  %1065 = vmatmul.mubr.bf16.gmra.mxu1 %v1131_v19 }
  0x3e   : > { %1052 = vmatprep.mubr.bf16.mxu0 %v1132_v20  ;;  %1068 = vmatprep.mubr.bf16.mxu1 %v1133_v21 }
  0x45   : > { %1053 = vmatmul.mubr.bf16.gmra.mxu0 %v1134_v22  ;;  %1069 = vmatmul.mubr.bf16.gmra.mxu1 %v1135_v23 }
  0xed   : > { %v1042_v25 = vpop.f32.mrf.mxu0  ;;  %v1058_v26 = vpop.f32.mrf.mxu1 }
  0xee   : > { %v789_v27 = vadd.f32 %v1042_v25, %v1250_v24  ;;  %v805_v28 = vadd.f32 %v1058_v26, %v1250_v24 }
  0xef   : > { %v554_v29 = vpop.f32.mrf.mxu0  ;;  %v618_v30 = vpop.f32.mrf.mxu1 }
  0xf0   : > { %821 = vst [vmem:[%s1255_s19 + $0x10] sm:$0xff] %v789_v27  ;;  %837 = vst [vmem:[%s1255_s19 + $0x90] sm:$0xff] %v805_v28  ;;  %v787_v31 = vadd.f32 %v1250_v24, %v554_v29  ;;  %v803_v32 = vadd.f32 %v1250_v24, %v618_v30 }
  0xf1   : > { %v1043_v33 = vpop.f32.mrf.mxu0  ;;  %v1059_v34 = vpop.f32.mrf.mxu1 }
  0xf2   : > { %819 = vst [vmem:[%s1255_s19] sm:$0xff] %v787_v31  ;;  %835 = vst [vmem:[%s1255_s19 + $0x80] sm:$0xff] %v803_v32  ;;  %v790_v35 = vadd.f32 %v1043_v33, %v1250_v24  ;;  %v806_v36 = vadd.f32 %v1059_v34, %v1250_v24 }
  0xf3   : > { %v557_v37 = vpop.f32.mrf.mxu0  ;;  %v621_v38 = vpop.f32.mrf.mxu1 }
  0xf4   : > { %822 = vst [vmem:[%s1255_s19 + $0x18] sm:$0xff] %v790_v35  ;;  %838 = vst [vmem:[%s1255_s19 + $0x98] sm:$0xff] %v806_v36  ;;  %v788_v39 = vadd.f32 %v1250_v24, %v557_v37  ;;  %v804_v40 = vadd.f32 %v1250_v24, %v621_v38 }
  0xf5   : > { %v1046_v41 = vpop.f32.mrf.mxu0  ;;  %v1062_v42 = vpop.f32.mrf.mxu1 }
  0xf6   : > { %820 = vst [vmem:[%s1255_s19 + $0x8] sm:$0xff] %v788_v39  ;;  %836 = vst [vmem:[%s1255_s19 + $0x88] sm:$0xff] %v804_v40  ;;  %v793_v43 = vadd.f32 %v1046_v41, %v1250_v24  ;;  %v809_v44 = vadd.f32 %v1062_v42, %v1250_v24 }
  0xf7   : > { %v570_v45 = vpop.f32.mrf.mxu0  ;;  %v634_v46 = vpop.f32.mrf.mxu1 }
  0xf8   : > { %825 = vst [vmem:[%s1255_s19 + $0x30] sm:$0xff] %v793_v43  ;;  %841 = vst [vmem:[%s1255_s19 + $0xb0] sm:$0xff] %v809_v44  ;;  %v791_v47 = vadd.f32 %v1250_v24, %v570_v45  ;;  %v807_v48 = vadd.f32 %v1250_v24, %v634_v46 }
  0xf9   : > { %v1047_v49 = vpop.f32.mrf.mxu0  ;;  %v1063_v50 = vpop.f32.mrf.mxu1 }
  0xfa   : > { %823 = vst [vmem:[%s1255_s19 + $0x20] sm:$0xff] %v791_v47  ;;  %839 = vst [vmem:[%s1255_s19 + $0xa0] sm:$0xff] %v807_v48  ;;  %v794_v51 = vadd.f32 %v1047_v49, %v1250_v24  ;;  %v810_v52 = vadd.f32 %v1063_v50, %v1250_v24 }
  0xfb   : > { %v573_v53 = vpop.f32.mrf.mxu0  ;;  %v637_v54 = vpop.f32.mrf.mxu1 }
  0xfc   : > { %826 = vst [vmem:[%s1255_s19 + $0x38] sm:$0xff] %v794_v51  ;;  %842 = vst [vmem:[%s1255_s19 + $0xb8] sm:$0xff] %v810_v52  ;;  %v792_v55 = vadd.f32 %v1250_v24, %v573_v53  ;;  %v808_v56 = vadd.f32 %v1250_v24, %v637_v54 }
  0xfd   : > { %v1050_v57 = vpop.f32.mrf.mxu0  ;;  %v1066_v58 = vpop.f32.mrf.mxu1 }
  0xfe   : > { %824 = vst [vmem:[%s1255_s19 + $0x28] sm:$0xff] %v792_v55  ;;  %840 = vst [vmem:[%s1255_s19 + $0xa8] sm:$0xff] %v808_v56  ;;  %v797_v59 = vadd.f32 %v1050_v57, %v1250_v24  ;;  %v813_v60 = vadd.f32 %v1066_v58, %v1250_v24 }
  0xff   : > { %v586_v61 = vpop.f32.mrf.mxu0  ;;  %v650_v62 = vpop.f32.mrf.mxu1 }
 0x100   : > { %829 = vst [vmem:[%s1255_s19 + $0x50] sm:$0xff] %v797_v59  ;;  %845 = vst [vmem:[%s1255_s19 + $0xd0] sm:$0xff] %v813_v60  ;;  %v795_v63 = vadd.f32 %v1250_v24, %v586_v61  ;;  %v811_v0 = vadd.f32 %v1250_v24, %v650_v62 }
 0x101   : > { %v1051_v1 = vpop.f32.mrf.mxu0  ;;  %v1067_v2 = vpop.f32.mrf.mxu1 }
 0x102   : > { %827 = vst [vmem:[%s1255_s19 + $0x40] sm:$0xff] %v795_v63  ;;  %843 = vst [vmem:[%s1255_s19 + $0xc0] sm:$0xff] %v811_v0  ;;  %v798_v3 = vadd.f32 %v1051_v1, %v1250_v24  ;;  %v814_v4 = vadd.f32 %v1067_v2, %v1250_v24 }
 0x103   : > { %v589_v5 = vpop.f32.mrf.mxu0  ;;  %v653_v6 = vpop.f32.mrf.mxu1 }
 0x104   : > { %830 = vst [vmem:[%s1255_s19 + $0x58] sm:$0xff] %v798_v3  ;;  %846 = vst [vmem:[%s1255_s19 + $0xd8] sm:$0xff] %v814_v4  ;;  %v796_v7 = vadd.f32 %v1250_v24, %v589_v5  ;;  %v812_v8 = vadd.f32 %v1250_v24, %v653_v6 }
 0x105   : > { %v1054_v9 = vpop.f32.mrf.mxu0  ;;  %v1070_v10 = vpop.f32.mrf.mxu1 }
 0x106   : > { %828 = vst [vmem:[%s1255_s19 + $0x48] sm:$0xff] %v796_v7  ;;  %844 = vst [vmem:[%s1255_s19 + $0xc8] sm:$0xff] %v812_v8  ;;  %v801_v11 = vadd.f32 %v1054_v9, %v1250_v24  ;;  %v817_v12 = vadd.f32 %v1070_v10, %v1250_v24 }
 0x107   : > { %v602_v13 = vpop.f32.mrf.mxu0  ;;  %v666_v14 = vpop.f32.mrf.mxu1 }
 0x108   : > { %833 = vst [vmem:[%s1255_s19 + $0x70] sm:$0xff] %v801_v11  ;;  %849 = vst [vmem:[%s1255_s19 + $0xf0] sm:$0xff] %v817_v12  ;;  %v799_v15 = vadd.f32 %v1250_v24, %v602_v13  ;;  %v815_v16 = vadd.f32 %v1250_v24, %v666_v14 }
 0x109   : > { %v1055_v17 = vpop.f32.mrf.mxu0  ;;  %v1071_v18 = vpop.f32.mrf.mxu1 }
 0x10a   : > { %831 = vst [vmem:[%s1255_s19 + $0x60] sm:$0xff] %v799_v15  ;;  %847 = vst [vmem:[%s1255_s19 + $0xe0] sm:$0xff] %v815_v16  ;;  %v802_v19 = vadd.f32 %v1055_v17, %v1250_v24  ;;  %v818_v20 = vadd.f32 %v1071_v18, %v1250_v24 }
 0x10b   : > { %v605_v21 = vpop.f32.mrf.mxu0  ;;  %v669_v22 = vpop.f32.mrf.mxu1 }
 0x10c   : > { %834 = vst [vmem:[%s1255_s19 + $0x78] sm:$0xff] %v802_v19  ;;  %850 = vst [vmem:[%s1255_s19 + $0xf8] sm:$0xff] %v818_v20  ;;  %v800_v23 = vadd.f32 %v1250_v24, %v605_v21  ;;  %v816_v25 = vadd.f32 %v1250_v24, %v669_v22 }
 0x10e   : > { %832 = vst [vmem:[%s1255_s19 + $0x68] sm:$0xff] %v800_v23  ;;  %848 = vst [vmem:[%s1255_s19 + $0xe8] sm:$0xff] %v816_v25 }
 0x10f PF: > { %s13_s14 = sadd.s32 1, %s1158_s14   ;;  %s1334_s12 = smov %s1154_s13 }
 0x110   : > { %p10_p5 = scmp.ge.s32.totalorder %s13_s14, 4   ;;  %s1335_s13 = smov %s1337_s15 }
 0x112   :  { %12 = sbr.rel (!%p10_p5) target bundleno = 2 (0x2), region = 76 }

// kernel: res_block.8
= control target key start
LH: loop header
LB: loop body
LE: loop exit
PB: predicated region body
PF: predicated region fallthrough
CT: control target
= control target key end

     0   :  { %s8764_s15 = smov 0   ;;  %s10277_s0 = inlined_call_operand.vmem [shape: bf16[2,456,96], index: 0, kind: input, shape index: {}]   ;;  %s10278_s1 = inlined_call_operand.vmem [shape: bf16[9,96,128], index: 1, kind: input, shape index: {}]   ;;  %s10279_s2 = inlined_call_operand.vmem [shape: f32[1,128], index: 2, kind: input, shape index: {}]   ;;  %s10280_s3 = inlined_call_operand.vmem [shape: f32[2,1,128], index: 3, kind: input, shape index: {}]   ;;  %s10281_s4 = inlined_call_operand.vmem [shape: f32[2,384,128], index: 4, kind: output, shape index: {}]  }
   0x1 LB: > { %s7024_s16 = sadd.s32 4294967295, %s8737_s15   ;;  %p7028_p0 = scmp.ge.s32.totalorder %s8737_s15, 1  ;;  %s8737_s15 = sphi %s8764_s15, %s14_s15  }
   0x2   : > { %p170_p1 = scmp.lt.s32.totalorder %s8737_s15, 3 }
   0x4   : > { %p171_p2 = pnand %p7028_p0, %p170_p1 }
   0x6   : > { %174 = sbr.rel (%p171_p2) target bundleno = 664 (0x298), region = 36 }
   0xb   : > { %v8455_v0 = vld [vmem:[%s10278_s1 + $0x28] sm:$0xff]   ;;  %p199_p3 = scmp.lt.s32.totalorder %s7024_s16, 1  ;;  %v8456_v1 = vld [vmem:[%s10278_s1 + $0x20] sm:$0xff]   ;;  %v8457_v2 = vld [vmem:[%s10278_s1 + $0x18] sm:$0xff]   ;;  %vm541_vm0 = vcmask 785408   ;;  %vm2027_vm1 = vcmask 1046528  }
   0xc   : > { %8433 = vmatprep.subr.bf16.mxu1 %v8455_v0  ;;  %7893 = vmatprep.subr.bf16.mxu0 %v8455_v0  ;;  %v8458_v4 = vld [vmem:[%s10278_s1 + $0x10] sm:$0xff]   ;;  %v8459_v6 = vld [vmem:[%s10278_s1 + $0x8] sm:$0xff]   ;;  %v8460_v7 = vld [vmem:[%s10278_s1] sm:$0xff]   ;;  %vm1168_vm2 = vsmask.f32 7424 }
   0xd   : > { %s10285_s16 = smov (!%p199_p3, %s7024_s16), 1  ;;  %8439 = vmatpush3.bf16.msra.mxu1 %v8455_v0  ;;  %7894 = vmatpush3.bf16.msra.mxu0 %v8455_v0  ;;  %v8463_v8 = vld [vmem:[%s10278_s1 + $0x58] sm:$0xff]   ;;  %v8469_v10 = vld [vmem:[%s10278_s1 + $0x88] sm:$0xff]   ;;  %v8468_v13 = vld [vmem:[%s10278_s1 + $0x50] sm:$0xff]  }
   0xe   : > { %8434 = vmatprep.subr.bf16.mxu1 %v8456_v1  ;;  %7895 = vmatprep.subr.bf16.mxu0 %v8456_v1  ;;  %s8445_s23 = smul.u32 228, %s10285_s16  ;;  %v8475_v15 = vld [vmem:[%s10278_s1 + $0x80] sm:$0xff]   ;;  %v8474_v18 = vld [vmem:[%s10278_s1 + $0x48] sm:$0xff]   ;;  %v8481_v19 = vld [vmem:[%s10278_s1 + $0x78] sm:$0xff]   ;;  %s206_s18 = scalar_lea.vmem %s10280_s3, %s10285_s16 }
   0xf   : > { %v8480_v22 = vld [vmem:[%s10278_s1 + $0x40] sm:$0xff]   ;;  %v8487_v23 = vld [vmem:[%s10278_s1 + $0x70] sm:$0xff]   ;;  %v8486_v26 = vld [vmem:[%s10278_s1 + $0x38] sm:$0xff]   ;;  %s8446_s21 = smul.u32 384, %s10285_s16 }
  0x10   : > { %s8787_s26 = scalar_lea.vmem %s10277_s0, %s8445_s23  ;;  %v8492_v29 = vld [vmem:[%s10278_s1 + $0x30] sm:$0xff]   ;;  %v8493_v30 = vld [vmem:[%s10278_s1 + $0x68] sm:$0xff]   ;;  %v8864_v33 = vld [vmem:[%s10278_s1 + $0xb8] sm:$0xff]  }
  0x11   : > { %8440 = vmatpush3.bf16.msra.mxu1 %v8456_v1  ;;  %7896 = vmatpush3.bf16.msra.mxu0 %v8456_v1  ;;  %v8461_v3 = vld [vmem:[%s8787_s26 + $0x60] sm:$0xff]   ;;  %v8462_v9 = vld [vmem:[%s8787_s26 + $0x68] sm:$0xff]   ;;  %v8466_v12 = vld [vmem:[%s8787_s26 + $0x70] sm:$0xff]   ;;  %s9215_s24 = scalar_lea.vmem %s10281_s4, %s8446_s21 }
  0x12   : > { %8435 = vmatprep.subr.bf16.mxu1 %v8457_v2  ;;  %7897 = vmatprep.subr.bf16.mxu0 %v8457_v2  ;;  %v8464_v5 = vld [vmem:[%s8787_s26] sm:$0xff]   ;;  %v8465_v11 = vld [vmem:[%s8787_s26 + $0x8] sm:$0xff]   ;;  %v8470_v14 = vld [vmem:[%s8787_s26 + $0x10] sm:$0xff]  }
  0x13   : > { %7929 = vmatprep.mubr.msk.bf16.mxu1 %vm541_vm0, %v8461_v3  ;;  %7905 = vmatprep.mubr.msk.bf16.mxu0 %vm541_vm0, %v8464_v5  ;;  %v8467_v16 = vld [vmem:[%s8787_s26 + $0x78] sm:$0xff]   ;;  %v8472_v20 = vld [vmem:[%s8787_s26 + $0x80] sm:$0xff]   ;;  %v8473_v24 = vld [vmem:[%s8787_s26 + $0x88] sm:$0xff]  }
  0x14   : > { %v8471_v17 = vld [vmem:[%s8787_s26 + $0x18] sm:$0xff]   ;;  %v8476_v21 = vld [vmem:[%s8787_s26 + $0x20] sm:$0xff]   ;;  %v8477_v25 = vld [vmem:[%s8787_s26 + $0x28] sm:$0xff]  }
  0x15   : > { %8441 = vmatpush3.bf16.msra.mxu1 %v8457_v2  ;;  %7898 = vmatpush3.bf16.msra.mxu0 %v8457_v2  ;;  %v8478_v27 = vld [vmem:[%s8787_s26 + $0x90] sm:$0xff]   ;;  %v8479_v31 = vld [vmem:[%s8787_s26 + $0x98] sm:$0xff]   ;;  %v8484_v34 = vld [vmem:[%s8787_s26 + $0xa0] sm:$0xff]  }
  0x16   : > { %8436 = vmatprep.subr.bf16.mxu1 %v8458_v4  ;;  %7899 = vmatprep.subr.bf16.mxu0 %v8458_v4  ;;  %v8482_v28 = vld [vmem:[%s8787_s26 + $0x30] sm:$0xff]   ;;  %v8483_v32 = vld [vmem:[%s8787_s26 + $0x38] sm:$0xff]   ;;  %v8500_v35 = vld [vmem:[%s10278_s1 + $0x60] sm:$0xff]  }
  0x17   : > { %v8488_v36 = vld [vmem:[%s8787_s26 + $0x40] sm:$0xff]   ;;  %v8497_v38 = vld [vmem:[%s8787_s26 + $0x8] sm:$0xff]   ;;  %v8490_v42 = vld [vmem:[%s8787_s26 + $0xb0] sm:$0xff]  }
  0x18   : > { %v8496_v37 = vld [vmem:[%s8787_s26] sm:$0xff]   ;;  %v8485_v39 = vld [vmem:[%s8787_s26 + $0xa8] sm:$0xff]   ;;  %v8494_v44 = vld [vmem:[%s8787_s26 + $0x50] sm:$0xff]   ;;  %v1177_v46 = vshll.u32 %v8497_v38, 16  ;;  %v1181_v58 = vshrl.u32 %v8497_v38, 16 }
  0x19   : > { %8442 = vmatpush3.bf16.msra.mxu1 %v8458_v4  ;;  %7900 = vmatpush3.bf16.msra.mxu0 %v8458_v4  ;;  %v8489_v40 = vld [vmem:[%s8787_s26 + $0x48] sm:$0xff]   ;;  %v1172_v41 = vshll.u32 %v8496_v37, 16  ;;  %v1170_v45 = vshrl.u32 %v8496_v37, 16  ;;  %v8501_v48 = vld [vmem:[%s8787_s26] sm:$0xfe]   ;;  %v8498_v50 = vld [vmem:[%s8787_s26 + $0x10] sm:$0xff]  }
  0x1a   : > { %8437 = vmatprep.subr.bf16.mxu1 %v8459_v6  ;;  %7901 = vmatprep.subr.bf16.mxu0 %v8459_v6  ;;  %v8884_v43 = vld [vmem:[%s10278_s1 + $0xe8] sm:$0xff]   ;;  %v8491_v51 = vld [vmem:[%s8787_s26 + $0xb8] sm:$0xff]   ;;  %v1179_v54 = vrot.slane %v1177_v46, 1  ;;  %v2028_v55 = vrot.slane %v8501_v48, 1  ;;  %v1185_v59 = vshll.u32 %v8498_v50, 16  ;;  %v8503_v60 = vld [vmem:[%s8787_s26 + $0x10] sm:$0xff]  }
  0x1b   : > { %v1174_v47 = vrot.slane %v1172_v41, 1  ;;  %v8502_v49 = vld [vmem:[%s8787_s26 + $0x8] sm:$0xff]   ;;  %v8495_v52 = vld [vmem:[%s8787_s26 + $0x58] sm:$0xff]   ;;  %v1189_v61 = vshrl.u32 %v8498_v50, 16  ;;  %v8505_v1 = vld [vmem:[%s8787_s26 + $0x20] sm:$0xff]   ;;  %v2031_v5 = vrot.slane %v8503_v60, 1 }
  0x1c   : > { %v2029_v56 = vrot.slane %v8502_v49, 1  ;;  %v8504_v57 = vld [vmem:[%s8787_s26 + $0x18] sm:$0xff]   ;;  %v1187_v3 = vrot.slane %v1185_v59, 1  ;;  %v1183_v4 = vor.u32 %v1181_v58, %v1179_v54 }
  0x1d   : > { %8443 = vmatpush3.bf16.msra.mxu1 %v8459_v6  ;;  %7902 = vmatpush3.bf16.msra.mxu0 %v8459_v6  ;;  %v1175_v53 = vor.u32 %v1174_v47, %v1170_v45  ;;  %v1193_v0 = vshll.u32 %v8504_v57, 16  ;;  %v8507_v2 = vld [vmem:[%s8787_s26 + $0x18] sm:$0xff]   ;;  %v8509_v6 = vld [vmem:[%s8787_s26 + $0x28] sm:$0xff]  }
  0x1e   : > { %8438 = vmatprep.subr.bf16.mxu1 %v8460_v7  ;;  %7903 = vmatprep.subr.bf16.mxu0 %v8460_v7  ;;  %v2030_v63 = vsel %vm2027_vm1, %v2028_v55, %v2029_v56  ;;  %v8517_v41 = vld [vmem:[%s8787_s26 + $0x38] sm:$0xff]   ;;  %v8519_v47 = vld [vmem:[%s8787_s26 + $0x48] sm:$0xff]  }
  0x1f   : > { %v1180_v62 = vsel %vm1168_vm2, %v1175_v53, %v1179_v54  ;;  %v2041_v50 = vrot.slane %v8517_v41, 1  ;;  %v8536_v53 = vld [vmem:[%s10278_s1 + $0xd0] sm:$0xff]  }
  0x21   : > { %8444 = vmatpush3.bf16.msra.mxu1 %v8460_v7  ;;  %7904 = vmatpush3.bf16.msra.mxu0 %v8460_v7  ;;  %v1191_v7 = vor.u32 %v1189_v61, %v1187_v3  ;;  %v8522_v61 = vld [vmem:[%s8787_s26 + $0x48] sm:$0xff]  }
  0x22   : > { %7953 = vmatprep.subr.bf16.mxu1 %v8463_v8  ;;  %8013 = vmatprep.subr.bf16.mxu0 %v8469_v10 }
  0x24   : > { %7930 = vmatmul.mubr.msk.bf16.vlgmr.msra.gmra.mxu1 %vm541_vm0, %v8462_v9  ;;  %7906 = vmatmul.mubr.msk.bf16.vlgmr.msra.gmra.mxu0 %vm541_vm0, %v8465_v11  ;;  %v1201_v9 = vshll.u32 %v8505_v1, 16  ;;  %v8508_v11 = vld [vmem:[%s8787_s26 + $0x20] sm:$0xff]  }
  0x25   : > { %7954 = vmatpush3.bf16.msra.mxu1 %v8463_v8  ;;  %7933 = vmatprep.mubr.msk.bf16.mxu1 %vm541_vm0, %v8466_v12  ;;  %v1195_v8 = vrot.slane %v1193_v0, 1  ;;  %v1188_v12 = vsel %vm1168_vm2, %v1183_v4, %v1187_v3  ;;  %v8541_v0 = vld [vmem:[%s10278_s1 + $0x98] sm:$0xff]  }
  0x26   : > { %7955 = vmatprep.subr.bf16.mxu1 %v8468_v13  ;;  %8014 = vmatpush3.bf16.msra.mxu0 %v8469_v10  ;;  %v2033_v10 = vrot.slane %v8507_v2, 1 }
  0x27   : > { %7909 = vmatprep.mubr.msk.bf16.mxu0 %vm541_vm0, %v8470_v14  ;;  %8015 = vmatprep.subr.bf16.mxu0 %v8475_v15  ;;  %v1197_v14 = vshrl.u32 %v8504_v57, 16  ;;  %v1241_v57 = vshll.u32 %v8519_v47, 16 }
  0x29   : > { %7956 = vmatpush3.bf16.msra.mxu1 %v8468_v13  ;;  %v2032_v13 = vsel %vm2027_vm1, %v2029_v56, %v2031_v5  ;;  %v8518_v56 = vld [vmem:[%s8787_s26 + $0x40] sm:$0xff]   ;;  %v1243_v3 = vrot.slane %v1241_v57, 1 }
  0x2a   : > { %7957 = vmatprep.subr.bf16.mxu1 %v8474_v18  ;;  %8016 = vmatpush3.bf16.msra.mxu0 %v8475_v15  ;;  %v1209_v15 = vshll.u32 %v8509_v6, 16  ;;  %v2043_v2 = vrot.slane %v8518_v56, 1  ;;  %v9009_v56 = vld [vmem:[%s10278_s1 + $0x118] sm:$0xff]  }
  0x2b   : > { %8017 = vmatprep.subr.bf16.mxu0 %v8481_v19 }
  0x2c   : > { %7934 = vmatmul.mubr.msk.bf16.gmra.mxu1 %vm541_vm0, %v8467_v16  ;;  %7910 = vmatmul.mubr.msk.bf16.gmra.mxu0 %vm541_vm0, %v8471_v17  ;;  %v8511_v16 = vld [vmem:[%s10278_s1 + $0xb0] sm:$0xff]   ;;  %v1196_v17 = vsel %vm1168_vm2, %v1191_v7, %v1195_v8  ;;  %v1245_v7 = vshrl.u32 %v8519_v47, 16 }
  0x2d   : > { %7937 = vmatprep.mubr.msk.bf16.mxu1 %vm541_vm0, %v8472_v20  ;;  %7958 = vmatpush3.bf16.msra.mxu1 %v8474_v18  ;;  %v1205_v18 = vshrl.u32 %v8505_v1, 16  ;;  %v1203_v20 = vrot.slane %v1201_v9, 1 }
  0x2e   : > { %7913 = vmatprep.mubr.msk.bf16.mxu0 %vm541_vm0, %v8476_v21  ;;  %7959 = vmatprep.subr.bf16.mxu1 %v8480_v22  ;;  %v2034_v21 = vsel %vm2027_vm1, %v2031_v5, %v2033_v10  ;;  %v2045_v5 = vrot.slane %v8522_v61, 1  ;;  %v8539_v61 = vld [vmem:[%s8787_s26 + $0x88] sm:$0xff]  }
  0x2f   : > { %8018 = vmatpush3.bf16.msra.mxu0 %v8481_v19  ;;  %v8512_v19 = vld [vmem:[%s8787_s26 + $0x28] sm:$0xff]  }
  0x30   : > { %8019 = vmatprep.subr.bf16.mxu0 %v8487_v23 }
  0x31   : > { %7960 = vmatpush3.bf16.msra.mxu1 %v8480_v22  ;;  %v8516_v22 = vld [vmem:[%s10278_s1 + $0xe0] sm:$0xff]  }
  0x32   : > { %7961 = vmatprep.subr.bf16.mxu1 %v8486_v26 }
  0x33   : > { %8020 = vmatpush3.bf16.msra.mxu0 %v8487_v23  ;;  %v2035_v23 = vrot.slane %v8508_v11, 1  ;;  %v8523_v11 = vld [vmem:[%s8787_s26 + $0x50] sm:$0xff]  }
  0x34   : > { %7938 = vmatmul.mubr.msk.bf16.gmra.mxu1 %vm541_vm0, %v8473_v24  ;;  %7914 = vmatmul.mubr.msk.bf16.gmra.mxu0 %vm541_vm0, %v8477_v25  ;;  %v8510_v24 = vld [vmem:[%s8787_s26 + $0x30] sm:$0xff]   ;;  %v1199_v25 = vor.u32 %v1197_v14, %v1195_v8  ;;  %v2046_v14 = vsel %vm2027_vm1, %v2043_v2, %v2045_v5 }
  0x35   : > { %7941 = vmatprep.mubr.msk.bf16.mxu1 %vm541_vm0, %v8478_v27  ;;  %7917 = vmatprep.mubr.msk.bf16.mxu0 %vm541_vm0, %v8482_v28  ;;  %v8514_v27 = vld [vmem:[%s8787_s26 + $0x38] sm:$0xff]   ;;  %v1207_v28 = vor.u32 %v1205_v18, %v1203_v20  ;;  %v1221_v37 = vshrl.u32 %v8510_v24, 16 }
  0x36   : > { %7962 = vmatpush3.bf16.msra.mxu1 %v8486_v26  ;;  %8021 = vmatprep.subr.bf16.mxu0 %v8493_v30  ;;  %v1211_v26 = vrot.slane %v1209_v15, 1 }
  0x37   : > { %7963 = vmatprep.subr.bf16.mxu1 %v8492_v29  ;;  %8022 = vmatpush3.bf16.msra.mxu0 %v8493_v30  ;;  %v8521_v30 = vld [vmem:[%s10278_s1 + $0xa8] sm:$0xff]  }
  0x38   : > { %8023 = vmatprep.subr.bf16.mxu0 %v8500_v35  ;;  %v1212_v38 = vsel %vm1168_vm2, %v1207_v28, %v1211_v26  ;;  %v8528_v28 = vld [vmem:[%s8787_s26 + $0x60] sm:$0xff]  }
  0x3a   : > { %7964 = vmatpush3.bf16.msra.mxu1 %v8492_v29  ;;  %v2037_v29 = vrot.slane %v8512_v19, 1  ;;  %v8525_v19 = vld [vmem:[%s8787_s26 + $0x60] sm:$0xff]  }
  0x3b   : > { %8073 = vmatprep.subr.bf16.mxu1 %v8864_v33  ;;  %8024 = vmatpush3.bf16.msra.mxu0 %v8500_v35  ;;  %v2036_v35 = vsel %vm2027_vm1, %v2033_v10, %v2035_v23  ;;  %v2044_v10 = vsel %vm2027_vm1, %v2041_v50, %v2043_v2 }
  0x3c   : > { %7942 = vmatmul.mubr.msk.bf16.gmra.mxu1 %vm541_vm0, %v8479_v31  ;;  %7918 = vmatmul.mubr.msk.bf16.gmra.mxu0 %vm541_vm0, %v8483_v32  ;;  %v8526_v31 = vld [vmem:[%s10278_s1 + $0xd8] sm:$0xff]   ;;  %v1213_v32 = vshrl.u32 %v8509_v6, 16 }
  0x3d   : > { %7945 = vmatprep.mubr.msk.bf16.mxu1 %vm541_vm0, %v8484_v34  ;;  %7921 = vmatprep.mubr.msk.bf16.mxu0 %vm541_vm0, %v8488_v36  ;;  %v1204_v34 = vsel %vm1168_vm2, %v1199_v25, %v1203_v20  ;;  %v8513_v36 = vld [vmem:[%s8787_s26 + $0x30] sm:$0xff]   ;;  %v8524_v6 = vld [vmem:[%s8787_s26 + $0x58] sm:$0xff]   ;;  %v1247_v20 = vor.u32 %v1245_v7, %v1243_v3  ;;  %v1305_v7 = vshll.u32 %v8539_v61, 16 }
  0x3e   : > { %8133 = vmatprep.subr.bf16.mxu0 %v8884_v43  ;;  %v1215_v45 = vor.u32 %v1213_v32, %v1211_v26  ;;  %v2039_v46 = vrot.slane %v8513_v36, 1  ;;  %v1257_v15 = vshll.u32 %v8524_v6, 16  ;;  %v8551_v26 = vld [vmem:[%s10278_s1 + $0x90] sm:$0xff]   ;;  %v8532_v36 = vld [vmem:[%s8787_s26 + $0x68] sm:$0xff]  }
  0x40   : > { %v2040_v55 = vsel %vm2027_vm1, %v2037_v29, %v2039_v46  ;;  %v2042_v59 = vsel %vm2027_vm1, %v2039_v46, %v2041_v50  ;;  %v8533_v50 = vld [vmem:[%s8787_s26 + $0x70] sm:$0xff]  }
  0x44   : > { %7946 = vmatmul.mubr.msk.bf16.gmra.mxu1 %vm541_vm0, %v8485_v39  ;;  %7922 = vmatmul.mubr.msk.bf16.gmra.mxu0 %vm541_vm0, %v8489_v40  ;;  %v2038_v39 = vsel %vm2027_vm1, %v2035_v23, %v2037_v29  ;;  %v1225_v40 = vshll.u32 %v8514_v27, 16 }
  0x45   : > { %7949 = vmatprep.mubr.msk.bf16.mxu1 %vm541_vm0, %v8490_v42  ;;  %7925 = vmatprep.mubr.msk.bf16.mxu0 %vm541_vm0, %v8494_v44  ;;  %v8531_v42 = vld [vmem:[%s10278_s1 + $0xa0] sm:$0xff]  }
  0x46   : > { %v8515_v44 = vld [vmem:[%s8787_s26 + $0x40] sm:$0xff]   ;;  %v1227_v49 = vrot.slane %v1225_v40, 1 }
  0x47   : > { %v1237_v60 = vshrl.u32 %v8515_v44, 16 }
  0x4c   : > { %7950 = vmatmul.mubr.msk.bf16.gmra.mxu1 %vm541_vm0, %v8491_v51  ;;  %7926 = vmatmul.mubr.msk.bf16.gmra.mxu0 %vm541_vm0, %v8495_v52  ;;  %v1229_v51 = vshrl.u32 %v8514_v27, 16  ;;  %v1233_v52 = vshll.u32 %v8515_v44, 16  ;;  %v1265_v27 = vshll.u32 %v8525_v19, 16  ;;  %v2053_v44 = vrot.slane %v8532_v36, 1 }
  0x4d   : > { %7965 = vmatprep.mubr.msk.bf16.mxu1 %vm541_vm0, %v1180_v62  ;;  %8025 = vmatprep.mubr.msk.bf16.mxu0 %vm541_vm0, %v2030_v63  ;;  %v8520_v62 = vld [vmem:[%s8787_s26 + $0x50] sm:$0xff]  }
  0x4e   : > { %v1235_v63 = vrot.slane %v1233_v52, 1  ;;  %v1231_v1 = vor.u32 %v1229_v51, %v1227_v49  ;;  %v1249_v8 = vshll.u32 %v8520_v62, 16 }
  0x50   : > { %v1239_v4 = vor.u32 %v1237_v60, %v1235_v63  ;;  %v1236_v9 = vsel %vm1168_vm2, %v1231_v1, %v1235_v63  ;;  %v1251_v18 = vrot.slane %v1249_v8, 1  ;;  %v2055_v60 = vrot.slane %v8533_v50, 1 }
  0x52   : > { %v1252_v29 = vsel %vm1168_vm2, %v1247_v20, %v1251_v18 }
  0x54   : > { %7966 = vmatmul.mubr.msk.bf16.vlgmr.msra.gmra.mxu1 %vm541_vm0, %v1188_v12  ;;  %8026 = vmatmul.mubr.msk.bf16.vlgmr.msra.gmra.mxu0 %vm541_vm0, %v2032_v13  ;;  %v1253_v12 = vshrl.u32 %v8520_v62, 16  ;;  %v1244_v13 = vsel %vm1168_vm2, %v1239_v4, %v1243_v3  ;;  %v9021_v3 = vld [vmem:[%s10278_s1 + $0x148] sm:$0xff]  }
  0x55   : > { %8074 = vmatpush3.bf16.msra.mxu1 %v8864_v33  ;;  %7969 = vmatprep.mubr.msk.bf16.mxu1 %vm541_vm0, %v1196_v17  ;;  %v1217_v33 = vshll.u32 %v8510_v24, 16  ;;  %v8546_v17 = vld [vmem:[%s10278_s1 + $0xc8] sm:$0xff]   ;;  %v1259_v24 = vrot.slane %v1257_v15, 1 }
  0x56   : > { %8134 = vmatpush3.bf16.msra.mxu0 %v8884_v43  ;;  %8029 = vmatprep.mubr.msk.bf16.mxu0 %vm541_vm0, %v2034_v21  ;;  %v2047_v21 = vrot.slane %v8523_v11, 1  ;;  %v1255_v23 = vor.u32 %v1253_v12, %v1251_v18  ;;  %v8542_v11 = vld [vmem:[%s8787_s26 + $0x88] sm:$0xff]  }
  0x57   : > { %8075 = vmatprep.subr.bf16.mxu1 %v8511_v16  ;;  %8135 = vmatprep.subr.bf16.mxu0 %v8516_v22  ;;  %v1219_v43 = vrot.slane %v1217_v33, 1  ;;  %v2061_v18 = vrot.slane %v8542_v11, 1 }
  0x58   : > { %v1260_v33 = vsel %vm1168_vm2, %v1255_v23, %v1259_v24  ;;  %v1309_v23 = vshrl.u32 %v8539_v61, 16 }
  0x59   : > { %8076 = vmatpush3.bf16.msra.mxu1 %v8511_v16  ;;  %v1223_v48 = vor.u32 %v1221_v37, %v1219_v43  ;;  %v1220_v54 = vsel %vm1168_vm2, %v1215_v45, %v1219_v43  ;;  %v8527_v16 = vld [vmem:[%s8787_s26 + $0x58] sm:$0xff]   ;;  %v1267_v37 = vrot.slane %v1265_v27, 1  ;;  %v8556_v45 = vld [vmem:[%s10278_s1 + $0xc0] sm:$0xff]  }
  0x5a   : > { %8136 = vmatpush3.bf16.msra.mxu0 %v8516_v22  ;;  %8077 = vmatprep.subr.bf16.mxu1 %v8521_v30  ;;  %v8529_v22 = vld [vmem:[%s8787_s26 + $0x68] sm:$0xff]   ;;  %v2049_v25 = vrot.slane %v8527_v16, 1  ;;  %v1307_v16 = vrot.slane %v1305_v7, 1 }
  0x5b   : > { %8137 = vmatprep.subr.bf16.mxu0 %v8526_v31  ;;  %v1228_v58 = vsel %vm1168_vm2, %v1223_v48, %v1227_v49  ;;  %v1273_v32 = vshll.u32 %v8529_v22, 16  ;;  %v1277_v46 = vshrl.u32 %v8529_v22, 16 }
  0x5c   : > { %7970 = vmatmul.mubr.msk.bf16.gmra.mxu1 %vm541_vm0, %v1204_v34  ;;  %8030 = vmatmul.mubr.msk.bf16.gmra.mxu0 %vm541_vm0, %v2036_v35  ;;  %v2050_v34 = vsel %vm2027_vm1, %v2047_v21, %v2049_v25  ;;  %v1269_v35 = vshrl.u32 %v8525_v19, 16  ;;  %v8544_v19 = vld [vmem:[%s8787_s26 + $0x98] sm:$0xff]  }
  0x5d   : > { %7973 = vmatprep.mubr.msk.bf16.mxu1 %vm541_vm0, %v1212_v38  ;;  %8033 = vmatprep.mubr.msk.bf16.mxu0 %vm541_vm0, %v2038_v39  ;;  %v2051_v38 = vrot.slane %v8528_v28, 1  ;;  %v8530_v39 = vld [vmem:[%s8787_s26 + $0x70] sm:$0xff]   ;;  %v1275_v41 = vrot.slane %v1273_v32, 1  ;;  %v1321_v28 = vshll.u32 %v8544_v19, 16  ;;  %v1311_v32 = vor.u32 %v1309_v23, %v1307_v16 }
  0x5e   : > { %8078 = vmatpush3.bf16.msra.mxu1 %v8521_v30  ;;  %8138 = vmatpush3.bf16.msra.mxu0 %v8526_v31  ;;  %v2048_v30 = vsel %vm2027_vm1, %v2045_v5, %v2047_v21  ;;  %v1261_v31 = vshrl.u32 %v8524_v6, 16  ;;  %v1271_v43 = vor.u32 %v1269_v35, %v1267_v37  ;;  %v1281_v47 = vshll.u32 %v8530_v39, 16  ;;  %v8538_v6 = vld [vmem:[%s8787_s26 + $0x80] sm:$0xff]  }
  0x5f   : > { %8079 = vmatprep.subr.bf16.mxu1 %v8531_v42  ;;  %8139 = vmatprep.subr.bf16.mxu0 %v8536_v53  ;;  %v2052_v49 = vsel %vm2027_vm1, %v2049_v25, %v2051_v38  ;;  %v1285_v51 = vshrl.u32 %v8530_v39, 16  ;;  %v2056_v5 = vsel %vm2027_vm1, %v2053_v44, %v2055_v60  ;;  %v2059_v15 = vrot.slane %v8538_v6, 1 }
  0x60   : > { %v1263_v40 = vor.u32 %v1261_v31, %v1259_v24  ;;  %v1276_v52 = vsel %vm1168_vm2, %v1271_v43, %v1275_v41  ;;  %v1283_v57 = vrot.slane %v1281_v47, 1  ;;  %v8543_v24 = vld [vmem:[%s8787_s26 + $0x90] sm:$0xff]   ;;  %v8545_v31 = vld [vmem:[%s8787_s26 + $0xa0] sm:$0xff]   ;;  %v1323_v35 = vrot.slane %v1321_v28, 1  ;;  %v8552_v47 = vld [vmem:[%s8787_s26 + $0xa8] sm:$0xff]  }
  0x61   : > { %v1329_v39 = vshll.u32 %v8545_v31, 16 }
  0x62   : > { %8080 = vmatpush3.bf16.msra.mxu1 %v8531_v42  ;;  %8140 = vmatpush3.bf16.msra.mxu0 %v8536_v53  ;;  %v8534_v42 = vld [vmem:[%s8787_s26 + $0x78] sm:$0xff]   ;;  %v1268_v48 = vsel %vm1168_vm2, %v1263_v40, %v1267_v37  ;;  %v2054_v53 = vsel %vm2027_vm1, %v2051_v38, %v2053_v44  ;;  %v1287_v62 = vor.u32 %v1285_v51, %v1283_v57  ;;  %v8549_v37 = vld [vmem:[%s8787_s26 + $0xa8] sm:$0xff]   ;;  %v1325_v38 = vshrl.u32 %v8544_v19, 16  ;;  %v8548_v40 = vld [vmem:[%s8787_s26 + $0xa0] sm:$0xff]  }
  0x63   : > { %8081 = vmatprep.subr.bf16.mxu1 %v8541_v0  ;;  %8141 = vmatprep.subr.bf16.mxu0 %v8546_v17  ;;  %v1293_v1 = vshrl.u32 %v8534_v42, 16  ;;  %v2067_v51 = vrot.slane %v8548_v40, 1 }
  0x64   : > { %7974 = vmatmul.mubr.msk.bf16.gmra.mxu1 %vm541_vm0, %v1220_v54  ;;  %8034 = vmatmul.mubr.msk.bf16.gmra.mxu0 %vm541_vm0, %v2040_v55  ;;  %v1289_v54 = vshll.u32 %v8534_v42, 16  ;;  %v8537_v55 = vld [vmem:[%s8787_s26 + $0x78] sm:$0xff]   ;;  %v1327_v50 = vor.u32 %v1325_v38, %v1323_v35 }
  0x65   : > { %7977 = vmatprep.mubr.msk.bf16.mxu1 %vm541_vm0, %v1228_v58  ;;  %8037 = vmatprep.mubr.msk.bf16.mxu0 %vm541_vm0, %v2042_v59  ;;  %v8535_v58 = vld [vmem:[%s8787_s26 + $0x80] sm:$0xff]   ;;  %v1279_v59 = vor.u32 %v1277_v46, %v1275_v41  ;;  %v1337_v46 = vshll.u32 %v8549_v37, 16 }
  0x66   : > { %8082 = vmatpush3.bf16.msra.mxu1 %v8541_v0  ;;  %8142 = vmatpush3.bf16.msra.mxu0 %v8546_v17  ;;  %v1291_v63 = vrot.slane %v1289_v54, 1  ;;  %v2057_v0 = vrot.slane %v8537_v55, 1  ;;  %v1297_v2 = vshll.u32 %v8535_v58, 16  ;;  %v2069_v55 = vrot.slane %v8552_v47, 1 }
  0x67   : > { %8083 = vmatprep.subr.bf16.mxu1 %v8551_v26  ;;  %8143 = vmatprep.subr.bf16.mxu0 %v8556_v45  ;;  %v1284_v4 = vsel %vm1168_vm2, %v1279_v59, %v1283_v57  ;;  %v1339_v54 = vrot.slane %v1337_v46, 1  ;;  %v1341_v57 = vshrl.u32 %v8549_v37, 16  ;;  %v8553_v59 = vld [vmem:[%s8787_s26 + $0xb0] sm:$0xff]   ;;  %v8565_v46 = vld [vmem:[%s8787_s26 + $0x1c] sm:$0xff]  }
  0x68   : > { %v1292_v8 = vsel %vm1168_vm2, %v1287_v62, %v1291_v63  ;;  %v1299_v12 = vrot.slane %v1297_v2, 1  ;;  %v2060_v22 = vsel %vm2027_vm1, %v2057_v0, %v2059_v15  ;;  %v2071_v7 = vrot.slane %v8553_v59, 1  ;;  %v8578_v59 = vld [vmem:[%s8787_s26 + $0x44] sm:$0xff]  }
  0x6a   : > { %8084 = vmatpush3.bf16.msra.mxu1 %v8551_v26  ;;  %8144 = vmatpush3.bf16.msra.mxu0 %v8556_v45  ;;  %v2062_v26 = vsel %vm2027_vm1, %v2059_v15, %v2061_v18  ;;  %v1333_v45 = vshrl.u32 %v8545_v31, 16 }
  0x6b   : > { %8193 = vmatprep.subr.bf16.mxu1 %v9009_v56  ;;  %8253 = vmatprep.subr.bf16.mxu0 %v9021_v3 }
  0x6c   : > { %7978 = vmatmul.mubr.msk.bf16.gmra.mxu1 %vm541_vm0, %v1236_v9  ;;  %8038 = vmatmul.mubr.msk.bf16.gmra.mxu0 %vm541_vm0, %v2044_v10  ;;  %v2058_v9 = vsel %vm2027_vm1, %v2055_v60, %v2057_v0  ;;  %v1301_v10 = vshrl.u32 %v8535_v58, 16 }
  0x6d   : > { %7981 = vmatprep.mubr.msk.bf16.mxu1 %vm541_vm0, %v1244_v13  ;;  %8041 = vmatprep.mubr.msk.bf16.mxu0 %vm541_vm0, %v2046_v14  ;;  %v8540_v13 = vld [vmem:[%s8787_s26 + $0x90] sm:$0xff]   ;;  %v1295_v14 = vor.u32 %v1293_v1, %v1291_v63  ;;  %v8557_v63 = vld [vmem:[%s8787_s26 + $0xb8] sm:$0xff]   ;;  %v2070_v1 = vsel %vm2027_vm1, %v2067_v51, %v2069_v55 }
  0x6e   : > { %v1303_v17 = vor.u32 %v1301_v10, %v1299_v12  ;;  %v1313_v20 = vshll.u32 %v8540_v13, 16  ;;  %v1317_v27 = vshrl.u32 %v8540_v13, 16  ;;  %v2073_v10 = vrot.slane %v8557_v63, 1  ;;  %v8566_v63 = vld [vmem:[%s8787_s26 + $0x24] sm:$0xff]  }
  0x6f   : > { %v1300_v21 = vsel %vm1168_vm2, %v1295_v14, %v1299_v12  ;;  %v8563_v12 = vld [vmem:[%s8787_s26 + $0x14] sm:$0xff]   ;;  %v8558_v14 = vld [vmem:[%s8787_s26 + $0xc0] ss:$0 sps:$4 sm:$0x11]  }
  0x70   : > { %v1308_v25 = vsel %vm1168_vm2, %v1303_v17, %v1307_v16  ;;  %v2072_v17 = vsel %vm2027_vm1, %v2069_v55, %v2071_v7  ;;  %v3405_v23 = vshll.u32 %v8563_v12, 16 }
  0x74   : > { %7982 = vmatmul.mubr.msk.bf16.gmra.mxu1 %vm541_vm0, %v1252_v29  ;;  %8042 = vmatmul.mubr.msk.bf16.gmra.mxu0 %vm541_vm0, %v2048_v30  ;;  %v8547_v29 = vld [vmem:[%s8787_s26 + $0x98] sm:$0xff]   ;;  %v1315_v30 = vrot.slane %v1313_v20, 1 }
  0x75   : > { %7985 = vmatprep.mubr.msk.bf16.mxu1 %vm541_vm0, %v1260_v33  ;;  %8045 = vmatprep.mubr.msk.bf16.mxu0 %vm541_vm0, %v2050_v34  ;;  %v2063_v33 = vrot.slane %v8543_v24, 1  ;;  %v2065_v36 = vrot.slane %v8547_v29, 1  ;;  %v3407_v29 = vrot.slane %v3405_v23, 1 }
  0x76   : > { %v1319_v34 = vor.u32 %v1317_v27, %v1315_v30  ;;  %v1316_v41 = vsel %vm1168_vm2, %v1311_v32, %v1315_v30  ;;  %v8564_v27 = vld [vmem:[%s8787_s26 + $0x1c] sm:$0xff]   ;;  %v8568_v30 = vld [vmem:[%s8787_s26 + $0x24] sm:$0xff]  }
  0x77   : > { %v2064_v42 = vsel %vm2027_vm1, %v2061_v18, %v2063_v33  ;;  %v2066_v44 = vsel %vm2027_vm1, %v2063_v33, %v2065_v36  ;;  %v2068_v61 = vsel %vm2027_vm1, %v2065_v36, %v2067_v51  ;;  %v8559_v33 = vld [vmem:[%s8787_s26 + $0xc] sm:$0xff]   ;;  %v3417_v37 = vshrl.u32 %v8564_v27, 16 }
  0x78   : > { %v1324_v43 = vsel %vm1168_vm2, %v1319_v34, %v1323_v35  ;;  %v3409_v34 = vshrl.u32 %v8563_v12, 16  ;;  %v3413_v35 = vshll.u32 %v8564_v27, 16  ;;  %v3421_v38 = vshll.u32 %v8568_v30, 16  ;;  %v8572_v51 = vld [vmem:[%s10278_s1 + $0x110] sm:$0xff]  }
  0x79   : > { %v8583_v12 = vld [vmem:[%s8787_s26 + $0x54] sm:$0xff]  }
  0x7a   : > { %v3411_v40 = vor.u32 %v3409_v34, %v3407_v29  ;;  %v9164_v34 = vld [vmem:[%s10278_s1 + $0x1a8] sm:$0xff]  }
  0x7c   : > { %7986 = vmatmul.mubr.msk.bf16.gmra.mxu1 %vm541_vm0, %v1268_v48  ;;  %8046 = vmatmul.mubr.msk.bf16.gmra.mxu0 %vm541_vm0, %v2052_v49  ;;  %v1331_v48 = vrot.slane %v1329_v39, 1  ;;  %v8550_v49 = vld [vmem:[%s8787_s26 + $0xb0] sm:$0xff]  }
  0x7d   : > { %7989 = vmatprep.mubr.msk.bf16.mxu1 %vm541_vm0, %v1276_v52  ;;  %8049 = vmatprep.mubr.msk.bf16.mxu0 %vm541_vm0, %v2054_v53  ;;  %v8554_v52 = vld [vmem:[%s8787_s26 + $0xb8] sm:$0xff]   ;;  %v1345_v58 = vshll.u32 %v8550_v49, 16  ;;  %v1349_v2 = vshrl.u32 %v8550_v49, 16  ;;  %v8569_v39 = vld [vmem:[%s8787_s26 + $0x2c] sm:$0xff]   ;;  %v3425_v49 = vshrl.u32 %v8568_v30, 16  ;;  %v8588_v30 = vld [vmem:[%s8787_s26 + $0x64] sm:$0xff]  }
  0x7e   : > { %v1335_v53 = vor.u32 %v1333_v45, %v1331_v48  ;;  %v1332_v60 = vsel %vm1168_vm2, %v1327_v50, %v1331_v48  ;;  %v1353_v62 = vshll.u32 %v8554_v52, 16  ;;  %v1357_v15 = vshrl.u32 %v8554_v52, 16 }
  0x7f   : > { %v1347_v6 = vrot.slane %v1345_v58, 1  ;;  %v3423_v45 = vrot.slane %v3421_v38, 1  ;;  %v3429_v47 = vshll.u32 %v8569_v39, 16  ;;  %v3433_v50 = vshrl.u32 %v8569_v39, 16  ;;  %v8580_v38 = vld [vmem:[%s8787_s26 + $0x4c] sm:$0xff]  }
  0x80   : > { %v1340_v0 = vsel %vm1168_vm2, %v1335_v53, %v1339_v54  ;;  %v3473_v39 = vshrl.u32 %v8583_v12, 16 }
  0x81   : > { %v1351_v11 = vor.u32 %v1349_v2, %v1347_v6  ;;  %v3431_v55 = vrot.slane %v3429_v47, 1  ;;  %v3427_v58 = vor.u32 %v3425_v49, %v3423_v45  ;;  %v8581_v49 = vld [vmem:[%s8787_s26 + $0x54] sm:$0xff]  }
  0x84   : > { %7990 = vmatmul.mubr.msk.bf16.gmra.mxu1 %vm541_vm0, %v1284_v4  ;;  %8050 = vmatmul.mubr.msk.bf16.gmra.mxu0 %vm541_vm0, %v2056_v5  ;;  %v8562_v4 = vld [vmem:[%s8787_s26 + $0xc] sm:$0xff]   ;;  %v8555_v5 = vld [vmem:[%s8787_s26 + $0xc0] ss:$0 sps:$4 sm:$0x11]  }
  0x85   : > { %7993 = vmatprep.mubr.msk.bf16.mxu1 %vm541_vm0, %v1292_v8  ;;  %8053 = vmatprep.mubr.msk.bf16.mxu0 %vm541_vm0, %v2058_v9  ;;  %v1343_v8 = vor.u32 %v1341_v57, %v1339_v54  ;;  %v1355_v9 = vrot.slane %v1353_v62, 1  ;;  %v3400_v13 = vshll.u32 %v8562_v4, 16  ;;  %v1361_v18 = vshll.u32 %v8555_v5, 16  ;;  %v8577_v54 = vld [vmem:[%s10278_s1 + $0x140] sm:$0xff]   ;;  %v8582_v62 = vld [vmem:[%s10278_s1 + $0x108] sm:$0xff]  }
  0x86   : > { %v3398_v19 = vshrl.u32 %v8562_v4, 16  ;;  %v8574_v57 = vld [vmem:[%s8787_s26 + $0x3c] sm:$0xff]  }
  0x87   : > { %v1348_v16 = vsel %vm1168_vm2, %v1343_v8, %v1347_v6  ;;  %v1356_v20 = vsel %vm1168_vm2, %v1351_v11, %v1355_v9  ;;  %v1359_v24 = vor.u32 %v1357_v15, %v1355_v9  ;;  %v3449_v5 = vshrl.u32 %v8574_v57, 16  ;;  %v8597_v8 = vld [vmem:[%s10278_s1 + $0x130] sm:$0xff]  }
  0x88   : > { %v3453_v6 = vshll.u32 %v8578_v59, 16 }
  0x8c   : > { %7994 = vmatmul.mubr.msk.bf16.gmra.mxu1 %vm541_vm0, %v1300_v21  ;;  %8054 = vmatmul.mubr.msk.bf16.gmra.mxu0 %vm541_vm0, %v2060_v22  ;;  %v2074_v21 = vsel %vm2027_vm1, %v2071_v7, %v2073_v10  ;;  %v3402_v22 = vrot.slane %v3400_v13, 1  ;;  %v8592_v7 = vld [vmem:[%s10278_s1 + $0x100] sm:$0xff]   ;;  %v8602_v13 = vld [vmem:[%s10278_s1 + $0xf8] sm:$0xff]  }
  0x8d   : > { %7997 = vmatprep.mubr.msk.bf16.mxu1 %vm541_vm0, %v1308_v25  ;;  %8057 = vmatprep.mubr.msk.bf16.mxu0 %vm541_vm0, %v2062_v26  ;;  %v1363_v25 = vrot.slane %v1361_v18, 1  ;;  %v2075_v26 = vrot.slane %v8558_v14, 1  ;;  %v8571_v14 = vld [vmem:[%s8787_s26 + $0x34] sm:$0xff]   ;;  %v8575_v18 = vld [vmem:[%s8787_s26 + $0x3c] sm:$0xff]  }
  0x8e   : > { %v3403_v28 = vor.u32 %v3402_v22, %v3398_v19 }
  0x8f   : > { %v1364_v31 = vsel %vm1168_vm2, %v1359_v24, %v1363_v25  ;;  %v2076_v32 = vsel %vm2027_vm1, %v2073_v10, %v2075_v26  ;;  %v8579_v10 = vld [vmem:[%s8787_s26 + $0x4c] sm:$0xff]   ;;  %v3469_v24 = vshll.u32 %v8583_v12, 16  ;;  %v8617_v26 = vld [vmem:[%s10278_s1 + $0x120] sm:$0xff]  }
  0x90   : > { %v3408_v36 = vsel %vm1168_vm2, %v3403_v28, %v3407_v29  ;;  %v3461_v19 = vshll.u32 %v8579_v10, 16  ;;  %v3465_v22 = vshrl.u32 %v8579_v10, 16  ;;  %v8612_v25 = vld [vmem:[%s10278_s1 + $0xf0] sm:$0xff]   ;;  %v8584_v28 = vld [vmem:[%s8787_s26 + $0x5c] sm:$0xff]  }
  0x91   : > { %v7032_v10 = vld [vmem:[%s206_s18] ss:$0 sm:$0xff] }
  0x92   : > { %v3463_v27 = vrot.slane %v3461_v19, 1  ;;  %v8595_v19 = vld [vmem:[%s8787_s26 + $0x7c] sm:$0xff]  }
  0x94   : > { %7998 = vmatmul.mubr.msk.bf16.gmra.mxu1 %vm541_vm0, %v1316_v41  ;;  %8058 = vmatmul.mubr.msk.bf16.gmra.mxu0 %vm541_vm0, %v2064_v42  ;;  %v3415_v41 = vrot.slane %v3413_v35, 1  ;;  %v8573_v42 = vld [vmem:[%s8787_s26 + $0x34] sm:$0xff]   ;;  %v8576_v35 = vld [vmem:[%s8787_s26 + $0x44] sm:$0xff]  }
  0x95   : > { %8001 = vmatprep.mubr.msk.bf16.mxu1 %vm541_vm0, %v1324_v43  ;;  %8061 = vmatprep.mubr.msk.bf16.mxu0 %vm541_vm0, %v2066_v44  ;;  %v8560_v43 = vld [vmem:[%s8787_s26 + $0x14] sm:$0xff]   ;;  %v3437_v52 = vshll.u32 %v8573_v42, 16  ;;  %v3441_v2 = vshrl.u32 %v8573_v42, 16  ;;  %v3485_v42 = vshll.u32 %v8588_v30, 16 }
  0x96   : > { %v3419_v44 = vor.u32 %v3417_v37, %v3415_v41  ;;  %v3416_v48 = vsel %vm1168_vm2, %v3411_v40, %v3415_v41  ;;  %v3481_v41 = vshrl.u32 %v8584_v28, 16 }
  0x97   : > { %v3487_v47 = vrot.slane %v3485_v42, 1 }
  0x98   : > { %v3424_v53 = vsel %vm1168_vm2, %v3419_v44, %v3423_v45  ;;  %v8589_v44 = vld [vmem:[%s8787_s26 + $0x6c] sm:$0xff]  }
  0x9c   : > { %8002 = vmatmul.mubr.msk.bf16.gmra.mxu1 %vm541_vm0, %v1332_v60  ;;  %8062 = vmatmul.mubr.msk.bf16.gmra.mxu0 %vm541_vm0, %v2068_v61  ;;  %v3435_v60 = vor.u32 %v3433_v50, %v3431_v55  ;;  %v3439_v61 = vrot.slane %v3437_v52, 1  ;;  %v3493_v50 = vshll.u32 %v8589_v44, 16  ;;  %v8585_v52 = vld [vmem:[%s8787_s26 + $0x5c] sm:$0xff]  }
  0x9d   : > { %8005 = vmatprep.mubr.msk.bf16.mxu1 %vm541_vm0, %v1340_v0  ;;  %8065 = vmatprep.mubr.msk.bf16.mxu0 %vm541_vm0, %v2070_v1  ;;  %v3445_v0 = vshll.u32 %v8574_v57, 16  ;;  %v3432_v1 = vsel %vm1168_vm2, %v3427_v58, %v3431_v55  ;;  %v3497_v55 = vshrl.u32 %v8589_v44, 16  ;;  %v8600_v44 = vld [vmem:[%s8787_s26 + $0x8c] sm:$0xff]  }
  0x9e   : > { %v3440_v4 = vsel %vm1168_vm2, %v3435_v60, %v3439_v61  ;;  %v3443_v11 = vor.u32 %v3441_v2, %v3439_v61  ;;  %v3495_v58 = vrot.slane %v3493_v50, 1 }
  0x9f   : > { %v3447_v9 = vrot.slane %v3445_v0, 1 }
  0xa0   : > { %v3499_v61 = vor.u32 %v3497_v55, %v3495_v58  ;;  %v8609_v55 = vld [vmem:[%s8787_s26 + $0xac] sm:$0xff]  }
  0xa1   : > { %v3451_v15 = vor.u32 %v3449_v5, %v3447_v9 }
  0xa4   : > { %8006 = vmatmul.mubr.msk.bf16.gmra.mxu1 %vm541_vm0, %v1348_v16  ;;  %8066 = vmatmul.mubr.msk.bf16.gmra.mxu0 %vm541_vm0, %v2072_v17  ;;  %v3455_v16 = vrot.slane %v3453_v6, 1  ;;  %v8607_v17 = vld [vmem:[%s10278_s1 + $0x128] sm:$0xff]  }
  0xa5   : > { %8009 = vmatprep.mubr.msk.bf16.mxu1 %vm541_vm0, %v1356_v20  ;;  %8069 = vmatprep.mubr.msk.bf16.mxu0 %vm541_vm0, %v2074_v21  ;;  %v3448_v20 = vsel %vm1168_vm2, %v3443_v11, %v3447_v9  ;;  %v3457_v21 = vshrl.u32 %v8578_v59, 16  ;;  %v8594_v59 = vld [vmem:[%s8787_s26 + $0x7c] sm:$0xff]   ;;  %v8599_v9 = vld [vmem:[%s8787_s26 + $0x8c] sm:$0xff]  }
  0xa6   : > { %v3456_v23 = vsel %vm1168_vm2, %v3451_v15, %v3455_v16  ;;  %v3509_v0 = vshll.u32 %v8594_v59, 16  ;;  %v3513_v5 = vshrl.u32 %v8594_v59, 16  ;;  %v8591_v15 = vld [vmem:[%s8787_s26 + $0x74] sm:$0xff]  }
  0xa7   : > { %v3459_v29 = vor.u32 %v3457_v21, %v3455_v16  ;;  %v3525_v16 = vshll.u32 %v8599_v9, 16 }
  0xa9   : > { %v3464_v37 = vsel %vm1168_vm2, %v3459_v29, %v3463_v27 }
  0xac   : > { %8010 = vmatmul.mubr.msk.bf16.gmra.mxu1 %vm541_vm0, %v1364_v31  ;;  %8070 = vmatmul.mubr.msk.bf16.gmra.mxu0 %vm541_vm0, %v2076_v32  ;;  %v3467_v31 = vor.u32 %v3465_v22, %v3463_v27  ;;  %v3471_v32 = vrot.slane %v3469_v24, 1  ;;  %v3529_v22 = vshrl.u32 %v8599_v9, 16  ;;  %v8604_v27 = vld [vmem:[%s8787_s26 + $0x9c] sm:$0xff]  }
  0xad   : > { %8085 = vmatprep.mubr.msk.bf16.mxu1 %vm541_vm0, %v8559_v33  ;;  %8145 = vmatprep.mubr.msk.bf16.mxu0 %vm541_vm0, %v3408_v36  ;;  %v9159_v33 = vld [vmem:[%s10278_s1 + $0x178] sm:$0xff]   ;;  %v3477_v36 = vshll.u32 %v8584_v28, 16 }
  0xae   : > { %v3472_v40 = vsel %vm1168_vm2, %v3467_v31, %v3471_v32  ;;  %v3475_v45 = vor.u32 %v3473_v39, %v3471_v32  ;;  %v8596_v39 = vld [vmem:[%s8787_s26 + $0x84] sm:$0xff]  }
  0xb4   : > { %8086 = vmatmul.mubr.msk.bf16.vlgmr.msra.gmra.mxu1 %vm541_vm0, %v8560_v43  ;;  %8146 = vmatmul.mubr.msk.bf16.vlgmr.msra.gmra.mxu0 %vm541_vm0, %v3416_v48  ;;  %v3479_v43 = vrot.slane %v3477_v36, 1  ;;  %v8593_v48 = vld [vmem:[%s8787_s26 + $0x74] sm:$0xff]   ;;  %v9228_v36 = vld [vmem:[%s8787_s26 + $0xa4] sm:$0xff]  }
  0xb5   : > { %8194 = vmatpush3.bf16.msra.mxu1 %v9009_v56  ;;  %8089 = vmatprep.mubr.msk.bf16.mxu1 %vm541_vm0, %v8565_v46  ;;  %v8587_v56 = vld [vmem:[%s10278_s1 + $0x138] sm:$0xff]   ;;  %v3501_v57 = vshll.u32 %v8593_v48, 16  ;;  %v3505_v2 = vshrl.u32 %v8593_v48, 16  ;;  %v3549_v50 = vshll.u32 %v9228_v36, 16 }
  0xb6   : > { %8254 = vmatpush3.bf16.msra.mxu0 %v9021_v3  ;;  %8149 = vmatprep.mubr.msk.bf16.mxu0 %vm541_vm0, %v3424_v53  ;;  %v8570_v3 = vld [vmem:[%s8787_s26 + $0x2c] sm:$0xff]   ;;  %v3483_v46 = vor.u32 %v3481_v41, %v3479_v43  ;;  %v3489_v53 = vshrl.u32 %v8588_v30, 16  ;;  %v3541_v41 = vshll.u32 %v8604_v27, 16 }
  0xb7   : > { %8195 = vmatprep.subr.bf16.mxu1 %v8572_v51  ;;  %8255 = vmatprep.subr.bf16.mxu0 %v8577_v54 }
  0xb8   : > { %v3491_v60 = vor.u32 %v3489_v53, %v3487_v47 }
  0xb9   : > { %8196 = vmatpush3.bf16.msra.mxu1 %v8572_v51  ;;  %v3480_v51 = vsel %vm1168_vm2, %v3475_v45, %v3479_v43 }
  0xba   : > { %8256 = vmatpush3.bf16.msra.mxu0 %v8577_v54  ;;  %8197 = vmatprep.subr.bf16.mxu1 %v8582_v62  ;;  %v3488_v54 = vsel %vm1168_vm2, %v3483_v46, %v3487_v47 }
  0xbb   : > { %8257 = vmatprep.subr.bf16.mxu0 %v8587_v56 }
  0xbc   : > { %8090 = vmatmul.mubr.msk.bf16.gmra.mxu1 %vm541_vm0, %v8566_v63  ;;  %8150 = vmatmul.mubr.msk.bf16.gmra.mxu0 %vm541_vm0, %v3432_v1  ;;  %v8586_v63 = vld [vmem:[%s8787_s26 + $0x64] sm:$0xff]   ;;  %v3496_v1 = vsel %vm1168_vm2, %v3491_v60, %v3495_v58 }
  0xbd   : > { %8093 = vmatprep.mubr.msk.bf16.mxu1 %vm541_vm0, %v8570_v3  ;;  %8153 = vmatprep.mubr.msk.bf16.mxu0 %vm541_vm0, %v3440_v4  ;;  %v8590_v3 = vld [vmem:[%s8787_s26 + $0x6c] sm:$0xff]  }
  0xbe   : > { %8198 = vmatpush3.bf16.msra.mxu1 %v8582_v62  ;;  %8258 = vmatpush3.bf16.msra.mxu0 %v8587_v56  ;;  %v3503_v62 = vrot.slane %v3501_v57, 1  ;;  %v8598_v56 = vld [vmem:[%s8787_s26 + $0x84] sm:$0xff]  }
  0xbf   : > { %8199 = vmatprep.subr.bf16.mxu1 %v8592_v7  ;;  %8259 = vmatprep.subr.bf16.mxu0 %v8597_v8  ;;  %v3517_v6 = vshll.u32 %v8598_v56, 16 }
  0xc0   : > { %v3504_v4 = vsel %vm1168_vm2, %v3499_v61, %v3503_v62  ;;  %v3507_v11 = vor.u32 %v3505_v2, %v3503_v62  ;;  %v3551_v62 = vrot.slane %v3549_v50, 1  ;;  %v3557_v2 = vshll.u32 %v8609_v55, 16  ;;  %v8619_v50 = vld [vmem:[%s8787_s26 + $0xcc] ss:$0 sps:$4 sm:$0x11]  }
  0xc2   : > { %8200 = vmatpush3.bf16.msra.mxu1 %v8592_v7  ;;  %8260 = vmatpush3.bf16.msra.mxu0 %v8597_v8  ;;  %v7031_v7 = vld [vmem:[%s10279_s2] ss:$0 sm:$0xff]  ;;  %v3511_v8 = vrot.slane %v3509_v0, 1 }
  0xc3   : > { %8201 = vmatprep.subr.bf16.mxu1 %v8602_v13  ;;  %8261 = vmatprep.subr.bf16.mxu0 %v8607_v17 }
  0xc4   : > { %8094 = vmatmul.mubr.msk.bf16.gmra.mxu1 %vm541_vm0, %v8571_v14  ;;  %8154 = vmatmul.mubr.msk.bf16.gmra.mxu0 %vm541_vm0, %v3448_v20  ;;  %v3515_v12 = vor.u32 %v3513_v5, %v3511_v8  ;;  %v8603_v14 = vld [vmem:[%s8787_s26 + $0x94] sm:$0xff]   ;;  %v3521_v20 = vshrl.u32 %v8598_v56, 16 }
  0xc5   : > { %8097 = vmatprep.mubr.msk.bf16.mxu1 %vm541_vm0, %v8575_v18  ;;  %8157 = vmatprep.mubr.msk.bf16.mxu0 %vm541_vm0, %v3456_v23  ;;  %v3512_v18 = vsel %vm1168_vm2, %v3507_v11, %v3511_v8  ;;  %v3533_v23 = vshll.u32 %v8603_v14, 16  ;;  %v3537_v45 = vshrl.u32 %v8603_v14, 16  ;;  %v9257_v56 = vld [vmem:[%s8787_s26 + $0xb4] sm:$0xff]   ;;  %v3561_v11 = vshrl.u32 %v8609_v55, 16 }
  0xc6   : > { %8202 = vmatpush3.bf16.msra.mxu1 %v8602_v13  ;;  %8262 = vmatpush3.bf16.msra.mxu0 %v8607_v17  ;;  %v3519_v13 = vrot.slane %v3517_v6, 1  ;;  %v9207_v17 = vadd.f32 %v7032_v10, %v7031_v7  ;;  %v8605_v6 = vld [vmem:[%s8787_s26 + $0x9c] sm:$0xff]   ;;  %v3553_v7 = vshrl.u32 %v9228_v36, 16 }
  0xc7   : > { %8203 = vmatprep.subr.bf16.mxu1 %v8612_v25  ;;  %8263 = vmatprep.subr.bf16.mxu0 %v8617_v26 }
  0xc8   : > { %v3520_v21 = vsel %vm1168_vm2, %v3515_v12, %v3519_v13  ;;  %v3523_v29 = vor.u32 %v3521_v20, %v3519_v13  ;;  %v3565_v12 = vshll.u32 %v9257_v56, 16  ;;  %v3555_v20 = vor.u32 %v3553_v7, %v3551_v62 }
  0xca   : > { %8204 = vmatpush3.bf16.msra.mxu1 %v8612_v25  ;;  %8264 = vmatpush3.bf16.msra.mxu0 %v8617_v26  ;;  %v3527_v26 = vrot.slane %v3525_v16, 1  ;;  %v3559_v16 = vrot.slane %v3557_v2, 1 }
  0xcb   : > { %8313 = vmatprep.subr.bf16.mxu1 %v9159_v33  ;;  %8373 = vmatprep.subr.bf16.mxu0 %v9164_v34 }
  0xcc   : > { %8098 = vmatmul.mubr.msk.bf16.gmra.mxu1 %vm541_vm0, %v8576_v35  ;;  %8158 = vmatmul.mubr.msk.bf16.gmra.mxu0 %vm541_vm0, %v3464_v37  ;;  %v3531_v32 = vor.u32 %v3529_v22, %v3527_v26  ;;  %v3535_v35 = vrot.slane %v3533_v23, 1  ;;  %v3528_v43 = vsel %vm1168_vm2, %v3523_v29, %v3527_v26  ;;  %v3563_v23 = vor.u32 %v3561_v11, %v3559_v16  ;;  %v8618_v26 = vld [vmem:[%s8787_s26 + $0xc4] sm:$0xff]  }
  0xcd   : > { %8101 = vmatprep.mubr.msk.bf16.mxu1 %vm541_vm0, %v8580_v38  ;;  %8161 = vmatprep.mubr.msk.bf16.mxu0 %vm541_vm0, %v3472_v40  ;;  %v8606_v29 = vld [vmem:[%s8787_s26 + $0xa4] sm:$0xff]   ;;  %v3560_v36 = vsel %vm1168_vm2, %v3555_v20, %v3559_v16 }
  0xce   : > { %v3536_v48 = vsel %vm1168_vm2, %v3531_v32, %v3535_v35  ;;  %v3539_v58 = vor.u32 %v3537_v45, %v3535_v35 }
  0xd4   : > { %8102 = vmatmul.mubr.msk.bf16.gmra.mxu1 %vm541_vm0, %v8581_v49  ;;  %8162 = vmatmul.mubr.msk.bf16.gmra.mxu0 %vm541_vm0, %v3480_v51  ;;  %v3545_v49 = vshrl.u32 %v8604_v27, 16 }
  0xd5   : > { %8105 = vmatprep.mubr.msk.bf16.mxu1 %vm541_vm0, %v8585_v52  ;;  %8165 = vmatprep.mubr.msk.bf16.mxu0 %vm541_vm0, %v3488_v54  ;;  %v3543_v54 = vrot.slane %v3541_v41, 1 }
  0xd7   : > { %v3547_v61 = vor.u32 %v3545_v49, %v3543_v54  ;;  %v3544_v5 = vsel %vm1168_vm2, %v3539_v58, %v3543_v54 }
  0xd9   : > { %v3552_v10 = vsel %vm1168_vm2, %v3547_v61, %v3551_v62  ;;  %v8611_v61 = vld [vmem:[%s8787_s26 + $0xb4] sm:$0xff]  }
  0xdc   : > { %8106 = vmatmul.mubr.msk.bf16.gmra.mxu1 %vm541_vm0, %v8586_v63  ;;  %8166 = vmatmul.mubr.msk.bf16.gmra.mxu0 %vm541_vm0, %v3496_v1  ;;  %v8601_v1 = vld [vmem:[%s8787_s26 + $0x94] sm:$0xff]  }
  0xdd   : > { %8109 = vmatprep.mubr.msk.bf16.mxu1 %vm541_vm0, %v8590_v3  ;;  %8169 = vmatprep.mubr.msk.bf16.mxu0 %vm541_vm0, %v3504_v4 }
  0xe4   : > { %v7931_v24 = vpop.f32.mrf.mxu1  ;;  %8110 = vmatmul.mubr.msk.bf16.gmra.mxu1 %vm541_vm0, %v8591_v15  ;;  %v9218_v25 = vpop.f32.mrf.mxu0  ;;  %8170 = vmatmul.mubr.msk.bf16.gmra.mxu0 %vm541_vm0, %v3512_v18  ;;  %v8614_v18 = vld [vmem:[%s8787_s26 + $0xbc] sm:$0xff]  }
  0xe5   : > { %v865_v28 = vadd.f32 %v7931_v24, %v9207_v17  ;;  %8113 = vmatprep.mubr.msk.bf16.mxu1 %vm541_vm0, %v8595_v19  ;;  %8173 = vmatprep.mubr.msk.bf16.mxu0 %vm541_vm0, %v3520_v21  ;;  %v3567_v24 = vrot.slane %v3565_v12, 1  ;;  %v3573_v32 = vshll.u32 %v8614_v18, 16 }
  0xe6   : > { %v744_v30 = vpop.f32.mrf.mxu1  ;;  %v9225_v31 = vpop.f32.mrf.mxu0 }
  0xe7   : > { %913 = vst [vmem:[%s9215_s24 + $0xd0] sm:$0xff] %v865_v28  ;;  %v863_v37 = vadd.f32 %v744_v30, %v9207_v17  ;;  %v3575_v49 = vrot.slane %v3573_v32, 1 }
  0xe8   : > { %v7932_v38 = vpop.f32.mrf.mxu1  ;;  %v9233_v40 = vpop.f32.mrf.mxu0 }
  0xe9   : > { %911 = vst [vmem:[%s9215_s24 + $0xc0] sm:$0xff] %v863_v37  ;;  %v866_v42 = vadd.f32 %v7932_v38, %v9207_v17  ;;  %v8610_v37 = vld [vmem:[%s8787_s26 + $0xac] sm:$0xff]   ;;  %v3569_v38 = vshrl.u32 %v9257_v56, 16 }
  0xea   : > { %v747_v46 = vpop.f32.mrf.mxu1  ;;  %v9239_v47 = vpop.f32.mrf.mxu0 }
  0xeb   : > { %914 = vst [vmem:[%s9215_s24 + $0xd8] sm:$0xff] %v866_v42  ;;  %v864_v51 = vadd.f32 %v747_v46, %v9207_v17  ;;  %v3568_v42 = vsel %vm1168_vm2, %v3563_v23, %v3567_v24 }
  0xec   : > { %v7935_v52 = vpop.f32.mrf.mxu1  ;;  %8114 = vmatmul.mubr.msk.bf16.gmra.mxu1 %vm541_vm0, %v8596_v39  ;;  %v9246_v53 = vpop.f32.mrf.mxu0  ;;  %8174 = vmatmul.mubr.msk.bf16.gmra.mxu0 %vm541_vm0, %v3528_v43  ;;  %v3577_v43 = vshrl.u32 %v8614_v18, 16 }
  0xed   : > { %912 = vst [vmem:[%s9215_s24 + $0xc8] sm:$0xff] %v864_v51  ;;  %v869_v57 = vadd.f32 %v7935_v52, %v9207_v17  ;;  %8117 = vmatprep.mubr.msk.bf16.mxu1 %vm541_vm0, %v8600_v44  ;;  %8177 = vmatprep.mubr.msk.bf16.mxu0 %vm541_vm0, %v3536_v48  ;;  %v3581_v44 = vshll.u32 %v8618_v26, 16  ;;  %v3571_v52 = vor.u32 %v3569_v38, %v3567_v24 }
  0xee   : > { %v760_v59 = vpop.f32.mrf.mxu1  ;;  %v9254_v60 = vpop.f32.mrf.mxu0 }
  0xef   : > { %917 = vst [vmem:[%s9215_s24 + $0xf0] sm:$0xff] %v869_v57  ;;  %v867_v63 = vadd.f32 %v760_v59, %v9207_v17  ;;  %v3579_v57 = vor.u32 %v3577_v43, %v3575_v49  ;;  %v3583_v58 = vrot.slane %v3581_v44, 1  ;;  %v3576_v2 = vsel %vm1168_vm2, %v3571_v52, %v3575_v49 }
  0xf0   : > { %v7936_v0 = vpop.f32.mrf.mxu1  ;;  %v9262_v3 = vpop.f32.mrf.mxu0 }
  0xf1   : > { %915 = vst [vmem:[%s9215_s24 + $0xe0] sm:$0xff] %v867_v63  ;;  %v870_v4 = vadd.f32 %v7936_v0, %v9207_v17  ;;  %v8615_v63 = vld [vmem:[%s8787_s26 + $0xbc] sm:$0xff]   ;;  %v9320_v0 = vld [vmem:[%s8787_s26 + $0x14] sm:$0xff]  }
  0xf2   : > { %v763_v8 = vpop.f32.mrf.mxu1  ;;  %v9269_v9 = vpop.f32.mrf.mxu0  ;;  %v4256_v23 = vrot.slane %v9320_v0, 1  ;;  %v8629_v0 = vld [vmem:[%s8787_s26 + $0x28] sm:$0xff]  }
  0xf3   : > { %918 = vst [vmem:[%s9215_s24 + $0xf8] sm:$0xff] %v870_v4  ;;  %v868_v13 = vadd.f32 %v763_v8, %v9207_v17  ;;  %v3585_v4 = vshrl.u32 %v8618_v26, 16  ;;  %v3584_v8 = vsel %vm1168_vm2, %v3579_v57, %v3583_v58 }
  0xf4   : > { %v7939_v14 = vpop.f32.mrf.mxu1  ;;  %8118 = vmatmul.mubr.msk.bf16.gmra.mxu1 %vm541_vm0, %v8601_v1  ;;  %v9276_v15 = vpop.f32.mrf.mxu0  ;;  %8178 = vmatmul.mubr.msk.bf16.gmra.mxu0 %vm541_vm0, %v3544_v5  ;;  %v3589_v5 = vshll.u32 %v8619_v50, 16 }
  0xf5   : > { %916 = vst [vmem:[%s9215_s24 + $0xe8] sm:$0xff] %v868_v13  ;;  %v873_v19 = vadd.f32 %v7939_v14, %v9207_v17  ;;  %8121 = vmatprep.mubr.msk.bf16.mxu1 %vm541_vm0, %v8605_v6  ;;  %8181 = vmatprep.mubr.msk.bf16.mxu0 %vm541_vm0, %v3552_v10  ;;  %v8620_v10 = vld [vmem:[%s8787_s26 + $0xc] sm:$0xfe]   ;;  %v3587_v16 = vor.u32 %v3585_v4, %v3583_v58 }
  0xf6   : > { %v776_v21 = vpop.f32.mrf.mxu1  ;;  %v9284_v22 = vpop.f32.mrf.mxu0  ;;  %v3591_v18 = vrot.slane %v3589_v5, 1  ;;  %v9385_v5 = vld [vmem:[%s8787_s26 + $0x34] sm:$0xff]  }
  0xf7   : > { %921 = vst [vmem:[%s9215_s24 + $0x110] sm:$0xff] %v873_v19  ;;  %v871_v27 = vadd.f32 %v776_v21, %v9207_v17  ;;  %v4255_v21 = vrot.slane %v8620_v10, 1 }
  0xf8   : > { %v7940_v28 = vpop.f32.mrf.mxu1  ;;  %v9290_v30 = vpop.f32.mrf.mxu0 }
  0xf9   : > { %919 = vst [vmem:[%s9215_s24 + $0x100] sm:$0xff] %v871_v27  ;;  %v874_v35 = vadd.f32 %v7940_v28, %v9207_v17  ;;  %v8616_v27 = vld [vmem:[%s8787_s26 + $0xc4] sm:$0xff]  }
  0xfa   : > { %v779_v39 = vpop.f32.mrf.mxu1  ;;  %v9297_v41 = vpop.f32.mrf.mxu0 }
  0xfb   : > { %922 = vst [vmem:[%s9215_s24 + $0x118] sm:$0xff] %v874_v35  ;;  %v872_v45 = vadd.f32 %v779_v39, %v9207_v17  ;;  %v3592_v35 = vsel %vm1168_vm2, %v3587_v16, %v3591_v18  ;;  %v4257_v39 = vsel %vm2027_vm1, %v4255_v21, %v4256_v23  ;;  %v839_v16 = vadd.f32 %v9225_v31, %v9207_v17  ;;  %v8643_v31 = vld [vmem:[%s10278_s1 + $0x168] sm:$0xff]  }
  0xfc   : > { %v7943_v46 = vpop.f32.mrf.mxu1  ;;  %8122 = vmatmul.mubr.msk.bf16.gmra.mxu1 %vm541_vm0, %v8606_v29  ;;  %v9303_v48 = vpop.f32.mrf.mxu0  ;;  %8182 = vmatmul.mubr.msk.bf16.gmra.mxu0 %vm541_vm0, %v3560_v36  ;;  %v8622_v29 = vld [vmem:[%s8787_s26 + $0x1c] sm:$0xff]  }
  0xfd   : > { %920 = vst [vmem:[%s9215_s24 + $0x108] sm:$0xff] %v872_v45  ;;  %v877_v51 = vadd.f32 %v7943_v46, %v9207_v17  ;;  %8125 = vmatprep.mubr.msk.bf16.mxu1 %vm541_vm0, %v8610_v37  ;;  %8185 = vmatprep.mubr.msk.bf16.mxu0 %vm541_vm0, %v3568_v42  ;;  %v8624_v36 = vld [vmem:[%s8787_s26 + $0x18] sm:$0xff]   ;;  %v9356_v42 = vld [vmem:[%s8787_s26 + $0x24] sm:$0xff]   ;;  %v4258_v49 = vrot.slane %v8622_v29, 1 }
  0xfe   : > { %v792_v54 = vpop.f32.mrf.mxu1  ;;  %v9311_v55 = vpop.f32.mrf.mxu0  ;;  %v4260_v52 = vrot.slane %v9356_v42, 1  ;;  %v8634_v42 = vld [vmem:[%s8787_s26 + $0x38] sm:$0xff]  }
  0xff   : > { %925 = vst [vmem:[%s9215_s24 + $0x130] sm:$0xff] %v877_v51  ;;  %v875_v59 = vadd.f32 %v792_v54, %v9207_v17 }
 0x100   : > { %v7944_v62 = vpop.f32.mrf.mxu1  ;;  %v9316_v56 = vpop.f32.mrf.mxu0  ;;  %v4261_v4 = vsel %vm2027_vm1, %v4258_v49, %v4260_v52 }
 0x101   : > { %923 = vst [vmem:[%s9215_s24 + $0x120] sm:$0xff] %v875_v59  ;;  %v878_v1 = vadd.f32 %v7944_v62, %v9207_v17  ;;  %v8625_v59 = vld [vmem:[%s8787_s26 + $0x20] sm:$0xff]  }
 0x102   : > { %v795_v6 = vpop.f32.mrf.mxu1  ;;  %v9325_v7 = vpop.f32.mrf.mxu0 }
 0x103   : > { %926 = vst [vmem:[%s9215_s24 + $0x138] sm:$0xff] %v878_v1  ;;  %v876_v11 = vadd.f32 %v795_v6, %v9207_v17  ;;  %v8633_v6 = vld [vmem:[%s10278_s1 + $0x170] sm:$0xff]  }
 0x104   : > { %v7947_v12 = vpop.f32.mrf.mxu1  ;;  %8126 = vmatmul.mubr.msk.bf16.gmra.mxu1 %vm541_vm0, %v8611_v61  ;;  %v9332_v13 = vpop.f32.mrf.mxu0  ;;  %8186 = vmatmul.mubr.msk.bf16.gmra.mxu0 %vm541_vm0, %v3576_v2  ;;  %v8627_v61 = vld [vmem:[%s8787_s26 + $0x2c] sm:$0xff]  }
 0x105   : > { %924 = vst [vmem:[%s9215_s24 + $0x128] sm:$0xff] %v876_v11  ;;  %v881_v14 = vadd.f32 %v7947_v12, %v9207_v17  ;;  %8129 = vmatprep.mubr.msk.bf16.mxu1 %vm541_vm0, %v8615_v63  ;;  %8189 = vmatprep.mubr.msk.bf16.mxu0 %vm541_vm0, %v3584_v8  ;;  %v4259_v63 = vsel %vm2027_vm1, %v4256_v23, %v4258_v49  ;;  %v8638_v11 = vld [vmem:[%s10278_s1 + $0x1a0] sm:$0xff]   ;;  %v4264_v23 = vrot.slane %v9385_v5, 1 }
 0x106   : > { %v808_v19 = vpop.f32.mrf.mxu1  ;;  %v9339_v20 = vpop.f32.mrf.mxu0  ;;  %v841_v8 = vadd.f32 %v9218_v25, %v9207_v17  ;;  %v4262_v25 = vrot.slane %v8627_v61, 1  ;;  %v9426_v49 = vld [vmem:[%s8787_s26 + $0x44] sm:$0xff]   ;;  %v849_v5 = vadd.f32 %v9276_v15, %v9207_v17 }
 0x107   : > { %929 = vst [vmem:[%s9215_s24 + $0x150] sm:$0xff] %v881_v14  ;;  %v879_v24 = vadd.f32 %v808_v19, %v9207_v17 }
 0x108   : > { %v7948_v26 = vpop.f32.mrf.mxu1  ;;  %v9345_v28 = vpop.f32.mrf.mxu0 }
 0x109   : > { %927 = vst [vmem:[%s9215_s24 + $0x140] sm:$0xff] %v879_v24  ;;  %v882_v32 = vadd.f32 %v7948_v26, %v9207_v17 }
 0x10a   : > { %v811_v37 = vpop.f32.mrf.mxu1  ;;  %v9352_v38 = vpop.f32.mrf.mxu0 }
 0x10b   : > { %930 = vst [vmem:[%s9215_s24 + $0x158] sm:$0xff] %v882_v32  ;;  %v880_v43 = vadd.f32 %v811_v37, %v9207_v17  ;;  %v8630_v32 = vld [vmem:[%s8787_s26 + $0x30] sm:$0xff]  }
 0x10c   : > { %v7951_v44 = vpop.f32.mrf.mxu1  ;;  %8130 = vmatmul.mubr.msk.bf16.gmra.mxu1 %vm541_vm0, %v8616_v27  ;;  %v9361_v45 = vpop.f32.mrf.mxu0  ;;  %8190 = vmatmul.mubr.msk.bf16.gmra.mxu0 %vm541_vm0, %v3592_v35  ;;  %v8632_v35 = vld [vmem:[%s8787_s26 + $0x3c] sm:$0xff]  }
 0x10d   : > { %928 = vst [vmem:[%s9215_s24 + $0x148] sm:$0xff] %v880_v43  ;;  %v885_v46 = vadd.f32 %v7951_v44, %v9207_v17  ;;  %8205 = vmatprep.mubr.msk.bf16.mxu1 %vm541_vm0, %v4257_v39  ;;  %8265 = vmatprep.mubr.msk.bf16.mxu0 %vm541_vm0, %v8624_v36  ;;  %v840_v36 = vadd.f32 %v9239_v47, %v9207_v17 }
 0x10e   : > { %v824_v50 = vpop.f32.mrf.mxu1  ;;  %v9368_v51 = vpop.f32.mrf.mxu0  ;;  %v4263_v39 = vsel %vm2027_vm1, %v4260_v52, %v4262_v25  ;;  %v845_v47 = vadd.f32 %v9246_v53, %v9207_v17  ;;  %v8653_v52 = vld [vmem:[%s10278_s1 + $0x160] sm:$0xff]   ;;  %v843_v53 = vadd.f32 %v9254_v60, %v9207_v17  ;;  %v846_v60 = vadd.f32 %v9262_v3, %v9207_v17 }
 0x10f   : > { %933 = vst [vmem:[%s9215_s24 + $0x170] sm:$0xff] %v885_v46  ;;  %v883_v54 = vadd.f32 %v824_v50, %v9207_v17  ;;  %v4265_v46 = vsel %vm2027_vm1, %v4262_v25, %v4264_v23  ;;  %v8637_v25 = vld [vmem:[%s8787_s26 + $0x4c] sm:$0xff]   ;;  %v844_v3 = vadd.f32 %v9269_v9, %v9207_v17 }
 0x110   : > { %v7952_v57 = vpop.f32.mrf.mxu1  ;;  %v9373_v58 = vpop.f32.mrf.mxu0  ;;  %v8673_v9 = vld [vmem:[%s10278_s1 + $0x150] sm:$0xff]  }
 0x111   : > { %931 = vst [vmem:[%s9215_s24 + $0x160] sm:$0xff] %v883_v54  ;;  %v886_v62 = vadd.f32 %v7952_v57, %v9207_v17  ;;  %v8658_v57 = vld [vmem:[%s10278_s1 + $0x190] sm:$0xff]  }
 0x112   : > { %v827_v1 = vpop.f32.mrf.mxu1  ;;  %v9381_v2 = vpop.f32.mrf.mxu0 }
 0x113   : > { %934 = vst [vmem:[%s9215_s24 + $0x178] sm:$0xff] %v886_v62  ;;  %v884_v10 = vadd.f32 %v827_v1, %v9207_v17 }
 0x114   : > { %v7967_v12 = vpop.f32.mrf.mxu1  ;;  %8206 = vmatmul.mubr.msk.bf16.vlgmr.msra.gmra.mxu1 %vm541_vm0, %v4259_v63  ;;  %v8027_v14 = vpop.f32.mrf.mxu0  ;;  %8266 = vmatmul.mubr.msk.bf16.vlgmr.msra.gmra.mxu0 %vm541_vm0, %v8625_v59 }
 0x115   : > { %932 = vst [vmem:[%s9215_s24 + $0x168] sm:$0xff] %v884_v10  ;;  %v1700_v18 = vadd.f32 %v7967_v12, %v841_v8  ;;  %8314 = vmatpush3.bf16.msra.mxu1 %v9159_v33  ;;  %8209 = vmatprep.mubr.msk.bf16.mxu1 %vm541_vm0, %v4261_v4  ;;  %v842_v33 = vadd.f32 %v9233_v40, %v9207_v17  ;;  %v4268_v8 = vrot.slane %v9426_v49, 1  ;;  %v8663_v12 = vld [vmem:[%s10278_s1 + $0x158] sm:$0xff]  }
 0x116   : > { %v1507_v19 = vpop.f32.mrf.mxu1  ;;  %v2219_v21 = vpop.f32.mrf.mxu0  ;;  %8374 = vmatpush3.bf16.msra.mxu0 %v9164_v34  ;;  %8269 = vmatprep.mubr.msk.bf16.mxu0 %vm541_vm0, %v8629_v0  ;;  %v8648_v34 = vld [vmem:[%s10278_s1 + $0x198] sm:$0xff]   ;;  %v4266_v0 = vrot.slane %v8632_v35, 1 }
 0x117   : > { %v1698_v24 = vadd.f32 %v1507_v19, %v839_v16  ;;  %v2412_v26 = vadd.f32 %v8027_v14, %v1700_v18  ;;  %8315 = vmatprep.subr.bf16.mxu1 %v8633_v6  ;;  %8375 = vmatprep.subr.bf16.mxu0 %v8638_v11  ;;  %v8668_v14 = vld [vmem:[%s10278_s1 + $0x188] sm:$0xff]  }
 0x118   : > { %v7968_v27 = vpop.f32.mrf.mxu1  ;;  %v8028_v29 = vpop.f32.mrf.mxu0  ;;  %v8639_v19 = vld [vmem:[%s8787_s26 + $0x48] sm:$0xff]  }
 0x119   : > { %v1701_v37 = vadd.f32 %v7968_v27, %v842_v33  ;;  %2460 = vst [vmem:[%s9215_s24 + $0x10] sm:$0xff] %v2412_v26  ;;  %v2410_v40 = vadd.f32 %v2219_v21, %v1698_v24  ;;  %8316 = vmatpush3.bf16.msra.mxu1 %v8633_v6  ;;  %v8635_v6 = vld [vmem:[%s8787_s26 + $0x40] sm:$0xff]   ;;  %v4267_v33 = vsel %vm2027_vm1, %v4264_v23, %v4266_v0  ;;  %v9464_v24 = vld [vmem:[%s8787_s26 + $0x54] sm:$0xff]  }
 0x11a   : > { %v1510_v43 = vpop.f32.mrf.mxu1  ;;  %v2222_v44 = vpop.f32.mrf.mxu0  ;;  %8376 = vmatpush3.bf16.msra.mxu0 %v8638_v11  ;;  %8317 = vmatprep.subr.bf16.mxu1 %v8643_v31  ;;  %v4269_v27 = vsel %vm2027_vm1, %v4266_v0, %v4268_v8 }
 0x11b   : > { %v1699_v50 = vadd.f32 %v1510_v43, %v840_v36  ;;  %2458 = vst [vmem:[%s9215_s24] sm:$0xff] %v2410_v40  ;;  %v2413_v54 = vadd.f32 %v8028_v29, %v1701_v37  ;;  %8377 = vmatprep.subr.bf16.mxu0 %v8648_v34  ;;  %v847_v37 = vadd.f32 %v9284_v22, %v9207_v17 }
 0x11c   : > { %v7971_v59 = vpop.f32.mrf.mxu1  ;;  %8210 = vmatmul.mubr.msk.bf16.gmra.mxu1 %vm541_vm0, %v4263_v39  ;;  %v8031_v61 = vpop.f32.mrf.mxu0  ;;  %8270 = vmatmul.mubr.msk.bf16.gmra.mxu0 %vm541_vm0, %v8630_v32  ;;  %v8678_v32 = vld [vmem:[%s10278_s1 + $0x180] sm:$0xff]   ;;  %v4270_v39 = vrot.slane %v8637_v25, 1  ;;  %v850_v22 = vadd.f32 %v9290_v30, %v9207_v17  ;;  %v854_v25 = vadd.f32 %v9316_v56, %v9207_v17 }
 0x11d   : > { %v1704_v62 = vadd.f32 %v7971_v59, %v845_v47  ;;  %2461 = vst [vmem:[%s9215_s24 + $0x18] sm:$0xff] %v2413_v54  ;;  %v2411_v63 = vadd.f32 %v2222_v44, %v1699_v50  ;;  %8213 = vmatprep.mubr.msk.bf16.mxu1 %vm541_vm0, %v4265_v46  ;;  %8273 = vmatprep.mubr.msk.bf16.mxu0 %vm541_vm0, %v8634_v42  ;;  %v4272_v44 = vrot.slane %v9464_v24, 1 }
 0x11e   : > { %v1523_v1 = vpop.f32.mrf.mxu1  ;;  %v2235_v4 = vpop.f32.mrf.mxu0  ;;  %8318 = vmatpush3.bf16.msra.mxu1 %v8643_v31  ;;  %8378 = vmatpush3.bf16.msra.mxu0 %v8648_v34  ;;  %v848_v59 = vadd.f32 %v9297_v41, %v9207_v17  ;;  %v4271_v30 = vsel %vm2027_vm1, %v4268_v8, %v4270_v39  ;;  %v853_v41 = vadd.f32 %v9303_v48, %v9207_v17 }
 0x11f   : > { %v1702_v10 = vadd.f32 %v1523_v1, %v843_v53  ;;  %2459 = vst [vmem:[%s9215_s24 + $0x8] sm:$0xff] %v2411_v63  ;;  %v2416_v11 = vadd.f32 %v8031_v61, %v1704_v62  ;;  %8319 = vmatprep.subr.bf16.mxu1 %v8653_v52  ;;  %8379 = vmatprep.subr.bf16.mxu0 %v8658_v57  ;;  %v8644_v62 = vld [vmem:[%s8787_s26 + $0x58] sm:$0xff]  }
 0x120   : > { %v7972_v16 = vpop.f32.mrf.mxu1  ;;  %v8032_v18 = vpop.f32.mrf.mxu0  ;;  %v4273_v1 = vsel %vm2027_vm1, %v4270_v39, %v4272_v44  ;;  %v851_v8 = vadd.f32 %v9311_v55, %v9207_v17  ;;  %v852_v24 = vadd.f32 %v9325_v7, %v9207_v17 }
 0x121   : > { %v1705_v21 = vadd.f32 %v7972_v16, %v846_v60  ;;  %2464 = vst [vmem:[%s9215_s24 + $0x30] sm:$0xff] %v2416_v11  ;;  %v2414_v31 = vadd.f32 %v2235_v4, %v1702_v10  ;;  %v9500_v4 = vld [vmem:[%s8787_s26 + $0x64] sm:$0xff]  }
 0x122   : > { %v1526_v26 = vpop.f32.mrf.mxu1  ;;  %v2238_v34 = vpop.f32.mrf.mxu0  ;;  %8320 = vmatpush3.bf16.msra.mxu1 %v8653_v52  ;;  %8380 = vmatpush3.bf16.msra.mxu0 %v8658_v57  ;;  %v8640_v52 = vld [vmem:[%s8787_s26 + $0x50] sm:$0xff]   ;;  %v8642_v57 = vld [vmem:[%s8787_s26 + $0x5c] sm:$0xff]  }
 0x123   : > { %v1703_v29 = vadd.f32 %v1526_v26, %v844_v3  ;;  %2462 = vst [vmem:[%s9215_s24 + $0x20] sm:$0xff] %v2414_v31  ;;  %v2417_v23 = vadd.f32 %v8032_v18, %v1705_v21  ;;  %8321 = vmatprep.subr.bf16.mxu1 %v8663_v12  ;;  %8381 = vmatprep.subr.bf16.mxu0 %v8668_v14  ;;  %v4274_v48 = vrot.slane %v8642_v57, 1  ;;  %v4276_v18 = vrot.slane %v9500_v4, 1  ;;  %v8645_v31 = vld [vmem:[%s8787_s26 + $0x60] sm:$0xff]  }
 0x124   : > { %v7975_v35 = vpop.f32.mrf.mxu1  ;;  %8214 = vmatmul.mubr.msk.bf16.gmra.mxu1 %vm541_vm0, %v4267_v33  ;;  %v8035_v36 = vpop.f32.mrf.mxu0  ;;  %8274 = vmatmul.mubr.msk.bf16.gmra.mxu0 %vm541_vm0, %v8635_v6  ;;  %v8647_v33 = vld [vmem:[%s8787_s26 + $0x6c] sm:$0xff]  }
 0x125   : > { %v1708_v15 = vadd.f32 %v7975_v35, %v849_v5  ;;  %2465 = vst [vmem:[%s9215_s24 + $0x38] sm:$0xff] %v2417_v23  ;;  %v2415_v40 = vadd.f32 %v2238_v34, %v1703_v29  ;;  %8217 = vmatprep.mubr.msk.bf16.mxu1 %vm541_vm0, %v4269_v27  ;;  %8277 = vmatprep.mubr.msk.bf16.mxu0 %vm541_vm0, %v8639_v19  ;;  %v9525_v23 = vld [vmem:[%s8787_s26 + $0x74] sm:$0xff]  }
 0x126   : > { %v1539_v42 = vpop.f32.mrf.mxu1  ;;  %v2251_v43 = vpop.f32.mrf.mxu0  ;;  %8322 = vmatpush3.bf16.msra.mxu1 %v8663_v12  ;;  %8382 = vmatpush3.bf16.msra.mxu0 %v8668_v14  ;;  %v4275_v27 = vsel %vm2027_vm1, %v4272_v44, %v4274_v48  ;;  %v4277_v29 = vsel %vm2027_vm1, %v4274_v48, %v4276_v18  ;;  %v4280_v44 = vrot.slane %v9525_v23, 1  ;;  %v862_v48 = vadd.f32 %v9373_v58, %v9207_v17  ;;  %v8659_v58 = vld [vmem:[%s8787_s26 + $0x88] sm:$0xff]  }
 0x127   : > { %v1706_v46 = vadd.f32 %v1539_v42, %v847_v37  ;;  %2463 = vst [vmem:[%s9215_s24 + $0x28] sm:$0xff] %v2415_v40  ;;  %v2420_v47 = vadd.f32 %v8035_v36, %v1708_v15  ;;  %8323 = vmatprep.subr.bf16.mxu1 %v8673_v9  ;;  %8383 = vmatprep.subr.bf16.mxu0 %v8678_v32 }
 0x128   : > { %v7976_v50 = vpop.f32.mrf.mxu1  ;;  %v8036_v54 = vpop.f32.mrf.mxu0  ;;  %v855_v15 = vadd.f32 %v9339_v20, %v9207_v17 }
 0x129   : > { %v1709_v61 = vadd.f32 %v7976_v50, %v850_v22  ;;  %2468 = vst [vmem:[%s9215_s24 + $0x50] sm:$0xff] %v2420_v47  ;;  %v2418_v53 = vadd.f32 %v2251_v43, %v1706_v46  ;;  %v858_v22 = vadd.f32 %v9345_v28, %v9207_v17 }
 0x12a   : > { %v1542_v63 = vpop.f32.mrf.mxu1  ;;  %v2254_v0 = vpop.f32.mrf.mxu0  ;;  %8324 = vmatpush3.bf16.msra.mxu1 %v8673_v9  ;;  %8384 = vmatpush3.bf16.msra.mxu0 %v8678_v32  ;;  %v8649_v9 = vld [vmem:[%s8787_s26 + $0x68] sm:$0xff]   ;;  %v857_v32 = vadd.f32 %v9332_v13, %v9207_v17  ;;  %v4278_v13 = vrot.slane %v8647_v33, 1 }
 0x12b   : > { %v1707_v6 = vadd.f32 %v1542_v63, %v848_v59  ;;  %2466 = vst [vmem:[%s9215_s24 + $0x40] sm:$0xff] %v2418_v53  ;;  %v2421_v60 = vadd.f32 %v8036_v54, %v1709_v61  ;;  %v8650_v54 = vld [vmem:[%s8787_s26 + $0x70] sm:$0xff]   ;;  %v8652_v53 = vld [vmem:[%s8787_s26 + $0x7c] sm:$0xff]  }
 0x12c   : > { %v7979_v10 = vpop.f32.mrf.mxu1  ;;  %8218 = vmatmul.mubr.msk.bf16.gmra.mxu1 %vm541_vm0, %v4271_v30  ;;  %v8039_v49 = vpop.f32.mrf.mxu0  ;;  %8278 = vmatmul.mubr.msk.bf16.gmra.mxu0 %vm541_vm0, %v8640_v52  ;;  %v856_v52 = vadd.f32 %v9352_v38, %v9207_v17  ;;  %v4279_v61 = vsel %vm2027_vm1, %v4276_v18, %v4278_v13  ;;  %v8654_v30 = vld [vmem:[%s8787_s26 + $0x78] sm:$0xff]   ;;  %v4281_v63 = vsel %vm2027_vm1, %v4278_v13, %v4280_v44 }
 0x12d   : > { %v1712_v11 = vadd.f32 %v7979_v10, %v853_v41  ;;  %2469 = vst [vmem:[%s9215_s24 + $0x58] sm:$0xff] %v2421_v60  ;;  %v2419_v12 = vadd.f32 %v2254_v0, %v1707_v6  ;;  %8221 = vmatprep.mubr.msk.bf16.mxu1 %vm541_vm0, %v4273_v1  ;;  %8281 = vmatprep.mubr.msk.bf16.mxu0 %vm541_vm0, %v8644_v62  ;;  %v9550_v0 = vld [vmem:[%s8787_s26 + $0x84] sm:$0xff]  }
 0x12e   : > { %v1555_v14 = vpop.f32.mrf.mxu1  ;;  %v2267_v16 = vpop.f32.mrf.mxu0  ;;  %v861_v1 = vadd.f32 %v9361_v45, %v9207_v17  ;;  %v859_v60 = vadd.f32 %v9368_v51, %v9207_v17  ;;  %v4282_v45 = vrot.slane %v8652_v53, 1  ;;  %v965_v53 = vld [vmem:[%s9215_s24 + $0xf0] sm:$0xff] }
 0x12f   : > { %v1710_v55 = vadd.f32 %v1555_v14, %v851_v8  ;;  %2467 = vst [vmem:[%s9215_s24 + $0x48] sm:$0xff] %v2419_v12  ;;  %v2424_v19 = vadd.f32 %v8039_v49, %v1712_v11  ;;  %v4284_v12 = vrot.slane %v9550_v0, 1 }
 0x130   : > { %v7980_v3 = vpop.f32.mrf.mxu1  ;;  %v8040_v21 = vpop.f32.mrf.mxu0 }
 0x131   : > { %v1713_v26 = vadd.f32 %v7980_v3, %v854_v25  ;;  %2472 = vst [vmem:[%s9215_s24 + $0x70] sm:$0xff] %v2424_v19  ;;  %v2422_v34 = vadd.f32 %v2267_v16, %v1710_v55  ;;  %v8655_v25 = vld [vmem:[%s8787_s26 + $0x80] sm:$0xff]   ;;  %v860_v55 = vadd.f32 %v9381_v2, %v9207_v17 }
 0x132   : > { %v1558_v56 = vpop.f32.mrf.mxu1  ;;  %v2270_v5 = vpop.f32.mrf.mxu0 }
 0x133   : > { %v1711_v35 = vadd.f32 %v1558_v56, %v852_v24  ;;  %2470 = vst [vmem:[%s9215_s24 + $0x60] sm:$0xff] %v2422_v34  ;;  %v2425_v36 = vadd.f32 %v8040_v21, %v1713_v26  ;;  %v4283_v21 = vsel %vm2027_vm1, %v4280_v44, %v4282_v45  ;;  %v4285_v26 = vsel %vm2027_vm1, %v4282_v45, %v4284_v12  ;;  %v9575_v34 = vld [vmem:[%s8787_s26 + $0x94] sm:$0xff]  }
 0x134   : > { %v7983_v7 = vpop.f32.mrf.mxu1  ;;  %8222 = vmatmul.mubr.msk.bf16.gmra.mxu1 %vm541_vm0, %v4275_v27  ;;  %v8043_v37 = vpop.f32.mrf.mxu0  ;;  %8282 = vmatmul.mubr.msk.bf16.gmra.mxu0 %vm541_vm0, %v8645_v31  ;;  %v8657_v31 = vld [vmem:[%s8787_s26 + $0x8c] sm:$0xff]  }
 0x135   : > { %v1716_v40 = vadd.f32 %v7983_v7, %v857_v32  ;;  %2473 = vst [vmem:[%s9215_s24 + $0x78] sm:$0xff] %v2425_v36  ;;  %v2423_v39 = vadd.f32 %v2270_v5, %v1711_v35  ;;  %8225 = vmatprep.mubr.msk.bf16.mxu1 %vm541_vm0, %v4277_v29  ;;  %8285 = vmatprep.mubr.msk.bf16.mxu0 %vm541_vm0, %v8649_v9  ;;  %v961_v56 = vld [vmem:[%s9215_s24 + $0xd0] sm:$0xff]  ;;  %v4286_v23 = vrot.slane %v8657_v31, 1  ;;  %v959_v32 = vld [vmem:[%s9215_s24 + $0xc0] sm:$0xff]  ;;  %v4288_v7 = vrot.slane %v9575_v34, 1 }
 0x136   : > { %v1571_v42 = vpop.f32.mrf.mxu1  ;;  %v2283_v43 = vpop.f32.mrf.mxu0  ;;  %v969_v31 = vld [vmem:[%s9215_s24 + $0x110] sm:$0xff] }
 0x137   : > { %v1714_v20 = vadd.f32 %v1571_v42, %v855_v15  ;;  %2471 = vst [vmem:[%s9215_s24 + $0x68] sm:$0xff] %v2423_v39  ;;  %v2428_v46 = vadd.f32 %v8043_v37, %v1716_v40  ;;  %v962_v40 = vld [vmem:[%s9215_s24 + $0xd8] sm:$0xff]  ;;  %v8660_v42 = vld [vmem:[%s8787_s26 + $0x90] sm:$0xff]  }
 0x138   : > { %v7984_v47 = vpop.f32.mrf.mxu1  ;;  %v8044_v50 = vpop.f32.mrf.mxu0 }
 0x139   : > { %v1717_v57 = vadd.f32 %v7984_v47, %v858_v22  ;;  %2476 = vst [vmem:[%s9215_s24 + $0x90] sm:$0xff] %v2428_v46  ;;  %v2426_v59 = vadd.f32 %v2283_v43, %v1714_v20  ;;  %v4287_v22 = vsel %vm2027_vm1, %v4284_v12, %v4286_v23  ;;  %v8662_v20 = vld [vmem:[%s8787_s26 + $0x9c] sm:$0xff]   ;;  %v960_v47 = vld [vmem:[%s9215_s24 + $0xc8] sm:$0xff] }
 0x13a   : > { %v1574_v28 = vpop.f32.mrf.mxu1  ;;  %v2286_v62 = vpop.f32.mrf.mxu0  ;;  %v8664_v46 = vld [vmem:[%s8787_s26 + $0x98] sm:$0xff]   ;;  %v4290_v0 = vrot.slane %v8662_v20, 1 }
 0x13b   : > { %v1715_v4 = vadd.f32 %v1574_v28, %v856_v52  ;;  %2474 = vst [vmem:[%s9215_s24 + $0x80] sm:$0xff] %v2426_v59  ;;  %v2429_v38 = vadd.f32 %v8044_v50, %v1717_v57  ;;  %v4289_v52 = vsel %vm2027_vm1, %v4286_v23, %v4288_v7  ;;  %v9596_v57 = vld [vmem:[%s8787_s26 + $0xa4] sm:$0xff]  }
 0x13c   : > { %v7987_v41 = vpop.f32.mrf.mxu1  ;;  %8226 = vmatmul.mubr.msk.bf16.gmra.mxu1 %vm541_vm0, %v4279_v61  ;;  %v8047_v6 = vpop.f32.mrf.mxu0  ;;  %8286 = vmatmul.mubr.msk.bf16.gmra.mxu0 %vm541_vm0, %v8650_v54 }
 0x13d   : > { %v1720_v10 = vadd.f32 %v7987_v41, %v861_v1  ;;  %2477 = vst [vmem:[%s9215_s24 + $0x98] sm:$0xff] %v2429_v38  ;;  %v2427_v49 = vadd.f32 %v2286_v62, %v1715_v4  ;;  %8229 = vmatprep.mubr.msk.bf16.mxu1 %vm541_vm0, %v4281_v63  ;;  %8289 = vmatprep.mubr.msk.bf16.mxu0 %vm541_vm0, %v8654_v30  ;;  %v963_v1 = vld [vmem:[%s9215_s24 + $0xe0] sm:$0xff]  ;;  %v4292_v41 = vrot.slane %v9596_v57, 1 }
 0x13e   : > { %v1587_v8 = vpop.f32.mrf.mxu1  ;;  %v2299_v11 = vpop.f32.mrf.mxu0 }
 0x13f   : > { %v1718_v51 = vadd.f32 %v1587_v8, %v859_v60  ;;  %2475 = vst [vmem:[%s9215_s24 + $0x88] sm:$0xff] %v2427_v49  ;;  %v2432_v14 = vadd.f32 %v8047_v6, %v1720_v10  ;;  %v966_v10 = vld [vmem:[%s9215_s24 + $0xf8] sm:$0xff]  ;;  %v8665_v8 = vld [vmem:[%s8787_s26 + $0xa0] sm:$0xff]  }
 0x140   : > { %v7988_v16 = vpop.f32.mrf.mxu1  ;;  %v8048_v18 = vpop.f32.mrf.mxu0 }
 0x141   : > { %v1721_v19 = vadd.f32 %v7988_v16, %v862_v48  ;;  %2480 = vst [vmem:[%s9215_s24 + $0xb0] sm:$0xff] %v2432_v14  ;;  %v2430_v3 = vadd.f32 %v2299_v11, %v1718_v51  ;;  %v4291_v48 = vsel %vm2027_vm1, %v4288_v7, %v4290_v0  ;;  %v8667_v51 = vld [vmem:[%s8787_s26 + $0xac] sm:$0xff]  }
 0x142   : > { %v1590_v33 = vpop.f32.mrf.mxu1  ;;  %v2302_v24 = vpop.f32.mrf.mxu0  ;;  %v8669_v14 = vld [vmem:[%s8787_s26 + $0xa8] sm:$0xff]   ;;  %v4294_v34 = vrot.slane %v8667_v51, 1 }
 0x143   : > { %v1719_v27 = vadd.f32 %v1590_v33, %v860_v55  ;;  %2478 = vst [vmem:[%s9215_s24 + $0xa0] sm:$0xff] %v2430_v3  ;;  %v2433_v9 = vadd.f32 %v8048_v18, %v1721_v19  ;;  %v964_v16 = vld [vmem:[%s9215_s24 + $0xe8] sm:$0xff]  ;;  %v4293_v55 = vsel %vm2027_vm1, %v4290_v0, %v4292_v41  ;;  %v9617_v19 = vld [vmem:[%s8787_s26 + $0xb4] sm:$0xff]  }
 0x144   : > { %v7991_v17 = vpop.f32.mrf.mxu1  ;;  %8230 = vmatmul.mubr.msk.bf16.gmra.mxu1 %vm541_vm0, %v4283_v21  ;;  %v8051_v2 = vpop.f32.mrf.mxu0  ;;  %8290 = vmatmul.mubr.msk.bf16.gmra.mxu0 %vm541_vm0, %v8655_v25 }
 0x145   : > { %v1724_v5 = vadd.f32 %v7991_v17, %v961_v56  ;;  %2481 = vst [vmem:[%s9215_s24 + $0xb8] sm:$0xff] %v2433_v9  ;;  %v2431_v29 = vadd.f32 %v2302_v24, %v1719_v27  ;;  %8233 = vmatprep.mubr.msk.bf16.mxu1 %vm541_vm0, %v4285_v26  ;;  %8293 = vmatprep.mubr.msk.bf16.mxu0 %vm541_vm0, %v8659_v58  ;;  %v967_v27 = vld [vmem:[%s9215_s24 + $0x100] sm:$0xff]  ;;  %v4296_v17 = vrot.slane %v9617_v19, 1 }
 0x146   : > { %v1603_v35 = vpop.f32.mrf.mxu1  ;;  %v2315_v36 = vpop.f32.mrf.mxu0 }
 0x147   : > { %v1722_v37 = vadd.f32 %v1603_v35, %v959_v32  ;;  %2479 = vst [vmem:[%s9215_s24 + $0xa8] sm:$0xff] %v2431_v29  ;;  %v2436_v15 = vadd.f32 %v8051_v2, %v1724_v5  ;;  %v970_v29 = vld [vmem:[%s9215_s24 + $0x118] sm:$0xff]  ;;  %v8670_v35 = vld [vmem:[%s8787_s26 + $0xb0] sm:$0xff]  }
 0x148   : > { %v7992_v39 = vpop.f32.mrf.mxu1  ;;  %v8052_v13 = vpop.f32.mrf.mxu0 }
 0x149   : > { %v1725_v43 = vadd.f32 %v7992_v39, %v962_v40  ;;  %2484 = vst [vmem:[%s9215_s24 + $0xd0] sm:$0xff] %v2436_v15  ;;  %v2434_v44 = vadd.f32 %v2315_v36, %v1722_v37  ;;  %v4295_v37 = vsel %vm2027_vm1, %v4292_v41, %v4294_v34  ;;  %v8672_v15 = vld [vmem:[%s8787_s26 + $0xbc] sm:$0xff]   ;;  %v968_v39 = vld [vmem:[%s9215_s24 + $0x108] sm:$0xff] }
 0x14a   : > { %v1606_v50 = vpop.f32.mrf.mxu1  ;;  %v2318_v54 = vpop.f32.mrf.mxu0  ;;  %v8674_v40 = vld [vmem:[%s8787_s26 + $0xb8] sm:$0xff]  }
 0x14b   : > { %v1723_v59 = vadd.f32 %v1606_v50, %v960_v47  ;;  %2482 = vst [vmem:[%s9215_s24 + $0xc0] sm:$0xff] %v2434_v44  ;;  %v2437_v61 = vadd.f32 %v8052_v13, %v1725_v43  ;;  %v4297_v43 = vsel %vm2027_vm1, %v4294_v34, %v4296_v17  ;;  %v9638_v44 = vld [vmem:[%s8787_s26 + $0xc4] sm:$0xff]   ;;  %v973_v47 = vld [vmem:[%s9215_s24 + $0x130] sm:$0xff] }
 0x14c   : > { %v7995_v30 = vpop.f32.mrf.mxu1  ;;  %8234 = vmatmul.mubr.msk.bf16.gmra.mxu1 %vm541_vm0, %v4287_v22  ;;  %v8055_v28 = vpop.f32.mrf.mxu0  ;;  %8294 = vmatmul.mubr.msk.bf16.gmra.mxu0 %vm541_vm0, %v8660_v42  ;;  %v8681_v22 = vld [vmem:[%s8787_s26 + $0x18] sm:$0xff]  }
 0x14d   : > { %v1728_v62 = vadd.f32 %v7995_v30, %v965_v53  ;;  %2485 = vst [vmem:[%s9215_s24 + $0xd8] sm:$0xff] %v2437_v61  ;;  %v2435_v63 = vadd.f32 %v2318_v54, %v1723_v59  ;;  %8237 = vmatprep.mubr.msk.bf16.mxu1 %vm541_vm0, %v4289_v52  ;;  %8297 = vmatprep.mubr.msk.bf16.mxu0 %vm541_vm0, %v8664_v46  ;;  %v4298_v59 = vrot.slane %v8672_v15, 1  ;;  %v971_v61 = vld [vmem:[%s9215_s24 + $0x120] sm:$0xff]  ;;  %v8680_v15 = vld [vmem:[%s8787_s26 + $0xd0] sm:$0xff]  }
 0x14e   : > { %v1619_v4 = vpop.f32.mrf.mxu1  ;;  %v2331_v38 = vpop.f32.mrf.mxu0 }
 0x14f   : > { %v1726_v6 = vadd.f32 %v1619_v4, %v963_v1  ;;  %2483 = vst [vmem:[%s9215_s24 + $0xc8] sm:$0xff] %v2435_v63  ;;  %v2440_v60 = vadd.f32 %v8055_v28, %v1728_v62  ;;  %v4300_v28 = vrot.slane %v9638_v44, 1  ;;  %v9651_v62 = vld [vmem:[%s8787_s26 + $0x20] sm:$0xff]   ;;  %v5627_v63 = vshll.u32 %v8681_v22, 16  ;;  %v974_v4 = vld [vmem:[%s9215_s24 + $0x138] sm:$0xff]  ;;  %v8686_v44 = vld [vmem:[%s8787_s26 + $0x28] sm:$0xff]  }
 0x150   : > { %v7996_v49 = vpop.f32.mrf.mxu1  ;;  %v8056_v45 = vpop.f32.mrf.mxu0 }
 0x151   : > { %v1729_v11 = vadd.f32 %v7996_v49, %v966_v10  ;;  %2488 = vst [vmem:[%s9215_s24 + $0xf0] sm:$0xff] %v2440_v60  ;;  %v2438_v12 = vadd.f32 %v2331_v38, %v1726_v6  ;;  %v8675_v6 = vld [vmem:[%s8787_s26 + $0xc0] sm:$0xff]   ;;  %v4299_v49 = vsel %vm2027_vm1, %v4296_v17, %v4298_v59 }
 0x152   : > { %v1622_v18 = vpop.f32.mrf.mxu1  ;;  %v2334_v25 = vpop.f32.mrf.mxu0 }
 0x153   : > { %v1727_v3 = vadd.f32 %v1622_v18, %v964_v16  ;;  %2486 = vst [vmem:[%s9215_s24 + $0xe0] sm:$0xff] %v2438_v12  ;;  %v2441_v21 = vadd.f32 %v8056_v45, %v1729_v11  ;;  %v8677_v45 = vld [vmem:[%s8787_s26 + $0xcc] ss:$0 sps:$4 sm:$0x11]   ;;  %v5625_v11 = vshrl.u32 %v8681_v22, 16  ;;  %v5629_v16 = vrot.slane %v5627_v63, 1 }
 0x154   : > { %v7999_v58 = vpop.f32.mrf.mxu1  ;;  %8238 = vmatmul.mubr.msk.bf16.gmra.mxu1 %vm541_vm0, %v4291_v48  ;;  %v8059_v33 = vpop.f32.mrf.mxu0  ;;  %8298 = vmatmul.mubr.msk.bf16.gmra.mxu0 %vm541_vm0, %v8665_v8  ;;  %v8679_v8 = vld [vmem:[%s8787_s26 + $0xc8] sm:$0xff]   ;;  %v5632_v18 = vshll.u32 %v9651_v62, 16  ;;  %v4302_v34 = vrot.slane %v8677_v45, 1  ;;  %v8688_v63 = vld [vmem:[%s8787_s26 + $0x38] sm:$0xff]  }
 0x155   : > { %v1732_v24 = vadd.f32 %v7999_v58, %v969_v31  ;;  %2489 = vst [vmem:[%s9215_s24 + $0xf8] sm:$0xff] %v2441_v21  ;;  %v2439_v26 = vadd.f32 %v2334_v25, %v1727_v3  ;;  %8241 = vmatprep.mubr.msk.bf16.mxu1 %vm541_vm0, %v4293_v55  ;;  %8301 = vmatprep.mubr.msk.bf16.mxu0 %vm541_vm0, %v8669_v14  ;;  %v972_v12 = vld [vmem:[%s9215_s24 + $0x128] sm:$0xff]  ;;  %v8684_v25 = vld [vmem:[%s8787_s26 + $0x18] sm:$0xfe]   ;;  %v9665_v55 = vld [vmem:[%s8787_s26 + $0x20] sm:$0xff]  }
 0x156   : > { %v1635_v9 = vpop.f32.mrf.mxu1  ;;  %v2347_v56 = vpop.f32.mrf.mxu0  ;;  %v4301_v14 = vsel %vm2027_vm1, %v4298_v59, %v4300_v28  ;;  %v977_v21 = vld [vmem:[%s9215_s24 + $0x150] sm:$0xff]  ;;  %v5630_v17 = vor.u32 %v5629_v16, %v5625_v11  ;;  %v976_v22 = vld [vmem:[%s9215_s24 + $0x148] sm:$0xff] }
 0x157   : > { %v1730_v2 = vadd.f32 %v1635_v9, %v967_v27  ;;  %2487 = vst [vmem:[%s9215_s24 + $0xe8] sm:$0xff] %v2439_v26  ;;  %v2444_v5 = vadd.f32 %v8059_v33, %v1732_v24  ;;  %v8683_v33 = vld [vmem:[%s8787_s26 + $0x28] sm:$0xff]   ;;  %v975_v27 = vld [vmem:[%s9215_s24 + $0x140] sm:$0xff] }
 0x158   : > { %v8000_v23 = vpop.f32.mrf.mxu1  ;;  %v8060_v32 = vpop.f32.mrf.mxu0 }
 0x159   : > { %v1733_v36 = vadd.f32 %v8000_v23, %v970_v29  ;;  %2492 = vst [vmem:[%s9215_s24 + $0x110] sm:$0xff] %v2444_v5  ;;  %v2442_v7 = vadd.f32 %v2347_v56, %v1730_v2  ;;  %v5634_v2 = vrot.slane %v5632_v18, 1  ;;  %v6482_v5 = vrot.slane %v8684_v25, 1  ;;  %v9678_v23 = vld [vmem:[%s8787_s26 + $0x30] sm:$0xff]  }
 0x15a   : > { %v1638_v13 = vpop.f32.mrf.mxu1  ;;  %v2350_v42 = vpop.f32.mrf.mxu0  ;;  %v6483_v29 = vrot.slane %v9665_v55, 1  ;;  %v5652_v16 = vshrl.u32 %v9678_v23, 16  ;;  %v5656_v18 = vshll.u32 %v8688_v63, 16 }
 0x15b   : > { %v1731_v20 = vadd.f32 %v1638_v13, %v968_v39  ;;  %2490 = vst [vmem:[%s9215_s24 + $0x100] sm:$0xff] %v2442_v7  ;;  %v2445_v46 = vadd.f32 %v8060_v32, %v1733_v36  ;;  %v978_v36 = vld [vmem:[%s9215_s24 + $0x158] sm:$0xff] }
 0x15c   : > { %v8003_v50 = vpop.f32.mrf.mxu1  ;;  %8242 = vmatmul.mubr.msk.bf16.gmra.mxu1 %vm541_vm0, %v4295_v37  ;;  %v8063_v54 = vpop.f32.mrf.mxu0  ;;  %8302 = vmatmul.mubr.msk.bf16.gmra.mxu0 %vm541_vm0, %v8670_v35 }
 0x15d   : > { %v1736_v52 = vadd.f32 %v8003_v50, %v973_v47  ;;  %2493 = vst [vmem:[%s9215_s24 + $0x118] sm:$0xff] %v2445_v46  ;;  %v2443_v57 = vadd.f32 %v2350_v42, %v1731_v20  ;;  %8245 = vmatprep.mubr.msk.bf16.mxu1 %vm541_vm0, %v4297_v43  ;;  %8305 = vmatprep.mubr.msk.bf16.mxu0 %vm541_vm0, %v8674_v40  ;;  %v5640_v40 = vshll.u32 %v8683_v33, 16  ;;  %v5636_v43 = vshrl.u32 %v9651_v62, 16 }
 0x15e   : > { %v1651_v53 = vpop.f32.mrf.mxu1  ;;  %v2363_v30 = vpop.f32.mrf.mxu0  ;;  %v4303_v42 = vsel %vm2027_vm1, %v4300_v28, %v4302_v34  ;;  %v5635_v47 = vsel %vm1168_vm2, %v5630_v17, %v5634_v2  ;;  %v6484_v50 = vsel %vm2027_vm1, %v6482_v5, %v6483_v29  ;;  %v5660_v34 = vshrl.u32 %v8688_v63, 16 }
 0x15f   : > { %v1734_v0 = vadd.f32 %v1651_v53, %v971_v61  ;;  %2491 = vst [vmem:[%s9215_s24 + $0x108] sm:$0xff] %v2443_v57  ;;  %v2448_v1 = vadd.f32 %v8063_v54, %v1736_v52  ;;  %v5644_v54 = vshrl.u32 %v8683_v33, 16  ;;  %v5648_v52 = vshll.u32 %v9678_v23, 16  ;;  %v9692_v57 = vld [vmem:[%s8787_s26 + $0x30] sm:$0xff]  }
 0x160   : > { %v8004_v38 = vpop.f32.mrf.mxu1  ;;  %v8064_v41 = vpop.f32.mrf.mxu0  ;;  %v981_v53 = vld [vmem:[%s9215_s24 + $0x170] sm:$0xff]  ;;  %v5642_v62 = vrot.slane %v5640_v40, 1  ;;  %v6487_v45 = vrot.slane %v9692_v57, 1 }
 0x161   : > { %v1737_v60 = vadd.f32 %v8004_v38, %v974_v4  ;;  %2496 = vst [vmem:[%s9215_s24 + $0x130] sm:$0xff] %v2448_v1  ;;  %v2446_v10 = vadd.f32 %v2363_v30, %v1734_v0  ;;  %v5638_v4 = vor.u32 %v5636_v43, %v5634_v2  ;;  %v6485_v38 = vrot.slane %v8686_v44, 1  ;;  %v2508_v2 = vld [vmem:[%s9215_s24 + $0x10] sm:$0xff] }
 0x162   : > { %v1654_v48 = vpop.f32.mrf.mxu1  ;;  %v2366_v51 = vpop.f32.mrf.mxu0  ;;  %v9732_v44 = vld [vmem:[%s8787_s26 + $0x50] sm:$0xff]  }
 0x163   : > { %v1735_v19 = vadd.f32 %v1654_v48, %v972_v12  ;;  %2494 = vst [vmem:[%s9215_s24 + $0x120] sm:$0xff] %v2446_v10  ;;  %v2449_v3 = vadd.f32 %v8064_v41, %v1737_v60  ;;  %v979_v41 = vld [vmem:[%s9215_s24 + $0x160] sm:$0xff]  ;;  %v5646_v10 = vor.u32 %v5644_v54, %v5642_v62  ;;  %v982_v48 = vld [vmem:[%s9215_s24 + $0x178] sm:$0xff] }
 0x164   : > { %v8007_v31 = vpop.f32.mrf.mxu1  ;;  %8246 = vmatmul.mubr.msk.bf16.gmra.mxu1 %vm541_vm0, %v4299_v49  ;;  %v8067_v58 = vpop.f32.mrf.mxu0  ;;  %8306 = vmatmul.mubr.msk.bf16.gmra.mxu0 %vm541_vm0, %v8675_v6  ;;  %v5650_v49 = vrot.slane %v5648_v52, 1 }
 0x165   : > { %v1740_v24 = vadd.f32 %v8007_v31, %v977_v21  ;;  %2497 = vst [vmem:[%s9215_s24 + $0x138] sm:$0xff] %v2449_v3  ;;  %v2447_v26 = vadd.f32 %v2366_v51, %v1735_v19  ;;  %8249 = vmatprep.mubr.msk.bf16.mxu1 %vm541_vm0, %v4301_v14  ;;  %8309 = vmatprep.mubr.msk.bf16.mxu0 %vm541_vm0, %v8679_v8  ;;  %v9705_v8 = vld [vmem:[%s8787_s26 + $0x40] sm:$0xff]   ;;  %v8690_v21 = vld [vmem:[%s8787_s26 + $0x38] sm:$0xff]   ;;  %v980_v31 = vld [vmem:[%s9215_s24 + $0x168] sm:$0xff] }
 0x166   : > { %v1667_v9 = vpop.f32.mrf.mxu1  ;;  %v2379_v56 = vpop.f32.mrf.mxu0  ;;  %v5643_v19 = vsel %vm1168_vm2, %v5638_v4, %v5642_v62  ;;  %v6486_v3 = vsel %vm2027_vm1, %v6483_v29, %v6485_v38  ;;  %v5654_v23 = vor.u32 %v5652_v16, %v5650_v49  ;;  %v2510_v16 = vld [vmem:[%s9215_s24 + $0x20] sm:$0xff] }
 0x167   : > { %v1738_v32 = vadd.f32 %v1667_v9, %v975_v27  ;;  %2495 = vst [vmem:[%s9215_s24 + $0x128] sm:$0xff] %v2447_v26  ;;  %v2452_v35 = vadd.f32 %v8067_v58, %v1740_v24  ;;  %v5651_v24 = vsel %vm1168_vm2, %v5646_v10, %v5650_v49  ;;  %v6488_v26 = vsel %vm2027_vm1, %v6485_v38, %v6487_v45  ;;  %v9719_v9 = vld [vmem:[%s8787_s26 + $0x40] sm:$0xff]   ;;  %v2512_v10 = vld [vmem:[%s9215_s24 + $0x30] sm:$0xff] }
 0x168   : > { %v8008_v7 = vpop.f32.mrf.mxu1  ;;  %v8068_v37 = vpop.f32.mrf.mxu0  ;;  %v5664_v27 = vshll.u32 %v9705_v8, 16  ;;  %v6491_v43 = vrot.slane %v9719_v9, 1  ;;  %v5680_v38 = vshll.u32 %v9732_v44, 16 }
 0x169   : > { %v1741_v39 = vadd.f32 %v8008_v7, %v978_v36  ;;  %2500 = vst [vmem:[%s9215_s24 + $0x150] sm:$0xff] %v2452_v35  ;;  %v2450_v13 = vadd.f32 %v2379_v56, %v1738_v32  ;;  %v5658_v32 = vrot.slane %v5656_v18, 1  ;;  %v8692_v35 = vld [vmem:[%s8787_s26 + $0x48] sm:$0xff]  }
 0x16a   : > { %v1670_v20 = vpop.f32.mrf.mxu1  ;;  %v2382_v46 = vpop.f32.mrf.mxu0  ;;  %v5672_v52 = vshll.u32 %v8692_v35, 16  ;;  %v5676_v4 = vshrl.u32 %v8692_v35, 16 }
 0x16b   : > { %v1739_v59 = vadd.f32 %v1670_v20, %v976_v22  ;;  %2498 = vst [vmem:[%s9215_s24 + $0x140] sm:$0xff] %v2450_v13  ;;  %v2453_v61 = vadd.f32 %v8068_v37, %v1741_v39  ;;  %v6489_v37 = vrot.slane %v8690_v21, 1  ;;  %v5662_v13 = vor.u32 %v5660_v34, %v5658_v32  ;;  %v9759_v21 = vld [vmem:[%s8787_s26 + $0x60] sm:$0xff]  }
 0x16c   : > { %v8011_v30 = vpop.f32.mrf.mxu1  ;;  %8250 = vmatmul.mubr.msk.bf16.gmra.mxu1 %vm541_vm0, %v4303_v42  ;;  %v8071_v28 = vpop.f32.mrf.mxu0  ;;  %8310 = vmatmul.mubr.msk.bf16.gmra.mxu0 %vm541_vm0, %v8680_v15  ;;  %v2506_v15 = vld [vmem:[%s9215_s24] sm:$0xff]  ;;  %v5666_v42 = vrot.slane %v5664_v27, 1  ;;  %v5684_v34 = vshrl.u32 %v9732_v44, 16 }
 0x16d   : > { %v1744_v0 = vadd.f32 %v8011_v30, %v981_v53  ;;  %2501 = vst [vmem:[%s9215_s24 + $0x158] sm:$0xff] %v2453_v61  ;;  %v2451_v1 = vadd.f32 %v2382_v46, %v1739_v59  ;;  %8325 = vmatprep.mubr.msk.bf16.mxu1 %vm541_vm0, %v5635_v47  ;;  %8385 = vmatprep.mubr.msk.bf16.mxu0 %vm541_vm0, %v6484_v50  ;;  %v2509_v46 = vld [vmem:[%s9215_s24 + $0x18] sm:$0xff]  ;;  %v5668_v53 = vshrl.u32 %v9705_v8, 16  ;;  %v8694_v30 = vld [vmem:[%s8787_s26 + $0x48] sm:$0xff]   ;;  %v5674_v8 = vrot.slane %v5672_v52, 1 }
 0x16e   : > { %v1683_v6 = vpop.f32.mrf.mxu1  ;;  %v2395_v60 = vpop.f32.mrf.mxu0  ;;  %v5659_v50 = vsel %vm1168_vm2, %v5654_v23, %v5658_v32  ;;  %v6490_v61 = vsel %vm2027_vm1, %v6487_v45, %v6489_v37 }
 0x16f   : > { %v1742_v11 = vadd.f32 %v1683_v6, %v979_v41  ;;  %2499 = vst [vmem:[%s9215_s24 + $0x148] sm:$0xff] %v2451_v1  ;;  %v2456_v12 = vadd.f32 %v8071_v28, %v1744_v0  ;;  %v2507_v28 = vld [vmem:[%s9215_s24 + $0x8] sm:$0xff]  ;;  %v5667_v0 = vsel %vm1168_vm2, %v5662_v13, %v5666_v42  ;;  %v6492_v1 = vsel %vm2027_vm1, %v6489_v37, %v6491_v43  ;;  %v9746_v41 = vld [vmem:[%s8787_s26 + $0x50] sm:$0xff]  }
 0x170   : > { %v8012_v51 = vpop.f32.mrf.mxu1  ;;  %v8072_v14 = vpop.f32.mrf.mxu0  ;;  %v5696_v37 = vshll.u32 %v9759_v21, 16  ;;  %v2516_v13 = vld [vmem:[%s9215_s24 + $0x50] sm:$0xff] }
 0x171   : > { %v1745_v25 = vadd.f32 %v8012_v51, %v982_v48  ;;  %2504 = vst [vmem:[%s9215_s24 + $0x170] sm:$0xff] %v2456_v12  ;;  %v2454_v55 = vadd.f32 %v2395_v60, %v1742_v11  ;;  %v8696_v11 = vld [vmem:[%s8787_s26 + $0x58] sm:$0xff]   ;;  %v5670_v51 = vor.u32 %v5668_v53, %v5666_v42 }
 0x172   : > { %v1686_v58 = vpop.f32.mrf.mxu1  ;;  %v2398_v33 = vpop.f32.mrf.mxu0  ;;  %v5688_v27 = vshll.u32 %v8696_v11, 16 }
 0x173   : > { %v1743_v56 = vadd.f32 %v1686_v58, %v980_v31  ;;  %2502 = vst [vmem:[%s9215_s24 + $0x160] sm:$0xff] %v2454_v55  ;;  %v2457_v17 = vadd.f32 %v8072_v14, %v1745_v25  ;;  %v6493_v14 = vrot.slane %v8694_v30, 1  ;;  %v5678_v55 = vor.u32 %v5676_v4, %v5674_v8  ;;  %v9786_v30 = vld [vmem:[%s8787_s26 + $0x70] sm:$0xff]  }
 0x174   : > { %v8087_v5 = vpop.f32.mrf.mxu1  ;;  %8326 = vmatmul.mubr.msk.bf16.vlgmr.msra.gmra.mxu1 %vm541_vm0, %v5643_v19  ;;  %v8147_v29 = vpop.f32.mrf.mxu0  ;;  %8386 = vmatmul.mubr.msk.bf16.vlgmr.msra.gmra.mxu0 %vm541_vm0, %v6486_v3  ;;  %v5682_v19 = vrot.slane %v5680_v38, 1  ;;  %v6495_v3 = vrot.slane %v9746_v41, 1 }
 0x175   : > { %v3070_v36 = vadd.f32 %v8087_v5, %v2508_v2  ;;  %2505 = vst [vmem:[%s9215_s24 + $0x178] sm:$0xff] %v2457_v17  ;;  %v2455_v7 = vadd.f32 %v2398_v33, %v1743_v56  ;;  %8329 = vmatprep.mubr.msk.bf16.mxu1 %vm541_vm0, %v5651_v24  ;;  %8389 = vmatprep.mubr.msk.bf16.mxu0 %vm541_vm0, %v6488_v26  ;;  %v2513_v33 = vld [vmem:[%s9215_s24 + $0x38] sm:$0xff] }
 0x176   : > { %v2877_v40 = vpop.f32.mrf.mxu1  ;;  %v3735_v39 = vpop.f32.mrf.mxu0  ;;  %v5675_v17 = vsel %vm1168_vm2, %v5670_v51, %v5674_v8  ;;  %v6494_v2 = vsel %vm2027_vm1, %v6491_v43, %v6493_v14  ;;  %v8698_v5 = vld [vmem:[%s8787_s26 + $0x58] sm:$0xff]   ;;  %v5683_v35 = vsel %vm1168_vm2, %v5678_v55, %v5682_v19  ;;  %v5686_v44 = vor.u32 %v5684_v34, %v5682_v19  ;;  %v2520_v55 = vld [vmem:[%s9215_s24 + $0x70] sm:$0xff]  ;;  %v2518_v34 = vld [vmem:[%s9215_s24 + $0x60] sm:$0xff] }
 0x177   : > { %v3068_v22 = vadd.f32 %v2877_v40, %v2506_v15  ;;  %2503 = vst [vmem:[%s9215_s24 + $0x168] sm:$0xff] %v2455_v7  ;;  %v3928_v20 = vadd.f32 %v8147_v29, %v3070_v36  ;;  %v2511_v29 = vld [vmem:[%s9215_s24 + $0x28] sm:$0xff]  ;;  %v6496_v36 = vsel %vm2027_vm1, %v6493_v14, %v6495_v3  ;;  %v5692_v7 = vshrl.u32 %v8696_v11, 16  ;;  %v9773_v15 = vld [vmem:[%s8787_s26 + $0x60] sm:$0xff]  }
 0x178   : > { %v8088_v47 = vpop.f32.mrf.mxu1  ;;  %v8148_v54 = vpop.f32.mrf.mxu0  ;;  %v6499_v53 = vrot.slane %v9773_v15, 1  ;;  %v5712_v14 = vshll.u32 %v9786_v30, 16 }
 0x179   : > { %v3071_v57 = vadd.f32 %v8088_v47, %v2509_v46  ;;  %3976 = vst [vmem:[%s9215_s24 + $0x10] sm:$0xff] %v3928_v20  ;;  %v3926_v59 = vadd.f32 %v3735_v39, %v3068_v22  ;;  %v5690_v22 = vrot.slane %v5688_v27, 1  ;;  %v8700_v20 = vld [vmem:[%s8787_s26 + $0x68] sm:$0xff]  }
 0x17a   : > { %v2880_v62 = vpop.f32.mrf.mxu1  ;;  %v3738_v63 = vpop.f32.mrf.mxu0  ;;  %v5704_v38 = vshll.u32 %v8700_v20, 16  ;;  %v5708_v51 = vshrl.u32 %v8700_v20, 16 }
 0x17b   : > { %v3069_v6 = vadd.f32 %v2880_v62, %v2507_v28  ;;  %3974 = vst [vmem:[%s9215_s24] sm:$0xff] %v3926_v59  ;;  %v3929_v60 = vadd.f32 %v8148_v54, %v3071_v57  ;;  %v2514_v54 = vld [vmem:[%s9215_s24 + $0x40] sm:$0xff]  ;;  %v5694_v59 = vor.u32 %v5692_v7, %v5690_v22  ;;  %v5716_v7 = vshrl.u32 %v9786_v30, 16 }
 0x17c   : > { %v8091_v49 = vpop.f32.mrf.mxu1  ;;  %8330 = vmatmul.mubr.msk.bf16.gmra.mxu1 %vm541_vm0, %v5659_v50  ;;  %v8151_v45 = vpop.f32.mrf.mxu0  ;;  %8390 = vmatmul.mubr.msk.bf16.gmra.mxu0 %vm541_vm0, %v6490_v61  ;;  %v6497_v50 = vrot.slane %v8698_v5, 1  ;;  %v5698_v61 = vrot.slane %v5696_v37, 1  ;;  %v9813_v5 = vld [vmem:[%s8787_s26 + $0x80] sm:$0xff]  }
 0x17d   : > { %v3074_v12 = vadd.f32 %v8091_v49, %v2512_v10  ;;  %3977 = vst [vmem:[%s9215_s24 + $0x18] sm:$0xff] %v3929_v60  ;;  %v3927_v48 = vadd.f32 %v3738_v63, %v3069_v6  ;;  %8333 = vmatprep.mubr.msk.bf16.mxu1 %vm541_vm0, %v5667_v0  ;;  %8393 = vmatprep.mubr.msk.bf16.mxu0 %vm541_vm0, %v6492_v1  ;;  %v2517_v63 = vld [vmem:[%s9215_s24 + $0x58] sm:$0xff]  ;;  %v5700_v10 = vshrl.u32 %v9759_v21, 16  ;;  %v8702_v49 = vld [vmem:[%s8787_s26 + $0x68] sm:$0xff]   ;;  %v5706_v21 = vrot.slane %v5704_v38, 1 }
 0x17e   : > { %v2893_v18 = vpop.f32.mrf.mxu1  ;;  %v3751_v25 = vpop.f32.mrf.mxu0  ;;  %v5691_v1 = vsel %vm1168_vm2, %v5686_v44, %v5690_v22  ;;  %v6498_v60 = vsel %vm2027_vm1, %v6495_v3, %v6497_v50 }
 0x17f   : > { %v3072_v31 = vadd.f32 %v2893_v18, %v2510_v16  ;;  %3975 = vst [vmem:[%s9215_s24 + $0x8] sm:$0xff] %v3927_v48  ;;  %v3932_v58 = vadd.f32 %v8151_v45, %v3074_v12  ;;  %v2515_v45 = vld [vmem:[%s9215_s24 + $0x48] sm:$0xff]  ;;  %v5699_v12 = vsel %vm1168_vm2, %v5694_v59, %v5698_v61  ;;  %v6500_v48 = vsel %vm2027_vm1, %v6497_v50, %v6499_v53  ;;  %v9800_v16 = vld [vmem:[%s8787_s26 + $0x70] sm:$0xff]  }
 0x180   : > { %v8092_v24 = vpop.f32.mrf.mxu1  ;;  %v8152_v26 = vpop.f32.mrf.mxu0  ;;  %v5728_v50 = vshll.u32 %v9813_v5, 16  ;;  %v2524_v59 = vld [vmem:[%s9215_s24 + $0x90] sm:$0xff] }
 0x181   : > { %v3075_v9 = vadd.f32 %v8092_v24, %v2513_v33  ;;  %3980 = vst [vmem:[%s9215_s24 + $0x30] sm:$0xff] %v3932_v58  ;;  %v3930_v56 = vadd.f32 %v3751_v25, %v3072_v31  ;;  %v8704_v31 = vld [vmem:[%s8787_s26 + $0x78] sm:$0xff]   ;;  %v5702_v24 = vor.u32 %v5700_v10, %v5698_v61 }
 0x182   : > { %v2896_v23 = vpop.f32.mrf.mxu1  ;;  %v3754_v32 = vpop.f32.mrf.mxu0  ;;  %v5720_v37 = vshll.u32 %v8704_v31, 16 }
 0x183   : > { %v3073_v40 = vadd.f32 %v2896_v23, %v2511_v29  ;;  %3978 = vst [vmem:[%s9215_s24 + $0x20] sm:$0xff] %v3930_v56  ;;  %v3933_v39 = vadd.f32 %v8152_v26, %v3075_v9  ;;  %v6501_v26 = vrot.slane %v8702_v49, 1  ;;  %v5710_v56 = vor.u32 %v5708_v51, %v5706_v21  ;;  %v9840_v49 = vld [vmem:[%s8787_s26 + $0x90] sm:$0xff]  }
 0x184   : > { %v8095_v42 = vpop.f32.mrf.mxu1  ;;  %8334 = vmatmul.mubr.msk.bf16.gmra.mxu1 %vm541_vm0, %v5675_v17  ;;  %v8155_v43 = vpop.f32.mrf.mxu0  ;;  %8394 = vmatmul.mubr.msk.bf16.gmra.mxu0 %vm541_vm0, %v6494_v2  ;;  %v5714_v17 = vrot.slane %v5712_v14, 1  ;;  %v6503_v2 = vrot.slane %v9800_v16, 1  ;;  %v8710_v16 = vld [vmem:[%s8787_s26 + $0x88] sm:$0xff]  }
 0x185   : > { %v3078_v46 = vadd.f32 %v8095_v42, %v2516_v13  ;;  %3981 = vst [vmem:[%s9215_s24 + $0x38] sm:$0xff] %v3933_v39  ;;  %v3931_v47 = vadd.f32 %v3754_v32, %v3073_v40  ;;  %8337 = vmatprep.mubr.msk.bf16.mxu1 %vm541_vm0, %v5683_v35  ;;  %8397 = vmatprep.mubr.msk.bf16.mxu0 %vm541_vm0, %v6496_v36  ;;  %v2521_v32 = vld [vmem:[%s9215_s24 + $0x78] sm:$0xff] }
 0x186   : > { %v2909_v52 = vpop.f32.mrf.mxu1  ;;  %v3767_v57 = vpop.f32.mrf.mxu0  ;;  %v5707_v39 = vsel %vm1168_vm2, %v5702_v24, %v5706_v21  ;;  %v6502_v13 = vsel %vm2027_vm1, %v6499_v53, %v6501_v26  ;;  %v8706_v42 = vld [vmem:[%s8787_s26 + $0x78] sm:$0xff]   ;;  %v5715_v20 = vsel %vm1168_vm2, %v5710_v56, %v5714_v17  ;;  %v5718_v30 = vor.u32 %v5716_v7, %v5714_v17  ;;  %v2528_v56 = vld [vmem:[%s9215_s24 + $0xb0] sm:$0xff]  ;;  %v2526_v7 = vld [vmem:[%s9215_s24 + $0xa0] sm:$0xff] }
 0x187   : > { %v3076_v28 = vadd.f32 %v2909_v52, %v2514_v54  ;;  %3979 = vst [vmem:[%s9215_s24 + $0x28] sm:$0xff] %v3931_v47  ;;  %v3936_v62 = vadd.f32 %v8155_v43, %v3078_v46  ;;  %v2519_v43 = vld [vmem:[%s9215_s24 + $0x68] sm:$0xff]  ;;  %v6504_v46 = vsel %vm2027_vm1, %v6501_v26, %v6503_v2  ;;  %v5724_v47 = vshrl.u32 %v8704_v31, 16  ;;  %v9827_v54 = vld [vmem:[%s8787_s26 + $0x80] sm:$0xff]  }
 0x188   : > { %v8096_v0 = vpop.f32.mrf.mxu1  ;;  %v8156_v4 = vpop.f32.mrf.mxu0  ;;  %v6507_v10 = vrot.slane %v9827_v54, 1  ;;  %v5744_v26 = vshll.u32 %v9840_v49, 16  ;;  %v8714_v54 = vld [vmem:[%s8787_s26 + $0x98] sm:$0xff]  }
 0x189   : > { %v3079_v41 = vadd.f32 %v8096_v0, %v2517_v63  ;;  %3984 = vst [vmem:[%s9215_s24 + $0x50] sm:$0xff] %v3936_v62  ;;  %v3934_v6 = vadd.f32 %v3767_v57, %v3076_v28  ;;  %v5722_v28 = vrot.slane %v5720_v37, 1  ;;  %v8708_v62 = vld [vmem:[%s8787_s26 + $0x88] sm:$0xff]  }
 0x18a   : > { %v2912_v8 = vpop.f32.mrf.mxu1  ;;  %v3770_v11 = vpop.f32.mrf.mxu0  ;;  %v5736_v14 = vshll.u32 %v8708_v62, 16  ;;  %v5740_v24 = vshrl.u32 %v8708_v62, 16 }
 0x18b   : > { %v3077_v18 = vadd.f32 %v2912_v8, %v2515_v45  ;;  %3982 = vst [vmem:[%s9215_s24 + $0x40] sm:$0xff] %v3934_v6  ;;  %v3937_v25 = vadd.f32 %v8156_v4, %v3079_v41  ;;  %v2522_v4 = vld [vmem:[%s9215_s24 + $0x80] sm:$0xff]  ;;  %v5726_v6 = vor.u32 %v5724_v47, %v5722_v28 }
 0x18c   : > { %v8099_v19 = vpop.f32.mrf.mxu1  ;;  %8338 = vmatmul.mubr.msk.bf16.gmra.mxu1 %vm541_vm0, %v5691_v1  ;;  %v8159_v3 = vpop.f32.mrf.mxu0  ;;  %8398 = vmatmul.mubr.msk.bf16.gmra.mxu0 %vm541_vm0, %v6498_v60  ;;  %v6505_v1 = vrot.slane %v8706_v42, 1  ;;  %v5730_v60 = vrot.slane %v5728_v50, 1  ;;  %v9867_v42 = vld [vmem:[%s8787_s26 + $0xa0] sm:$0xff]  }
 0x18d   : > { %v3082_v58 = vadd.f32 %v8099_v19, %v2520_v55  ;;  %3985 = vst [vmem:[%s9215_s24 + $0x58] sm:$0xff] %v3937_v25  ;;  %v3935_v33 = vadd.f32 %v3770_v11, %v3077_v18  ;;  %8341 = vmatprep.mubr.msk.bf16.mxu1 %vm541_vm0, %v5699_v12  ;;  %8401 = vmatprep.mubr.msk.bf16.mxu0 %vm541_vm0, %v6500_v48  ;;  %v2525_v11 = vld [vmem:[%s9215_s24 + $0x98] sm:$0xff]  ;;  %v5732_v19 = vshrl.u32 %v9813_v5, 16  ;;  %v5738_v5 = vrot.slane %v5736_v14, 1 }
 0x18e   : > { %v2925_v27 = vpop.f32.mrf.mxu1  ;;  %v3783_v9 = vpop.f32.mrf.mxu0  ;;  %v5723_v48 = vsel %vm1168_vm2, %v5718_v30, %v5722_v28  ;;  %v6506_v55 = vsel %vm2027_vm1, %v6503_v2, %v6505_v1 }
 0x18f   : > { %v3080_v29 = vadd.f32 %v2925_v27, %v2518_v34  ;;  %3983 = vst [vmem:[%s9215_s24 + $0x48] sm:$0xff] %v3935_v33  ;;  %v3940_v23 = vadd.f32 %v8159_v3, %v3082_v58  ;;  %v2523_v3 = vld [vmem:[%s9215_s24 + $0x88] sm:$0xff]  ;;  %v5731_v58 = vsel %vm1168_vm2, %v5726_v6, %v5730_v60  ;;  %v6508_v33 = vsel %vm2027_vm1, %v6505_v1, %v6507_v10  ;;  %v9854_v34 = vld [vmem:[%s8787_s26 + $0x90] sm:$0xff]  }
 0x190   : > { %v8100_v35 = vpop.f32.mrf.mxu1  ;;  %v8160_v36 = vpop.f32.mrf.mxu0  ;;  %v5760_v1 = vshll.u32 %v9867_v42, 16  ;;  %v2532_v6 = vld [vmem:[%s9215_s24 + $0xd0] sm:$0xff] }
 0x191   : > { %v3083_v15 = vadd.f32 %v8100_v35, %v2521_v32  ;;  %3988 = vst [vmem:[%s9215_s24 + $0x70] sm:$0xff] %v3940_v23  ;;  %v3938_v40 = vadd.f32 %v3783_v9, %v3080_v29  ;;  %v6509_v29 = vrot.slane %v8710_v16, 1  ;;  %v8712_v23 = vld [vmem:[%s8787_s26 + $0x98] sm:$0xff]  }
 0x192   : > { %v2928_v44 = vpop.f32.mrf.mxu1  ;;  %v3786_v22 = vpop.f32.mrf.mxu0  ;;  %v5752_v50 = vshll.u32 %v8712_v23, 16 }
 0x193   : > { %v3081_v52 = vadd.f32 %v2928_v44, %v2519_v43  ;;  %3986 = vst [vmem:[%s9215_s24 + $0x60] sm:$0xff] %v3938_v40  ;;  %v3941_v57 = vadd.f32 %v8160_v36, %v3083_v15  ;;  %v5734_v36 = vor.u32 %v5732_v19, %v5730_v60  ;;  %v5742_v40 = vor.u32 %v5740_v24, %v5738_v5  ;;  %v9894_v19 = vld [vmem:[%s8787_s26 + $0xb0] sm:$0xff]  }
 0x194   : > { %v8103_v61 = vpop.f32.mrf.mxu1  ;;  %8342 = vmatmul.mubr.msk.bf16.gmra.mxu1 %vm541_vm0, %v5707_v39  ;;  %v8163_v53 = vpop.f32.mrf.mxu0  ;;  %8402 = vmatmul.mubr.msk.bf16.gmra.mxu0 %vm541_vm0, %v6502_v13  ;;  %v5746_v39 = vrot.slane %v5744_v26, 1  ;;  %v6511_v13 = vrot.slane %v9854_v34, 1  ;;  %v6510_v47 = vsel %vm2027_vm1, %v6507_v10, %v6509_v29  ;;  %v8718_v34 = vld [vmem:[%s8787_s26 + $0xa8] sm:$0xff]  }
 0x195   : > { %v3086_v63 = vadd.f32 %v8103_v61, %v2524_v59  ;;  %3989 = vst [vmem:[%s9215_s24 + $0x78] sm:$0xff] %v3941_v57  ;;  %v3939_v0 = vadd.f32 %v3786_v22, %v3081_v52  ;;  %8345 = vmatprep.mubr.msk.bf16.mxu1 %vm541_vm0, %v5715_v20  ;;  %8405 = vmatprep.mubr.msk.bf16.mxu0 %vm541_vm0, %v6504_v46  ;;  %v2529_v22 = vld [vmem:[%s9215_s24 + $0xb8] sm:$0xff]  ;;  %v5748_v61 = vshrl.u32 %v9840_v49, 16  ;;  %v5754_v49 = vrot.slane %v5752_v50, 1 }
 0x196   : > { %v2941_v38 = vpop.f32.mrf.mxu1  ;;  %v3799_v41 = vpop.f32.mrf.mxu0  ;;  %v5739_v59 = vsel %vm1168_vm2, %v5734_v36, %v5738_v5  ;;  %v5747_v62 = vsel %vm1168_vm2, %v5742_v40, %v5746_v39  ;;  %v5776_v36 = vshll.u32 %v9894_v19, 16  ;;  %v2536_v40 = vld [vmem:[%s9215_s24 + $0xf0] sm:$0xff] }
 0x197   : > { %v3084_v45 = vadd.f32 %v2941_v38, %v2522_v4  ;;  %3987 = vst [vmem:[%s9215_s24 + $0x68] sm:$0xff] %v3939_v0  ;;  %v3944_v8 = vadd.f32 %v8163_v53, %v3086_v63  ;;  %v2527_v53 = vld [vmem:[%s9215_s24 + $0xa8] sm:$0xff]  ;;  %v6512_v63 = vsel %vm2027_vm1, %v6509_v29, %v6511_v13  ;;  %v5756_v0 = vshrl.u32 %v8712_v23, 16  ;;  %v9881_v4 = vld [vmem:[%s8787_s26 + $0xa0] sm:$0xff]  }
 0x198   : > { %v8104_v12 = vpop.f32.mrf.mxu1  ;;  %v8164_v51 = vpop.f32.mrf.mxu0 }
 0x199   : > { %v3087_v18 = vadd.f32 %v8104_v12, %v2525_v11  ;;  %3992 = vst [vmem:[%s9215_s24 + $0x90] sm:$0xff] %v3944_v8  ;;  %v3942_v25 = vadd.f32 %v3799_v41, %v3084_v45  ;;  %v6513_v45 = vrot.slane %v8714_v54, 1  ;;  %v8716_v8 = vld [vmem:[%s8787_s26 + $0xa8] sm:$0xff]  }
 0x19a   : > { %v2944_v21 = vpop.f32.mrf.mxu1  ;;  %v3802_v31 = vpop.f32.mrf.mxu0  ;;  %v5768_v26 = vshll.u32 %v8716_v8, 16 }
 0x19b   : > { %v3085_v27 = vadd.f32 %v2944_v21, %v2523_v3  ;;  %3990 = vst [vmem:[%s9215_s24 + $0x80] sm:$0xff] %v3942_v25  ;;  %v3945_v9 = vadd.f32 %v8164_v51, %v3087_v18  ;;  %v2530_v51 = vld [vmem:[%s9215_s24 + $0xc0] sm:$0xff]  ;;  %v5758_v18 = vor.u32 %v5756_v0, %v5754_v49  ;;  %v5762_v25 = vrot.slane %v5760_v1, 1 }
 0x19c   : > { %v8107_v17 = vpop.f32.mrf.mxu1  ;;  %8346 = vmatmul.mubr.msk.bf16.gmra.mxu1 %vm541_vm0, %v5723_v48  ;;  %v8167_v2 = vpop.f32.mrf.mxu0  ;;  %8406 = vmatmul.mubr.msk.bf16.gmra.mxu0 %vm541_vm0, %v6506_v55  ;;  %v5750_v48 = vor.u32 %v5748_v61, %v5746_v39  ;;  %v6515_v55 = vrot.slane %v9881_v4, 1  ;;  %v6514_v24 = vsel %vm2027_vm1, %v6511_v13, %v6513_v45  ;;  %v9925_v61 = vld [vmem:[%s8787_s26 + $0xc0] sm:$0xff]   ;;  %v8722_v4 = vld [vmem:[%s8787_s26 + $0xb8] sm:$0xff]  }
 0x19d   : > { %v3090_v32 = vadd.f32 %v8107_v17, %v2528_v56  ;;  %3993 = vst [vmem:[%s9215_s24 + $0x98] sm:$0xff] %v3945_v9  ;;  %v3943_v35 = vadd.f32 %v3802_v31, %v3085_v27  ;;  %8349 = vmatprep.mubr.msk.bf16.mxu1 %vm541_vm0, %v5731_v58  ;;  %8409 = vmatprep.mubr.msk.bf16.mxu0 %vm541_vm0, %v6508_v33  ;;  %v2533_v31 = vld [vmem:[%s9215_s24 + $0xd8] sm:$0xff]  ;;  %v5764_v17 = vshrl.u32 %v9867_v42, 16  ;;  %v5770_v42 = vrot.slane %v5768_v26, 1 }
 0x19e   : > { %v2957_v37 = vpop.f32.mrf.mxu1  ;;  %v3815_v15 = vpop.f32.mrf.mxu0  ;;  %v5755_v56 = vsel %vm1168_vm2, %v5750_v48, %v5754_v49  ;;  %v5763_v23 = vsel %vm1168_vm2, %v5758_v18, %v5762_v25  ;;  %v5792_v48 = vshll.u32 %v9925_v61, 16  ;;  %v2540_v18 = vld [vmem:[%s9215_s24 + $0x110] sm:$0xff] }
 0x19f   : > { %v3088_v43 = vadd.f32 %v2957_v37, %v2526_v7  ;;  %3991 = vst [vmem:[%s9215_s24 + $0x88] sm:$0xff] %v3943_v35  ;;  %v3948_v44 = vadd.f32 %v8167_v2, %v3090_v32  ;;  %v2531_v2 = vld [vmem:[%s9215_s24 + $0xc8] sm:$0xff]  ;;  %v6516_v32 = vsel %vm2027_vm1, %v6513_v45, %v6515_v55  ;;  %v5772_v35 = vshrl.u32 %v8716_v8, 16  ;;  %v9910_v7 = vld [vmem:[%s8787_s26 + $0xb0] sm:$0xff]  }
 0x1a0   : > { %v8108_v20 = vpop.f32.mrf.mxu1  ;;  %v8168_v46 = vpop.f32.mrf.mxu0 }
 0x1a1   : > { %v3091_v52 = vadd.f32 %v8108_v20, %v2529_v22  ;;  %3996 = vst [vmem:[%s9215_s24 + $0xb0] sm:$0xff] %v3948_v44  ;;  %v3946_v57 = vadd.f32 %v3815_v15, %v3088_v43  ;;  %v6517_v43 = vrot.slane %v8718_v34, 1  ;;  %v8720_v44 = vld [vmem:[%s8787_s26 + $0xb8] sm:$0xff]  }
 0x1a2   : > { %v2960_v30 = vpop.f32.mrf.mxu1  ;;  %v3818_v28 = vpop.f32.mrf.mxu0  ;;  %v5784_v1 = vshll.u32 %v8720_v44, 16 }
 0x1a3   : > { %v3089_v38 = vadd.f32 %v2960_v30, %v2527_v53  ;;  %3994 = vst [vmem:[%s9215_s24 + $0xa0] sm:$0xff] %v3946_v57  ;;  %v3949_v41 = vadd.f32 %v8168_v46, %v3091_v52  ;;  %v5766_v46 = vor.u32 %v5764_v17, %v5762_v25  ;;  %v5774_v52 = vor.u32 %v5772_v35, %v5770_v42 }
 0x1a4   : > { %v8111_v60 = vpop.f32.mrf.mxu1  ;;  %8350 = vmatmul.mubr.msk.bf16.gmra.mxu1 %vm541_vm0, %v5739_v59  ;;  %v8171_v10 = vpop.f32.mrf.mxu0  ;;  %8410 = vmatmul.mubr.msk.bf16.gmra.mxu0 %vm541_vm0, %v6510_v47  ;;  %v2534_v47 = vld [vmem:[%s9215_s24 + $0xe0] sm:$0xff]  ;;  %v5778_v57 = vrot.slane %v5776_v36, 1  ;;  %v6519_v59 = vrot.slane %v9910_v7, 1  ;;  %v6518_v0 = vsel %vm2027_vm1, %v6515_v55, %v6517_v43 }
 0x1a5   : > { %v3094_v11 = vadd.f32 %v8111_v60, %v2532_v6  ;;  %3997 = vst [vmem:[%s9215_s24 + $0xb8] sm:$0xff] %v3949_v41  ;;  %v3947_v12 = vadd.f32 %v3818_v28, %v3089_v38  ;;  %8353 = vmatprep.mubr.msk.bf16.mxu1 %vm541_vm0, %v5747_v62  ;;  %8413 = vmatprep.mubr.msk.bf16.mxu0 %vm541_vm0, %v6512_v63  ;;  %v2537_v28 = vld [vmem:[%s9215_s24 + $0xf8] sm:$0xff]  ;;  %v5780_v60 = vshrl.u32 %v9894_v19, 16  ;;  %v5786_v19 = vrot.slane %v5784_v1, 1 }
 0x1a6   : > { %v2973_v14 = vpop.f32.mrf.mxu1  ;;  %v3831_v16 = vpop.f32.mrf.mxu0  ;;  %v5771_v6 = vsel %vm1168_vm2, %v5766_v46, %v5770_v42  ;;  %v5779_v8 = vsel %vm1168_vm2, %v5774_v52, %v5778_v57  ;;  %v5796_v42 = vshrl.u32 %v9925_v61, 16  ;;  %v9972_v52 = vld [vmem:[%s8787_s26 + $0xd0] sm:$0xff]  }
 0x1a7   : > { %v3092_v3 = vadd.f32 %v2973_v14, %v2530_v51  ;;  %3995 = vst [vmem:[%s9215_s24 + $0xa8] sm:$0xff] %v3947_v12  ;;  %v3952_v21 = vadd.f32 %v8171_v10, %v3094_v11  ;;  %v2535_v10 = vld [vmem:[%s9215_s24 + $0xe8] sm:$0xff]  ;;  %v6520_v11 = vsel %vm2027_vm1, %v6517_v43, %v6519_v59  ;;  %v5788_v12 = vshrl.u32 %v8720_v44, 16  ;;  %v9941_v51 = vld [vmem:[%s8787_s26 + $0xc0] sm:$0xff]  }
 0x1a8   : > { %v8112_v58 = vpop.f32.mrf.mxu1  ;;  %v8172_v33 = vpop.f32.mrf.mxu0  ;;  %v6523_v17 = vrot.slane %v9941_v51, 1  ;;  %v2539_v43 = vld [vmem:[%s9215_s24 + $0x108] sm:$0xff] }
 0x1a9   : > { %v3095_v27 = vadd.f32 %v8112_v58, %v2533_v31  ;;  %4000 = vst [vmem:[%s9215_s24 + $0xd0] sm:$0xff] %v3952_v21  ;;  %v9901_v9 = vadd.f32 %v3831_v16, %v3092_v3  ;;  %v6521_v3 = vrot.slane %v8722_v4, 1  ;;  %v8724_v21 = vld [vmem:[%s8787_s26 + $0xc8] sm:$0xff]  }
 0x1aa   : > { %v2976_v5 = vpop.f32.mrf.mxu1  ;;  %v3834_v29 = vpop.f32.mrf.mxu0  ;;  %v5800_v7 = vshll.u32 %v8724_v21, 16 }
 0x1ab   : > { %v3093_v37 = vadd.f32 %v2976_v5, %v2531_v2  ;;  %v9912_v15 = vadd.f32 %v8172_v33, %v3095_v27  ;;  %v5782_v33 = vor.u32 %v5780_v60, %v5778_v57  ;;  %v5790_v27 = vor.u32 %v5788_v12, %v5786_v19  ;;  %v9956_v2 = vld [vmem:[%s8787_s26 + $0xd0] sm:$0xff]  }
 0x1ac   : > { %v8115_v39 = vpop.f32.mrf.mxu1  ;;  %8354 = vmatmul.mubr.msk.bf16.gmra.mxu1 %vm541_vm0, %v5755_v56  ;;  %v8175_v13 = vpop.f32.mrf.mxu0  ;;  %8414 = vmatmul.mubr.msk.bf16.gmra.mxu0 %vm541_vm0, %v6514_v24  ;;  %v2538_v24 = vld [vmem:[%s9215_s24 + $0x100] sm:$0xff]  ;;  %v5794_v56 = vrot.slane %v5792_v48, 1  ;;  %v6522_v36 = vsel %vm2027_vm1, %v6519_v59, %v6521_v3  ;;  %v2545_v48 = vld [vmem:[%s9215_s24 + $0x138] sm:$0xff] }
 0x1ad   : > { %v3098_v22 = vadd.f32 %v8115_v39, %v2536_v40  ;;  %v9918_v20 = vadd.f32 %v3834_v29, %v3093_v37  ;;  %8357 = vmatprep.mubr.msk.bf16.mxu1 %vm541_vm0, %v5763_v23  ;;  %8417 = vmatprep.mubr.msk.bf16.mxu0 %vm541_vm0, %v6516_v32  ;;  %v2541_v23 = vld [vmem:[%s9215_s24 + $0x118] sm:$0xff]  ;;  %v8726_v37 = vld [vmem:[%s8787_s26 + $0xc8] sm:$0xff]  }
 0x1ae   : > { %v2989_v50 = vpop.f32.mrf.mxu1  ;;  %v3847_v54 = vpop.f32.mrf.mxu0  ;;  %v5795_v46 = vsel %vm1168_vm2, %v5790_v27, %v5794_v56  ;;  %v5798_v4 = vor.u32 %v5796_v42, %v5794_v56 }
 0x1af   : > { %v3096_v53 = vadd.f32 %v2989_v50, %v2534_v47  ;;  %v9927_v30 = vadd.f32 %v8175_v13, %v3098_v22  ;;  %v5787_v13 = vsel %vm1168_vm2, %v5782_v33, %v5786_v19  ;;  %v6524_v47 = vsel %vm2027_vm1, %v6521_v3, %v6523_v17  ;;  %v2543_v33 = vld [vmem:[%s9215_s24 + $0x128] sm:$0xff] }
 0x1b0   : > { %v8116_v62 = vpop.f32.mrf.mxu1  ;;  %v8176_v63 = vpop.f32.mrf.mxu0  ;;  %v5804_v50 = vshrl.u32 %v8724_v21, 16 }
 0x1b1   : > { %v3099_v38 = vadd.f32 %v8116_v62, %v2537_v28  ;;  %v9932_v41 = vadd.f32 %v3847_v54, %v3096_v53  ;;  %v5808_v54 = vshll.u32 %v9956_v2, 16  ;;  %v2544_v53 = vld [vmem:[%s9215_s24 + $0x130] sm:$0xff]  ;;  %v5802_v62 = vrot.slane %v5800_v7, 1 }
 0x1b2   : > { %v2992_v49 = vpop.f32.mrf.mxu1  ;;  %v3850_v45 = vpop.f32.mrf.mxu0 }
 0x1b3   : > { %v3097_v14 = vadd.f32 %v2992_v49, %v2535_v10  ;;  %v9943_v16 = vadd.f32 %v8176_v63, %v3099_v38  ;;  %v6525_v63 = vrot.slane %v8726_v37, 1  ;;  %v8728_v38 = vld [vmem:[%s8787_s26 + $0xd8] ss:$0 sps:$4 sm:$0x11]   ;;  %v5806_v49 = vor.u32 %v5804_v50, %v5802_v62 }
 0x1b4   : > { %v8119_v25 = vpop.f32.mrf.mxu1  ;;  %8358 = vmatmul.mubr.msk.bf16.gmra.mxu1 %vm541_vm0, %v5771_v6  ;;  %v8179_v55 = vpop.f32.mrf.mxu0  ;;  %8418 = vmatmul.mubr.msk.bf16.gmra.mxu0 %vm541_vm0, %v6518_v0  ;;  %v2542_v6 = vld [vmem:[%s9215_s24 + $0x120] sm:$0xff]  ;;  %v5803_v3 = vsel %vm1168_vm2, %v5798_v4, %v5802_v62  ;;  %v5816_v21 = vshll.u32 %v8728_v38, 16 }
 0x1b5   : > { %v3102_v31 = vadd.f32 %v8119_v25, %v2540_v18  ;;  %v9949_v58 = vadd.f32 %v3850_v45, %v3097_v14  ;;  %8361 = vmatprep.mubr.msk.bf16.mxu1 %vm541_vm0, %v5779_v8  ;;  %8421 = vmatprep.mubr.msk.bf16.mxu0 %vm541_vm0, %v6520_v11  ;;  %v5810_v45 = vrot.slane %v5808_v54, 1  ;;  %v6527_v8 = vrot.slane %v9972_v52, 1 }
 0x1b6   : > { %v3005_v26 = vpop.f32.mrf.mxu1  ;;  %v3863_v34 = vpop.f32.mrf.mxu0  ;;  %v6526_v18 = vsel %vm2027_vm1, %v6523_v17, %v6525_v63  ;;  %v5812_v25 = vshrl.u32 %v9956_v2, 16  ;;  %v2548_v17 = vld [vmem:[%s9215_s24 + $0x150] sm:$0xff]  ;;  %v5818_v7 = vrot.slane %v5816_v21, 1 }
 0x1b7   : > { %v3100_v5 = vadd.f32 %v3005_v26, %v2538_v24  ;;  %v9958_v29 = vadd.f32 %v8179_v55, %v3102_v31  ;;  %v8730_v31 = vld [vmem:[%s8787_s26 + $0xd8] ss:$0 sps:$4 sm:$0x11]   ;;  %v6528_v27 = vsel %vm2027_vm1, %v6525_v63, %v6527_v8 }
 0x1b8   : > { %v8120_v32 = vpop.f32.mrf.mxu1  ;;  %v8180_v35 = vpop.f32.mrf.mxu0  ;;  %v6529_v37 = vrot.slane %v8730_v31, 1 }
 0x1b9   : > { %v3103_v40 = vadd.f32 %v8120_v32, %v2541_v23  ;;  %v9963_v39 = vadd.f32 %v3863_v34, %v3100_v5  ;;  %v5811_v34 = vsel %vm1168_vm2, %v5806_v49, %v5810_v45  ;;  %v5814_v32 = vor.u32 %v5812_v25, %v5810_v45 }
 0x1ba   : > { %v3008_v44 = vpop.f32.mrf.mxu1  ;;  %v3866_v22 = vpop.f32.mrf.mxu0 }
 0x1bb   : > { %v3101_v57 = vadd.f32 %v3008_v44, %v2539_v43  ;;  %v9974_v59 = vadd.f32 %v8180_v35, %v3103_v40  ;;  %v2546_v40 = vld [vmem:[%s9215_s24 + $0x140] sm:$0xff]  ;;  %v5819_v52 = vsel %vm1168_vm2, %v5814_v32, %v5818_v7  ;;  %v4025_v7 = vld [vmem:[%s9215_s24 + $0x18] sm:$0xff] }
 0x1bc   : > { %v8123_v28 = vpop.f32.mrf.mxu1  ;;  %8362 = vmatmul.mubr.msk.bf16.gmra.mxu1 %vm541_vm0, %v5787_v13  ;;  %v8183_v61 = vpop.f32.mrf.mxu0  ;;  %8422 = vmatmul.mubr.msk.bf16.gmra.mxu0 %vm541_vm0, %v6522_v36 }
 0x1bd   : > { %v3106_v0 = vadd.f32 %v8123_v28, %v2544_v53  ;;  %v9979_v1 = vadd.f32 %v3866_v22, %v3101_v57  ;;  %8365 = vmatprep.mubr.msk.bf16.mxu1 %vm541_vm0, %v5795_v46  ;;  %8425 = vmatprep.mubr.msk.bf16.mxu0 %vm541_vm0, %v6524_v47  ;;  %v2549_v22 = vld [vmem:[%s9215_s24 + $0x158] sm:$0xff]  ;;  %v6530_v57 = vsel %vm2027_vm1, %v6527_v8, %v6529_v37  ;;  %v2547_v53 = vld [vmem:[%s9215_s24 + $0x148] sm:$0xff] }
 0x1be   : > { %v3021_v60 = vpop.f32.mrf.mxu1  ;;  %v3879_v10 = vpop.f32.mrf.mxu0 }
 0x1bf   : > { %v3104_v11 = vadd.f32 %v3021_v60, %v2542_v6  ;;  %v9986_v12 = vadd.f32 %v8183_v61, %v3106_v0  ;;  %v2552_v0 = vld [vmem:[%s9215_s24 + $0x170] sm:$0xff] }
 0x1c0   : > { %v8124_v51 = vpop.f32.mrf.mxu1  ;;  %v8184_v14 = vpop.f32.mrf.mxu0 }
 0x1c1   : > { %v3107_v55 = vadd.f32 %v8124_v51, %v2545_v48  ;;  %v9991_v19 = vadd.f32 %v3879_v10, %v3104_v11  ;;  %v2550_v10 = vld [vmem:[%s9215_s24 + $0x160] sm:$0xff]  ;;  %v2553_v48 = vld [vmem:[%s9215_s24 + $0x178] sm:$0xff] }
 0x1c2   : > { %v3024_v24 = vpop.f32.mrf.mxu1  ;;  %v3882_v26 = vpop.f32.mrf.mxu0 }
 0x1c3   : > { %v3105_v56 = vadd.f32 %v3024_v24, %v2543_v33  ;;  %v9998_v5 = vadd.f32 %v8184_v14, %v3107_v55  ;;  %v2551_v55 = vld [vmem:[%s9215_s24 + $0x168] sm:$0xff]  ;;  %v4024_v24 = vld [vmem:[%s9215_s24 + $0x10] sm:$0xff] }
 0x1c4   : > { %v8127_v2 = vpop.f32.mrf.mxu1  ;;  %8366 = vmatmul.mubr.msk.bf16.gmra.mxu1 %vm541_vm0, %v5803_v3  ;;  %v8187_v23 = vpop.f32.mrf.mxu0  ;;  %8426 = vmatmul.mubr.msk.bf16.gmra.mxu0 %vm541_vm0, %v6526_v18 }
 0x1c5   : > { %v3110_v35 = vadd.f32 %v8127_v2, %v2548_v17  ;;  %v10003_v36 = vadd.f32 %v3882_v26, %v3105_v56  ;;  %8369 = vmatprep.mubr.msk.bf16.mxu1 %vm541_vm0, %v5811_v34  ;;  %8429 = vmatprep.mubr.msk.bf16.mxu0 %vm541_vm0, %v6528_v27  ;;  %v4022_v17 = vld [vmem:[%s9215_s24] sm:$0xff] }
 0x1c6   : > { %v3037_v13 = vpop.f32.mrf.mxu1  ;;  %v3895_v42 = vpop.f32.mrf.mxu0 }
 0x1c7   : > { %v3108_v43 = vadd.f32 %v3037_v13, %v2546_v40  ;;  %v10008_v44 = vadd.f32 %v8187_v23, %v3110_v35 }
 0x1c8   : > { %v8128_v46 = vpop.f32.mrf.mxu1  ;;  %v8188_v47 = vpop.f32.mrf.mxu0 }
 0x1c9   : > { %v3111_v50 = vadd.f32 %v8128_v46, %v2549_v22  ;;  %v10011_v54 = vadd.f32 %v3895_v42, %v3108_v43  ;;  %v4023_v43 = vld [vmem:[%s9215_s24 + $0x8] sm:$0xff] }
 0x1ca   : > { %v3040_v28 = vpop.f32.mrf.mxu1  ;;  %v3898_v61 = vpop.f32.mrf.mxu0 }
 0x1cb   : > { %v3109_v62 = vadd.f32 %v3040_v28, %v2547_v53  ;;  %v10016_v63 = vadd.f32 %v8188_v47, %v3111_v50 }
 0x1cc   : > { %v8131_v4 = vpop.f32.mrf.mxu1  ;;  %8370 = vmatmul.mubr.msk.bf16.gmra.mxu1 %vm541_vm0, %v5819_v52  ;;  %v8191_v38 = vpop.f32.mrf.mxu0  ;;  %8430 = vmatmul.mubr.msk.bf16.gmra.mxu0 %vm541_vm0, %v6530_v57  ;;  %v4028_v52 = vld [vmem:[%s9215_s24 + $0x30] sm:$0xff] }
 0x1cd   : > { %v3114_v6 = vadd.f32 %v8131_v4, %v2552_v0  ;;  %v10021_v60 = vadd.f32 %v3898_v61, %v3109_v62  ;;  %v4026_v62 = vld [vmem:[%s9215_s24 + $0x20] sm:$0xff] }
 0x1ce   : > { %v3053_v49 = vpop.f32.mrf.mxu1  ;;  %v3911_v45 = vpop.f32.mrf.mxu0 }
 0x1cf   : > { %v3112_v8 = vadd.f32 %v3053_v49, %v2550_v10  ;;  %v10024_v11 = vadd.f32 %v8191_v38, %v3114_v6  ;;  %v4029_v10 = vld [vmem:[%s9215_s24 + $0x38] sm:$0xff] }
 0x1d0   : > { %v8132_v51 = vpop.f32.mrf.mxu1  ;;  %v8192_v14 = vpop.f32.mrf.mxu0 }
 0x1d1   : > { %v3115_v18 = vadd.f32 %v8132_v51, %v2553_v48  ;;  %v10027_v25 = vadd.f32 %v3911_v45, %v3112_v8  ;;  %v4027_v51 = vld [vmem:[%s9215_s24 + $0x28] sm:$0xff] }
 0x1d2   : > { %v3056_v3 = vpop.f32.mrf.mxu1  ;;  %v3914_v21 = vpop.f32.mrf.mxu0 }
 0x1d3   : > { %v3113_v31 = vadd.f32 %v3056_v3, %v2551_v55  ;;  %v10030_v33 = vadd.f32 %v8192_v14, %v3115_v18 }
 0x1d4   : > { %v8207_v26 = vpop.f32.mrf.mxu1  ;;  %v8267_v34 = vpop.f32.mrf.mxu0 }
 0x1d5   : > { %v4639_v27 = vadd.f32 %v8207_v26, %v4024_v24  ;;  %v10033_v56 = vadd.f32 %v3914_v21, %v3113_v31  ;;  %v4032_v21 = vld [vmem:[%s9215_s24 + $0x50] sm:$0xff] }
 0x1d6   : > { %v4446_v2 = vpop.f32.mrf.mxu1  ;;  %v5104_v23 = vpop.f32.mrf.mxu0 }
 0x1d7   : > { %v4637_v32 = vadd.f32 %v4446_v2, %v4022_v17  ;;  %v10036_v35 = vadd.f32 %v8267_v34, %v4639_v27  ;;  %v4030_v27 = vld [vmem:[%s9215_s24 + $0x40] sm:$0xff] }
 0x1d8   : > { %v8208_v37 = vpop.f32.mrf.mxu1  ;;  %v8268_v40 = vpop.f32.mrf.mxu0 }
 0x1d9   : > { %v4640_v13 = vadd.f32 %v8208_v37, %v4025_v7  ;;  %v10039_v42 = vadd.f32 %v5104_v23, %v4637_v32  ;;  %v4033_v7 = vld [vmem:[%s9215_s24 + $0x58] sm:$0xff] }
 0x1da   : > { %v4449_v22 = vpop.f32.mrf.mxu1  ;;  %v5107_v46 = vpop.f32.mrf.mxu0 }
 0x1db   : > { %v4638_v47 = vadd.f32 %v4449_v22, %v4023_v43  ;;  %v10042_v50 = vadd.f32 %v8268_v40, %v4640_v13  ;;  %v4031_v22 = vld [vmem:[%s9215_s24 + $0x48] sm:$0xff] }
 0x1dc   : > { %v8211_v57 = vpop.f32.mrf.mxu1  ;;  %v8271_v53 = vpop.f32.mrf.mxu0 }
 0x1dd   : > { %v4643_v28 = vadd.f32 %v8211_v57, %v4028_v52  ;;  %v10045_v61 = vadd.f32 %v5107_v46, %v4638_v47 }
 0x1de   : > { %v4462_v0 = vpop.f32.mrf.mxu1  ;;  %v5120_v4 = vpop.f32.mrf.mxu0 }
 0x1df   : > { %v4641_v38 = vadd.f32 %v4462_v0, %v4026_v62  ;;  %v10048_v6 = vadd.f32 %v8271_v53, %v4643_v28  ;;  %v4036_v53 = vld [vmem:[%s9215_s24 + $0x70] sm:$0xff] }
 0x1e0   : > { %v8212_v49 = vpop.f32.mrf.mxu1  ;;  %v8272_v45 = vpop.f32.mrf.mxu0 }
 0x1e1   : > { %v4644_v8 = vadd.f32 %v8212_v49, %v4029_v10  ;;  %v10051_v48 = vadd.f32 %v5120_v4, %v4641_v38  ;;  %v4034_v38 = vld [vmem:[%s9215_s24 + $0x60] sm:$0xff] }
 0x1e2   : > { %v4465_v14 = vpop.f32.mrf.mxu1  ;;  %v5123_v18 = vpop.f32.mrf.mxu0 }
 0x1e3   : > { %v4642_v55 = vadd.f32 %v4465_v14, %v4027_v51  ;;  %v10054_v3 = vadd.f32 %v8272_v45, %v4644_v8  ;;  %v4037_v51 = vld [vmem:[%s9215_s24 + $0x78] sm:$0xff] }
 0x1e4   : > { %v8215_v31 = vpop.f32.mrf.mxu1  ;;  %v8275_v24 = vpop.f32.mrf.mxu0 }
 0x1e5   : > { %v4647_v26 = vadd.f32 %v8215_v31, %v4032_v21  ;;  %v10057_v34 = vadd.f32 %v5123_v18, %v4642_v55  ;;  %v4035_v31 = vld [vmem:[%s9215_s24 + $0x68] sm:$0xff] }
 0x1e6   : > { %v4478_v17 = vpop.f32.mrf.mxu1  ;;  %v5136_v2 = vpop.f32.mrf.mxu0 }
 0x1e7   : > { %v4645_v23 = vadd.f32 %v4478_v17, %v4030_v27  ;;  %v10060_v32 = vadd.f32 %v8275_v24, %v4647_v26 }
 0x1e8   : > { %v8216_v37 = vpop.f32.mrf.mxu1  ;;  %v8276_v40 = vpop.f32.mrf.mxu0 }
 0x1e9   : > { %v4648_v13 = vadd.f32 %v8216_v37, %v4033_v7  ;;  %v10063_v43 = vadd.f32 %v5136_v2, %v4645_v23  ;;  %v4040_v2 = vld [vmem:[%s9215_s24 + $0x90] sm:$0xff] }
 0x1ea   : > { %v4481_v46 = vpop.f32.mrf.mxu1  ;;  %v5139_v47 = vpop.f32.mrf.mxu0 }
 0x1eb   : > { %v4646_v52 = vadd.f32 %v4481_v46, %v4031_v22  ;;  %v10066_v57 = vadd.f32 %v8276_v40, %v4648_v13  ;;  %v4038_v13 = vld [vmem:[%s9215_s24 + $0x80] sm:$0xff] }
 0x1ec   : > { %v8219_v28 = vpop.f32.mrf.mxu1  ;;  %v8279_v62 = vpop.f32.mrf.mxu0 }
 0x1ed   : > { %v4651_v0 = vadd.f32 %v8219_v28, %v4036_v53  ;;  %v10069_v4 = vadd.f32 %v5139_v47, %v4646_v52  ;;  %v4041_v53 = vld [vmem:[%s9215_s24 + $0x98] sm:$0xff] }
 0x1ee   : > { %v4494_v10 = vpop.f32.mrf.mxu1  ;;  %v5152_v49 = vpop.f32.mrf.mxu0 }
 0x1ef   : > { %v4649_v45 = vadd.f32 %v4494_v10, %v4034_v38  ;;  %v10072_v8 = vadd.f32 %v8279_v62, %v4651_v0  ;;  %v4039_v10 = vld [vmem:[%s9215_s24 + $0x88] sm:$0xff] }
 0x1f0   : > { %v8220_v14 = vpop.f32.mrf.mxu1  ;;  %v8280_v18 = vpop.f32.mrf.mxu0 }
 0x1f1   : > { %v4652_v55 = vadd.f32 %v8220_v14, %v4037_v51  ;;  %v10075_v21 = vadd.f32 %v5152_v49, %v4649_v45 }
 0x1f2   : > { %v4497_v24 = vpop.f32.mrf.mxu1  ;;  %v5155_v26 = vpop.f32.mrf.mxu0 }
 0x1f3   : > { %v4650_v27 = vadd.f32 %v4497_v24, %v4035_v31  ;;  %v10078_v17 = vadd.f32 %v8280_v18, %v4652_v55  ;;  %v4044_v18 = vld [vmem:[%s9215_s24 + $0xb0] sm:$0xff] }
 0x1f4   : > { %v8223_v23 = vpop.f32.mrf.mxu1  ;;  %v8283_v7 = vpop.f32.mrf.mxu0 }
 0x1f5   : > { %v4655_v37 = vadd.f32 %v8223_v23, %v4040_v2  ;;  %v10081_v40 = vadd.f32 %v5155_v26, %v4650_v27  ;;  %v4042_v27 = vld [vmem:[%s9215_s24 + $0xa0] sm:$0xff] }
 0x1f6   : > { %v4510_v22 = vpop.f32.mrf.mxu1  ;;  %v5168_v46 = vpop.f32.mrf.mxu0 }
 0x1f7   : > { %v4653_v47 = vadd.f32 %v4510_v22, %v4038_v13  ;;  %v10084_v52 = vadd.f32 %v8283_v7, %v4655_v37  ;;  %v4045_v13 = vld [vmem:[%s9215_s24 + $0xb8] sm:$0xff] }
 0x1f8   : > { %v8224_v28 = vpop.f32.mrf.mxu1  ;;  %v8284_v62 = vpop.f32.mrf.mxu0 }
 0x1f9   : > { %v4656_v0 = vadd.f32 %v8224_v28, %v4041_v53  ;;  %v10087_v38 = vadd.f32 %v5168_v46, %v4653_v47  ;;  %v4043_v28 = vld [vmem:[%s9215_s24 + $0xa8] sm:$0xff] }
 0x1fa   : > { %v4513_v49 = vpop.f32.mrf.mxu1  ;;  %v5171_v45 = vpop.f32.mrf.mxu0 }
 0x1fb   : > { %v4654_v51 = vadd.f32 %v4513_v49, %v4039_v10  ;;  %v10090_v14 = vadd.f32 %v8284_v62, %v4656_v0 }
 0x1fc   : > { %v8227_v55 = vpop.f32.mrf.mxu1  ;;  %v8287_v31 = vpop.f32.mrf.mxu0 }
 0x1fd   : > { %v4659_v24 = vadd.f32 %v8227_v55, %v4044_v18  ;;  %v10093_v26 = vadd.f32 %v5171_v45, %v4654_v51  ;;  %v4048_v45 = vld [vmem:[%s9215_s24 + $0xd0] sm:$0xff] }
 0x1fe   : > { %v4526_v2 = vpop.f32.mrf.mxu1  ;;  %v5184_v23 = vpop.f32.mrf.mxu0 }
 0x1ff   : > { %10282 = vst [vmem:[#allocation2_spill] sm:$0xff] %v10093_v26  ;;  %v4657_v7 = vadd.f32 %v4526_v2, %v4042_v27  ;;  %v10096_v37 = vadd.f32 %v8287_v31, %v4659_v24 }
 0x200   : > { %v8228_v22 = vpop.f32.mrf.mxu1  ;;  %v8288_v46 = vpop.f32.mrf.mxu0 }
 0x201   : > { %v4660_v47 = vadd.f32 %v8228_v22, %v4045_v13  ;;  %v10099_v53 = vadd.f32 %v5184_v23, %v4657_v7 }
 0x202   : > { %v4529_v62 = vpop.f32.mrf.mxu1  ;;  %v5187_v0 = vpop.f32.mrf.mxu0 }
 0x203   : > { %v4658_v10 = vadd.f32 %v4529_v62, %v4043_v28  ;;  %v10102_v49 = vadd.f32 %v8288_v46, %v4660_v47 }
 0x204   : > { %v8231_v51 = vpop.f32.mrf.mxu1  ;;  %v8291_v18 = vpop.f32.mrf.mxu0 }
 0x205   : > { %v4663_v55 = vadd.f32 %v8231_v51, %v4048_v45  ;;  %v10105_v26 = vadd.f32 %v5187_v0, %v4658_v10 }
 0x206   : > { %v4542_v31 = vpop.f32.mrf.mxu1  ;;  %v5200_v24 = vpop.f32.mrf.mxu0 }
 0x207   : > { %v4661_v27 = vadd.f32 %v4542_v31, %v9901_v9  ;;  %v10108_v2 = vadd.f32 %v8291_v18, %v4663_v55 }
 0x208   : > { %v8232_v23 = vpop.f32.mrf.mxu1  ;;  %v8292_v7 = vpop.f32.mrf.mxu0 }
 0x209   : > { %v4664_v13 = vadd.f32 %v8232_v23, %v9912_v15  ;;  %v10111_v22 = vadd.f32 %v5200_v24, %v4661_v27 }
 0x20a   : > { %v4545_v46 = vpop.f32.mrf.mxu1  ;;  %v5203_v47 = vpop.f32.mrf.mxu0 }
 0x20b   : > { %v4662_v28 = vadd.f32 %v4545_v46, %v9918_v20  ;;  %v10114_v62 = vadd.f32 %v8292_v7, %v4664_v13 }
 0x20c   : > { %v8235_v0 = vpop.f32.mrf.mxu1  ;;  %v8295_v10 = vpop.f32.mrf.mxu0 }
 0x20d   : > { %v4667_v45 = vadd.f32 %v8235_v0, %v9927_v30  ;;  %v10117_v51 = vadd.f32 %v5203_v47, %v4662_v28 }
 0x20e   : > { %v4558_v9 = vpop.f32.mrf.mxu1  ;;  %v5216_v18 = vpop.f32.mrf.mxu0 }
 0x20f   : > { %v4665_v55 = vadd.f32 %v4558_v9, %v9932_v41  ;;  %v10120_v31 = vadd.f32 %v8295_v10, %v4667_v45 }
 0x210   : > { %v8236_v15 = vpop.f32.mrf.mxu1  ;;  %v8296_v24 = vpop.f32.mrf.mxu0 }
 0x211   : > { %v4668_v27 = vadd.f32 %v8236_v15, %v9943_v16  ;;  %v10123_v23 = vadd.f32 %v5216_v18, %v4665_v55 }
 0x212   : > { %v4561_v20 = vpop.f32.mrf.mxu1  ;;  %v5219_v7 = vpop.f32.mrf.mxu0 }
 0x213   : > { %v4666_v13 = vadd.f32 %v4561_v20, %v9949_v58  ;;  %v10126_v46 = vadd.f32 %v8296_v24, %v4668_v27 }
 0x214   : > { %v8239_v30 = vpop.f32.mrf.mxu1  ;;  %v8299_v47 = vpop.f32.mrf.mxu0 }
 0x215   : > { %v4671_v28 = vadd.f32 %v8239_v30, %v9958_v29  ;;  %v10129_v0 = vadd.f32 %v5219_v7, %v4666_v13 }
 0x216   : > { %v4574_v41 = vpop.f32.mrf.mxu1  ;;  %v5232_v10 = vpop.f32.mrf.mxu0 }
 0x217   : > { %v4669_v45 = vadd.f32 %v4574_v41, %v9963_v39  ;;  %v10132_v9 = vadd.f32 %v8299_v47, %v4671_v28 }
 0x218   : > { %v8240_v16 = vpop.f32.mrf.mxu1  ;;  %v8300_v18 = vpop.f32.mrf.mxu0 }
 0x219   : > { %v4672_v55 = vadd.f32 %v8240_v16, %v9974_v59  ;;  %v10135_v15 = vadd.f32 %v5232_v10, %v4669_v45 }
 0x21a   : > { %v4577_v58 = vpop.f32.mrf.mxu1  ;;  %v5235_v24 = vpop.f32.mrf.mxu0 }
 0x21b   : > { %v4670_v27 = vadd.f32 %v4577_v58, %v9979_v1  ;;  %v10138_v20 = vadd.f32 %v8300_v18, %v4672_v55 }
 0x21c   : > { %v8243_v29 = vpop.f32.mrf.mxu1  ;;  %v8303_v7 = vpop.f32.mrf.mxu0 }
 0x21d   : > { %v4675_v13 = vadd.f32 %v8243_v29, %v9986_v12  ;;  %v10141_v30 = vadd.f32 %v5235_v24, %v4670_v27 }
 0x21e   : > { %v4590_v39 = vpop.f32.mrf.mxu1  ;;  %v5248_v47 = vpop.f32.mrf.mxu0 }
 0x21f   : > { %v4673_v28 = vadd.f32 %v4590_v39, %v9991_v19  ;;  %v10144_v41 = vadd.f32 %v8303_v7, %v4675_v13 }
 0x220   : > { %v8244_v59 = vpop.f32.mrf.mxu1  ;;  %v8304_v10 = vpop.f32.mrf.mxu0 }
 0x221   : > { %v4676_v45 = vadd.f32 %v8244_v59, %v9998_v5  ;;  %v10147_v16 = vadd.f32 %v5248_v47, %v4673_v28 }
 0x222   : > { %v4593_v1 = vpop.f32.mrf.mxu1  ;;  %v5251_v18 = vpop.f32.mrf.mxu0 }
 0x223   : > { %v4674_v55 = vadd.f32 %v4593_v1, %v10003_v36  ;;  %v10150_v58 = vadd.f32 %v8304_v10, %v4676_v45 }
 0x224   : > { %v8247_v12 = vpop.f32.mrf.mxu1  ;;  %v8307_v24 = vpop.f32.mrf.mxu0 }
 0x225   : > { %v4679_v27 = vadd.f32 %v8247_v12, %v10008_v44  ;;  %v10153_v29 = vadd.f32 %v5251_v18, %v4674_v55 }
 0x226   : > { %v4606_v19 = vpop.f32.mrf.mxu1  ;;  %v5264_v7 = vpop.f32.mrf.mxu0 }
 0x227   : > { %v4677_v13 = vadd.f32 %v4606_v19, %v10011_v54  ;;  %v10156_v39 = vadd.f32 %v8307_v24, %v4679_v27 }
 0x228   : > { %v8248_v5 = vpop.f32.mrf.mxu1  ;;  %v8308_v47 = vpop.f32.mrf.mxu0 }
 0x229   : > { %v4680_v28 = vadd.f32 %v8248_v5, %v10016_v63  ;;  %v10159_v59 = vadd.f32 %v5264_v7, %v4677_v13 }
 0x22a   : > { %v4609_v36 = vpop.f32.mrf.mxu1  ;;  %v5267_v10 = vpop.f32.mrf.mxu0 }
 0x22b   : > { %v4678_v45 = vadd.f32 %v4609_v36, %v10021_v60  ;;  %v10162_v1 = vadd.f32 %v8308_v47, %v4680_v28 }
 0x22c   : > { %v8251_v44 = vpop.f32.mrf.mxu1  ;;  %v8311_v18 = vpop.f32.mrf.mxu0 }
 0x22d   : > { %v4683_v55 = vadd.f32 %v8251_v44, %v10024_v11  ;;  %v10165_v12 = vadd.f32 %v5267_v10, %v4678_v45 }
 0x22e   : > { %v4622_v54 = vpop.f32.mrf.mxu1  ;;  %v5280_v24 = vpop.f32.mrf.mxu0 }
 0x22f   : > { %v4681_v27 = vadd.f32 %v4622_v54, %v10027_v25  ;;  %v10168_v19 = vadd.f32 %v8311_v18, %v4683_v55 }
 0x230   : > { %v8252_v63 = vpop.f32.mrf.mxu1  ;;  %v8312_v7 = vpop.f32.mrf.mxu0 }
 0x231   : > { %v4684_v13 = vadd.f32 %v8252_v63, %v10030_v33  ;;  %v10171_v5 = vadd.f32 %v5280_v24, %v4681_v27 }
 0x232   : > { %v4625_v60 = vpop.f32.mrf.mxu1  ;;  %v5283_v47 = vpop.f32.mrf.mxu0 }
 0x233   : > { %v4682_v28 = vadd.f32 %v4625_v60, %v10033_v56  ;;  %v10174_v11 = vadd.f32 %v8312_v7, %v4684_v13 }
 0x234   : > { %v8327_v36 = vpop.f32.mrf.mxu1  ;;  %v8387_v10 = vpop.f32.mrf.mxu0 }
 0x235   : > { %v6155_v25 = vadd.f32 %v8327_v36, %v10036_v35  ;;  %v10177_v45 = vadd.f32 %v5283_v47, %v4682_v28 }
 0x236   : > { %v5962_v44 = vpop.f32.mrf.mxu1  ;;  %v6673_v18 = vpop.f32.mrf.mxu0 }
 0x237   : > { %v6153_v33 = vadd.f32 %v5962_v44, %v10039_v42  ;;  %v6866_v55 = vadd.f32 %v8387_v10, %v6155_v25 }
 0x238   : > { %v8328_v54 = vpop.f32.mrf.mxu1  ;;  %v8388_v24 = vpop.f32.mrf.mxu0 }
 0x239   : > { %v6156_v27 = vadd.f32 %v8328_v54, %v10042_v50  ;;  %6914 = vst [vmem:[%s9215_s24 + $0x10] sm:$0xff] %v6866_v55  ;;  %v6864_v56 = vadd.f32 %v6673_v18, %v6153_v33 }
 0x23a   : > { %v5965_v63 = vpop.f32.mrf.mxu1  ;;  %v6676_v7 = vpop.f32.mrf.mxu0 }
 0x23b   : > { %v6154_v13 = vadd.f32 %v5965_v63, %v10045_v61  ;;  %6912 = vst [vmem:[%s9215_s24] sm:$0xff] %v6864_v56  ;;  %v6867_v35 = vadd.f32 %v8388_v24, %v6156_v27 }
 0x23c   : > { %v8331_v60 = vpop.f32.mrf.mxu1  ;;  %v8391_v47 = vpop.f32.mrf.mxu0 }
 0x23d   : > { %v6159_v28 = vadd.f32 %v8331_v60, %v10048_v6  ;;  %6915 = vst [vmem:[%s9215_s24 + $0x18] sm:$0xff] %v6867_v35  ;;  %v6865_v42 = vadd.f32 %v6676_v7, %v6154_v13 }
 0x23e   : > { %v5978_v36 = vpop.f32.mrf.mxu1  ;;  %v6689_v10 = vpop.f32.mrf.mxu0 }
 0x23f   : > { %v6157_v50 = vadd.f32 %v5978_v36, %v10051_v48  ;;  %6913 = vst [vmem:[%s9215_s24 + $0x8] sm:$0xff] %v6865_v42  ;;  %v6870_v25 = vadd.f32 %v8391_v47, %v6159_v28 }
 0x240   : > { %v8332_v44 = vpop.f32.mrf.mxu1  ;;  %v8392_v18 = vpop.f32.mrf.mxu0 }
 0x241   : > { %v6160_v61 = vadd.f32 %v8332_v44, %v10054_v3  ;;  %6918 = vst [vmem:[%s9215_s24 + $0x30] sm:$0xff] %v6870_v25  ;;  %v6868_v33 = vadd.f32 %v6689_v10, %v6157_v50 }
 0x242   : > { %v5981_v55 = vpop.f32.mrf.mxu1  ;;  %v6692_v54 = vpop.f32.mrf.mxu0 }
 0x243   : > { %v6158_v6 = vadd.f32 %v5981_v55, %v10057_v34  ;;  %6916 = vst [vmem:[%s9215_s24 + $0x20] sm:$0xff] %v6868_v33  ;;  %v6871_v24 = vadd.f32 %v8392_v18, %v6160_v61 }
 0x244   : > { %v8335_v27 = vpop.f32.mrf.mxu1  ;;  %v8395_v56 = vpop.f32.mrf.mxu0 }
 0x245   : > { %v6163_v48 = vadd.f32 %v8335_v27, %v10060_v32  ;;  %6919 = vst [vmem:[%s9215_s24 + $0x38] sm:$0xff] %v6871_v24  ;;  %v6869_v63 = vadd.f32 %v6692_v54, %v6158_v6 }
 0x246   : > { %v5994_v7 = vpop.f32.mrf.mxu1  ;;  %v6705_v13 = vpop.f32.mrf.mxu0 }
 0x247   : > { %v6161_v3 = vadd.f32 %v5994_v7, %v10063_v43  ;;  %6917 = vst [vmem:[%s9215_s24 + $0x28] sm:$0xff] %v6869_v63  ;;  %v6874_v35 = vadd.f32 %v8395_v56, %v6163_v48 }
 0x248   : > { %v8336_v60 = vpop.f32.mrf.mxu1  ;;  %v8396_v47 = vpop.f32.mrf.mxu0 }
 0x249   : > { %v6164_v34 = vadd.f32 %v8336_v60, %v10066_v57  ;;  %6922 = vst [vmem:[%s9215_s24 + $0x50] sm:$0xff] %v6874_v35  ;;  %v6872_v28 = vadd.f32 %v6705_v13, %v6161_v3 }
 0x24a   : > { %v5997_v42 = vpop.f32.mrf.mxu1  ;;  %v6708_v36 = vpop.f32.mrf.mxu0 }
 0x24b   : > { %v6162_v32 = vadd.f32 %v5997_v42, %v10069_v4  ;;  %6920 = vst [vmem:[%s9215_s24 + $0x40] sm:$0xff] %v6872_v28  ;;  %v6875_v10 = vadd.f32 %v8396_v47, %v6164_v34 }
 0x24c   : > { %v8339_v50 = vpop.f32.mrf.mxu1  ;;  %v8399_v25 = vpop.f32.mrf.mxu0 }
 0x24d   : > { %v6167_v43 = vadd.f32 %v8339_v50, %v10072_v8  ;;  %6923 = vst [vmem:[%s9215_s24 + $0x58] sm:$0xff] %v6875_v10  ;;  %v6873_v44 = vadd.f32 %v6708_v36, %v6162_v32 }
 0x24e   : > { %v6010_v18 = vpop.f32.mrf.mxu1  ;;  %v6721_v61 = vpop.f32.mrf.mxu0 }
 0x24f   : > { %v6165_v57 = vadd.f32 %v6010_v18, %v10075_v21  ;;  %6921 = vst [vmem:[%s9215_s24 + $0x48] sm:$0xff] %v6873_v44  ;;  %v6878_v33 = vadd.f32 %v8399_v25, %v6167_v43 }
 0x250   : > { %v8340_v55 = vpop.f32.mrf.mxu1  ;;  %v8400_v54 = vpop.f32.mrf.mxu0 }
 0x251   : > { %v6168_v4 = vadd.f32 %v8340_v55, %v10078_v17  ;;  %6926 = vst [vmem:[%s9215_s24 + $0x70] sm:$0xff] %v6878_v33  ;;  %v6876_v6 = vadd.f32 %v6721_v61, %v6165_v57 }
 0x252   : > { %v6013_v24 = vpop.f32.mrf.mxu1  ;;  %v6724_v27 = vpop.f32.mrf.mxu0 }
 0x253   : > { %v6166_v8 = vadd.f32 %v6013_v24, %v10081_v40  ;;  %6924 = vst [vmem:[%s9215_s24 + $0x60] sm:$0xff] %v6876_v6  ;;  %v6879_v56 = vadd.f32 %v8400_v54, %v6168_v4 }
 0x254   : > { %v8343_v48 = vpop.f32.mrf.mxu1  ;;  %v8403_v63 = vpop.f32.mrf.mxu0 }
 0x255   : > { %v6171_v21 = vadd.f32 %v8343_v48, %v10084_v52  ;;  %6927 = vst [vmem:[%s9215_s24 + $0x78] sm:$0xff] %v6879_v56  ;;  %v6877_v7 = vadd.f32 %v6724_v27, %v6166_v8  ;;  %v10283_v52 = vld [vmem:[#allocation2_spill] sm:$0xff] }
 0x256   : > { %v6026_v13 = vpop.f32.mrf.mxu1  ;;  %v6737_v3 = vpop.f32.mrf.mxu0 }
 0x257   : > { %v6169_v17 = vadd.f32 %v6026_v13, %v10087_v38  ;;  %6925 = vst [vmem:[%s9215_s24 + $0x68] sm:$0xff] %v6877_v7  ;;  %v6882_v35 = vadd.f32 %v8403_v63, %v6171_v21 }
 0x258   : > { %v8344_v60 = vpop.f32.mrf.mxu1  ;;  %v8404_v47 = vpop.f32.mrf.mxu0 }
 0x259   : > { %v6172_v40 = vadd.f32 %v8344_v60, %v10090_v14  ;;  %6930 = vst [vmem:[%s9215_s24 + $0x90] sm:$0xff] %v6882_v35  ;;  %v6880_v34 = vadd.f32 %v6737_v3, %v6169_v17 }
 0x25a   : > { %v6029_v28 = vpop.f32.mrf.mxu1  ;;  %v6740_v42 = vpop.f32.mrf.mxu0 }
 0x25b   : > { %v6170_v36 = vadd.f32 %v6029_v28, %v10283_v52  ;;  %6928 = vst [vmem:[%s9215_s24 + $0x80] sm:$0xff] %v6880_v34  ;;  %v6883_v32 = vadd.f32 %v8404_v47, %v6172_v40 }
 0x25c   : > { %v8347_v10 = vpop.f32.mrf.mxu1  ;;  %v8407_v50 = vpop.f32.mrf.mxu0 }
 0x25d   : > { %v6175_v38 = vadd.f32 %v8347_v10, %v10096_v37  ;;  %6931 = vst [vmem:[%s9215_s24 + $0x98] sm:$0xff] %v6883_v32  ;;  %v6881_v25 = vadd.f32 %v6740_v42, %v6170_v36 }
 0x25e   : > { %v6042_v43 = vpop.f32.mrf.mxu1  ;;  %v6753_v44 = vpop.f32.mrf.mxu0 }
 0x25f   : > { %v6173_v14 = vadd.f32 %v6042_v43, %v10099_v53  ;;  %6929 = vst [vmem:[%s9215_s24 + $0x88] sm:$0xff] %v6881_v25  ;;  %v6886_v18 = vadd.f32 %v8407_v50, %v6175_v38 }
 0x260   : > { %v8348_v61 = vpop.f32.mrf.mxu1  ;;  %v8408_v57 = vpop.f32.mrf.mxu0 }
 0x261   : > { %v6176_v33 = vadd.f32 %v8348_v61, %v10102_v49  ;;  %6934 = vst [vmem:[%s9215_s24 + $0xb0] sm:$0xff] %v6886_v18  ;;  %v6884_v55 = vadd.f32 %v6753_v44, %v6173_v14 }
 0x262   : > { %v6045_v54 = vpop.f32.mrf.mxu1  ;;  %v6756_v4 = vpop.f32.mrf.mxu0 }
 0x263   : > { %v6174_v37 = vadd.f32 %v6045_v54, %v10105_v26  ;;  %6932 = vst [vmem:[%s9215_s24 + $0xa0] sm:$0xff] %v6884_v55  ;;  %v6887_v6 = vadd.f32 %v8408_v57, %v6176_v33 }
 0x264   : > { %v8351_v24 = vpop.f32.mrf.mxu1  ;;  %v8411_v27 = vpop.f32.mrf.mxu0 }
 0x265   : > { %v6179_v53 = vadd.f32 %v8351_v24, %v10108_v2  ;;  %6935 = vst [vmem:[%s9215_s24 + $0xb8] sm:$0xff] %v6887_v6  ;;  %v6885_v8 = vadd.f32 %v6756_v4, %v6174_v37 }
 0x266   : > { %v6058_v56 = vpop.f32.mrf.mxu1  ;;  %v6769_v48 = vpop.f32.mrf.mxu0 }
 0x267   : > { %v6177_v49 = vadd.f32 %v6058_v56, %v10111_v22  ;;  %6933 = vst [vmem:[%s9215_s24 + $0xa8] sm:$0xff] %v6885_v8  ;;  %v6890_v63 = vadd.f32 %v8411_v27, %v6179_v53 }
 0x268   : > { %v8352_v21 = vpop.f32.mrf.mxu1  ;;  %v8412_v7 = vpop.f32.mrf.mxu0 }
 0x269   : > { %v6180_v26 = vadd.f32 %v8352_v21, %v10114_v62  ;;  %6938 = vst [vmem:[%s9215_s24 + $0xd0] sm:$0xff] %v6890_v63  ;;  %v6888_v13 = vadd.f32 %v6769_v48, %v6177_v49 }
 0x26a   : > { %v6061_v3 = vpop.f32.mrf.mxu1  ;;  %v6772_v17 = vpop.f32.mrf.mxu0 }
 0x26b   : > { %v6178_v2 = vadd.f32 %v6061_v3, %v10117_v51  ;;  %6936 = vst [vmem:[%s9215_s24 + $0xc0] sm:$0xff] %v6888_v13  ;;  %v6891_v35 = vadd.f32 %v8412_v7, %v6180_v26 }
 0x26c   : > { %v8355_v60 = vpop.f32.mrf.mxu1  ;;  %v8415_v47 = vpop.f32.mrf.mxu0 }
 0x26d   : > { %v6183_v22 = vadd.f32 %v8355_v60, %v10120_v31  ;;  %6939 = vst [vmem:[%s9215_s24 + $0xd8] sm:$0xff] %v6891_v35  ;;  %v6889_v40 = vadd.f32 %v6772_v17, %v6178_v2 }
 0x26e   : > { %v6074_v34 = vpop.f32.mrf.mxu1  ;;  %v6785_v28 = vpop.f32.mrf.mxu0 }
 0x26f   : > { %v6181_v62 = vadd.f32 %v6074_v34, %v10123_v23  ;;  %6937 = vst [vmem:[%s9215_s24 + $0xc8] sm:$0xff] %v6889_v40  ;;  %v6894_v42 = vadd.f32 %v8415_v47, %v6183_v22 }
 0x270   : > { %v8356_v52 = vpop.f32.mrf.mxu1  ;;  %v8416_v36 = vpop.f32.mrf.mxu0 }
 0x271   : > { %v6184_v51 = vadd.f32 %v8356_v52, %v10126_v46  ;;  %6942 = vst [vmem:[%s9215_s24 + $0xf0] sm:$0xff] %v6894_v42  ;;  %v6892_v32 = vadd.f32 %v6785_v28, %v6181_v62 }
 0x272   : > { %v6077_v10 = vpop.f32.mrf.mxu1  ;;  %v6788_v50 = vpop.f32.mrf.mxu0 }
 0x273   : > { %v6182_v31 = vadd.f32 %v6077_v10, %v10129_v0  ;;  %6940 = vst [vmem:[%s9215_s24 + $0xe0] sm:$0xff] %v6892_v32  ;;  %v6895_v38 = vadd.f32 %v8416_v36, %v6184_v51 }
 0x274   : > { %v8359_v25 = vpop.f32.mrf.mxu1  ;;  %v8419_v43 = vpop.f32.mrf.mxu0 }
 0x275   : > { %v6187_v23 = vadd.f32 %v8359_v25, %v10132_v9  ;;  %6943 = vst [vmem:[%s9215_s24 + $0xf8] sm:$0xff] %v6895_v38  ;;  %v6893_v44 = vadd.f32 %v6788_v50, %v6182_v31 }
 0x276   : > { %v6090_v14 = vpop.f32.mrf.mxu1  ;;  %v6801_v18 = vpop.f32.mrf.mxu0 }
 0x277   : > { %v6185_v46 = vadd.f32 %v6090_v14, %v10135_v15  ;;  %6941 = vst [vmem:[%s9215_s24 + $0xe8] sm:$0xff] %v6893_v44  ;;  %v6898_v61 = vadd.f32 %v8419_v43, %v6187_v23 }
 0x278   : > { %v8360_v57 = vpop.f32.mrf.mxu1  ;;  %v8420_v33 = vpop.f32.mrf.mxu0 }
 0x279   : > { %v6188_v0 = vadd.f32 %v8360_v57, %v10138_v20  ;;  %6946 = vst [vmem:[%s9215_s24 + $0x110] sm:$0xff] %v6898_v61  ;;  %v6896_v55 = vadd.f32 %v6801_v18, %v6185_v46 }
 0x27a   : > { %v6093_v54 = vpop.f32.mrf.mxu1  ;;  %v6804_v4 = vpop.f32.mrf.mxu0 }
 0x27b   : > { %v6186_v9 = vadd.f32 %v6093_v54, %v10141_v30  ;;  %6944 = vst [vmem:[%s9215_s24 + $0x100] sm:$0xff] %v6896_v55  ;;  %v6899_v37 = vadd.f32 %v8420_v33, %v6188_v0 }
 0x27c   : > { %v8363_v6 = vpop.f32.mrf.mxu1  ;;  %v8423_v24 = vpop.f32.mrf.mxu0 }
 0x27d   : > { %v6191_v15 = vadd.f32 %v8363_v6, %v10144_v41  ;;  %6947 = vst [vmem:[%s9215_s24 + $0x118] sm:$0xff] %v6899_v37  ;;  %v6897_v27 = vadd.f32 %v6804_v4, %v6186_v9 }
 0x27e   : > { %v6106_v53 = vpop.f32.mrf.mxu1  ;;  %v6817_v8 = vpop.f32.mrf.mxu0 }
 0x27f   : > { %v6189_v20 = vadd.f32 %v6106_v53, %v10147_v16  ;;  %6945 = vst [vmem:[%s9215_s24 + $0x108] sm:$0xff] %v6897_v27  ;;  %v6902_v56 = vadd.f32 %v8423_v24, %v6191_v15 }
 0x280   : > { %v8364_v48 = vpop.f32.mrf.mxu1  ;;  %v8424_v49 = vpop.f32.mrf.mxu0 }
 0x281   : > { %v6192_v30 = vadd.f32 %v8364_v48, %v10150_v58  ;;  %6950 = vst [vmem:[%s9215_s24 + $0x130] sm:$0xff] %v6902_v56  ;;  %v6900_v63 = vadd.f32 %v6817_v8, %v6189_v20 }
 0x282   : > { %v6109_v21 = vpop.f32.mrf.mxu1  ;;  %v6820_v7 = vpop.f32.mrf.mxu0 }
 0x283   : > { %v6190_v41 = vadd.f32 %v6109_v21, %v10153_v29  ;;  %6948 = vst [vmem:[%s9215_s24 + $0x120] sm:$0xff] %v6900_v63  ;;  %v6903_v26 = vadd.f32 %v8424_v49, %v6192_v30 }
 0x284   : > { %v8367_v13 = vpop.f32.mrf.mxu1  ;;  %v8427_v3 = vpop.f32.mrf.mxu0 }
 0x285   : > { %v6195_v16 = vadd.f32 %v8367_v13, %v10156_v39  ;;  %6951 = vst [vmem:[%s9215_s24 + $0x138] sm:$0xff] %v6903_v26  ;;  %v6901_v17 = vadd.f32 %v6820_v7, %v6190_v41 }
 0x286   : > { %v6122_v2 = vpop.f32.mrf.mxu1  ;;  %v6833_v35 = vpop.f32.mrf.mxu0 }
 0x287   : > { %v6193_v58 = vadd.f32 %v6122_v2, %v10159_v59  ;;  %6949 = vst [vmem:[%s9215_s24 + $0x128] sm:$0xff] %v6901_v17  ;;  %v6906_v60 = vadd.f32 %v8427_v3, %v6195_v16 }
 0x288   : > { %v8368_v47 = vpop.f32.mrf.mxu1  ;;  %v8428_v22 = vpop.f32.mrf.mxu0 }
 0x289   : > { %v6196_v29 = vadd.f32 %v8368_v47, %v10162_v1  ;;  %6954 = vst [vmem:[%s9215_s24 + $0x150] sm:$0xff] %v6906_v60  ;;  %v6904_v40 = vadd.f32 %v6833_v35, %v6193_v58 }
 0x28a   : > { %v6125_v34 = vpop.f32.mrf.mxu1  ;;  %v6836_v28 = vpop.f32.mrf.mxu0 }
 0x28b   : > { %v6194_v39 = vadd.f32 %v6125_v34, %v10165_v12  ;;  %6952 = vst [vmem:[%s9215_s24 + $0x140] sm:$0xff] %v6904_v40  ;;  %v6907_v62 = vadd.f32 %v8428_v22, %v6196_v29 }
 0x28c   : > { %v8371_v42 = vpop.f32.mrf.mxu1  ;;  %v8431_v52 = vpop.f32.mrf.mxu0 }
 0x28d   : > { %v6199_v59 = vadd.f32 %v8371_v42, %v10168_v19  ;;  %6955 = vst [vmem:[%s9215_s24 + $0x158] sm:$0xff] %v6907_v62  ;;  %v6905_v36 = vadd.f32 %v6836_v28, %v6194_v39 }
 0x28e   : > { %v6138_v51 = vpop.f32.mrf.mxu1  ;;  %v6849_v1 = vpop.f32.mrf.mxu0 }
 0x28f   : > { %v6197_v32 = vadd.f32 %v6138_v51, %v10171_v5  ;;  %6953 = vst [vmem:[%s9215_s24 + $0x148] sm:$0xff] %v6905_v36  ;;  %v6910_v10 = vadd.f32 %v8431_v52, %v6199_v59 }
 0x290   : > { %v8372_v50 = vpop.f32.mrf.mxu1  ;;  %v8432_v12 = vpop.f32.mrf.mxu0 }
 0x291   : > { %v6200_v31 = vadd.f32 %v8372_v50, %v10174_v11  ;;  %6958 = vst [vmem:[%s9215_s24 + $0x170] sm:$0xff] %v6910_v10  ;;  %v6908_v38 = vadd.f32 %v6849_v1, %v6197_v32 }
 0x292   : > { %v6141_v25 = vpop.f32.mrf.mxu1  ;;  %v6852_v23 = vpop.f32.mrf.mxu0 }
 0x293   : > { %v6198_v43 = vadd.f32 %v6141_v25, %v10177_v45  ;;  %6956 = vst [vmem:[%s9215_s24 + $0x160] sm:$0xff] %v6908_v38  ;;  %v6911_v19 = vadd.f32 %v8432_v12, %v6200_v31 }
 0x295   : > { %6959 = vst [vmem:[%s9215_s24 + $0x178] sm:$0xff] %v6911_v19  ;;  %v6909_v44 = vadd.f32 %v6852_v23, %v6198_v43 }
 0x297   : > { %6957 = vst [vmem:[%s9215_s24 + $0x168] sm:$0xff] %v6909_v44 }
 0x298 PF: > { %s14_s15 = sadd.s32 1, %s8737_s15  }
 0x299   : > { %p11_p4 = scmp.ge.s32.totalorder %s14_s15, 4  }
 0x29b   :  { %13 = sbr.rel (!%p11_p4) target bundleno = 1 (0x1), region = 77 }

// kernel: res_block.11
= control target key start
LH: loop header
LB: loop body
LE: loop exit
PB: predicated region body
PF: predicated region fallthrough
CT: control target
= control target key end

     0   :  { %s8483_s15 = smov 0   ;;  %s9968_s0 = inlined_call_operand.vmem [shape: bf16[2,456,128], index: 0, kind: input, shape index: {}]   ;;  %s9969_s1 = inlined_call_operand.vmem [shape: bf16[9,128,128], index: 1, kind: input, shape index: {}]   ;;  %s9970_s2 = inlined_call_operand.vmem [shape: f32[1,128], index: 2, kind: input, shape index: {}]   ;;  %s9971_s3 = inlined_call_operand.vmem [shape: f32[2,384,128], index: 3, kind: input, shape index: {}]   ;;  %s9972_s4 = inlined_call_operand.vmem [shape: f32[2,384,128], index: 4, kind: output, shape index: {}]  }
   0x1 LB: > { %s6832_s16 = sadd.s32 4294967295, %s8456_s15   ;;  %p6836_p0 = scmp.ge.s32.totalorder %s8456_s15, 1  ;;  %s8456_s15 = sphi %s8483_s15, %s14_s15  }
   0x2   : > { %p172_p1 = scmp.lt.s32.totalorder %s8456_s15, 3 }
   0x4   : > { %p173_p2 = pnand %p6836_p0, %p172_p1 }
   0x6   : > { %176 = sbr.rel (%p173_p2) target bundleno = 672 (0x2a0), region = 36 }
   0xb   : > { %v8155_v0 = vld [vmem:[%s9969_s1 + $0x38] sm:$0xff]   ;;  %p203_p3 = scmp.lt.s32.totalorder %s6832_s16, 1  ;;  %v8156_v1 = vld [vmem:[%s9969_s1 + $0x30] sm:$0xff]   ;;  %v8157_v2 = vld [vmem:[%s9969_s1 + $0x28] sm:$0xff]   ;;  %vm2060_vm0 = vcmask 1046528  }
   0xc   : > { %8129 = vmatprep.subr.bf16.mxu1 %v8155_v0  ;;  %7553 = vmatprep.subr.bf16.mxu0 %v8155_v0  ;;  %v8158_v3 = vld [vmem:[%s9969_s1 + $0x20] sm:$0xff]   ;;  %v8159_v6 = vld [vmem:[%s9969_s1 + $0x18] sm:$0xff]   ;;  %v8160_v7 = vld [vmem:[%s9969_s1 + $0x10] sm:$0xff]   ;;  %vm1233_vm1 = vsmask.f32 7424 }
   0xd   : > { %s9986_s16 = smov (!%p203_p3, %s6832_s16), 1  ;;  %8137 = vmatpush3.bf16.msra.mxu1 %v8155_v0  ;;  %7554 = vmatpush3.bf16.msra.mxu0 %v8155_v0  ;;  %v8161_v8 = vld [vmem:[%s9969_s1 + $0x8] sm:$0xff]   ;;  %v8162_v9 = vld [vmem:[%s9969_s1] sm:$0xff]   ;;  %v8165_v10 = vld [vmem:[%s9969_s1 + $0x78] sm:$0xff]  }
   0xe   : > { %8130 = vmatprep.subr.bf16.mxu1 %v8156_v1  ;;  %7555 = vmatprep.subr.bf16.mxu0 %v8156_v1  ;;  %s8145_s23 = smul.u32 228, %s9986_s16  ;;  %v8171_v12 = vld [vmem:[%s9969_s1 + $0xb8] sm:$0xff]   ;;  %v8168_v14 = vld [vmem:[%s9969_s1 + $0x70] sm:$0xff]   ;;  %v8173_v18 = vld [vmem:[%s9969_s1 + $0x68] sm:$0xff]  }
   0xf   : > { %v8177_v17 = vld [vmem:[%s9969_s1 + $0xb0] sm:$0xff]   ;;  %v8181_v21 = vld [vmem:[%s9969_s1 + $0xa8] sm:$0xff]   ;;  %v8178_v23 = vld [vmem:[%s9969_s1 + $0x60] sm:$0xff]   ;;  %s8146_s10 = smul.u32 384, %s9986_s16 }
  0x10   : > { %s8506_s26 = scalar_lea.vmem %s9968_s0, %s8145_s23  ;;  %v8186_v25 = vld [vmem:[%s9969_s1 + $0xa0] sm:$0xff]   ;;  %v8184_v27 = vld [vmem:[%s9969_s1 + $0x58] sm:$0xff]   ;;  %v8188_v31 = vld [vmem:[%s9969_s1 + $0x50] sm:$0xff]  }
  0x11   : > { %8138 = vmatpush3.bf16.msra.mxu1 %v8156_v1  ;;  %7556 = vmatpush3.bf16.msra.mxu0 %v8156_v1  ;;  %v8163_v4 = vld [vmem:[%s8506_s26 + $0x60] sm:$0xff]   ;;  %v8164_v11 = vld [vmem:[%s8506_s26 + $0x68] sm:$0xff]   ;;  %v8169_v15 = vld [vmem:[%s8506_s26 + $0x70] sm:$0xff]   ;;  %s8786_s19 = scalar_lea.vmem %s9971_s3, %s8146_s10  ;;  %s8964_s6 = scalar_lea.vmem %s9972_s4, %s8146_s10 }
  0x12   : > { %8131 = vmatprep.subr.bf16.mxu1 %v8157_v2  ;;  %7557 = vmatprep.subr.bf16.mxu0 %v8157_v2  ;;  %v8166_v5 = vld [vmem:[%s8506_s26] sm:$0xff]   ;;  %v8167_v13 = vld [vmem:[%s8506_s26 + $0x8] sm:$0xff]   ;;  %v8172_v16 = vld [vmem:[%s8506_s26 + $0x10] sm:$0xff]  }
  0x13   : > { %7593 = vmatprep.mubr.bf16.mxu1 %v8163_v4  ;;  %7569 = vmatprep.mubr.bf16.mxu0 %v8166_v5  ;;  %v8170_v19 = vld [vmem:[%s8506_s26 + $0x78] sm:$0xff]   ;;  %v8175_v22 = vld [vmem:[%s8506_s26 + $0x80] sm:$0xff]   ;;  %v8176_v26 = vld [vmem:[%s8506_s26 + $0x88] sm:$0xff]  }
  0x14   : > { %v8174_v20 = vld [vmem:[%s8506_s26 + $0x18] sm:$0xff]   ;;  %v8179_v24 = vld [vmem:[%s8506_s26 + $0x20] sm:$0xff]   ;;  %v8180_v28 = vld [vmem:[%s8506_s26 + $0x28] sm:$0xff]  }
  0x15   : > { %8139 = vmatpush3.bf16.msra.mxu1 %v8157_v2  ;;  %7558 = vmatpush3.bf16.msra.mxu0 %v8157_v2  ;;  %v8182_v29 = vld [vmem:[%s8506_s26 + $0x90] sm:$0xff]   ;;  %v8191_v32 = vld [vmem:[%s9969_s1 + $0x98] sm:$0xff]   ;;  %v8193_v36 = vld [vmem:[%s9969_s1 + $0x48] sm:$0xff]  }
  0x16   : > { %8132 = vmatprep.subr.bf16.mxu1 %v8158_v3  ;;  %7559 = vmatprep.subr.bf16.mxu0 %v8158_v3  ;;  %v8185_v30 = vld [vmem:[%s8506_s26 + $0x30] sm:$0xff]   ;;  %v8183_v34 = vld [vmem:[%s8506_s26 + $0x98] sm:$0xff]   ;;  %v8189_v37 = vld [vmem:[%s8506_s26 + $0xa0] sm:$0xff]  }
  0x17   : > { %v8197_v33 = vld [vmem:[%s9969_s1 + $0x90] sm:$0xff]   ;;  %v8187_v35 = vld [vmem:[%s8506_s26 + $0x38] sm:$0xff]   ;;  %v8192_v38 = vld [vmem:[%s8506_s26 + $0x40] sm:$0xff]  }
  0x18   : > { %v8202_v39 = vld [vmem:[%s8506_s26] sm:$0xff]   ;;  %v8201_v41 = vld [vmem:[%s9969_s1 + $0x88] sm:$0xff]   ;;  %v8593_v46 = vld [vmem:[%s9969_s1 + $0xf8] sm:$0xff]  }
  0x19   : > { %8140 = vmatpush3.bf16.msra.mxu1 %v8158_v3  ;;  %7560 = vmatpush3.bf16.msra.mxu0 %v8158_v3  ;;  %v8198_v40 = vld [vmem:[%s9969_s1 + $0x40] sm:$0xff]   ;;  %v8203_v42 = vld [vmem:[%s8506_s26 + $0x8] sm:$0xff]   ;;  %v1237_v43 = vshll.u32 %v8202_v39, 16  ;;  %v8195_v47 = vld [vmem:[%s8506_s26 + $0xb0] sm:$0xff]   ;;  %v1235_v50 = vshrl.u32 %v8202_v39, 16 }
  0x1a   : > { %8133 = vmatprep.subr.bf16.mxu1 %v8159_v6  ;;  %7561 = vmatprep.subr.bf16.mxu0 %v8159_v6  ;;  %v8190_v44 = vld [vmem:[%s8506_s26 + $0xa8] sm:$0xff]   ;;  %v8199_v48 = vld [vmem:[%s8506_s26 + $0x50] sm:$0xff]   ;;  %v8206_v49 = vld [vmem:[%s9969_s1 + $0x80] sm:$0xff]   ;;  %v1242_v51 = vshll.u32 %v8203_v42, 16  ;;  %v1246_v1 = vshrl.u32 %v8203_v42, 16 }
  0x1b   : > { %v8194_v45 = vld [vmem:[%s8506_s26 + $0x48] sm:$0xff]   ;;  %v1239_v52 = vrot.slane %v1237_v43, 1  ;;  %v8207_v54 = vld [vmem:[%s8506_s26] sm:$0xfe]   ;;  %v8212_v55 = vld [vmem:[%s9969_s1 + $0x138] sm:$0xff]  }
  0x1c   : > { %v8208_v53 = vld [vmem:[%s8506_s26 + $0x8] sm:$0xff]   ;;  %v8204_v56 = vld [vmem:[%s8506_s26 + $0x10] sm:$0xff]   ;;  %v1244_v57 = vrot.slane %v1242_v51, 1  ;;  %v8196_v59 = vld [vmem:[%s8506_s26 + $0xb8] sm:$0xff]   ;;  %v2061_v61 = vrot.slane %v8207_v54, 1 }
  0x1d   : > { %8141 = vmatpush3.bf16.msra.mxu1 %v8159_v6  ;;  %7562 = vmatpush3.bf16.msra.mxu0 %v8159_v6  ;;  %v2062_v58 = vrot.slane %v8208_v53, 1  ;;  %v1240_v60 = vor.u32 %v1239_v52, %v1235_v50  ;;  %v8210_v62 = vld [vmem:[%s8506_s26 + $0x18] sm:$0xff]   ;;  %v1250_v0 = vshll.u32 %v8204_v56, 16  ;;  %v8209_v2 = vld [vmem:[%s8506_s26 + $0x10] sm:$0xff]   ;;  %v1254_v5 = vshrl.u32 %v8204_v56, 16  ;;  %v8222_v51 = vld [vmem:[%s8506_s26 + $0x40] sm:$0xff]  }
  0x1e   : > { %8134 = vmatprep.subr.bf16.mxu1 %v8160_v7  ;;  %7563 = vmatprep.subr.bf16.mxu0 %v8160_v7  ;;  %v8200_v63 = vld [vmem:[%s8506_s26 + $0x58] sm:$0xff]   ;;  %v1258_v6 = vshll.u32 %v8210_v62, 16 }
  0x1f   : > { %v1245_v3 = vsel %vm1233_vm1, %v1240_v60, %v1244_v57  ;;  %v2063_v4 = vsel %vm2060_vm0, %v2061_v61, %v2062_v58  ;;  %v1298_v60 = vshll.u32 %v8222_v51, 16  ;;  %v8244_v61 = vld [vmem:[%s9969_s1 + $0x118] sm:$0xff]  }
  0x21   : > { %8142 = vmatpush3.bf16.msra.mxu1 %v8160_v7  ;;  %7564 = vmatpush3.bf16.msra.mxu0 %v8160_v7  ;;  %v8213_v7 = vld [vmem:[%s8506_s26 + $0x18] sm:$0xff]  }
  0x22   : > { %8135 = vmatprep.subr.bf16.mxu1 %v8161_v8  ;;  %7565 = vmatprep.subr.bf16.mxu0 %v8161_v8 }
  0x25   : > { %8143 = vmatpush3.bf16.msra.mxu1 %v8161_v8  ;;  %7566 = vmatpush3.bf16.msra.mxu0 %v8161_v8  ;;  %v1252_v8 = vrot.slane %v1250_v0, 1  ;;  %v8225_v0 = vld [vmem:[%s8506_s26 + $0x40] sm:$0xff]  }
  0x26   : > { %8136 = vmatprep.subr.bf16.mxu1 %v8162_v9  ;;  %7567 = vmatprep.subr.bf16.mxu0 %v8162_v9 }
  0x29   : > { %8144 = vmatpush3.bf16.msra.mxu1 %v8162_v9  ;;  %7568 = vmatpush3.bf16.msra.mxu0 %v8162_v9  ;;  %v8211_v9 = vld [vmem:[%s8506_s26 + $0x20] sm:$0xff]  }
  0x2a   : > { %7617 = vmatprep.subr.bf16.mxu1 %v8165_v10  ;;  %7681 = vmatprep.subr.bf16.mxu0 %v8171_v12 }
  0x2c   : > { %7594 = vmatmul.mubr.bf16.vlgmr.msra.gmra.mxu1 %v8164_v11  ;;  %7570 = vmatmul.mubr.bf16.vlgmr.msra.gmra.mxu0 %v8167_v13  ;;  %v2064_v11 = vrot.slane %v8209_v2, 1  ;;  %v1256_v13 = vor.u32 %v1254_v5, %v1252_v8  ;;  %v8229_v5 = vld [vmem:[%s8506_s26 + $0x48] sm:$0xff]  }
  0x2d   : > { %7618 = vmatpush3.bf16.msra.mxu1 %v8165_v10  ;;  %7597 = vmatprep.mubr.bf16.mxu1 %v8169_v15  ;;  %v1248_v10 = vor.u32 %v1246_v1, %v1244_v57  ;;  %v2066_v15 = vrot.slane %v8213_v7, 1  ;;  %v8226_v57 = vld [vmem:[%s8506_s26 + $0x48] sm:$0xff]   ;;  %v1302_v1 = vshrl.u32 %v8222_v51, 16  ;;  %v1300_v7 = vrot.slane %v1298_v60, 1  ;;  %v8242_v51 = vld [vmem:[%s8506_s26 + $0x78] sm:$0xff]   ;;  %v8241_v60 = vld [vmem:[%s8506_s26 + $0x70] sm:$0xff]  }
  0x2e   : > { %7619 = vmatprep.subr.bf16.mxu1 %v8168_v14  ;;  %7682 = vmatpush3.bf16.msra.mxu0 %v8171_v12  ;;  %v8216_v12 = vld [vmem:[%s8506_s26 + $0x28] sm:$0xff]  }
  0x2f   : > { %7573 = vmatprep.mubr.bf16.mxu0 %v8172_v16  ;;  %7683 = vmatprep.subr.bf16.mxu0 %v8177_v17  ;;  %v1262_v16 = vshrl.u32 %v8210_v62, 16 }
  0x31   : > { %7620 = vmatpush3.bf16.msra.mxu1 %v8168_v14  ;;  %v1260_v14 = vrot.slane %v1258_v6, 1  ;;  %v8246_v6 = vld [vmem:[%s9969_s1 + $0xd0] sm:$0xff]  }
  0x32   : > { %7621 = vmatprep.subr.bf16.mxu1 %v8173_v18  ;;  %7684 = vmatpush3.bf16.msra.mxu0 %v8177_v17  ;;  %v1266_v17 = vshll.u32 %v8211_v9, 16 }
  0x33   : > { %7685 = vmatprep.subr.bf16.mxu0 %v8181_v21 }
  0x34   : > { %7598 = vmatmul.mubr.bf16.gmra.mxu1 %v8170_v19  ;;  %7574 = vmatmul.mubr.bf16.gmra.mxu0 %v8174_v20  ;;  %v2065_v19 = vsel %vm2060_vm0, %v2062_v58, %v2064_v11  ;;  %v8214_v20 = vld [vmem:[%s9969_s1 + $0xf0] sm:$0xff]  }
  0x35   : > { %7622 = vmatpush3.bf16.msra.mxu1 %v8173_v18  ;;  %7601 = vmatprep.mubr.bf16.mxu1 %v8175_v22  ;;  %v1253_v18 = vsel %vm1233_vm1, %v1248_v10, %v1252_v8  ;;  %v1274_v22 = vshll.u32 %v8216_v12, 16  ;;  %v8227_v8 = vld [vmem:[%s8506_s26 + $0x50] sm:$0xff]   ;;  %v2076_v10 = vrot.slane %v8225_v0, 1 }
  0x36   : > { %7623 = vmatprep.subr.bf16.mxu1 %v8178_v23  ;;  %7577 = vmatprep.mubr.bf16.mxu0 %v8179_v24  ;;  %v1270_v24 = vshrl.u32 %v8211_v9, 16 }
  0x37   : > { %7686 = vmatpush3.bf16.msra.mxu0 %v8181_v21  ;;  %v8215_v21 = vld [vmem:[%s8506_s26 + $0x20] sm:$0xff]  }
  0x38   : > { %7687 = vmatprep.subr.bf16.mxu0 %v8186_v25 }
  0x39   : > { %7624 = vmatpush3.bf16.msra.mxu1 %v8178_v23  ;;  %v1261_v23 = vsel %vm1233_vm1, %v1256_v13, %v1260_v14 }
  0x3a   : > { %7625 = vmatprep.subr.bf16.mxu1 %v8184_v27 }
  0x3b   : > { %7688 = vmatpush3.bf16.msra.mxu0 %v8186_v25  ;;  %v8217_v25 = vld [vmem:[%s8506_s26 + $0x30] sm:$0xff]  }
  0x3c   : > { %7602 = vmatmul.mubr.bf16.gmra.mxu1 %v8176_v26  ;;  %7578 = vmatmul.mubr.bf16.gmra.mxu0 %v8180_v28  ;;  %v8218_v26 = vld [vmem:[%s8506_s26 + $0x28] sm:$0xff]   ;;  %v8220_v28 = vld [vmem:[%s9969_s1 + $0x130] sm:$0xff]   ;;  %v1282_v39 = vshll.u32 %v8217_v25, 16 }
  0x3d   : > { %7605 = vmatprep.mubr.bf16.mxu1 %v8182_v29  ;;  %7626 = vmatpush3.bf16.msra.mxu1 %v8184_v27  ;;  %v2067_v27 = vsel %vm2060_vm0, %v2064_v11, %v2066_v15  ;;  %v1268_v29 = vrot.slane %v1266_v17, 1  ;;  %v8232_v11 = vld [vmem:[%s8506_s26 + $0x58] sm:$0xff]   ;;  %v1314_v17 = vshll.u32 %v8227_v8, 16 }
  0x3e   : > { %7581 = vmatprep.mubr.bf16.mxu0 %v8185_v30  ;;  %7627 = vmatprep.subr.bf16.mxu1 %v8188_v31  ;;  %v8630_v30 = vld [vmem:[%s8506_s26 + $0x38] sm:$0xff]   ;;  %v1284_v50 = vrot.slane %v1282_v39, 1 }
  0x3f   : > { %7689 = vmatprep.subr.bf16.mxu0 %v8191_v32  ;;  %v1294_v58 = vshrl.u32 %v8630_v30, 16 }
  0x40   : > { %7690 = vmatpush3.bf16.msra.mxu0 %v8191_v32  ;;  %v2068_v32 = vrot.slane %v8215_v21, 1  ;;  %v1322_v21 = vshll.u32 %v8232_v11, 16 }
  0x41   : > { %7628 = vmatpush3.bf16.msra.mxu1 %v8188_v31  ;;  %7691 = vmatprep.subr.bf16.mxu0 %v8197_v33  ;;  %v1264_v31 = vor.u32 %v1262_v16, %v1260_v14  ;;  %v2078_v14 = vrot.slane %v8229_v5, 1  ;;  %v1310_v16 = vshrl.u32 %v8226_v57, 16 }
  0x42   : > { %7629 = vmatprep.subr.bf16.mxu1 %v8193_v36  ;;  %v2069_v43 = vsel %vm2060_vm0, %v2066_v15, %v2068_v32  ;;  %v8252_v15 = vld [vmem:[%s9969_s1 + $0x110] sm:$0xff]  }
  0x43   : > { %v1269_v42 = vsel %vm1233_vm1, %v1264_v31, %v1268_v29  ;;  %v1324_v31 = vrot.slane %v1322_v21, 1  ;;  %v8726_v21 = vld [vmem:[%s9969_s1 + $0x1b8] sm:$0xff]  }
  0x44   : > { %7606 = vmatmul.mubr.bf16.gmra.mxu1 %v8183_v34  ;;  %7582 = vmatmul.mubr.bf16.gmra.mxu0 %v8187_v35  ;;  %v1272_v34 = vor.u32 %v1270_v24, %v1268_v29  ;;  %v2070_v35 = vrot.slane %v8218_v26, 1  ;;  %v1318_v24 = vshrl.u32 %v8227_v8, 16  ;;  %v8233_v26 = vld [vmem:[%s8506_s26 + $0x60] sm:$0xff]  }
  0x45   : > { %7609 = vmatprep.mubr.bf16.mxu1 %v8189_v37  ;;  %7585 = vmatprep.mubr.bf16.mxu0 %v8192_v38  ;;  %v8228_v37 = vld [vmem:[%s9969_s1 + $0x128] sm:$0xff]   ;;  %v1278_v38 = vshrl.u32 %v8216_v12, 16  ;;  %v1304_v12 = vor.u32 %v1302_v1, %v1300_v7 }
  0x46   : > { %7630 = vmatpush3.bf16.msra.mxu1 %v8193_v36  ;;  %7692 = vmatpush3.bf16.msra.mxu0 %v8197_v33  ;;  %v1276_v33 = vrot.slane %v1274_v22, 1  ;;  %v8223_v36 = vld [vmem:[%s9969_s1 + $0xe8] sm:$0xff]  }
  0x47   : > { %7631 = vmatprep.subr.bf16.mxu1 %v8198_v40  ;;  %7693 = vmatprep.subr.bf16.mxu0 %v8201_v41 }
  0x48   : > { %v1280_v52 = vor.u32 %v1278_v38, %v1276_v33 }
  0x4a   : > { %7632 = vmatpush3.bf16.msra.mxu1 %v8198_v40  ;;  %7694 = vmatpush3.bf16.msra.mxu0 %v8201_v41  ;;  %v8219_v40 = vld [vmem:[%s8506_s26 + $0x30] sm:$0xff]   ;;  %v1290_v41 = vshll.u32 %v8630_v30, 16  ;;  %v1285_v62 = vsel %vm1233_vm1, %v1280_v52, %v1284_v50 }
  0x4b   : > { %7745 = vmatprep.subr.bf16.mxu1 %v8593_v46  ;;  %7695 = vmatprep.subr.bf16.mxu0 %v8206_v49  ;;  %v2072_v53 = vrot.slane %v8219_v40, 1  ;;  %v8235_v40 = vld [vmem:[%s8506_s26 + $0x60] sm:$0xff]  }
  0x4c   : > { %7610 = vmatmul.mubr.bf16.gmra.mxu1 %v8190_v44  ;;  %7586 = vmatmul.mubr.bf16.gmra.mxu0 %v8194_v45  ;;  %v1277_v44 = vsel %vm1233_vm1, %v1272_v34, %v1276_v33  ;;  %v2071_v45 = vsel %vm2060_vm0, %v2068_v32, %v2070_v35  ;;  %v1292_v54 = vrot.slane %v1290_v41, 1  ;;  %v8237_v34 = vld [vmem:[%s8506_s26 + $0x68] sm:$0xff]   ;;  %v1334_v41 = vshrl.u32 %v8233_v26, 16 }
  0x4d   : > { %7613 = vmatprep.mubr.bf16.mxu1 %v8195_v47  ;;  %7589 = vmatprep.mubr.bf16.mxu0 %v8199_v48  ;;  %v8224_v47 = vld [vmem:[%s8506_s26 + $0x38] sm:$0xff]   ;;  %v8230_v48 = vld [vmem:[%s9969_s1 + $0xe0] sm:$0xff]  }
  0x4e   : > { %7696 = vmatpush3.bf16.msra.mxu0 %v8206_v49  ;;  %v8236_v49 = vld [vmem:[%s9969_s1 + $0x120] sm:$0xff]   ;;  %v2074_v56 = vrot.slane %v8224_v47, 1  ;;  %v1296_v9 = vor.u32 %v1294_v58, %v1292_v54 }
  0x4f   : > { %7809 = vmatprep.subr.bf16.mxu0 %v8212_v55 }
  0x54   : > { %7614 = vmatmul.mubr.bf16.gmra.mxu1 %v8196_v59  ;;  %7590 = vmatmul.mubr.bf16.gmra.mxu0 %v8200_v63  ;;  %v8239_v59 = vld [vmem:[%s9969_s1 + $0xd8] sm:$0xff]   ;;  %v2073_v63 = vsel %vm2060_vm0, %v2070_v35, %v2072_v53  ;;  %v1326_v35 = vshrl.u32 %v8232_v11, 16  ;;  %v1358_v11 = vshrl.u32 %v8242_v51, 16 }
  0x55   : > { %7633 = vmatprep.mubr.bf16.mxu1 %v1245_v3  ;;  %7697 = vmatprep.mubr.bf16.mxu0 %v2063_v4  ;;  %v2075_v3 = vsel %vm2060_vm0, %v2072_v53, %v2074_v56  ;;  %v1306_v4 = vshll.u32 %v8226_v57, 16 }
  0x57   : > { %v1308_v13 = vrot.slane %v1306_v4, 1  ;;  %v8248_v4 = vld [vmem:[%s8506_s26 + $0x88] sm:$0xff]  }
  0x59   : > { %v1309_v22 = vsel %vm1233_vm1, %v1304_v12, %v1308_v13  ;;  %v1312_v29 = vor.u32 %v1310_v16, %v1308_v13  ;;  %v1370_v16 = vshll.u32 %v8248_v4, 16 }
  0x5c   : > { %7634 = vmatmul.mubr.bf16.vlgmr.msra.gmra.mxu1 %v1253_v18  ;;  %7698 = vmatmul.mubr.bf16.vlgmr.msra.gmra.mxu0 %v2065_v19  ;;  %v1301_v18 = vsel %vm1233_vm1, %v1296_v9, %v1300_v7  ;;  %v2077_v19 = vsel %vm2060_vm0, %v2074_v56, %v2076_v10  ;;  %v1342_v56 = vshrl.u32 %v8237_v34, 16  ;;  %v8714_v7 = vld [vmem:[%s9969_s1 + $0x178] sm:$0xff]  }
  0x5d   : > { %7746 = vmatpush3.bf16.msra.mxu1 %v8593_v46  ;;  %7637 = vmatprep.mubr.bf16.mxu1 %v1261_v23  ;;  %v1286_v46 = vshrl.u32 %v8217_v25, 16  ;;  %v2079_v23 = vsel %vm2060_vm0, %v2076_v10, %v2078_v14  ;;  %v8234_v25 = vld [vmem:[%s8506_s26 + $0x58] sm:$0xff]  }
  0x5e   : > { %7810 = vmatpush3.bf16.msra.mxu0 %v8212_v55  ;;  %7701 = vmatprep.mubr.bf16.mxu0 %v2067_v27  ;;  %v1316_v27 = vrot.slane %v1314_v17, 1  ;;  %v2082_v33 = vrot.slane %v8234_v25, 1 }
  0x5f   : > { %7747 = vmatprep.subr.bf16.mxu1 %v8214_v20  ;;  %7811 = vmatprep.subr.bf16.mxu0 %v8220_v28  ;;  %v1288_v55 = vor.u32 %v1286_v46, %v1284_v50  ;;  %v8262_v46 = vld [vmem:[%s9969_s1 + $0xc0] sm:$0xff]   ;;  %v2084_v50 = vrot.slane %v8235_v40, 1 }
  0x60   : > { %v1320_v32 = vor.u32 %v1318_v24, %v1316_v27  ;;  %v1317_v38 = vsel %vm1233_vm1, %v1312_v29, %v1316_v27  ;;  %v8253_v29 = vld [vmem:[%s8506_s26 + $0x98] sm:$0xff]  }
  0x61   : > { %7748 = vmatpush3.bf16.msra.mxu1 %v8214_v20  ;;  %v1293_v2 = vsel %vm1233_vm1, %v1288_v55, %v1292_v54  ;;  %v8231_v20 = vld [vmem:[%s8506_s26 + $0x50] sm:$0xff]   ;;  %v8268_v55 = vld [vmem:[%s9969_s1 + $0x100] sm:$0xff]  }
  0x62   : > { %7812 = vmatpush3.bf16.msra.mxu0 %v8220_v28  ;;  %7749 = vmatprep.subr.bf16.mxu1 %v8223_v36  ;;  %v8255_v28 = vld [vmem:[%s9969_s1 + $0xc8] sm:$0xff]   ;;  %v2080_v30 = vrot.slane %v8231_v20, 1 }
  0x63   : > { %7813 = vmatprep.subr.bf16.mxu0 %v8228_v37  ;;  %v8250_v20 = vld [vmem:[%s8506_s26 + $0x88] sm:$0xff]  }
  0x64   : > { %7638 = vmatmul.mubr.bf16.gmra.mxu1 %v1269_v42  ;;  %7702 = vmatmul.mubr.bf16.gmra.mxu0 %v2069_v43  ;;  %v2081_v39 = vsel %vm2060_vm0, %v2078_v14, %v2080_v30  ;;  %v1325_v42 = vsel %vm1233_vm1, %v1320_v32, %v1324_v31  ;;  %v2083_v43 = vsel %vm2060_vm0, %v2080_v30, %v2082_v33  ;;  %v1374_v30 = vshrl.u32 %v8248_v4, 16  ;;  %v8263_v4 = vld [vmem:[%s8506_s26 + $0xb0] sm:$0xff]  }
  0x65   : > { %7641 = vmatprep.mubr.bf16.mxu1 %v1277_v44  ;;  %7705 = vmatprep.mubr.bf16.mxu0 %v2071_v45  ;;  %v1338_v44 = vshll.u32 %v8237_v34, 16  ;;  %v8240_v45 = vld [vmem:[%s8506_s26 + $0x68] sm:$0xff]   ;;  %v8251_v34 = vld [vmem:[%s8506_s26 + $0x90] sm:$0xff]  }
  0x66   : > { %7750 = vmatpush3.bf16.msra.mxu1 %v8223_v36  ;;  %7814 = vmatpush3.bf16.msra.mxu0 %v8228_v37  ;;  %v1330_v36 = vshll.u32 %v8233_v26, 16  ;;  %v8260_v37 = vld [vmem:[%s9969_s1 + $0x108] sm:$0xff]   ;;  %v2086_v54 = vrot.slane %v8240_v45, 1  ;;  %v1372_v26 = vrot.slane %v1370_v16, 1 }
  0x67   : > { %7751 = vmatprep.subr.bf16.mxu1 %v8230_v48  ;;  %7815 = vmatprep.subr.bf16.mxu0 %v8236_v49  ;;  %v1340_v53 = vrot.slane %v1338_v44, 1  ;;  %v8258_v44 = vld [vmem:[%s8506_s26 + $0xa8] sm:$0xff]  }
  0x68   : > { %v1332_v47 = vrot.slane %v1330_v36, 1  ;;  %v2087_v1 = vsel %vm2060_vm0, %v2084_v50, %v2086_v54 }
  0x69   : > { %v1344_v5 = vor.u32 %v1342_v56, %v1340_v53 }
  0x6a   : > { %7752 = vmatpush3.bf16.msra.mxu1 %v8230_v48  ;;  %7816 = vmatpush3.bf16.msra.mxu0 %v8236_v49  ;;  %v8238_v48 = vld [vmem:[%s8506_s26 + $0x70] sm:$0xff]   ;;  %v1328_v49 = vor.u32 %v1326_v35, %v1324_v31  ;;  %v1336_v52 = vor.u32 %v1334_v41, %v1332_v47  ;;  %v8254_v41 = vld [vmem:[%s8506_s26 + $0xa0] sm:$0xff]  }
  0x6b   : > { %7753 = vmatprep.subr.bf16.mxu1 %v8239_v59  ;;  %7817 = vmatprep.subr.bf16.mxu0 %v8244_v61  ;;  %v1346_v57 = vshll.u32 %v8238_v48, 16  ;;  %v1398_v56 = vshrl.u32 %v8254_v41, 16 }
  0x6c   : > { %7642 = vmatmul.mubr.bf16.gmra.mxu1 %v1285_v62  ;;  %7706 = vmatmul.mubr.bf16.gmra.mxu0 %v2073_v63  ;;  %v1333_v58 = vsel %vm1233_vm1, %v1328_v49, %v1332_v47  ;;  %v1354_v62 = vshll.u32 %v8242_v51, 16  ;;  %v8245_v63 = vld [vmem:[%s8506_s26 + $0x78] sm:$0xff]   ;;  %v1341_v0 = vsel %vm1233_vm1, %v1336_v52, %v1340_v53  ;;  %v1394_v49 = vshll.u32 %v8254_v41, 16  ;;  %v8257_v52 = vld [vmem:[%s8506_s26 + $0xa0] sm:$0xff]   ;;  %v8269_v41 = vld [vmem:[%s8506_s26 + $0xc] sm:$0xff]  }
  0x6d   : > { %7645 = vmatprep.mubr.bf16.mxu1 %v1293_v2  ;;  %7709 = vmatprep.mubr.bf16.mxu0 %v2075_v3  ;;  %v8243_v2 = vld [vmem:[%s8506_s26 + $0x80] sm:$0xff]   ;;  %v1348_v3 = vrot.slane %v1346_v57, 1  ;;  %v2090_v10 = vrot.slane %v8245_v63, 1  ;;  %v1402_v53 = vshll.u32 %v8258_v44, 16  ;;  %v8261_v57 = vld [vmem:[%s8506_s26 + $0xa8] sm:$0xff]  }
  0x6e   : > { %7754 = vmatpush3.bf16.msra.mxu1 %v8239_v59  ;;  %7818 = vmatpush3.bf16.msra.mxu0 %v8244_v61  ;;  %v2085_v59 = vsel %vm2060_vm0, %v2082_v33, %v2084_v50  ;;  %v1350_v61 = vshrl.u32 %v8238_v48, 16  ;;  %v1356_v9 = vrot.slane %v1354_v62, 1  ;;  %v1362_v12 = vshll.u32 %v8243_v2, 16 }
  0x6f   : > { %7755 = vmatprep.subr.bf16.mxu1 %v8246_v6  ;;  %7819 = vmatprep.subr.bf16.mxu0 %v8252_v15  ;;  %v1349_v13 = vsel %vm1233_vm1, %v1344_v5, %v1348_v3  ;;  %v1390_v48 = vshrl.u32 %v8253_v29, 16  ;;  %v1404_v62 = vrot.slane %v1402_v53, 1 }
  0x70   : > { %v1352_v8 = vor.u32 %v1350_v61, %v1348_v3  ;;  %v1360_v24 = vor.u32 %v1358_v11, %v1356_v9  ;;  %v2100_v61 = vrot.slane %v8257_v52, 1  ;;  %v8283_v52 = vld [vmem:[%s8506_s26 + $0x34] sm:$0xff]  }
  0x72   : > { %7756 = vmatpush3.bf16.msra.mxu1 %v8246_v6  ;;  %7820 = vmatpush3.bf16.msra.mxu0 %v8252_v15  ;;  %v2088_v6 = vrot.slane %v8241_v60, 1  ;;  %v8247_v15 = vld [vmem:[%s8506_s26 + $0x80] sm:$0xff]   ;;  %v1357_v17 = vsel %vm1233_vm1, %v1352_v8, %v1356_v9  ;;  %v8266_v9 = vld [vmem:[%s8506_s26 + $0xb8] sm:$0xff]  }
  0x73   : > { %7757 = vmatprep.subr.bf16.mxu1 %v8255_v28  ;;  %7821 = vmatprep.subr.bf16.mxu0 %v8260_v37  ;;  %v2092_v25 = vrot.slane %v8247_v15, 1  ;;  %v8265_v15 = vld [vmem:[%s8506_s26 + $0xc0] ss:$0 sps:$4 sm:$0x11]  }
  0x74   : > { %7646 = vmatmul.mubr.bf16.gmra.mxu1 %v1301_v18  ;;  %7710 = vmatmul.mubr.bf16.gmra.mxu0 %v2077_v19  ;;  %v2089_v14 = vsel %vm2060_vm0, %v2086_v54, %v2088_v6  ;;  %v2091_v18 = vsel %vm2060_vm0, %v2088_v6, %v2090_v10  ;;  %v1366_v19 = vshrl.u32 %v8243_v2, 16  ;;  %v1406_v2 = vshrl.u32 %v8258_v44, 16 }
  0x75   : > { %7649 = vmatprep.mubr.bf16.mxu1 %v1309_v22  ;;  %7713 = vmatprep.mubr.bf16.mxu0 %v2079_v23  ;;  %v1364_v22 = vrot.slane %v1362_v12, 1  ;;  %v8249_v23 = vld [vmem:[%s8506_s26 + $0x90] sm:$0xff]   ;;  %v2093_v33 = vsel %vm2060_vm0, %v2090_v10, %v2092_v25 }
  0x76   : > { %7758 = vmatpush3.bf16.msra.mxu1 %v8255_v28  ;;  %7822 = vmatpush3.bf16.msra.mxu0 %v8260_v37  ;;  %v2094_v28 = vrot.slane %v8250_v20, 1  ;;  %v1378_v31 = vshll.u32 %v8249_v23, 16  ;;  %v1382_v35 = vshrl.u32 %v8249_v23, 16  ;;  %v1408_v16 = vor.u32 %v1406_v2, %v1404_v62 }
  0x77   : > { %7759 = vmatprep.subr.bf16.mxu1 %v8262_v46  ;;  %7823 = vmatprep.subr.bf16.mxu0 %v8268_v55  ;;  %v1368_v27 = vor.u32 %v1366_v19, %v1364_v22  ;;  %v1365_v32 = vsel %vm1233_vm1, %v1360_v24, %v1364_v22  ;;  %v2106_v20 = vrot.slane %v8266_v9, 1  ;;  %v8273_v22 = vld [vmem:[%s8506_s26 + $0x14] sm:$0xff]  }
  0x78   : > { %v2095_v37 = vsel %vm2060_vm0, %v2092_v25, %v2094_v28  ;;  %v1380_v40 = vrot.slane %v1378_v31, 1  ;;  %v8267_v25 = vld [vmem:[%s8506_s26 + $0xc0] ss:$0 sps:$4 sm:$0x11]   ;;  %v3378_v44 = vshrl.u32 %v8273_v22, 16 }
  0x79   : > { %v1373_v36 = vsel %vm1233_vm1, %v1368_v27, %v1372_v26 }
  0x7a   : > { %7760 = vmatpush3.bf16.msra.mxu1 %v8262_v46  ;;  %7824 = vmatpush3.bf16.msra.mxu0 %v8268_v55  ;;  %v1384_v45 = vor.u32 %v1382_v35, %v1380_v40 }
  0x7b   : > { %7873 = vmatprep.subr.bf16.mxu1 %v8714_v7  ;;  %7937 = vmatprep.subr.bf16.mxu0 %v8726_v21 }
  0x7c   : > { %7650 = vmatmul.mubr.bf16.gmra.mxu1 %v1317_v38  ;;  %7714 = vmatmul.mubr.bf16.gmra.mxu0 %v2081_v39  ;;  %v1386_v38 = vshll.u32 %v8253_v29, 16  ;;  %v8256_v39 = vld [vmem:[%s8506_s26 + $0x98] sm:$0xff]  }
  0x7d   : > { %7653 = vmatprep.mubr.bf16.mxu1 %v1325_v42  ;;  %7717 = vmatprep.mubr.bf16.mxu0 %v2083_v43  ;;  %v1376_v42 = vor.u32 %v1374_v30, %v1372_v26  ;;  %v2096_v43 = vrot.slane %v8251_v34, 1  ;;  %v2098_v47 = vrot.slane %v8256_v39, 1 }
  0x7e   : > { %v1388_v46 = vrot.slane %v1386_v38, 1 }
  0x7f   : > { %v1381_v50 = vsel %vm1233_vm1, %v1376_v42, %v1380_v40  ;;  %v2097_v51 = vsel %vm2060_vm0, %v2094_v28, %v2096_v43  ;;  %v2099_v55 = vsel %vm2060_vm0, %v2096_v43, %v2098_v47  ;;  %v2101_v6 = vsel %vm2060_vm0, %v2098_v47, %v2100_v61  ;;  %v8278_v40 = vld [vmem:[%s8506_s26 + $0x24] sm:$0xff]  }
  0x80   : > { %v1389_v54 = vsel %vm1233_vm1, %v1384_v45, %v1388_v46  ;;  %v1392_v60 = vor.u32 %v1390_v48, %v1388_v46  ;;  %v1426_v28 = vshll.u32 %v8265_v15, 16  ;;  %v3390_v48 = vshll.u32 %v8278_v40, 16  ;;  %v236_v15 = vld [vmem:[%s8786_s19 + $0x48] sm:$0xff] }
  0x82   : > { %v1428_v35 = vrot.slane %v1426_v28, 1 }
  0x84   : > { %7654 = vmatmul.mubr.bf16.gmra.mxu1 %v1333_v58  ;;  %7718 = vmatmul.mubr.bf16.gmra.mxu0 %v2085_v59  ;;  %v1396_v58 = vrot.slane %v1394_v49, 1  ;;  %v8259_v59 = vld [vmem:[%s8506_s26 + $0xb0] sm:$0xff]  }
  0x85   : > { %7657 = vmatprep.mubr.bf16.mxu1 %v1341_v0  ;;  %7721 = vmatprep.mubr.bf16.mxu0 %v2087_v1  ;;  %v2102_v0 = vrot.slane %v8261_v57, 1  ;;  %v8264_v1 = vld [vmem:[%s8506_s26 + $0xb8] sm:$0xff]   ;;  %v1410_v3 = vshll.u32 %v8259_v59, 16  ;;  %v1414_v8 = vshrl.u32 %v8259_v59, 16  ;;  %v8280_v49 = vld [vmem:[%s8506_s26 + $0x2c] sm:$0xff]   ;;  %v3394_v59 = vshrl.u32 %v8278_v40, 16 }
  0x86   : > { %v1400_v63 = vor.u32 %v1398_v56, %v1396_v58  ;;  %v1397_v5 = vsel %vm1233_vm1, %v1392_v60, %v1396_v58  ;;  %v1418_v12 = vshll.u32 %v8264_v1, 16  ;;  %v1422_v24 = vshrl.u32 %v8264_v1, 16  ;;  %v8275_v58 = vld [vmem:[%s8506_s26 + $0x1c] sm:$0xff]   ;;  %v8279_v60 = vld [vmem:[%s9969_s1 + $0x170] sm:$0xff]  }
  0x87   : > { %v2103_v11 = vsel %vm2060_vm0, %v2100_v61, %v2102_v0  ;;  %v3398_v56 = vshll.u32 %v8280_v49, 16  ;;  %v3402_v61 = vshrl.u32 %v8280_v49, 16  ;;  %v8285_v1 = vld [vmem:[%s9969_s1 + $0x1b0] sm:$0xff]  }
  0x88   : > { %v1405_v10 = vsel %vm1233_vm1, %v1400_v63, %v1404_v62  ;;  %v1420_v19 = vrot.slane %v1418_v12, 1  ;;  %v3406_v62 = vshll.u32 %v8283_v52, 16  ;;  %v8284_v63 = vld [vmem:[%s8506_s26 + $0x3c] sm:$0xff]   ;;  %v8276_v12 = vld [vmem:[%s8506_s26 + $0x24] sm:$0xff]   ;;  %v8282_v40 = vld [vmem:[%s8506_s26 + $0x34] sm:$0xff]  }
  0x89   : > { %v3400_v2 = vrot.slane %v3398_v56, 1  ;;  %v243_v56 = vld [vmem:[%s8786_s19 + $0x80] sm:$0xff] }
  0x8a   : > { %v1424_v34 = vor.u32 %v1422_v24, %v1420_v19  ;;  %v241_v24 = vld [vmem:[%s8786_s19 + $0x70] sm:$0xff] }
  0x8b   : > { %v3404_v9 = vor.u32 %v3402_v61, %v3400_v2  ;;  %v8875_v61 = vld [vmem:[%s8506_s26 + $0x64] sm:$0xff]  }
  0x8c   : > { %7658 = vmatmul.mubr.bf16.gmra.mxu1 %v1349_v13  ;;  %7722 = vmatmul.mubr.bf16.gmra.mxu0 %v2089_v14  ;;  %v8272_v13 = vld [vmem:[%s8506_s26 + $0xc] sm:$0xff]   ;;  %v1412_v14 = vrot.slane %v1410_v3, 1  ;;  %v1429_v42 = vsel %vm1233_vm1, %v1424_v34, %v1428_v35  ;;  %v8791_v3 = vld [vmem:[%s9970_s2] ss:$0 sm:$0xff] }
  0x8d   : > { %7661 = vmatprep.mubr.bf16.mxu1 %v1357_v17  ;;  %7725 = vmatprep.mubr.bf16.mxu0 %v2091_v18  ;;  %v2104_v17 = vrot.slane %v8263_v4, 1  ;;  %v3369_v23 = vshll.u32 %v8272_v13, 16  ;;  %v3367_v29 = vshrl.u32 %v8272_v13, 16  ;;  %v235_v4 = vld [vmem:[%s8786_s19 + $0x40] sm:$0xff]  ;;  %v3414_v13 = vshll.u32 %v8284_v63, 16 }
  0x8e   : > { %v1416_v18 = vor.u32 %v1414_v8, %v1412_v14  ;;  %v1413_v26 = vsel %vm1233_vm1, %v1408_v16, %v1412_v14  ;;  %v8799_v8 = vadd.f32 %v8791_v3, %v235_v4  ;;  %v238_v14 = vld [vmem:[%s8786_s19 + $0x58] sm:$0xff] }
  0x8f   : > { %v2105_v27 = vsel %vm2060_vm0, %v2102_v0, %v2104_v17  ;;  %v2107_v31 = vsel %vm2060_vm0, %v2104_v17, %v2106_v20  ;;  %v3410_v17 = vshrl.u32 %v8283_v52, 16  ;;  %v3416_v28 = vrot.slane %v3414_v13, 1  ;;  %v245_v52 = vld [vmem:[%s8786_s19 + $0x90] sm:$0xff] }
  0x90   : > { %v1421_v30 = vsel %vm1233_vm1, %v1416_v18, %v1420_v19  ;;  %v8814_v18 = vadd.f32 %v8791_v3, %v238_v14  ;;  %v8817_v19 = vadd.f32 %v8791_v3, %v236_v15  ;;  %v3454_v14 = vshll.u32 %v8875_v61, 16  ;;  %v8300_v15 = vld [vmem:[%s8506_s26 + $0x6c] sm:$0xff]  }
  0x94   : > { %7662 = vmatmul.mubr.bf16.gmra.mxu1 %v1365_v32  ;;  %7726 = vmatmul.mubr.bf16.gmra.mxu0 %v2093_v33  ;;  %v3371_v32 = vrot.slane %v3369_v23, 1  ;;  %v3374_v33 = vshll.u32 %v8273_v22, 16  ;;  %v3418_v22 = vshrl.u32 %v8284_v63, 16  ;;  %v8325_v63 = vld [vmem:[%s9969_s1 + $0x188] sm:$0xff]  }
  0x95   : > { %7665 = vmatprep.mubr.bf16.mxu1 %v1373_v36  ;;  %7729 = vmatprep.mubr.bf16.mxu0 %v2095_v37  ;;  %v2108_v36 = vrot.slane %v8267_v25, 1  ;;  %v8274_v37 = vld [vmem:[%s8506_s26 + $0x1c] sm:$0xff]  }
  0x96   : > { %v3372_v38 = vor.u32 %v3371_v32, %v3367_v29  ;;  %v3376_v39 = vrot.slane %v3374_v33, 1  ;;  %v3382_v45 = vshll.u32 %v8274_v37, 16  ;;  %v3386_v47 = vshrl.u32 %v8274_v37, 16  ;;  %v8295_v25 = vld [vmem:[%s9969_s1 + $0x160] sm:$0xff]   ;;  %v8290_v29 = vld [vmem:[%s8506_s26 + $0x4c] sm:$0xff]   ;;  %v8834_v32 = vld [vmem:[%s8506_s26 + $0x54] sm:$0xff]  }
  0x97   : > { %v2109_v43 = vsel %vm2060_vm0, %v2106_v20, %v2108_v36  ;;  %v3420_v34 = vor.u32 %v3418_v22, %v3416_v28  ;;  %v8304_v36 = vld [vmem:[%s9969_s1 + $0x158] sm:$0xff]   ;;  %v247_v22 = vld [vmem:[%s8786_s19 + $0xa0] sm:$0xff] }
  0x98   : > { %v3377_v46 = vsel %vm1233_vm1, %v3372_v38, %v3376_v39  ;;  %v242_v37 = vld [vmem:[%s8786_s19 + $0x78] sm:$0xff] }
  0x99   : > { %v8309_v38 = vld [vmem:[%s9969_s1 + $0x198] sm:$0xff]  }
  0x9c   : > { %7666 = vmatmul.mubr.bf16.gmra.mxu1 %v1381_v50  ;;  %7730 = vmatmul.mubr.bf16.gmra.mxu0 %v2097_v51  ;;  %v3380_v50 = vor.u32 %v3378_v44, %v3376_v39  ;;  %v3384_v51 = vrot.slane %v3382_v45, 1  ;;  %v8847_v39 = vadd.f32 %v8791_v3, %v242_v37  ;;  %v240_v44 = vld [vmem:[%s8786_s19 + $0x68] sm:$0xff] }
  0x9d   : > { %7669 = vmatprep.mubr.bf16.mxu1 %v1389_v54  ;;  %7733 = vmatprep.mubr.bf16.mxu0 %v2099_v55  ;;  %v3392_v54 = vrot.slane %v3390_v48, 1  ;;  %v8270_v55 = vld [vmem:[%s8506_s26 + $0x14] sm:$0xff]   ;;  %v8858_v48 = vadd.f32 %v8791_v3, %v240_v44  ;;  %v248_v37 = vld [vmem:[%s8786_s19 + $0xa8] sm:$0xff] }
  0x9e   : > { %v3388_v53 = vor.u32 %v3386_v47, %v3384_v51  ;;  %v3385_v57 = vsel %vm1233_vm1, %v3380_v50, %v3384_v51  ;;  %v8311_v47 = vld [vmem:[%s9969_s1 + $0x150] sm:$0xff]   ;;  %v3438_v50 = vshll.u32 %v8834_v32, 16 }
  0x9f   : > { %v8317_v51 = vld [vmem:[%s9969_s1 + $0x190] sm:$0xff]  }
  0xa0   : > { %v3393_v0 = vsel %vm1233_vm1, %v3388_v53, %v3392_v54 }
  0xa4   : > { %7670 = vmatmul.mubr.bf16.gmra.mxu1 %v1397_v5  ;;  %7734 = vmatmul.mubr.bf16.gmra.mxu0 %v2101_v6  ;;  %v3396_v5 = vor.u32 %v3394_v59, %v3392_v54  ;;  %v8288_v6 = vld [vmem:[%s9969_s1 + $0x168] sm:$0xff]   ;;  %v8296_v54 = vld [vmem:[%s8506_s26 + $0x5c] sm:$0xff]  }
  0xa5   : > { %7673 = vmatprep.mubr.bf16.mxu1 %v1405_v10  ;;  %7737 = vmatprep.mubr.bf16.mxu0 %v2103_v11  ;;  %v3408_v10 = vrot.slane %v3406_v62, 1  ;;  %v8803_v11 = vld [vmem:[%s8506_s26 + $0x44] sm:$0xff]   ;;  %v3450_v13 = vshrl.u32 %v8296_v54, 16 }
  0xa6   : > { %v3401_v16 = vsel %vm1233_vm1, %v3396_v5, %v3400_v2  ;;  %v3422_v23 = vshll.u32 %v8803_v11, 16  ;;  %v8320_v62 = vld [vmem:[%s9969_s1 + $0x148] sm:$0xff]   ;;  %v3446_v2 = vshll.u32 %v8296_v54, 16 }
  0xa7   : > { %v3409_v20 = vsel %vm1233_vm1, %v3404_v9, %v3408_v10  ;;  %v244_v5 = vld [vmem:[%s8786_s19 + $0x88] sm:$0xff] }
  0xa8   : > { %v3424_v35 = vrot.slane %v3422_v23, 1  ;;  %v8291_v9 = vld [vmem:[%s8506_s26 + $0x4c] sm:$0xff]  }
  0xaa   : > { %v3425_v49 = vsel %vm1233_vm1, %v3420_v34, %v3424_v35 }
  0xac   : > { %7674 = vmatmul.mubr.bf16.gmra.mxu1 %v1413_v26  ;;  %7738 = vmatmul.mubr.bf16.gmra.mxu0 %v2105_v27  ;;  %v8301_v26 = vld [vmem:[%s9969_s1 + $0x1a0] sm:$0xff]   ;;  %v8829_v27 = vadd.f32 %v8791_v3, %v241_v24  ;;  %v8910_v24 = vadd.f32 %v8791_v3, %v247_v22 }
  0xad   : > { %7677 = vmatprep.mubr.bf16.mxu1 %v1421_v30  ;;  %7741 = vmatprep.mubr.bf16.mxu0 %v2107_v31  ;;  %v239_v30 = vld [vmem:[%s8786_s19 + $0x60] sm:$0xff]  ;;  %v3412_v31 = vor.u32 %v3410_v17, %v3408_v10  ;;  %v3442_v10 = vshrl.u32 %v8834_v32, 16  ;;  %v3448_v17 = vrot.slane %v3446_v2, 1  ;;  %v3462_v32 = vshll.u32 %v8300_v15, 16  ;;  %v8303_v2 = vld [vmem:[%s8506_s26 + $0x74] sm:$0xff]  }
  0xae   : > { %v8837_v33 = vadd.f32 %v8791_v3, %v239_v30  ;;  %v8917_v30 = vld [vmem:[%s9969_s1 + $0x1f8] sm:$0xff]  }
  0xaf   : > { %v3417_v45 = vsel %vm1233_vm1, %v3412_v31, %v3416_v28  ;;  %v3456_v28 = vrot.slane %v3454_v14, 1  ;;  %v8297_v31 = vld [vmem:[%s8506_s26 + $0x5c] sm:$0xff]   ;;  %v3464_v44 = vrot.slane %v3462_v32, 1 }
  0xb4   : > { %7678 = vmatmul.mubr.bf16.gmra.mxu1 %v1429_v42  ;;  %7742 = vmatmul.mubr.bf16.gmra.mxu0 %v2109_v43  ;;  %v3426_v42 = vshrl.u32 %v8803_v11, 16  ;;  %v3430_v43 = vshll.u32 %v8290_v29, 16  ;;  %v8893_v11 = vadd.f32 %v8791_v3, %v244_v5 }
  0xb5   : > { %7761 = vmatprep.mubr.bf16.mxu1 %v8269_v41  ;;  %7825 = vmatprep.mubr.bf16.mxu0 %v3377_v46  ;;  %v8286_v41 = vld [vmem:[%s8506_s26 + $0x3c] sm:$0xff]   ;;  %v3434_v46 = vshrl.u32 %v8290_v29, 16  ;;  %v8305_v29 = vld [vmem:[%s8506_s26 + $0x74] sm:$0xff]  }
  0xb6   : > { %v3432_v53 = vrot.slane %v3430_v43, 1  ;;  %v8930_v43 = vadd.f32 %v8791_v3, %v248_v37 }
  0xb8   : > { %v3436_v59 = vor.u32 %v3434_v46, %v3432_v53  ;;  %9974 = vst [vmem:[#allocation3_spill] sm:$0xff] %v8930_v43  ;;  %v231_v43 = vld [vmem:[%s8786_s19 + $0x20] sm:$0xff] }
  0xbc   : > { %7762 = vmatmul.mubr.bf16.vlgmr.msra.gmra.mxu1 %v8270_v55  ;;  %7826 = vmatmul.mubr.bf16.vlgmr.msra.gmra.mxu0 %v3385_v57  ;;  %v8868_v55 = vadd.f32 %v8791_v3, %v245_v52  ;;  %v3428_v57 = vor.u32 %v3426_v42, %v3424_v35  ;;  %v3458_v35 = vshrl.u32 %v8875_v61, 16  ;;  %v8298_v52 = vld [vmem:[%s8506_s26 + $0x64] sm:$0xff]  }
  0xbd   : > { %7874 = vmatpush3.bf16.msra.mxu1 %v8714_v7  ;;  %7765 = vmatprep.mubr.bf16.mxu1 %v8275_v58  ;;  %v8293_v7 = vld [vmem:[%s9969_s1 + $0x1a8] sm:$0xff]   ;;  %v8872_v58 = vadd.f32 %v8791_v3, %v243_v56 }
  0xbe   : > { %7938 = vmatpush3.bf16.msra.mxu0 %v8726_v21  ;;  %7829 = vmatprep.mubr.bf16.mxu0 %v3393_v0  ;;  %v8281_v21 = vld [vmem:[%s8506_s26 + $0x2c] sm:$0xff]   ;;  %v246_v0 = vld [vmem:[%s8786_s19 + $0x98] sm:$0xff]  ;;  %v3460_v46 = vor.u32 %v3458_v35, %v3456_v28 }
  0xbf   : > { %7875 = vmatprep.subr.bf16.mxu1 %v8279_v60  ;;  %7939 = vmatprep.subr.bf16.mxu0 %v8285_v1  ;;  %v8886_v4 = vadd.f32 %v8791_v3, %v246_v0  ;;  %v8302_v56 = vld [vmem:[%s8506_s26 + $0x6c] sm:$0xff]  }
  0xc0   : > { %v3465_v54 = vsel %vm1233_vm1, %v3460_v46, %v3464_v44  ;;  %v253_v0 = vld [vmem:[%s8786_s19 + $0xd0] sm:$0xff] }
  0xc1   : > { %7876 = vmatpush3.bf16.msra.mxu1 %v8279_v60  ;;  %v3440_v60 = vrot.slane %v3438_v50, 1  ;;  %v257_v35 = vld [vmem:[%s8786_s19 + $0xf0] sm:$0xff] }
  0xc2   : > { %7940 = vmatpush3.bf16.msra.mxu0 %v8285_v1  ;;  %7877 = vmatprep.subr.bf16.mxu1 %v8288_v6  ;;  %v8287_v1 = vld [vmem:[%s8506_s26 + $0x44] sm:$0xff]  }
  0xc3   : > { %7941 = vmatprep.subr.bf16.mxu0 %v8293_v7  ;;  %v3444_v23 = vor.u32 %v3442_v10, %v3440_v60  ;;  %v251_v10 = vld [vmem:[%s8786_s19 + $0xc0] sm:$0xff] }
  0xc4   : > { %7766 = vmatmul.mubr.bf16.gmra.mxu1 %v8276_v12  ;;  %7830 = vmatmul.mubr.bf16.gmra.mxu0 %v3401_v16  ;;  %v3441_v12 = vsel %vm1233_vm1, %v3436_v59, %v3440_v60 }
  0xc5   : > { %7769 = vmatprep.mubr.bf16.mxu1 %v8281_v21  ;;  %7833 = vmatprep.mubr.bf16.mxu0 %v3409_v20  ;;  %v8327_v21 = vld [vmem:[%s9969_s1 + $0x140] sm:$0xff]   ;;  %v3449_v34 = vsel %vm1233_vm1, %v3444_v23, %v3448_v17  ;;  %v299_v23 = vadd.f32 %v8791_v3, %v251_v10  ;;  %v256_v10 = vld [vmem:[%s8786_s19 + $0xe8] sm:$0xff] }
  0xc6   : > { %7878 = vmatpush3.bf16.msra.mxu1 %v8288_v6  ;;  %7942 = vmatpush3.bf16.msra.mxu0 %v8293_v7  ;;  %v3433_v6 = vsel %vm1233_vm1, %v3428_v57, %v3432_v53  ;;  %v249_v7 = vld [vmem:[%s8786_s19 + $0xb0] sm:$0xff]  ;;  %v8333_v20 = vld [vmem:[%s9969_s1 + $0x180] sm:$0xff]   ;;  %v3474_v57 = vshrl.u32 %v8305_v29, 16 }
  0xc7   : > { %7879 = vmatprep.subr.bf16.mxu1 %v8295_v25  ;;  %7943 = vmatprep.subr.bf16.mxu0 %v8301_v26  ;;  %v8900_v16 = vadd.f32 %v8791_v3, %v249_v7  ;;  %v254_v7 = vld [vmem:[%s8786_s19 + $0xd8] sm:$0xff] }
  0xca   : > { %7880 = vmatpush3.bf16.msra.mxu1 %v8295_v25  ;;  %7944 = vmatpush3.bf16.msra.mxu0 %v8301_v26  ;;  %v8292_v25 = vld [vmem:[%s8506_s26 + $0x54] sm:$0xff]   ;;  %v3452_v26 = vor.u32 %v3450_v13, %v3448_v17  ;;  %v301_v13 = vadd.f32 %v8791_v3, %v253_v0 }
  0xcb   : > { %7881 = vmatprep.subr.bf16.mxu1 %v8304_v36  ;;  %7945 = vmatprep.subr.bf16.mxu0 %v8309_v38 }
  0xcc   : > { %7770 = vmatmul.mubr.bf16.gmra.mxu1 %v8282_v40  ;;  %7834 = vmatmul.mubr.bf16.gmra.mxu0 %v3417_v45  ;;  %v3466_v40 = vshrl.u32 %v8300_v15, 16  ;;  %v8306_v45 = vld [vmem:[%s8506_s26 + $0x7c] sm:$0xff]  }
  0xcd   : > { %7773 = vmatprep.mubr.bf16.mxu1 %v8286_v41  ;;  %7837 = vmatprep.mubr.bf16.mxu0 %v3425_v49  ;;  %v3470_v41 = vshll.u32 %v8305_v29, 16  ;;  %v3478_v53 = vshll.u32 %v8306_v45, 16  ;;  %v3482_v60 = vshrl.u32 %v8306_v45, 16  ;;  %v8307_v15 = vld [vmem:[%s8506_s26 + $0x7c] sm:$0xff]   ;;  %v8975_v45 = vld [vmem:[%s8506_s26 + $0xa4] sm:$0xff]  }
  0xce   : > { %7882 = vmatpush3.bf16.msra.mxu1 %v8304_v36  ;;  %7946 = vmatpush3.bf16.msra.mxu0 %v8309_v38  ;;  %v250_v36 = vld [vmem:[%s8786_s19 + $0xb8] sm:$0xff]  ;;  %v3457_v38 = vsel %vm1233_vm1, %v3452_v26, %v3456_v28  ;;  %v3468_v49 = vor.u32 %v3466_v40, %v3464_v44  ;;  %v8308_v40 = vld [vmem:[%s8506_s26 + $0x84] sm:$0xff]  }
  0xcf   : > { %7883 = vmatprep.subr.bf16.mxu1 %v8311_v47  ;;  %7947 = vmatprep.subr.bf16.mxu0 %v8317_v51  ;;  %v8926_v42 = vadd.f32 %v8791_v3, %v250_v36  ;;  %v3472_v50 = vrot.slane %v3470_v41, 1 }
  0xd1   : > { %9973 = vst [vmem:[#allocation2_spill] sm:$0xff] %v8926_v42  ;;  %v3473_v59 = vsel %vm1233_vm1, %v3468_v49, %v3472_v50  ;;  %v255_v49 = vld [vmem:[%s8786_s19 + $0xe0] sm:$0xff] }
  0xd2   : > { %7884 = vmatpush3.bf16.msra.mxu1 %v8311_v47  ;;  %7948 = vmatpush3.bf16.msra.mxu0 %v8317_v51  ;;  %v8310_v47 = vld [vmem:[%s8506_s26 + $0x84] sm:$0xff]   ;;  %v8937_v51 = vld [vmem:[%s9969_s1 + $0x238] sm:$0xff]  }
  0xd3   : > { %7885 = vmatprep.subr.bf16.mxu1 %v8320_v62  ;;  %7949 = vmatprep.subr.bf16.mxu0 %v8325_v63  ;;  %v3486_v61 = vshll.u32 %v8310_v47, 16 }
  0xd4   : > { %7774 = vmatmul.mubr.bf16.gmra.mxu1 %v8287_v1  ;;  %7838 = vmatmul.mubr.bf16.gmra.mxu0 %v3433_v6  ;;  %v3476_v1 = vor.u32 %v3474_v57, %v3472_v50  ;;  %v305_v57 = vadd.f32 %v8791_v3, %v257_v35 }
  0xd5   : > { %7777 = vmatprep.mubr.bf16.mxu1 %v8291_v9  ;;  %7841 = vmatprep.mubr.bf16.mxu0 %v3441_v12  ;;  %v3488_v6 = vrot.slane %v3486_v61, 1  ;;  %v8948_v9 = vld [vmem:[%s8506_s26 + $0x94] sm:$0xff]  }
  0xd6   : > { %7886 = vmatpush3.bf16.msra.mxu1 %v8320_v62  ;;  %7950 = vmatpush3.bf16.msra.mxu0 %v8325_v63  ;;  %v3480_v62 = vrot.slane %v3478_v53, 1  ;;  %v8312_v63 = vld [vmem:[%s8506_s26 + $0x8c] sm:$0xff]   ;;  %v3502_v22 = vshll.u32 %v8948_v9, 16  ;;  %v258_v53 = vld [vmem:[%s8786_s19 + $0xf8] sm:$0xff]  ;;  %v3506_v61 = vshrl.u32 %v8948_v9, 16 }
  0xd7   : > { %7887 = vmatprep.subr.bf16.mxu1 %v8327_v21  ;;  %7951 = vmatprep.subr.bf16.mxu0 %v8333_v20  ;;  %v3494_v12 = vshll.u32 %v8312_v63, 16 }
  0xd8   : > { %v3484_v5 = vor.u32 %v3482_v60, %v3480_v62  ;;  %v3481_v14 = vsel %vm1233_vm1, %v3476_v1, %v3480_v62  ;;  %v3504_v44 = vrot.slane %v3502_v22, 1  ;;  %v8313_v60 = vld [vmem:[%s8506_s26 + $0x8c] sm:$0xff]  }
  0xd9   : > { %v3496_v29 = vrot.slane %v3494_v12, 1 }
  0xda   : > { %7888 = vmatpush3.bf16.msra.mxu1 %v8327_v21  ;;  %7952 = vmatpush3.bf16.msra.mxu0 %v8333_v20  ;;  %v3490_v21 = vshrl.u32 %v8310_v47, 16  ;;  %v3489_v17 = vsel %vm1233_vm1, %v3484_v5, %v3488_v6  ;;  %v3498_v20 = vshrl.u32 %v8312_v63, 16 }
  0xdb   : > { %8001 = vmatprep.subr.bf16.mxu1 %v8917_v30  ;;  %8065 = vmatprep.subr.bf16.mxu0 %v8937_v51 }
  0xdc   : > { %7778 = vmatmul.mubr.bf16.gmra.mxu1 %v8292_v25  ;;  %7842 = vmatmul.mubr.bf16.gmra.mxu0 %v3449_v34  ;;  %v252_v25 = vld [vmem:[%s8786_s19 + $0xc8] sm:$0xff]  ;;  %v302_v34 = vadd.f32 %v8791_v3, %v254_v7  ;;  %v3492_v36 = vor.u32 %v3490_v21, %v3488_v6  ;;  %v3500_v41 = vor.u32 %v3498_v20, %v3496_v29  ;;  %v261_v21 = vld [vmem:[%s8786_s19 + $0x110] sm:$0xff] }
  0xdd   : > { %7781 = vmatprep.mubr.bf16.mxu1 %v8297_v31  ;;  %7845 = vmatprep.mubr.bf16.mxu0 %v3457_v38  ;;  %v8316_v31 = vld [vmem:[%s8506_s26 + $0x9c] sm:$0xff]   ;;  %v300_v47 = vadd.f32 %v8791_v3, %v252_v25  ;;  %v303_v6 = vadd.f32 %v8791_v3, %v255_v49 }
  0xde   : > { %v3505_v0 = vsel %vm1233_vm1, %v3500_v41, %v3504_v44  ;;  %v3514_v1 = vshrl.u32 %v8316_v31, 16  ;;  %v309_v41 = vadd.f32 %v8791_v3, %v261_v21 }
  0xe4   : > { %7782 = vmatmul.mubr.bf16.gmra.mxu1 %v8298_v52  ;;  %7846 = vmatmul.mubr.bf16.gmra.mxu0 %v3465_v54  ;;  %v3510_v54 = vshll.u32 %v8316_v31, 16  ;;  %v304_v31 = vadd.f32 %v8791_v3, %v256_v10 }
  0xe5   : > { %7785 = vmatprep.mubr.bf16.mxu1 %v8302_v56  ;;  %7849 = vmatprep.mubr.bf16.mxu0 %v3473_v59  ;;  %v3497_v59 = vsel %vm1233_vm1, %v3492_v36, %v3496_v29  ;;  %v259_v36 = vld [vmem:[%s8786_s19 + $0x100] sm:$0xff] }
  0xe6   : > { %v3512_v9 = vrot.slane %v3510_v54, 1 }
  0xec   : > { %v7595_v26 = vpop.f32.mrf.mxu1  ;;  %7786 = vmatmul.mubr.bf16.gmra.mxu1 %v8303_v2  ;;  %v8966_v28 = vpop.f32.mrf.mxu0  ;;  %7850 = vmatmul.mubr.bf16.gmra.mxu0 %v3481_v14  ;;  %v3518_v2 = vshll.u32 %v8975_v45, 16 }
  0xed   : > { %v926_v32 = vadd.f32 %v7595_v26, %v301_v13  ;;  %7789 = vmatprep.mubr.bf16.mxu1 %v8307_v15  ;;  %7853 = vmatprep.mubr.bf16.mxu0 %v3489_v17  ;;  %v8322_v13 = vld [vmem:[%s8506_s26 + $0xac] sm:$0xff]   ;;  %v306_v15 = vadd.f32 %v8791_v3, %v258_v53  ;;  %v3508_v17 = vor.u32 %v3506_v61, %v3504_v44  ;;  %v9004_v26 = vld [vmem:[%s8506_s26 + $0xb4] sm:$0xff]  }
  0xee   : > { %v805_v37 = vpop.f32.mrf.mxu1  ;;  %v8971_v38 = vpop.f32.mrf.mxu0  ;;  %v3520_v25 = vrot.slane %v3518_v2, 1  ;;  %v262_v53 = vld [vmem:[%s8786_s19 + $0x118] sm:$0xff] }
  0xef   : > { %974 = vst [vmem:[%s8964_s6 + $0xd0] sm:$0xff] %v926_v32  ;;  %v924_v46 = vadd.f32 %v805_v37, %v299_v23  ;;  %v3516_v23 = vor.u32 %v3514_v1, %v3512_v9  ;;  %v8314_v32 = vld [vmem:[%s8506_s26 + $0x94] sm:$0xff]   ;;  %v3526_v37 = vshll.u32 %v8322_v13, 16  ;;  %v3513_v44 = vsel %vm1233_vm1, %v3508_v17, %v3512_v9  ;;  %v8328_v1 = vld [vmem:[%s8506_s26 + $0xbc] sm:$0xff]  }
  0xf0   : > { %v7596_v50 = vpop.f32.mrf.mxu1  ;;  %v8980_v52 = vpop.f32.mrf.mxu0 }
  0xf1   : > { %972 = vst [vmem:[%s8964_s6 + $0xc0] sm:$0xff] %v924_v46  ;;  %v927_v56 = vadd.f32 %v7596_v50, %v302_v34  ;;  %v8318_v46 = vld [vmem:[%s8506_s26 + $0x9c] sm:$0xff]   ;;  %v3521_v54 = vsel %vm1233_vm1, %v3516_v23, %v3520_v25  ;;  %v8319_v23 = vld [vmem:[%s8506_s26 + $0xa4] sm:$0xff]  }
  0xf2   : > { %v808_v62 = vpop.f32.mrf.mxu1  ;;  %v8988_v63 = vpop.f32.mrf.mxu0 }
  0xf3   : > { %975 = vst [vmem:[%s8964_s6 + $0xd8] sm:$0xff] %v927_v56  ;;  %v925_v5 = vadd.f32 %v808_v62, %v300_v47  ;;  %v3522_v47 = vshrl.u32 %v8975_v45, 16  ;;  %v3530_v56 = vshrl.u32 %v8322_v13, 16  ;;  %v260_v45 = vld [vmem:[%s8786_s19 + $0x108] sm:$0xff] }
  0xf4   : > { %v7599_v7 = vpop.f32.mrf.mxu1  ;;  %7790 = vmatmul.mubr.bf16.gmra.mxu1 %v8308_v40  ;;  %v8995_v12 = vpop.f32.mrf.mxu0  ;;  %7854 = vmatmul.mubr.bf16.gmra.mxu0 %v3497_v59  ;;  %v308_v17 = vadd.f32 %v8791_v3, %v260_v45 }
  0xf5   : > { %973 = vst [vmem:[%s8964_s6 + $0xc8] sm:$0xff] %v925_v5  ;;  %v930_v14 = vadd.f32 %v7599_v7, %v305_v57  ;;  %7793 = vmatprep.mubr.bf16.mxu1 %v8313_v60  ;;  %7857 = vmatprep.mubr.bf16.mxu0 %v3505_v0  ;;  %v3534_v57 = vshll.u32 %v9004_v26, 16  ;;  %v307_v60 = vadd.f32 %v8791_v3, %v259_v36  ;;  %v3528_v0 = vrot.slane %v3526_v37, 1  ;;  %v8323_v37 = vld [vmem:[%s8506_s26 + $0xac] sm:$0xff]  }
  0xf6   : > { %v821_v20 = vpop.f32.mrf.mxu1  ;;  %v9001_v22 = vpop.f32.mrf.mxu0  ;;  %v310_v5 = vadd.f32 %v8791_v3, %v262_v53  ;;  %v3524_v10 = vor.u32 %v3522_v47, %v3520_v25  ;;  %v3542_v25 = vshll.u32 %v8328_v1, 16 }
  0xf7   : > { %978 = vst [vmem:[%s8964_s6 + $0xf0] sm:$0xff] %v930_v14  ;;  %v928_v29 = vadd.f32 %v821_v20, %v303_v6  ;;  %v265_v6 = vld [vmem:[%s8786_s19 + $0x130] sm:$0xff]  ;;  %v3532_v13 = vor.u32 %v3530_v56, %v3528_v0  ;;  %v3536_v14 = vrot.slane %v3534_v57, 1  ;;  %v8332_v57 = vld [vmem:[%s8506_s26 + $0xcc] ss:$0 sps:$4 sm:$0x11]  }
  0xf8   : > { %v7600_v34 = vpop.f32.mrf.mxu1  ;;  %v9009_v35 = vpop.f32.mrf.mxu0  ;;  %v3529_v36 = vsel %vm1233_vm1, %v3524_v10, %v3528_v0  ;;  %v8324_v10 = vld [vmem:[%s8506_s26 + $0xb4] sm:$0xff]  }
  0xf9   : > { %976 = vst [vmem:[%s8964_s6 + $0xe0] sm:$0xff] %v928_v29  ;;  %v931_v40 = vadd.f32 %v7600_v34, %v306_v15  ;;  %v9034_v15 = vld [vmem:[%s8506_s26 + $0xc4] sm:$0xff]   ;;  %v313_v34 = vadd.f32 %v8791_v3, %v265_v6  ;;  %v3537_v47 = vsel %vm1233_vm1, %v3532_v13, %v3536_v14  ;;  %v269_v6 = vld [vmem:[%s8786_s19 + $0x150] sm:$0xff] }
  0xfa   : > { %v824_v49 = vpop.f32.mrf.mxu1  ;;  %v9017_v50 = vpop.f32.mrf.mxu0  ;;  %v3550_v53 = vshll.u32 %v9034_v15, 16 }
  0xfb   : > { %979 = vst [vmem:[%s8964_s6 + $0xf8] sm:$0xff] %v931_v40  ;;  %v929_v59 = vadd.f32 %v824_v49, %v304_v31  ;;  %v263_v31 = vld [vmem:[%s8786_s19 + $0x120] sm:$0xff]  ;;  %v3538_v40 = vshrl.u32 %v9004_v26, 16  ;;  %v3546_v49 = vshrl.u32 %v8328_v1, 16 }
  0xfc   : > { %v7603_v61 = vpop.f32.mrf.mxu1  ;;  %7794 = vmatmul.mubr.bf16.gmra.mxu1 %v8314_v32  ;;  %v9024_v62 = vpop.f32.mrf.mxu0  ;;  %7858 = vmatmul.mubr.bf16.gmra.mxu0 %v3513_v44  ;;  %v311_v56 = vadd.f32 %v8791_v3, %v263_v31  ;;  %v3552_v13 = vrot.slane %v3550_v53, 1  ;;  %v8334_v53 = vld [vmem:[%s8506_s26 + $0xc] sm:$0xfe]  }
  0xfd   : > { %977 = vst [vmem:[%s8964_s6 + $0xe8] sm:$0xff] %v929_v59  ;;  %v934_v2 = vadd.f32 %v7603_v61, %v309_v41  ;;  %7797 = vmatprep.mubr.bf16.mxu1 %v8318_v46  ;;  %7861 = vmatprep.mubr.bf16.mxu0 %v3521_v54  ;;  %v266_v46 = vld [vmem:[%s8786_s19 + $0x138] sm:$0xff]  ;;  %v3544_v61 = vrot.slane %v3542_v25, 1  ;;  %v3540_v1 = vor.u32 %v3538_v40, %v3536_v14  ;;  %v3558_v40 = vshll.u32 %v8332_v57, 16  ;;  %v268_v57 = vld [vmem:[%s8786_s19 + $0x148] sm:$0xff] }
  0xfe   : > { %v837_v7 = vpop.f32.mrf.mxu1  ;;  %v9031_v9 = vpop.f32.mrf.mxu0  ;;  %v314_v0 = vadd.f32 %v8791_v3, %v266_v46  ;;  %v270_v14 = vld [vmem:[%s8786_s19 + $0x158] sm:$0xff] }
  0xff   : > { %982 = vst [vmem:[%s8964_s6 + $0x110] sm:$0xff] %v934_v2  ;;  %v932_v21 = vadd.f32 %v837_v7, %v307_v60  ;;  %v264_v60 = vld [vmem:[%s8786_s19 + $0x128] sm:$0xff]  ;;  %v3548_v7 = vor.u32 %v3546_v49, %v3544_v61  ;;  %v8329_v25 = vld [vmem:[%s8506_s26 + $0xbc] sm:$0xff]  }
 0x100   : > { %v7604_v20 = vpop.f32.mrf.mxu1  ;;  %v9039_v29 = vpop.f32.mrf.mxu0 }
 0x101   : > { %980 = vst [vmem:[%s8964_s6 + $0x100] sm:$0xff] %v932_v21  ;;  %v935_v32 = vadd.f32 %v7604_v20, %v310_v5  ;;  %v267_v20 = vld [vmem:[%s8786_s19 + $0x140] sm:$0xff]  ;;  %v3553_v49 = vsel %vm1233_vm1, %v3548_v7, %v3552_v13  ;;  %v4192_v7 = vrot.slane %v8334_v53, 1 }
 0x102   : > { %v840_v41 = vpop.f32.mrf.mxu1  ;;  %v9047_v44 = vpop.f32.mrf.mxu0  ;;  %v9114_v53 = vld [vmem:[%s8506_s26 + $0x24] sm:$0xff]  }
 0x103   : > { %983 = vst [vmem:[%s8964_s6 + $0x118] sm:$0xff] %v935_v32  ;;  %v933_v54 = vadd.f32 %v840_v41, %v308_v17  ;;  %v312_v17 = vadd.f32 %v8791_v3, %v264_v60  ;;  %v3554_v32 = vshrl.u32 %v9034_v15, 16  ;;  %v9076_v41 = vld [vmem:[%s8506_s26 + $0x14] sm:$0xff]   ;;  %v315_v15 = vadd.f32 %v8791_v3, %v267_v20 }
 0x104   : > { %v7607_v59 = vpop.f32.mrf.mxu1  ;;  %7798 = vmatmul.mubr.bf16.gmra.mxu1 %v8319_v23  ;;  %v9055_v26 = vpop.f32.mrf.mxu0  ;;  %7862 = vmatmul.mubr.bf16.gmra.mxu0 %v3529_v36  ;;  %v317_v36 = vadd.f32 %v8791_v3, %v269_v6  ;;  %v273_v6 = vld [vmem:[%s8786_s19 + $0x170] sm:$0xff]  ;;  %v316_v20 = vadd.f32 %v8791_v3, %v268_v57 }
 0x105   : > { %981 = vst [vmem:[%s8964_s6 + $0x108] sm:$0xff] %v933_v54  ;;  %v938_v45 = vadd.f32 %v7607_v59, %v313_v34  ;;  %7801 = vmatprep.mubr.bf16.mxu1 %v8323_v37  ;;  %7865 = vmatprep.mubr.bf16.mxu0 %v3537_v47  ;;  %v3545_v37 = vsel %vm1233_vm1, %v3540_v1, %v3544_v61 }
 0x106   : > { %v853_v2 = vpop.f32.mrf.mxu1  ;;  %v9060_v5 = vpop.f32.mrf.mxu0  ;;  %v318_v61 = vadd.f32 %v8791_v3, %v270_v14  ;;  %v8338_v3 = vld [vmem:[%s8506_s26 + $0x18] sm:$0xff]  }
 0x107   : > { %986 = vst [vmem:[%s8964_s6 + $0x130] sm:$0xff] %v938_v45  ;;  %v936_v21 = vadd.f32 %v853_v2, %v311_v56  ;;  %v3556_v45 = vor.u32 %v3554_v32, %v3552_v13 }
 0x108   : > { %v7608_v23 = vpop.f32.mrf.mxu1  ;;  %v9067_v31 = vpop.f32.mrf.mxu0 }
 0x109   : > { %984 = vst [vmem:[%s8964_s6 + $0x120] sm:$0xff] %v936_v21  ;;  %v939_v34 = vadd.f32 %v7608_v23, %v314_v0  ;;  %v3560_v0 = vrot.slane %v3558_v40, 1  ;;  %v4193_v21 = vrot.slane %v9076_v41, 1  ;;  %v271_v23 = vld [vmem:[%s8786_s19 + $0x160] sm:$0xff] }
 0x10a   : > { %v856_v46 = vpop.f32.mrf.mxu1  ;;  %v9078_v47 = vpop.f32.mrf.mxu0 }
 0x10b   : > { %987 = vst [vmem:[%s8964_s6 + $0x138] sm:$0xff] %v939_v34  ;;  %v937_v54 = vadd.f32 %v856_v46, %v312_v17  ;;  %v9104_v34 = vld [vmem:[%s9970_s2] ss:$0 sm:$0xff]  ;;  %v274_v46 = vld [vmem:[%s8786_s19 + $0x178] sm:$0xff] }
 0x10c   : > { %v7611_v56 = vpop.f32.mrf.mxu1  ;;  %7802 = vmatmul.mubr.bf16.gmra.mxu1 %v8324_v10  ;;  %v9084_v59 = vpop.f32.mrf.mxu0  ;;  %7866 = vmatmul.mubr.bf16.gmra.mxu0 %v3545_v37  ;;  %v8330_v10 = vld [vmem:[%s8506_s26 + $0xc4] sm:$0xff]   ;;  %v3561_v37 = vsel %vm1233_vm1, %v3556_v45, %v3560_v0  ;;  %v322_v0 = vadd.f32 %v9104_v34, %v274_v46 }
 0x10d   : > { %985 = vst [vmem:[%s8964_s6 + $0x128] sm:$0xff] %v937_v54  ;;  %v942_v60 = vadd.f32 %v7611_v56, %v317_v36  ;;  %7805 = vmatprep.mubr.bf16.mxu1 %v8329_v25  ;;  %7869 = vmatprep.mubr.bf16.mxu0 %v3553_v49  ;;  %v8336_v25 = vld [vmem:[%s8506_s26 + $0x1c] sm:$0xff]   ;;  %v321_v36 = vadd.f32 %v9104_v34, %v273_v6  ;;  %v229_v56 = vld [vmem:[%s8786_s19 + $0x10] sm:$0xff] }
 0x10e   : > { %v869_v1 = vpop.f32.mrf.mxu1  ;;  %v9089_v2 = vpop.f32.mrf.mxu0  ;;  %v4194_v49 = vsel %vm2060_vm0, %v4192_v7, %v4193_v21  ;;  %v227_v6 = vld [vmem:[%s8786_s19] sm:$0xff] }
 0x10f   : > { %990 = vst [vmem:[%s8964_s6 + $0x150] sm:$0xff] %v942_v60  ;;  %v940_v17 = vadd.f32 %v869_v1, %v315_v15  ;;  %v319_v15 = vadd.f32 %v9104_v34, %v271_v23  ;;  %v4195_v1 = vrot.slane %v8336_v25, 1  ;;  %v230_v23 = vld [vmem:[%s8786_s19 + $0x18] sm:$0xff]  ;;  %v275_v46 = vadd.f32 %v9104_v34, %v227_v6 }
 0x110   : > { %v7612_v14 = vpop.f32.mrf.mxu1  ;;  %v9097_v13 = vpop.f32.mrf.mxu0  ;;  %v9151_v6 = vld [vmem:[%s8506_s26 + $0x34] sm:$0xff]  }
 0x111   : > { %988 = vst [vmem:[%s8964_s6 + $0x140] sm:$0xff] %v940_v17  ;;  %v943_v32 = vadd.f32 %v7612_v14, %v318_v61  ;;  %v272_v61 = vld [vmem:[%s8786_s19 + $0x168] sm:$0xff]  ;;  %v4197_v17 = vrot.slane %v9114_v53, 1 }
 0x112   : > { %v872_v40 = vpop.f32.mrf.mxu1  ;;  %v9109_v41 = vpop.f32.mrf.mxu0 }
 0x113   : > { %991 = vst [vmem:[%s8964_s6 + $0x158] sm:$0xff] %v943_v32  ;;  %v941_v54 = vadd.f32 %v872_v40, %v316_v20  ;;  %v277_v20 = vadd.f32 %v9104_v34, %v229_v56  ;;  %v320_v32 = vadd.f32 %v9104_v34, %v272_v61  ;;  %v8341_v40 = vld [vmem:[%s8506_s26 + $0x2c] sm:$0xff]   ;;  %v4196_v56 = vsel %vm2060_vm0, %v4193_v21, %v4195_v1 }
 0x114   : > { %v7615_v57 = vpop.f32.mrf.mxu1  ;;  %7806 = vmatmul.mubr.bf16.gmra.mxu1 %v8330_v10  ;;  %v9119_v60 = vpop.f32.mrf.mxu0  ;;  %7870 = vmatmul.mubr.bf16.gmra.mxu0 %v3561_v37  ;;  %v4199_v42 = vrot.slane %v8341_v40, 1 }
 0x115   : > { %989 = vst [vmem:[%s8964_s6 + $0x148] sm:$0xff] %v941_v54  ;;  %v946_v45 = vadd.f32 %v7615_v57, %v321_v36  ;;  %7889 = vmatprep.mubr.bf16.mxu1 %v4194_v49  ;;  %7953 = vmatprep.mubr.bf16.mxu0 %v8338_v3  ;;  %v228_v36 = vld [vmem:[%s8786_s19 + $0x8] sm:$0xff]  ;;  %v8339_v3 = vld [vmem:[%s8506_s26 + $0x20] sm:$0xff]   ;;  %v233_v49 = vld [vmem:[%s8786_s19 + $0x30] sm:$0xff] }
 0x116   : > { %v885_v7 = vpop.f32.mrf.mxu1  ;;  %v9125_v10 = vpop.f32.mrf.mxu0  ;;  %v8343_v57 = vld [vmem:[%s8506_s26 + $0x28] sm:$0xff]  }
 0x117   : > { %9975 = vst [vmem:[#allocation4_spill] sm:$0xff] %v9125_v10  ;;  %994 = vst [vmem:[%s8964_s6 + $0x170] sm:$0xff] %v946_v45  ;;  %v944_v14 = vadd.f32 %v885_v7, %v319_v15  ;;  %v8344_v15 = vld [vmem:[%s9969_s1 + $0x1f0] sm:$0xff]   ;;  %v4198_v7 = vsel %vm2060_vm0, %v4195_v1, %v4197_v17  ;;  %v900_v1 = vadd.f32 %v8971_v38, %v275_v46  ;;  %v8353_v38 = vld [vmem:[%s9969_s1 + $0x1e8] sm:$0xff]  }
 0x118   : > { %v7616_v25 = vpop.f32.mrf.mxu1  ;;  %v9133_v37 = vpop.f32.mrf.mxu0  ;;  %v9192_v10 = vld [vmem:[%s8506_s26 + $0x44] sm:$0xff]  }
 0x119   : > { %9976 = vst [vmem:[#allocation5_spill] sm:$0xff] %v9133_v37  ;;  %992 = vst [vmem:[%s8964_s6 + $0x160] sm:$0xff] %v944_v14  ;;  %v947_v54 = vadd.f32 %v7616_v25, %v322_v0  ;;  %v902_v14 = vadd.f32 %v8966_v28, %v277_v20  ;;  %v278_v0 = vadd.f32 %v9104_v34, %v230_v23  ;;  %v8350_v25 = vld [vmem:[%s9969_s1 + $0x230] sm:$0xff]  }
 0x11a   : > { %v888_v61 = vpop.f32.mrf.mxu1  ;;  %v9145_v45 = vpop.f32.mrf.mxu0  ;;  %v276_v28 = vadd.f32 %v9104_v34, %v228_v36  ;;  %v281_v23 = vadd.f32 %v9104_v34, %v233_v49  ;;  %v232_v36 = vld [vmem:[%s8786_s19 + $0x28] sm:$0xff]  ;;  %v279_v49 = vadd.f32 %v9104_v34, %v231_v43 }
 0x11b   : > { %9977 = vst [vmem:[#allocation6_spill] sm:$0xff] %v9145_v45  ;;  %995 = vst [vmem:[%s8964_s6 + $0x178] sm:$0xff] %v947_v54  ;;  %v945_v21 = vadd.f32 %v888_v61, %v320_v32  ;;  %v234_v32 = vld [vmem:[%s8786_s19 + $0x38] sm:$0xff] }
 0x11c   : > { %v7635_v45 = vpop.f32.mrf.mxu1  ;;  %7890 = vmatmul.mubr.bf16.vlgmr.msra.gmra.mxu1 %v4196_v56  ;;  %v7699_v37 = vpop.f32.mrf.mxu0  ;;  %7954 = vmatmul.mubr.bf16.vlgmr.msra.gmra.mxu0 %v8339_v3  ;;  %v4201_v3 = vrot.slane %v9151_v6, 1  ;;  %v282_v53 = vadd.f32 %v9104_v34, %v234_v32 }
 0x11d   : > { %993 = vst [vmem:[%s8964_s6 + $0x168] sm:$0xff] %v945_v21  ;;  %v1729_v20 = vadd.f32 %v7635_v45, %v902_v14  ;;  %8002 = vmatpush3.bf16.msra.mxu1 %v8917_v30  ;;  %7893 = vmatprep.mubr.bf16.mxu1 %v4198_v7  ;;  %v903_v30 = vadd.f32 %v8980_v52, %v278_v0  ;;  %v8345_v45 = vld [vmem:[%s8506_s26 + $0x30] sm:$0xff]   ;;  %v9179_v7 = vld [vmem:[%s8506_s26 + $0x3c] sm:$0xff]  }
 0x11e   : > { %v1536_v54 = vpop.f32.mrf.mxu1  ;;  %v2216_v61 = vpop.f32.mrf.mxu0  ;;  %8066 = vmatpush3.bf16.msra.mxu0 %v8937_v51  ;;  %7957 = vmatprep.mubr.bf16.mxu0 %v8343_v57  ;;  %v8358_v51 = vld [vmem:[%s9969_s1 + $0x228] sm:$0xff]   ;;  %v901_v52 = vadd.f32 %v8988_v63, %v276_v28  ;;  %v4200_v0 = vsel %vm2060_vm0, %v4197_v17, %v4199_v42  ;;  %v8348_v21 = vld [vmem:[%s8506_s26 + $0x38] sm:$0xff]   ;;  %v906_v63 = vadd.f32 %v8995_v12, %v281_v23 }
 0x11f   : > { %v1727_v40 = vadd.f32 %v1536_v54, %v900_v1  ;;  %v2409_v46 = vadd.f32 %v7699_v37, %v1729_v20  ;;  %8003 = vmatprep.subr.bf16.mxu1 %v8344_v15  ;;  %8067 = vmatprep.subr.bf16.mxu0 %v8350_v25  ;;  %v237_v1 = vld [vmem:[%s8786_s19 + $0x50] sm:$0xff]  ;;  %v4202_v54 = vsel %vm2060_vm0, %v4199_v42, %v4201_v3  ;;  %v8366_v42 = vld [vmem:[%s9969_s1 + $0x220] sm:$0xff]  }
 0x120   : > { %v7636_v56 = vpop.f32.mrf.mxu1  ;;  %v7700_v57 = vpop.f32.mrf.mxu0  ;;  %v904_v23 = vadd.f32 %v9001_v22, %v279_v49  ;;  %v8369_v22 = vld [vmem:[%s9969_s1 + $0x1d8] sm:$0xff]   ;;  %v907_v49 = vadd.f32 %v9009_v35, %v282_v53 }
 0x121   : > { %v1730_v14 = vadd.f32 %v7636_v56, %v903_v30  ;;  %2457 = vst [vmem:[%s8964_s6 + $0x10] sm:$0xff] %v2409_v46  ;;  %v2407_v37 = vadd.f32 %v2216_v61, %v1727_v40  ;;  %8004 = vmatpush3.bf16.msra.mxu1 %v8344_v15  ;;  %v8360_v15 = vld [vmem:[%s9969_s1 + $0x1e0] sm:$0xff]   ;;  %v4203_v40 = vrot.slane %v9179_v7, 1  ;;  %v285_v46 = vadd.f32 %v9104_v34, %v237_v1  ;;  %v8354_v1 = vld [vmem:[%s8506_s26 + $0x48] sm:$0xff]  }
 0x122   : > { %v1539_v43 = vpop.f32.mrf.mxu1  ;;  %v2219_v20 = vpop.f32.mrf.mxu0  ;;  %8068 = vmatpush3.bf16.msra.mxu0 %v8350_v25  ;;  %8005 = vmatprep.subr.bf16.mxu1 %v8353_v38  ;;  %v280_v25 = vadd.f32 %v9104_v34, %v232_v36  ;;  %v8349_v36 = vld [vmem:[%s8506_s26 + $0x40] sm:$0xff]   ;;  %v8374_v34 = vld [vmem:[%s9969_s1 + $0x218] sm:$0xff]  }
 0x123   : > { %v1728_v28 = vadd.f32 %v1539_v43, %v901_v52  ;;  %2455 = vst [vmem:[%s8964_s6] sm:$0xff] %v2407_v37  ;;  %v2410_v17 = vadd.f32 %v7700_v57, %v1730_v14  ;;  %8069 = vmatprep.subr.bf16.mxu0 %v8358_v51  ;;  %v4205_v52 = vrot.slane %v9192_v10, 1  ;;  %v4204_v35 = vsel %vm2060_vm0, %v4201_v3, %v4203_v40 }
 0x124   : > { %v7639_v61 = vpop.f32.mrf.mxu1  ;;  %7894 = vmatmul.mubr.bf16.gmra.mxu1 %v4200_v0  ;;  %v7703_v12 = vpop.f32.mrf.mxu0  ;;  %7958 = vmatmul.mubr.bf16.gmra.mxu0 %v8345_v45  ;;  %v905_v37 = vadd.f32 %v9017_v50, %v280_v25  ;;  %v8376_v50 = vld [vmem:[%s9969_s1 + $0x1d0] sm:$0xff]   ;;  %v910_v6 = vadd.f32 %v9024_v62, %v285_v46 }
 0x125   : > { %v1733_v32 = vadd.f32 %v7639_v61, %v906_v63  ;;  %2458 = vst [vmem:[%s8964_s6 + $0x18] sm:$0xff] %v2410_v17  ;;  %v2408_v30 = vadd.f32 %v2219_v20, %v1728_v28  ;;  %7897 = vmatprep.mubr.bf16.mxu1 %v4202_v54  ;;  %7961 = vmatprep.mubr.bf16.mxu0 %v8348_v21  ;;  %v9229_v63 = vld [vmem:[%s8506_s26 + $0x54] sm:$0xff]  }
 0x126   : > { %v1552_v56 = vpop.f32.mrf.mxu1  ;;  %v2232_v57 = vpop.f32.mrf.mxu0  ;;  %8006 = vmatpush3.bf16.msra.mxu1 %v8353_v38  ;;  %8070 = vmatpush3.bf16.msra.mxu0 %v8358_v51  ;;  %v8352_v51 = vld [vmem:[%s8506_s26 + $0x4c] sm:$0xff]   ;;  %v4206_v54 = vsel %vm2060_vm0, %v4203_v40, %v4205_v52 }
 0x127   : > { %v1731_v45 = vadd.f32 %v1552_v56, %v904_v23  ;;  %2456 = vst [vmem:[%s8964_s6 + $0x8] sm:$0xff] %v2408_v30  ;;  %v2413_v7 = vadd.f32 %v7703_v12, %v1733_v32  ;;  %8007 = vmatprep.subr.bf16.mxu1 %v8360_v15  ;;  %8071 = vmatprep.subr.bf16.mxu0 %v8366_v42  ;;  %v8382_v28 = vld [vmem:[%s9969_s1 + $0x210] sm:$0xff]   ;;  %v4207_v61 = vrot.slane %v8352_v51, 1  ;;  %v4209_v30 = vrot.slane %v9229_v63, 1  ;;  %v8390_v56 = vld [vmem:[%s9969_s1 + $0x208] sm:$0xff]  }
 0x128   : > { %v7640_v14 = vpop.f32.mrf.mxu1  ;;  %v7704_v38 = vpop.f32.mrf.mxu0  ;;  %v8355_v32 = vld [vmem:[%s8506_s26 + $0x50] sm:$0xff]   ;;  %v9265_v51 = vld [vmem:[%s8506_s26 + $0x64] sm:$0xff]  }
 0x129   : > { %v1734_v0 = vadd.f32 %v7640_v14, %v907_v49  ;;  %2461 = vst [vmem:[%s8964_s6 + $0x30] sm:$0xff] %v2413_v7  ;;  %v2411_v21 = vadd.f32 %v2232_v57, %v1731_v45  ;;  %v909_v49 = vadd.f32 %v9047_v44, %v8817_v19  ;;  %v8359_v7 = vld [vmem:[%s8506_s26 + $0x58] sm:$0xff]   ;;  %v914_v19 = vadd.f32 %v9055_v26, %v8829_v27 }
 0x12a   : > { %v1555_v43 = vpop.f32.mrf.mxu1  ;;  %v2235_v20 = vpop.f32.mrf.mxu0  ;;  %8008 = vmatpush3.bf16.msra.mxu1 %v8360_v15  ;;  %8072 = vmatpush3.bf16.msra.mxu0 %v8366_v42  ;;  %v908_v42 = vadd.f32 %v9031_v9, %v8799_v8  ;;  %v8385_v8 = vld [vmem:[%s9969_s1 + $0x1c8] sm:$0xff]   ;;  %v911_v9 = vadd.f32 %v9039_v29, %v8814_v18  ;;  %v4208_v29 = vsel %vm2060_vm0, %v4205_v52, %v4207_v61  ;;  %v8392_v52 = vld [vmem:[%s9969_s1 + $0x1c0] sm:$0xff]  }
 0x12b   : > { %v1732_v53 = vadd.f32 %v1555_v43, %v905_v37  ;;  %2459 = vst [vmem:[%s8964_s6 + $0x20] sm:$0xff] %v2411_v21  ;;  %v2414_v3 = vadd.f32 %v7704_v38, %v1734_v0  ;;  %8009 = vmatprep.subr.bf16.mxu1 %v8369_v22  ;;  %8073 = vmatprep.subr.bf16.mxu0 %v8374_v34  ;;  %v8398_v37 = vld [vmem:[%s9969_s1 + $0x200] sm:$0xff]  }
 0x12c   : > { %v7643_v17 = vpop.f32.mrf.mxu1  ;;  %7898 = vmatmul.mubr.bf16.gmra.mxu1 %v4204_v35  ;;  %v7707_v15 = vpop.f32.mrf.mxu0  ;;  %7962 = vmatmul.mubr.bf16.gmra.mxu0 %v8349_v36  ;;  %v4210_v38 = vsel %vm2060_vm0, %v4207_v61, %v4209_v30  ;;  %v912_v27 = vadd.f32 %v9060_v5, %v8837_v33 }
 0x12d   : > { %v1737_v25 = vadd.f32 %v7643_v17, %v910_v6  ;;  %2462 = vst [vmem:[%s8964_s6 + $0x38] sm:$0xff] %v2414_v3  ;;  %v2412_v62 = vadd.f32 %v2235_v20, %v1732_v53  ;;  %7901 = vmatprep.mubr.bf16.mxu1 %v4206_v54  ;;  %7965 = vmatprep.mubr.bf16.mxu0 %v8354_v1  ;;  %v4213_v54 = vrot.slane %v9265_v51, 1  ;;  %v8361_v3 = vld [vmem:[%s8506_s26 + $0x60] sm:$0xff]  }
 0x12e   : > { %v1568_v12 = vpop.f32.mrf.mxu1  ;;  %v2248_v23 = vpop.f32.mrf.mxu0  ;;  %8010 = vmatpush3.bf16.msra.mxu1 %v8369_v22  ;;  %8074 = vmatpush3.bf16.msra.mxu0 %v8374_v34  ;;  %v8357_v22 = vld [vmem:[%s8506_s26 + $0x5c] sm:$0xff]   ;;  %v913_v17 = vadd.f32 %v9078_v47, %v8858_v48  ;;  %v918_v48 = vadd.f32 %v9084_v59, %v8868_v55  ;;  %v922_v51 = vadd.f32 %v9119_v60, %v8900_v16 }
 0x12f   : > { %v1735_v40 = vadd.f32 %v1568_v12, %v908_v42  ;;  %2460 = vst [vmem:[%s8964_s6 + $0x28] sm:$0xff] %v2412_v62  ;;  %v2417_v46 = vadd.f32 %v7707_v15, %v1737_v25  ;;  %8011 = vmatprep.subr.bf16.mxu1 %v8376_v50  ;;  %8075 = vmatprep.subr.bf16.mxu0 %v8382_v28  ;;  %v4211_v1 = vrot.slane %v8357_v22, 1  ;;  %v9294_v12 = vld [vmem:[%s8506_s26 + $0x74] sm:$0xff]  }
 0x130   : > { %v7644_v57 = vpop.f32.mrf.mxu1  ;;  %v7708_v36 = vpop.f32.mrf.mxu0 }
 0x131   : > { %v1738_v45 = vadd.f32 %v7644_v57, %v911_v9  ;;  %2465 = vst [vmem:[%s8964_s6 + $0x50] sm:$0xff] %v2417_v46  ;;  %v2415_v18 = vadd.f32 %v2248_v23, %v1735_v40  ;;  %v4214_v61 = vsel %vm2060_vm0, %v4211_v1, %v4213_v54  ;;  %v4217_v46 = vrot.slane %v9294_v12, 1  ;;  %v1022_v12 = vld [vmem:[%s8964_s6 + $0xd0] sm:$0xff] }
 0x132   : > { %v1571_v34 = vpop.f32.mrf.mxu1  ;;  %v2251_v14 = vpop.f32.mrf.mxu0  ;;  %8012 = vmatpush3.bf16.msra.mxu1 %v8376_v50  ;;  %8076 = vmatpush3.bf16.msra.mxu0 %v8382_v28  ;;  %v915_v50 = vadd.f32 %v9067_v31, %v8847_v39  ;;  %v8363_v28 = vld [vmem:[%s8506_s26 + $0x6c] sm:$0xff]   ;;  %v4212_v39 = vsel %vm2060_vm0, %v4209_v30, %v4211_v1  ;;  %v916_v30 = vadd.f32 %v9089_v2, %v8872_v58 }
 0x133   : > { %v1736_v44 = vadd.f32 %v1571_v34, %v909_v49  ;;  %2463 = vst [vmem:[%s8964_s6 + $0x40] sm:$0xff] %v2415_v18  ;;  %v2418_v10 = vadd.f32 %v7708_v36, %v1738_v45  ;;  %8013 = vmatprep.subr.bf16.mxu1 %v8385_v8  ;;  %8077 = vmatprep.subr.bf16.mxu0 %v8390_v56  ;;  %v8364_v31 = vld [vmem:[%s8506_s26 + $0x68] sm:$0xff]   ;;  %v4215_v40 = vrot.slane %v8363_v28, 1  ;;  %v8365_v2 = vld [vmem:[%s8506_s26 + $0x70] sm:$0xff]   ;;  %v8368_v49 = vld [vmem:[%s8506_s26 + $0x7c] sm:$0xff]  }
 0x134   : > { %v7647_v0 = vpop.f32.mrf.mxu1  ;;  %7902 = vmatmul.mubr.bf16.gmra.mxu1 %v4208_v29  ;;  %v7711_v21 = vpop.f32.mrf.mxu0  ;;  %7966 = vmatmul.mubr.bf16.gmra.mxu0 %v8355_v32  ;;  %v917_v45 = vadd.f32 %v9109_v41, %v8893_v11  ;;  %v8370_v34 = vld [vmem:[%s8506_s26 + $0x78] sm:$0xff]  }
 0x135   : > { %v1741_v26 = vadd.f32 %v7647_v0, %v914_v19  ;;  %2466 = vst [vmem:[%s8964_s6 + $0x58] sm:$0xff] %v2418_v10  ;;  %v2416_v35 = vadd.f32 %v2251_v14, %v1736_v44  ;;  %7905 = vmatprep.mubr.bf16.mxu1 %v4210_v38  ;;  %7969 = vmatprep.mubr.bf16.mxu0 %v8359_v7  ;;  %v9315_v38 = vld [vmem:[%s8506_s26 + $0x84] sm:$0xff]   ;;  %v9978_v10 = vld [vmem:[#allocation4_spill] sm:$0xff] }
 0x136   : > { %v1584_v43 = vpop.f32.mrf.mxu1  ;;  %v2264_v20 = vpop.f32.mrf.mxu0  ;;  %8014 = vmatpush3.bf16.msra.mxu1 %v8385_v8  ;;  %8078 = vmatpush3.bf16.msra.mxu0 %v8390_v56  ;;  %v919_v56 = vadd.f32 %v9097_v13, %v8886_v4  ;;  %v4216_v7 = vsel %vm2060_vm0, %v4213_v54, %v4215_v40  ;;  %v4218_v14 = vsel %vm2060_vm0, %v4215_v40, %v4217_v46 }
 0x137   : > { %v1739_v33 = vadd.f32 %v1584_v43, %v912_v27  ;;  %2464 = vst [vmem:[%s8964_s6 + $0x48] sm:$0xff] %v2416_v35  ;;  %v2421_v5 = vadd.f32 %v7711_v21, %v1741_v26  ;;  %8015 = vmatprep.subr.bf16.mxu1 %v8392_v52  ;;  %8079 = vmatprep.subr.bf16.mxu0 %v8398_v37  ;;  %v4219_v21 = vrot.slane %v8368_v49, 1  ;;  %v4221_v27 = vrot.slane %v9315_v38, 1  ;;  %v9979_v26 = vld [vmem:[#allocation2_spill] sm:$0xff]  ;;  %v9980_v35 = vld [vmem:[#allocation5_spill] sm:$0xff]  ;;  %v1026_v38 = vld [vmem:[%s8964_s6 + $0xf0] sm:$0xff] }
 0x138   : > { %v7648_v6 = vpop.f32.mrf.mxu1  ;;  %v7712_v53 = vpop.f32.mrf.mxu0  ;;  %v923_v1 = vadd.f32 %v9980_v35, %v9979_v26  ;;  %v8381_v35 = vld [vmem:[%s8506_s26 + $0xa0] sm:$0xff]  }
 0x139   : > { %v1742_v15 = vadd.f32 %v7648_v6, %v915_v50  ;;  %2469 = vst [vmem:[%s8964_s6 + $0x70] sm:$0xff] %v2421_v5  ;;  %v2419_v42 = vadd.f32 %v2264_v20, %v1739_v33  ;;  %v8371_v50 = vld [vmem:[%s8506_s26 + $0x80] sm:$0xff]   ;;  %v9981_v33 = vld [vmem:[#allocation3_spill] sm:$0xff]  ;;  %v4220_v28 = vsel %vm2060_vm0, %v4217_v46, %v4219_v21 }
 0x13a   : > { %v1587_v25 = vpop.f32.mrf.mxu1  ;;  %v2267_v62 = vpop.f32.mrf.mxu0  ;;  %8016 = vmatpush3.bf16.msra.mxu1 %v8392_v52  ;;  %8080 = vmatpush3.bf16.msra.mxu0 %v8398_v37  ;;  %v920_v52 = vadd.f32 %v9978_v10, %v8910_v24  ;;  %v9982_v5 = vld [vmem:[#allocation6_spill] sm:$0xff] }
 0x13b   : > { %v1740_v47 = vadd.f32 %v1587_v25, %v913_v17  ;;  %2467 = vst [vmem:[%s8964_s6 + $0x60] sm:$0xff] %v2419_v42  ;;  %v2422_v23 = vadd.f32 %v7712_v53, %v1742_v15  ;;  %v921_v6 = vadd.f32 %v9982_v5, %v9981_v33  ;;  %v8373_v17 = vld [vmem:[%s8506_s26 + $0x8c] sm:$0xff]   ;;  %v9336_v25 = vld [vmem:[%s8506_s26 + $0x94] sm:$0xff]   ;;  %v1024_v10 = vld [vmem:[%s8964_s6 + $0xe0] sm:$0xff] }
 0x13c   : > { %v7651_v32 = vpop.f32.mrf.mxu1  ;;  %7906 = vmatmul.mubr.bf16.gmra.mxu1 %v4212_v39  ;;  %v7715_v63 = vpop.f32.mrf.mxu0  ;;  %7970 = vmatmul.mubr.bf16.gmra.mxu0 %v8361_v3  ;;  %v8375_v15 = vld [vmem:[%s8506_s26 + $0x88] sm:$0xff]   ;;  %v4225_v40 = vrot.slane %v9336_v25, 1 }
 0x13d   : > { %v1745_v8 = vadd.f32 %v7651_v32, %v918_v48  ;;  %2470 = vst [vmem:[%s8964_s6 + $0x78] sm:$0xff] %v2422_v23  ;;  %v2420_v9 = vadd.f32 %v2267_v62, %v1740_v47  ;;  %7909 = vmatprep.mubr.bf16.mxu1 %v4214_v61  ;;  %7973 = vmatprep.mubr.bf16.mxu0 %v8364_v31 }
 0x13e   : > { %v1600_v55 = vpop.f32.mrf.mxu1  ;;  %v2280_v59 = vpop.f32.mrf.mxu0  ;;  %v4222_v31 = vsel %vm2060_vm0, %v4219_v21, %v4221_v27 }
 0x13f   : > { %v1743_v57 = vadd.f32 %v1600_v55, %v916_v30  ;;  %2468 = vst [vmem:[%s8964_s6 + $0x68] sm:$0xff] %v2420_v9  ;;  %v2425_v58 = vadd.f32 %v7715_v63, %v1745_v8  ;;  %v4223_v63 = vrot.slane %v8373_v17, 1  ;;  %v1020_v30 = vld [vmem:[%s8964_s6 + $0xc0] sm:$0xff]  ;;  %v1030_v17 = vld [vmem:[%s8964_s6 + $0x110] sm:$0xff] }
 0x140   : > { %v7652_v36 = vpop.f32.mrf.mxu1  ;;  %v7716_v22 = vpop.f32.mrf.mxu0 }
 0x141   : > { %v1746_v18 = vadd.f32 %v7652_v36, %v919_v56  ;;  %2473 = vst [vmem:[%s8964_s6 + $0x90] sm:$0xff] %v2425_v58  ;;  %v2423_v29 = vadd.f32 %v2280_v59, %v1743_v57  ;;  %v1023_v59 = vld [vmem:[%s8964_s6 + $0xd8] sm:$0xff]  ;;  %v8377_v58 = vld [vmem:[%s8506_s26 + $0x90] sm:$0xff]   ;;  %v4224_v49 = vsel %vm2060_vm0, %v4221_v27, %v4223_v63 }
 0x142   : > { %v1603_v4 = vpop.f32.mrf.mxu1  ;;  %v2283_v13 = vpop.f32.mrf.mxu0 }
 0x143   : > { %v1744_v19 = vadd.f32 %v1603_v4, %v917_v45  ;;  %2471 = vst [vmem:[%s8964_s6 + $0x80] sm:$0xff] %v2423_v29  ;;  %v2426_v44 = vadd.f32 %v7716_v22, %v1746_v18  ;;  %v8380_v45 = vld [vmem:[%s8506_s26 + $0x98] sm:$0xff]   ;;  %v1021_v18 = vld [vmem:[%s8964_s6 + $0xc8] sm:$0xff] }
 0x144   : > { %v7655_v11 = vpop.f32.mrf.mxu1  ;;  %7910 = vmatmul.mubr.bf16.gmra.mxu1 %v4216_v7  ;;  %v7719_v41 = vpop.f32.mrf.mxu0  ;;  %7974 = vmatmul.mubr.bf16.gmra.mxu0 %v8365_v2  ;;  %v8379_v2 = vld [vmem:[%s8506_s26 + $0x9c] sm:$0xff]   ;;  %v9353_v4 = vld [vmem:[%s8506_s26 + $0xa4] sm:$0xff]  }
 0x145   : > { %v1749_v37 = vadd.f32 %v7655_v11, %v922_v51  ;;  %2474 = vst [vmem:[%s8964_s6 + $0x98] sm:$0xff] %v2426_v44  ;;  %v2424_v0 = vadd.f32 %v2283_v13, %v1744_v19  ;;  %7913 = vmatprep.mubr.bf16.mxu1 %v4218_v14  ;;  %7977 = vmatprep.mubr.bf16.mxu0 %v8370_v34 }
 0x146   : > { %v1616_v16 = vpop.f32.mrf.mxu1  ;;  %v2296_v60 = vpop.f32.mrf.mxu0  ;;  %v4226_v34 = vsel %vm2060_vm0, %v4223_v63, %v4225_v40 }
 0x147   : > { %v1747_v43 = vadd.f32 %v1616_v16, %v920_v52  ;;  %2472 = vst [vmem:[%s8964_s6 + $0x88] sm:$0xff] %v2424_v0  ;;  %v2429_v24 = vadd.f32 %v7719_v41, %v1749_v37  ;;  %v4227_v41 = vrot.slane %v8379_v2, 1  ;;  %v4229_v0 = vrot.slane %v9353_v4, 1  ;;  %v1027_v16 = vld [vmem:[%s8964_s6 + $0xf8] sm:$0xff] }
 0x148   : > { %v7656_v20 = vpop.f32.mrf.mxu1  ;;  %v7720_v54 = vpop.f32.mrf.mxu0 }
 0x149   : > { %v1750_v53 = vadd.f32 %v7656_v20, %v923_v1  ;;  %2477 = vst [vmem:[%s8964_s6 + $0xb0] sm:$0xff] %v2429_v24  ;;  %v2427_v3 = vadd.f32 %v2296_v60, %v1747_v43  ;;  %v8384_v1 = vld [vmem:[%s8506_s26 + $0xac] sm:$0xff]   ;;  %v4228_v20 = vsel %vm2060_vm0, %v4225_v40, %v4227_v41 }
 0x14a   : > { %v1619_v42 = vpop.f32.mrf.mxu1  ;;  %v2299_v39 = vpop.f32.mrf.mxu0  ;;  %v4231_v25 = vrot.slane %v8384_v1, 1  ;;  %v8396_v1 = vld [vmem:[%s8506_s26 + $0xc8] sm:$0xff]  }
 0x14b   : > { %v1748_v62 = vadd.f32 %v1619_v42, %v921_v6  ;;  %2475 = vst [vmem:[%s8964_s6 + $0xa0] sm:$0xff] %v2427_v3  ;;  %v2430_v61 = vadd.f32 %v7720_v54, %v1750_v53  ;;  %v8386_v54 = vld [vmem:[%s8506_s26 + $0xa8] sm:$0xff]   ;;  %v4230_v6 = vsel %vm2060_vm0, %v4227_v41, %v4229_v0  ;;  %v9370_v53 = vld [vmem:[%s8506_s26 + $0xb4] sm:$0xff]  }
 0x14c   : > { %v7659_v48 = vpop.f32.mrf.mxu1  ;;  %7914 = vmatmul.mubr.bf16.gmra.mxu1 %v4220_v28  ;;  %v7723_v47 = vpop.f32.mrf.mxu0  ;;  %7978 = vmatmul.mubr.bf16.gmra.mxu0 %v8371_v50  ;;  %v1025_v50 = vld [vmem:[%s8964_s6 + $0xe8] sm:$0xff] }
 0x14d   : > { %v1753_v23 = vadd.f32 %v7659_v48, %v1022_v12  ;;  %2478 = vst [vmem:[%s8964_s6 + $0xb8] sm:$0xff] %v2430_v61  ;;  %v2428_v32 = vadd.f32 %v2299_v39, %v1748_v62  ;;  %7917 = vmatprep.mubr.bf16.mxu1 %v4222_v31  ;;  %7981 = vmatprep.mubr.bf16.mxu0 %v8375_v15  ;;  %v1028_v62 = vld [vmem:[%s8964_s6 + $0x100] sm:$0xff]  ;;  %v4233_v48 = vrot.slane %v9370_v53, 1 }
 0x14e   : > { %v1632_v8 = vpop.f32.mrf.mxu1  ;;  %v2312_v9 = vpop.f32.mrf.mxu0 }
 0x14f   : > { %v1751_v55 = vadd.f32 %v1632_v8, %v1020_v30  ;;  %2476 = vst [vmem:[%s8964_s6 + $0xa8] sm:$0xff] %v2428_v32  ;;  %v2433_v46 = vadd.f32 %v7723_v47, %v1753_v23  ;;  %v1031_v32 = vld [vmem:[%s8964_s6 + $0x118] sm:$0xff]  ;;  %v8387_v8 = vld [vmem:[%s8506_s26 + $0xb0] sm:$0xff]   ;;  %v4234_v2 = vsel %vm2060_vm0, %v4231_v25, %v4233_v48 }
 0x150   : > { %v7660_v56 = vpop.f32.mrf.mxu1  ;;  %v7724_v57 = vpop.f32.mrf.mxu0 }
 0x151   : > { %v1754_v36 = vadd.f32 %v7660_v56, %v1023_v59  ;;  %2481 = vst [vmem:[%s8964_s6 + $0xd0] sm:$0xff] %v2433_v46  ;;  %v2431_v22 = vadd.f32 %v2312_v9, %v1751_v55  ;;  %v4232_v55 = vsel %vm2060_vm0, %v4229_v0, %v4231_v25  ;;  %v8389_v59 = vld [vmem:[%s8506_s26 + $0xbc] sm:$0xff]   ;;  %v1029_v56 = vld [vmem:[%s8964_s6 + $0x108] sm:$0xff] }
 0x152   : > { %v1635_v29 = vpop.f32.mrf.mxu1  ;;  %v2315_v7 = vpop.f32.mrf.mxu0  ;;  %v8391_v46 = vld [vmem:[%s8506_s26 + $0xb8] sm:$0xff]  }
 0x153   : > { %v1752_v13 = vadd.f32 %v1635_v29, %v1021_v18  ;;  %2479 = vst [vmem:[%s8964_s6 + $0xc0] sm:$0xff] %v2431_v22  ;;  %v2434_v14 = vadd.f32 %v7724_v57, %v1754_v36  ;;  %v9387_v36 = vld [vmem:[%s8506_s26 + $0xc4] sm:$0xff]   ;;  %v8399_v22 = vld [vmem:[%s8506_s26 + $0x18] sm:$0xff]   ;;  %v1034_v18 = vld [vmem:[%s8964_s6 + $0x130] sm:$0xff] }
 0x154   : > { %v7663_v51 = vpop.f32.mrf.mxu1  ;;  %7918 = vmatmul.mubr.bf16.gmra.mxu1 %v4224_v49  ;;  %v7727_v19 = vpop.f32.mrf.mxu0  ;;  %7982 = vmatmul.mubr.bf16.gmra.mxu0 %v8377_v58 }
 0x155   : > { %v1757_v44 = vadd.f32 %v7663_v51, %v1026_v38  ;;  %2482 = vst [vmem:[%s8964_s6 + $0xd8] sm:$0xff] %v2434_v14  ;;  %v2432_v11 = vadd.f32 %v2315_v7, %v1752_v13  ;;  %7921 = vmatprep.mubr.bf16.mxu1 %v4226_v34  ;;  %7985 = vmatprep.mubr.bf16.mxu0 %v8380_v45  ;;  %v4235_v13 = vrot.slane %v8389_v59, 1  ;;  %v1032_v14 = vld [vmem:[%s8964_s6 + $0x120] sm:$0xff]  ;;  %v8397_v59 = vld [vmem:[%s8506_s26 + $0xd0] sm:$0xff]  }
 0x156   : > { %v1648_v52 = vpop.f32.mrf.mxu1  ;;  %v2328_v37 = vpop.f32.mrf.mxu0 }
 0x157   : > { %v1755_v21 = vadd.f32 %v1648_v52, %v1024_v10  ;;  %2480 = vst [vmem:[%s8964_s6 + $0xc8] sm:$0xff] %v2432_v11  ;;  %v2437_v60 = vadd.f32 %v7727_v19, %v1757_v44  ;;  %v4237_v19 = vrot.slane %v9387_v36, 1  ;;  %v9396_v44 = vld [vmem:[%s8506_s26 + $0x20] sm:$0xff]   ;;  %v5500_v11 = vshll.u32 %v8399_v22, 16  ;;  %v1035_v52 = vld [vmem:[%s8964_s6 + $0x138] sm:$0xff]  ;;  %v8404_v36 = vld [vmem:[%s8506_s26 + $0x28] sm:$0xff]  }
 0x158   : > { %v7664_v27 = vpop.f32.mrf.mxu1  ;;  %v7728_v26 = vpop.f32.mrf.mxu0 }
 0x159   : > { %v1758_v43 = vadd.f32 %v7664_v27, %v1027_v16  ;;  %2485 = vst [vmem:[%s8964_s6 + $0xf0] sm:$0xff] %v2437_v60  ;;  %v2435_v24 = vadd.f32 %v2328_v37, %v1755_v21  ;;  %v8393_v21 = vld [vmem:[%s8506_s26 + $0xc0] sm:$0xff]   ;;  %v1033_v60 = vld [vmem:[%s8964_s6 + $0x128] sm:$0xff] }
 0x15a   : > { %v1651_v33 = vpop.f32.mrf.mxu1  ;;  %v2331_v5 = vpop.f32.mrf.mxu0 }
 0x15b   : > { %v1756_v3 = vadd.f32 %v1651_v33, %v1025_v50  ;;  %2483 = vst [vmem:[%s8964_s6 + $0xe0] sm:$0xff] %v2435_v24  ;;  %v2438_v28 = vadd.f32 %v7728_v26, %v1758_v43  ;;  %v4236_v26 = vsel %vm2060_vm0, %v4233_v48, %v4235_v13  ;;  %v5502_v50 = vrot.slane %v5500_v11, 1 }
 0x15c   : > { %v7667_v15 = vpop.f32.mrf.mxu1  ;;  %7922 = vmatmul.mubr.bf16.gmra.mxu1 %v4228_v20  ;;  %v7731_v42 = vpop.f32.mrf.mxu0  ;;  %7986 = vmatmul.mubr.bf16.gmra.mxu0 %v8381_v35  ;;  %v8395_v35 = vld [vmem:[%s8506_s26 + $0xcc] ss:$0 sps:$4 sm:$0x11]   ;;  %v4238_v20 = vsel %vm2060_vm0, %v4235_v13, %v4237_v19  ;;  %v5505_v33 = vshll.u32 %v9396_v44, 16 }
 0x15d   : > { %v1761_v39 = vadd.f32 %v7667_v15, %v1030_v17  ;;  %2486 = vst [vmem:[%s8964_s6 + $0xf8] sm:$0xff] %v2438_v28  ;;  %v2436_v31 = vadd.f32 %v2331_v5, %v1756_v3  ;;  %7925 = vmatprep.mubr.bf16.mxu1 %v4230_v6  ;;  %7989 = vmatprep.mubr.bf16.mxu0 %v8386_v54  ;;  %v5498_v54 = vshrl.u32 %v8399_v22, 16  ;;  %v8402_v5 = vld [vmem:[%s8506_s26 + $0x18] sm:$0xfe]   ;;  %v9410_v6 = vld [vmem:[%s8506_s26 + $0x20] sm:$0xff]   ;;  %v1038_v28 = vld [vmem:[%s8964_s6 + $0x150] sm:$0xff] }
 0x15e   : > { %v1664_v61 = vpop.f32.mrf.mxu1  ;;  %v2344_v12 = vpop.f32.mrf.mxu0  ;;  %v4239_v25 = vrot.slane %v8395_v35, 1  ;;  %v1037_v22 = vld [vmem:[%s8964_s6 + $0x148] sm:$0xff]  ;;  %v9442_v35 = vld [vmem:[%s8506_s26 + $0x40] sm:$0xff]  }
 0x15f   : > { %v1759_v47 = vadd.f32 %v1664_v61, %v1028_v62  ;;  %2484 = vst [vmem:[%s8964_s6 + $0xe8] sm:$0xff] %v2436_v31  ;;  %v2441_v23 = vadd.f32 %v7731_v42, %v1761_v39  ;;  %v8401_v42 = vld [vmem:[%s8506_s26 + $0x28] sm:$0xff]   ;;  %v1036_v62 = vld [vmem:[%s8964_s6 + $0x140] sm:$0xff]  ;;  %v5503_v48 = vor.u32 %v5502_v50, %v5498_v54 }
 0x160   : > { %v7668_v63 = vpop.f32.mrf.mxu1  ;;  %v7732_v30 = vpop.f32.mrf.mxu0 }
 0x161   : > { %v1762_v9 = vadd.f32 %v7668_v63, %v1031_v32  ;;  %2489 = vst [vmem:[%s8964_s6 + $0x110] sm:$0xff] %v2441_v23  ;;  %v2439_v40 = vadd.f32 %v2344_v12, %v1759_v47  ;;  %v5507_v47 = vrot.slane %v5505_v33, 1  ;;  %v6323_v23 = vrot.slane %v8402_v5, 1  ;;  %v9419_v63 = vld [vmem:[%s8506_s26 + $0x30] sm:$0xff]   ;;  %v8408_v5 = vld [vmem:[%s8506_s26 + $0x38] sm:$0xff]  }
 0x162   : > { %v1667_v57 = vpop.f32.mrf.mxu1  ;;  %v2347_v58 = vpop.f32.mrf.mxu0  ;;  %v6324_v32 = vrot.slane %v9410_v6, 1 }
 0x163   : > { %v1760_v49 = vadd.f32 %v1667_v57, %v1029_v56  ;;  %2487 = vst [vmem:[%s8964_s6 + $0x100] sm:$0xff] %v2439_v40  ;;  %v2442_v45 = vadd.f32 %v7732_v30, %v1762_v9  ;;  %v1039_v9 = vld [vmem:[%s8964_s6 + $0x158] sm:$0xff]  ;;  %v5513_v56 = vshll.u32 %v8401_v42, 16 }
 0x164   : > { %v7671_v29 = vpop.f32.mrf.mxu1  ;;  %7926 = vmatmul.mubr.bf16.gmra.mxu1 %v4232_v55  ;;  %v7735_v7 = vpop.f32.mrf.mxu0  ;;  %7990 = vmatmul.mubr.bf16.gmra.mxu0 %v8387_v8 }
 0x165   : > { %v1765_v34 = vadd.f32 %v7671_v29, %v1034_v18  ;;  %2490 = vst [vmem:[%s8964_s6 + $0x118] sm:$0xff] %v2442_v45  ;;  %v2440_v4 = vadd.f32 %v2347_v58, %v1760_v49  ;;  %7929 = vmatprep.mubr.bf16.mxu1 %v4234_v2  ;;  %7993 = vmatprep.mubr.bf16.mxu0 %v8391_v46  ;;  %v5509_v46 = vshrl.u32 %v9396_v44, 16  ;;  %v5515_v11 = vrot.slane %v5513_v56, 1 }
 0x166   : > { %v1680_v38 = vpop.f32.mrf.mxu1  ;;  %v2360_v51 = vpop.f32.mrf.mxu0  ;;  %v4240_v2 = vsel %vm2060_vm0, %v4237_v19, %v4239_v25  ;;  %v5508_v18 = vsel %vm1233_vm1, %v5503_v48, %v5507_v47  ;;  %v6325_v29 = vsel %vm2060_vm0, %v6323_v23, %v6324_v32 }
 0x167   : > { %v1763_v41 = vadd.f32 %v1680_v38, %v1032_v14  ;;  %2488 = vst [vmem:[%s8964_s6 + $0x108] sm:$0xff] %v2440_v4  ;;  %v2445_v10 = vadd.f32 %v7735_v7, %v1765_v34  ;;  %v5517_v7 = vshrl.u32 %v8401_v42, 16  ;;  %v5521_v34 = vshll.u32 %v9419_v63, 16  ;;  %v9433_v4 = vld [vmem:[%s8506_s26 + $0x30] sm:$0xff]  }
 0x168   : > { %v7672_v37 = vpop.f32.mrf.mxu1  ;;  %v7736_v0 = vpop.f32.mrf.mxu0  ;;  %v1042_v38 = vld [vmem:[%s8964_s6 + $0x170] sm:$0xff]  ;;  %v5511_v44 = vor.u32 %v5509_v46, %v5507_v47 }
 0x169   : > { %v1766_v16 = vadd.f32 %v7672_v37, %v1035_v52  ;;  %2493 = vst [vmem:[%s8964_s6 + $0x130] sm:$0xff] %v2445_v10  ;;  %v2443_v27 = vadd.f32 %v2360_v51, %v1763_v41  ;;  %v8406_v41 = vld [vmem:[%s8506_s26 + $0x38] sm:$0xff]   ;;  %v6326_v37 = vrot.slane %v8404_v36, 1  ;;  %v2505_v47 = vld [vmem:[%s8964_s6 + $0x10] sm:$0xff] }
 0x16a   : > { %v1683_v43 = vpop.f32.mrf.mxu1  ;;  %v2363_v24 = vpop.f32.mrf.mxu0  ;;  %v5516_v54 = vsel %vm1233_vm1, %v5511_v44, %v5515_v11  ;;  %v5529_v33 = vshll.u32 %v8406_v41, 16  ;;  %v5533_v25 = vshrl.u32 %v8406_v41, 16  ;;  %v9465_v36 = vld [vmem:[%s8506_s26 + $0x50] sm:$0xff]  }
 0x16b   : > { %v1764_v53 = vadd.f32 %v1683_v43, %v1033_v60  ;;  %2491 = vst [vmem:[%s8964_s6 + $0x120] sm:$0xff] %v2443_v27  ;;  %v2446_v3 = vadd.f32 %v7736_v0, %v1766_v16  ;;  %v1040_v0 = vld [vmem:[%s8964_s6 + $0x160] sm:$0xff]  ;;  %v5519_v60 = vor.u32 %v5517_v7, %v5515_v11  ;;  %v5523_v27 = vrot.slane %v5521_v34, 1 }
 0x16c   : > { %v7675_v17 = vpop.f32.mrf.mxu1  ;;  %7930 = vmatmul.mubr.bf16.gmra.mxu1 %v4236_v26  ;;  %v7739_v15 = vpop.f32.mrf.mxu0  ;;  %7994 = vmatmul.mubr.bf16.gmra.mxu0 %v8393_v21  ;;  %v6328_v26 = vrot.slane %v9433_v4, 1  ;;  %v8412_v4 = vld [vmem:[%s8506_s26 + $0x48] sm:$0xff]  }
 0x16d   : > { %v1769_v39 = vadd.f32 %v7675_v17, %v1038_v28  ;;  %2494 = vst [vmem:[%s8964_s6 + $0x138] sm:$0xff] %v2446_v3  ;;  %v2444_v31 = vadd.f32 %v2363_v24, %v1764_v53  ;;  %7933 = vmatprep.mubr.bf16.mxu1 %v4238_v20  ;;  %7997 = vmatprep.mubr.bf16.mxu0 %v8396_v1  ;;  %v1043_v24 = vld [vmem:[%s8964_s6 + $0x178] sm:$0xff]  ;;  %v5525_v28 = vshrl.u32 %v9419_v63, 16  ;;  %v1041_v17 = vld [vmem:[%s8964_s6 + $0x168] sm:$0xff]  ;;  %v5531_v63 = vrot.slane %v5529_v33, 1 }
 0x16e   : > { %v1696_v61 = vpop.f32.mrf.mxu1  ;;  %v2376_v12 = vpop.f32.mrf.mxu0  ;;  %v6327_v3 = vsel %vm2060_vm0, %v6324_v32, %v6326_v37 }
 0x16f   : > { %v1767_v30 = vadd.f32 %v1696_v61, %v1036_v62  ;;  %2492 = vst [vmem:[%s8964_s6 + $0x128] sm:$0xff] %v2444_v31  ;;  %v2449_v8 = vadd.f32 %v7739_v15, %v1769_v39  ;;  %v5524_v39 = vsel %vm1233_vm1, %v5519_v60, %v5523_v27  ;;  %v6329_v31 = vsel %vm2060_vm0, %v6326_v37, %v6328_v26  ;;  %v9456_v61 = vld [vmem:[%s8506_s26 + $0x40] sm:$0xff]   ;;  %v2509_v60 = vld [vmem:[%s8964_s6 + $0x30] sm:$0xff] }
 0x170   : > { %v7676_v40 = vpop.f32.mrf.mxu1  ;;  %v7740_v55 = vpop.f32.mrf.mxu0  ;;  %v5537_v62 = vshll.u32 %v9442_v35, 16  ;;  %v5553_v37 = vshll.u32 %v9465_v36, 16 }
 0x171   : > { %v1770_v57 = vadd.f32 %v7676_v40, %v1039_v9  ;;  %2497 = vst [vmem:[%s8964_s6 + $0x150] sm:$0xff] %v2449_v8  ;;  %v2447_v58 = vadd.f32 %v2376_v12, %v1767_v30  ;;  %v6330_v30 = vrot.slane %v8408_v5, 1  ;;  %v8410_v8 = vld [vmem:[%s8506_s26 + $0x48] sm:$0xff]  }
 0x172   : > { %v1699_v49 = vpop.f32.mrf.mxu1  ;;  %v2379_v45 = vpop.f32.mrf.mxu0  ;;  %v5545_v34 = vshll.u32 %v8410_v8, 16 }
 0x173   : > { %v1768_v13 = vadd.f32 %v1699_v49, %v1037_v22  ;;  %2495 = vst [vmem:[%s8964_s6 + $0x140] sm:$0xff] %v2447_v58  ;;  %v2450_v14 = vadd.f32 %v7740_v55, %v1770_v57  ;;  %v5527_v55 = vor.u32 %v5525_v28, %v5523_v27  ;;  %v5535_v57 = vor.u32 %v5533_v25, %v5531_v63  ;;  %v9488_v28 = vld [vmem:[%s8506_s26 + $0x60] sm:$0xff]  }
 0x174   : > { %v7679_v51 = vpop.f32.mrf.mxu1  ;;  %7934 = vmatmul.mubr.bf16.gmra.mxu1 %v4240_v2  ;;  %v7743_v19 = vpop.f32.mrf.mxu0  ;;  %7998 = vmatmul.mubr.bf16.gmra.mxu0 %v8397_v59  ;;  %v2503_v59 = vld [vmem:[%s8964_s6] sm:$0xff]  ;;  %v5539_v58 = vrot.slane %v5537_v62, 1  ;;  %v6332_v2 = vrot.slane %v9456_v61, 1  ;;  %v6331_v7 = vsel %vm2060_vm0, %v6328_v26, %v6330_v30 }
 0x175   : > { %v1773_v10 = vadd.f32 %v7679_v51, %v1042_v38  ;;  %2498 = vst [vmem:[%s8964_s6 + $0x158] sm:$0xff] %v2450_v14  ;;  %v2448_v52 = vadd.f32 %v2379_v45, %v1768_v13  ;;  %8017 = vmatprep.mubr.bf16.mxu1 %v5508_v18  ;;  %8081 = vmatprep.mubr.bf16.mxu0 %v6325_v29  ;;  %v2506_v45 = vld [vmem:[%s8964_s6 + $0x18] sm:$0xff]  ;;  %v5541_v51 = vshrl.u32 %v9442_v35, 16  ;;  %v5547_v35 = vrot.slane %v5545_v34, 1 }
 0x176   : > { %v1712_v21 = vpop.f32.mrf.mxu1  ;;  %v2392_v16 = vpop.f32.mrf.mxu0  ;;  %v5532_v38 = vsel %vm1233_vm1, %v5527_v55, %v5531_v63  ;;  %v5540_v41 = vsel %vm1233_vm1, %v5535_v57, %v5539_v58  ;;  %v5569_v55 = vshll.u32 %v9488_v28, 16  ;;  %v2513_v57 = vld [vmem:[%s8964_s6 + $0x50] sm:$0xff] }
 0x177   : > { %v1771_v1 = vadd.f32 %v1712_v21, %v1040_v0  ;;  %2496 = vst [vmem:[%s8964_s6 + $0x148] sm:$0xff] %v2448_v52  ;;  %v2453_v43 = vadd.f32 %v7743_v19, %v1773_v10  ;;  %v2504_v19 = vld [vmem:[%s8964_s6 + $0x8] sm:$0xff]  ;;  %v6333_v10 = vsel %vm2060_vm0, %v6330_v30, %v6332_v2  ;;  %v5549_v52 = vshrl.u32 %v8410_v8, 16  ;;  %v9479_v0 = vld [vmem:[%s8506_s26 + $0x50] sm:$0xff]  }
 0x178   : > { %v7680_v20 = vpop.f32.mrf.mxu1  ;;  %v7744_v50 = vpop.f32.mrf.mxu0 }
 0x179   : > { %v1774_v6 = vadd.f32 %v7680_v20, %v1043_v24  ;;  %2501 = vst [vmem:[%s8964_s6 + $0x170] sm:$0xff] %v2453_v43  ;;  %v2451_v53 = vadd.f32 %v2392_v16, %v1771_v1  ;;  %v6334_v1 = vrot.slane %v8412_v4, 1  ;;  %v8414_v43 = vld [vmem:[%s8506_s26 + $0x58] sm:$0xff]  }
 0x17a   : > { %v1715_v15 = vpop.f32.mrf.mxu1  ;;  %v2395_v42 = vpop.f32.mrf.mxu0  ;;  %v5561_v62 = vshll.u32 %v8414_v43, 16 }
 0x17b   : > { %v1772_v12 = vadd.f32 %v1715_v15, %v1041_v17  ;;  %2499 = vst [vmem:[%s8964_s6 + $0x160] sm:$0xff] %v2451_v53  ;;  %v2454_v48 = vadd.f32 %v7744_v50, %v1774_v6  ;;  %v2507_v50 = vld [vmem:[%s8964_s6 + $0x20] sm:$0xff]  ;;  %v5551_v6 = vor.u32 %v5549_v52, %v5547_v35  ;;  %v5555_v53 = vrot.slane %v5553_v37, 1 }
 0x17c   : > { %v7763_v23 = vpop.f32.mrf.mxu1  ;;  %8018 = vmatmul.mubr.bf16.vlgmr.msra.gmra.mxu1 %v5516_v54  ;;  %v7827_v32 = vpop.f32.mrf.mxu0  ;;  %8082 = vmatmul.mubr.bf16.vlgmr.msra.gmra.mxu0 %v6327_v3  ;;  %v5543_v54 = vor.u32 %v5541_v51, %v5539_v58  ;;  %v6336_v3 = vrot.slane %v9479_v0, 1  ;;  %v6335_v25 = vsel %vm2060_vm0, %v6332_v2, %v6334_v1  ;;  %v9511_v51 = vld [vmem:[%s8506_s26 + $0x70] sm:$0xff]   ;;  %v5573_v52 = vshrl.u32 %v9488_v28, 16  ;;  %v8420_v0 = vld [vmem:[%s8506_s26 + $0x68] sm:$0xff]  }
 0x17d   : > { %v3035_v9 = vadd.f32 %v7763_v23, %v2505_v47  ;;  %2502 = vst [vmem:[%s8964_s6 + $0x178] sm:$0xff] %v2454_v48  ;;  %v2452_v40 = vadd.f32 %v2395_v42, %v1772_v12  ;;  %8021 = vmatprep.mubr.bf16.mxu1 %v5524_v39  ;;  %8085 = vmatprep.mubr.bf16.mxu0 %v6329_v31  ;;  %v2510_v42 = vld [vmem:[%s8964_s6 + $0x38] sm:$0xff]  ;;  %v5557_v47 = vshrl.u32 %v9465_v36, 16  ;;  %v5563_v36 = vrot.slane %v5561_v62, 1 }
 0x17e   : > { %v2842_v46 = vpop.f32.mrf.mxu1  ;;  %v3668_v56 = vpop.f32.mrf.mxu0  ;;  %v5548_v48 = vsel %vm1233_vm1, %v5543_v54, %v5547_v35  ;;  %v8416_v23 = vld [vmem:[%s8506_s26 + $0x58] sm:$0xff]   ;;  %v5556_v8 = vsel %vm1233_vm1, %v5551_v6, %v5555_v53  ;;  %v5585_v54 = vshll.u32 %v9511_v51, 16  ;;  %v2517_v6 = vld [vmem:[%s8964_s6 + $0x70] sm:$0xff] }
 0x17f   : > { %v3033_v22 = vadd.f32 %v2842_v46, %v2503_v59  ;;  %2500 = vst [vmem:[%s8964_s6 + $0x168] sm:$0xff] %v2452_v40  ;;  %v3861_v49 = vadd.f32 %v7827_v32, %v3035_v9  ;;  %v2508_v32 = vld [vmem:[%s8964_s6 + $0x28] sm:$0xff]  ;;  %v6337_v9 = vsel %vm2060_vm0, %v6334_v1, %v6336_v3  ;;  %v5565_v40 = vshrl.u32 %v8414_v43, 16  ;;  %v9502_v59 = vld [vmem:[%s8506_s26 + $0x60] sm:$0xff]  }
 0x180   : > { %v7764_v18 = vpop.f32.mrf.mxu1  ;;  %v7828_v29 = vpop.f32.mrf.mxu0 }
 0x181   : > { %v3036_v13 = vadd.f32 %v7764_v18, %v2506_v45  ;;  %3909 = vst [vmem:[%s8964_s6 + $0x10] sm:$0xff] %v3861_v49  ;;  %v3859_v14 = vadd.f32 %v3668_v56, %v3033_v22  ;;  %v8418_v22 = vld [vmem:[%s8506_s26 + $0x68] sm:$0xff]   ;;  %v5559_v18 = vor.u32 %v5557_v47, %v5555_v53 }
 0x182   : > { %v2845_v44 = vpop.f32.mrf.mxu1  ;;  %v3671_v11 = vpop.f32.mrf.mxu0  ;;  %v5577_v37 = vshll.u32 %v8418_v22, 16 }
 0x183   : > { %v3034_v21 = vadd.f32 %v2845_v44, %v2504_v19  ;;  %3907 = vst [vmem:[%s8964_s6] sm:$0xff] %v3859_v14  ;;  %v3862_v16 = vadd.f32 %v7828_v29, %v3036_v13  ;;  %v6338_v29 = vrot.slane %v8416_v23, 1  ;;  %v5567_v13 = vor.u32 %v5565_v40, %v5563_v36  ;;  %v9534_v23 = vld [vmem:[%s8506_s26 + $0x80] sm:$0xff]  }
 0x184   : > { %v7767_v27 = vpop.f32.mrf.mxu1  ;;  %8022 = vmatmul.mubr.bf16.gmra.mxu1 %v5532_v38  ;;  %v7831_v26 = vpop.f32.mrf.mxu0  ;;  %8086 = vmatmul.mubr.bf16.gmra.mxu0 %v6331_v7  ;;  %v2511_v7 = vld [vmem:[%s8964_s6 + $0x40] sm:$0xff]  ;;  %v5571_v14 = vrot.slane %v5569_v55, 1  ;;  %v6340_v38 = vrot.slane %v9502_v59, 1  ;;  %v5579_v28 = vrot.slane %v5577_v37, 1  ;;  %v8424_v59 = vld [vmem:[%s8506_s26 + $0x78] sm:$0xff]  }
 0x185   : > { %v3039_v24 = vadd.f32 %v7767_v27, %v2509_v60  ;;  %3910 = vst [vmem:[%s8964_s6 + $0x18] sm:$0xff] %v3862_v16  ;;  %v3860_v20 = vadd.f32 %v3671_v11, %v3034_v21  ;;  %8025 = vmatprep.mubr.bf16.mxu1 %v5540_v41  ;;  %8089 = vmatprep.mubr.bf16.mxu0 %v6333_v10  ;;  %v2514_v11 = vld [vmem:[%s8964_s6 + $0x58] sm:$0xff] }
 0x186   : > { %v2858_v33 = vpop.f32.mrf.mxu1  ;;  %v3684_v5 = vpop.f32.mrf.mxu0  ;;  %v5564_v60 = vsel %vm1233_vm1, %v5559_v18, %v5563_v36  ;;  %v6339_v27 = vsel %vm2060_vm0, %v6336_v3, %v6338_v29  ;;  %v5572_v43 = vsel %vm1233_vm1, %v5567_v13, %v5571_v14  ;;  %v2521_v13 = vld [vmem:[%s8964_s6 + $0x90] sm:$0xff] }
 0x187   : > { %v3037_v17 = vadd.f32 %v2858_v33, %v2507_v50  ;;  %3908 = vst [vmem:[%s8964_s6 + $0x8] sm:$0xff] %v3860_v20  ;;  %v3865_v15 = vadd.f32 %v7831_v26, %v3039_v24  ;;  %v2512_v26 = vld [vmem:[%s8964_s6 + $0x48] sm:$0xff]  ;;  %v6341_v24 = vsel %vm2060_vm0, %v6338_v29, %v6340_v38  ;;  %v5581_v20 = vshrl.u32 %v8418_v22, 16  ;;  %v9525_v50 = vld [vmem:[%s8506_s26 + $0x70] sm:$0xff]  }
 0x188   : > { %v7768_v39 = vpop.f32.mrf.mxu1  ;;  %v7832_v31 = vpop.f32.mrf.mxu0  ;;  %v6344_v47 = vrot.slane %v9525_v50, 1  ;;  %v5601_v29 = vshll.u32 %v9534_v23, 16 }
 0x189   : > { %v3040_v61 = vadd.f32 %v7768_v39, %v2510_v42  ;;  %3913 = vst [vmem:[%s8964_s6 + $0x30] sm:$0xff] %v3865_v15  ;;  %v3863_v12 = vadd.f32 %v3684_v5, %v3037_v17  ;;  %v6342_v17 = vrot.slane %v8420_v0, 1  ;;  %v8422_v15 = vld [vmem:[%s8506_s26 + $0x78] sm:$0xff]  }
 0x18a   : > { %v2861_v63 = vpop.f32.mrf.mxu1  ;;  %v3687_v30 = vpop.f32.mrf.mxu0  ;;  %v5593_v55 = vshll.u32 %v8422_v15, 16  ;;  %v5597_v18 = vshrl.u32 %v8422_v15, 16 }
 0x18b   : > { %v3038_v46 = vadd.f32 %v2861_v63, %v2508_v32  ;;  %3911 = vst [vmem:[%s8964_s6 + $0x20] sm:$0xff] %v3863_v12  ;;  %v3866_v56 = vadd.f32 %v7832_v31, %v3040_v61  ;;  %v5575_v31 = vor.u32 %v5573_v52, %v5571_v14  ;;  %v5583_v12 = vor.u32 %v5581_v20, %v5579_v28  ;;  %v2519_v52 = vld [vmem:[%s8964_s6 + $0x80] sm:$0xff] }
 0x18c   : > { %v7771_v58 = vpop.f32.mrf.mxu1  ;;  %8026 = vmatmul.mubr.bf16.gmra.mxu1 %v5548_v48  ;;  %v7835_v2 = vpop.f32.mrf.mxu0  ;;  %8090 = vmatmul.mubr.bf16.gmra.mxu0 %v6335_v25  ;;  %v2515_v25 = vld [vmem:[%s8964_s6 + $0x60] sm:$0xff]  ;;  %v5587_v48 = vrot.slane %v5585_v54, 1  ;;  %v6343_v40 = vsel %vm2060_vm0, %v6340_v38, %v6342_v17 }
 0x18d   : > { %v3043_v49 = vadd.f32 %v7771_v58, %v2513_v57  ;;  %3914 = vst [vmem:[%s8964_s6 + $0x38] sm:$0xff] %v3866_v56  ;;  %v3864_v45 = vadd.f32 %v3687_v30, %v3038_v46  ;;  %8029 = vmatprep.mubr.bf16.mxu1 %v5556_v8  ;;  %8093 = vmatprep.mubr.bf16.mxu0 %v6337_v9  ;;  %v2518_v30 = vld [vmem:[%s8964_s6 + $0x78] sm:$0xff]  ;;  %v5589_v58 = vshrl.u32 %v9511_v51, 16  ;;  %v5595_v51 = vrot.slane %v5593_v55, 1 }
 0x18e   : > { %v2874_v34 = vpop.f32.mrf.mxu1  ;;  %v3700_v4 = vpop.f32.mrf.mxu0  ;;  %v5580_v57 = vsel %vm1233_vm1, %v5575_v31, %v5579_v28 }
 0x18f   : > { %v3041_v19 = vadd.f32 %v2874_v34, %v2511_v7  ;;  %3912 = vst [vmem:[%s8964_s6 + $0x28] sm:$0xff] %v3864_v45  ;;  %v3869_v44 = vadd.f32 %v7835_v2, %v3043_v49  ;;  %v2516_v2 = vld [vmem:[%s8964_s6 + $0x68] sm:$0xff]  ;;  %v5588_v49 = vsel %vm1233_vm1, %v5583_v12, %v5587_v48  ;;  %v6345_v45 = vsel %vm2060_vm0, %v6342_v17, %v6344_v47  ;;  %v9548_v7 = vld [vmem:[%s8506_s26 + $0x80] sm:$0xff]   ;;  %v2525_v12 = vld [vmem:[%s8964_s6 + $0xb0] sm:$0xff] }
 0x190   : > { %v7772_v41 = vpop.f32.mrf.mxu1  ;;  %v7836_v10 = vpop.f32.mrf.mxu0 }
 0x191   : > { %v3044_v21 = vadd.f32 %v7772_v41, %v2514_v11  ;;  %3917 = vst [vmem:[%s8964_s6 + $0x50] sm:$0xff] %v3869_v44  ;;  %v3867_v16 = vadd.f32 %v3700_v4, %v3041_v19  ;;  %v6346_v19 = vrot.slane %v8424_v59, 1  ;;  %v8426_v44 = vld [vmem:[%s8506_s26 + $0x88] sm:$0xff]  }
 0x192   : > { %v2877_v35 = vpop.f32.mrf.mxu1  ;;  %v3703_v1 = vpop.f32.mrf.mxu0  ;;  %v5609_v54 = vshll.u32 %v8426_v44, 16 }
 0x193   : > { %v3042_v33 = vadd.f32 %v2877_v35, %v2512_v26  ;;  %3915 = vst [vmem:[%s8964_s6 + $0x40] sm:$0xff] %v3867_v16  ;;  %v3870_v5 = vadd.f32 %v7836_v10, %v3044_v21  ;;  %v5591_v10 = vor.u32 %v5589_v58, %v5587_v48  ;;  %v5599_v21 = vor.u32 %v5597_v18, %v5595_v51  ;;  %v9580_v58 = vld [vmem:[%s8506_s26 + $0xa0] sm:$0xff]  }
 0x194   : > { %v7775_v53 = vpop.f32.mrf.mxu1  ;;  %8030 = vmatmul.mubr.bf16.gmra.mxu1 %v5564_v60  ;;  %v7839_v3 = vpop.f32.mrf.mxu0  ;;  %8094 = vmatmul.mubr.bf16.gmra.mxu0 %v6339_v27  ;;  %v5603_v16 = vrot.slane %v5601_v29, 1  ;;  %v6348_v60 = vrot.slane %v9548_v7, 1  ;;  %v9557_v27 = vld [vmem:[%s8506_s26 + $0x90] sm:$0xff]   ;;  %v6347_v20 = vsel %vm2060_vm0, %v6344_v47, %v6346_v19 }
 0x195   : > { %v3047_v42 = vadd.f32 %v7775_v53, %v2517_v6  ;;  %3918 = vst [vmem:[%s8964_s6 + $0x58] sm:$0xff] %v3870_v5  ;;  %v3868_v39 = vadd.f32 %v3703_v1, %v3042_v33  ;;  %8033 = vmatprep.mubr.bf16.mxu1 %v5572_v43  ;;  %8097 = vmatprep.mubr.bf16.mxu0 %v6341_v24  ;;  %v2522_v1 = vld [vmem:[%s8964_s6 + $0x98] sm:$0xff]  ;;  %v5605_v6 = vshrl.u32 %v9534_v23, 16  ;;  %v8428_v53 = vld [vmem:[%s8506_s26 + $0x88] sm:$0xff]   ;;  %v5617_v31 = vshll.u32 %v9557_v27, 16 }
 0x196   : > { %v2890_v62 = vpop.f32.mrf.mxu1  ;;  %v3716_v61 = vpop.f32.mrf.mxu0  ;;  %v5596_v5 = vsel %vm1233_vm1, %v5591_v10, %v5595_v51  ;;  %v5604_v15 = vsel %vm1233_vm1, %v5599_v21, %v5603_v16  ;;  %v5611_v23 = vrot.slane %v5609_v54, 1  ;;  %v5621_v18 = vshrl.u32 %v9557_v27, 16  ;;  %v2529_v21 = vld [vmem:[%s8964_s6 + $0xd0] sm:$0xff] }
 0x197   : > { %v3045_v32 = vadd.f32 %v2890_v62, %v2515_v25  ;;  %3916 = vst [vmem:[%s8964_s6 + $0x48] sm:$0xff] %v3868_v39  ;;  %v3873_v63 = vadd.f32 %v7839_v3, %v3047_v42  ;;  %v2520_v3 = vld [vmem:[%s8964_s6 + $0x88] sm:$0xff]  ;;  %v6349_v42 = vsel %vm2060_vm0, %v6346_v19, %v6348_v60  ;;  %v5613_v39 = vshrl.u32 %v8426_v44, 16  ;;  %v9571_v25 = vld [vmem:[%s8506_s26 + $0x90] sm:$0xff]  }
 0x198   : > { %v7776_v8 = vpop.f32.mrf.mxu1  ;;  %v7840_v9 = vpop.f32.mrf.mxu0  ;;  %v5633_v10 = vshll.u32 %v9580_v58, 16 }
 0x199   : > { %v3048_v46 = vadd.f32 %v7776_v8, %v2518_v30  ;;  %3921 = vst [vmem:[%s8964_s6 + $0x70] sm:$0xff] %v3873_v63  ;;  %v3871_v56 = vadd.f32 %v3716_v61, %v3045_v32  ;;  %v8430_v32 = vld [vmem:[%s8506_s26 + $0x98] sm:$0xff]   ;;  %v5607_v8 = vor.u32 %v5605_v6, %v5603_v16 }
 0x19a   : > { %v2893_v36 = vpop.f32.mrf.mxu1  ;;  %v3719_v22 = vpop.f32.mrf.mxu0  ;;  %v5625_v29 = vshll.u32 %v8430_v32, 16 }
 0x19b   : > { %v3046_v34 = vadd.f32 %v2893_v36, %v2516_v2  ;;  %3919 = vst [vmem:[%s8964_s6 + $0x60] sm:$0xff] %v3871_v56  ;;  %v3874_v4 = vadd.f32 %v7840_v9, %v3048_v46  ;;  %v6350_v9 = vrot.slane %v8428_v53, 1  ;;  %v5615_v46 = vor.u32 %v5613_v39, %v5611_v23  ;;  %v9603_v53 = vld [vmem:[%s8506_s26 + $0xb0] sm:$0xff]  }
 0x19c   : > { %v7779_v14 = vpop.f32.mrf.mxu1  ;;  %8034 = vmatmul.mubr.bf16.gmra.mxu1 %v5580_v57  ;;  %v7843_v38 = vpop.f32.mrf.mxu0  ;;  %8098 = vmatmul.mubr.bf16.gmra.mxu0 %v6343_v40  ;;  %v2523_v40 = vld [vmem:[%s8964_s6 + $0xa0] sm:$0xff]  ;;  %v5619_v56 = vrot.slane %v5617_v31, 1  ;;  %v6352_v57 = vrot.slane %v9571_v25, 1  ;;  %v8436_v25 = vld [vmem:[%s8506_s26 + $0xa8] sm:$0xff]  }
 0x19d   : > { %v3051_v11 = vadd.f32 %v7779_v14, %v2521_v13  ;;  %3922 = vst [vmem:[%s8964_s6 + $0x78] sm:$0xff] %v3874_v4  ;;  %v3872_v41 = vadd.f32 %v3719_v22, %v3046_v34  ;;  %8037 = vmatprep.mubr.bf16.mxu1 %v5588_v49  ;;  %8101 = vmatprep.mubr.bf16.mxu0 %v6345_v45  ;;  %v2526_v22 = vld [vmem:[%s8964_s6 + $0xb8] sm:$0xff] }
 0x19e   : > { %v2906_v37 = vpop.f32.mrf.mxu1  ;;  %v3732_v0 = vpop.f32.mrf.mxu0  ;;  %v5612_v4 = vsel %vm1233_vm1, %v5607_v8, %v5611_v23  ;;  %v6351_v13 = vsel %vm2060_vm0, %v6348_v60, %v6350_v9  ;;  %v8432_v14 = vld [vmem:[%s8506_s26 + $0x98] sm:$0xff]   ;;  %v5620_v44 = vsel %vm1233_vm1, %v5615_v46, %v5619_v56  ;;  %v5623_v27 = vor.u32 %v5621_v18, %v5619_v56  ;;  %v2533_v46 = vld [vmem:[%s8964_s6 + $0xf0] sm:$0xff]  ;;  %v2531_v18 = vld [vmem:[%s8964_s6 + $0xe0] sm:$0xff] }
 0x19f   : > { %v3049_v26 = vadd.f32 %v2906_v37, %v2519_v52  ;;  %3920 = vst [vmem:[%s8964_s6 + $0x68] sm:$0xff] %v3872_v41  ;;  %v3877_v35 = vadd.f32 %v7843_v38, %v3051_v11  ;;  %v2524_v38 = vld [vmem:[%s8964_s6 + $0xa8] sm:$0xff]  ;;  %v6353_v11 = vsel %vm2060_vm0, %v6350_v9, %v6352_v57  ;;  %v5629_v41 = vshrl.u32 %v8430_v32, 16  ;;  %v9594_v52 = vld [vmem:[%s8506_s26 + $0xa0] sm:$0xff]  }
 0x1a0   : > { %v7780_v43 = vpop.f32.mrf.mxu1  ;;  %v7844_v24 = vpop.f32.mrf.mxu0  ;;  %v6356_v6 = vrot.slane %v9594_v52, 1  ;;  %v5649_v9 = vshll.u32 %v9603_v53, 16  ;;  %v8440_v52 = vld [vmem:[%s8506_s26 + $0xb8] sm:$0xff]  }
 0x1a1   : > { %v3052_v50 = vadd.f32 %v7780_v43, %v2522_v1  ;;  %3925 = vst [vmem:[%s8964_s6 + $0x90] sm:$0xff] %v3877_v35  ;;  %v3875_v33 = vadd.f32 %v3732_v0, %v3049_v26  ;;  %v5627_v26 = vrot.slane %v5625_v29, 1  ;;  %v8434_v35 = vld [vmem:[%s8506_s26 + $0xa8] sm:$0xff]  }
 0x1a2   : > { %v2909_v28 = vpop.f32.mrf.mxu1  ;;  %v3735_v17 = vpop.f32.mrf.mxu0  ;;  %v5641_v31 = vshll.u32 %v8434_v35, 16  ;;  %v5645_v8 = vshrl.u32 %v8434_v35, 16 }
 0x1a3   : > { %v3050_v62 = vadd.f32 %v2909_v28, %v2520_v3  ;;  %3923 = vst [vmem:[%s8964_s6 + $0x80] sm:$0xff] %v3875_v33  ;;  %v3878_v61 = vadd.f32 %v7844_v24, %v3052_v50  ;;  %v6354_v24 = vrot.slane %v8432_v14, 1  ;;  %v5631_v33 = vor.u32 %v5629_v41, %v5627_v26  ;;  %v9630_v14 = vld [vmem:[%s8506_s26 + $0xc0] sm:$0xff]  }
 0x1a4   : > { %v7783_v48 = vpop.f32.mrf.mxu1  ;;  %8038 = vmatmul.mubr.bf16.gmra.mxu1 %v5596_v5  ;;  %v7847_v47 = vpop.f32.mrf.mxu0  ;;  %8102 = vmatmul.mubr.bf16.gmra.mxu0 %v6347_v20  ;;  %v2527_v20 = vld [vmem:[%s8964_s6 + $0xc0] sm:$0xff]  ;;  %v5635_v5 = vrot.slane %v5633_v10, 1 }
 0x1a5   : > { %v3055_v63 = vadd.f32 %v7783_v48, %v2525_v12  ;;  %3926 = vst [vmem:[%s8964_s6 + $0x98] sm:$0xff] %v3878_v61  ;;  %v3876_v30 = vadd.f32 %v3735_v17, %v3050_v62  ;;  %8041 = vmatprep.mubr.bf16.mxu1 %v5604_v15  ;;  %8105 = vmatprep.mubr.bf16.mxu0 %v6349_v42  ;;  %v2530_v17 = vld [vmem:[%s8964_s6 + $0xd8] sm:$0xff]  ;;  %v5637_v48 = vshrl.u32 %v9580_v58, 16  ;;  %v5643_v58 = vrot.slane %v5641_v31, 1 }
 0x1a6   : > { %v2922_v55 = vpop.f32.mrf.mxu1  ;;  %v3748_v59 = vpop.f32.mrf.mxu0  ;;  %v5628_v42 = vsel %vm1233_vm1, %v5623_v27, %v5627_v26  ;;  %v6355_v12 = vsel %vm2060_vm0, %v6352_v57, %v6354_v24 }
 0x1a7   : > { %v3053_v2 = vadd.f32 %v2922_v55, %v2523_v40  ;;  %3924 = vst [vmem:[%s8964_s6 + $0x88] sm:$0xff] %v3876_v30  ;;  %v3881_v36 = vadd.f32 %v7847_v47, %v3055_v63  ;;  %v2528_v47 = vld [vmem:[%s8964_s6 + $0xc8] sm:$0xff]  ;;  %v5636_v63 = vsel %vm1233_vm1, %v5631_v33, %v5635_v5  ;;  %v6357_v30 = vsel %vm2060_vm0, %v6354_v24, %v6356_v6  ;;  %v9619_v40 = vld [vmem:[%s8506_s26 + $0xb0] sm:$0xff]  }
 0x1a8   : > { %v7784_v49 = vpop.f32.mrf.mxu1  ;;  %v7848_v45 = vpop.f32.mrf.mxu0  ;;  %v5665_v24 = vshll.u32 %v9630_v14, 16  ;;  %v2537_v33 = vld [vmem:[%s8964_s6 + $0x110] sm:$0xff] }
 0x1a9   : > { %v3056_v7 = vadd.f32 %v7784_v49, %v2526_v22  ;;  %3929 = vst [vmem:[%s8964_s6 + $0xb0] sm:$0xff] %v3881_v36  ;;  %v3879_v34 = vadd.f32 %v3748_v59, %v3053_v2  ;;  %v6358_v2 = vrot.slane %v8436_v25, 1  ;;  %v8438_v36 = vld [vmem:[%s8506_s26 + $0xb8] sm:$0xff]  }
 0x1aa   : > { %v2925_v51 = vpop.f32.mrf.mxu1  ;;  %v3751_v19 = vpop.f32.mrf.mxu0  ;;  %v5657_v10 = vshll.u32 %v8438_v36, 16 }
 0x1ab   : > { %v3054_v37 = vadd.f32 %v2925_v51, %v2524_v38  ;;  %3927 = vst [vmem:[%s8964_s6 + $0xa0] sm:$0xff] %v3879_v34  ;;  %v3882_v0 = vadd.f32 %v7848_v45, %v3056_v7  ;;  %v5639_v45 = vor.u32 %v5637_v48, %v5635_v5  ;;  %v5647_v34 = vor.u32 %v5645_v8, %v5643_v58 }
 0x1ac   : > { %v7787_v16 = vpop.f32.mrf.mxu1  ;;  %8042 = vmatmul.mubr.bf16.gmra.mxu1 %v5612_v4  ;;  %v7851_v60 = vpop.f32.mrf.mxu0  ;;  %8106 = vmatmul.mubr.bf16.gmra.mxu0 %v6351_v13  ;;  %v5651_v4 = vrot.slane %v5649_v9, 1  ;;  %v6360_v13 = vrot.slane %v9619_v40, 1  ;;  %v6359_v41 = vsel %vm2060_vm0, %v6356_v6, %v6358_v2 }
 0x1ad   : > { %v3059_v1 = vadd.f32 %v7787_v16, %v2529_v21  ;;  %3930 = vst [vmem:[%s8964_s6 + $0xb8] sm:$0xff] %v3882_v0  ;;  %v3880_v43 = vadd.f32 %v3751_v19, %v3054_v37  ;;  %8045 = vmatprep.mubr.bf16.mxu1 %v5620_v44  ;;  %8109 = vmatprep.mubr.bf16.mxu0 %v6353_v11  ;;  %v2534_v19 = vld [vmem:[%s8964_s6 + $0xf8] sm:$0xff]  ;;  %v5653_v16 = vshrl.u32 %v9603_v53, 16  ;;  %v5659_v53 = vrot.slane %v5657_v10, 1 }
 0x1ae   : > { %v2938_v54 = vpop.f32.mrf.mxu1  ;;  %v3764_v50 = vpop.f32.mrf.mxu0  ;;  %v5644_v21 = vsel %vm1233_vm1, %v5639_v45, %v5643_v58  ;;  %v5652_v35 = vsel %vm1233_vm1, %v5647_v34, %v5651_v4  ;;  %v8444_v58 = vld [vmem:[%s8506_s26 + $0xc8] sm:$0xff]   ;;  %v9673_v34 = vld [vmem:[%s8506_s26 + $0xd0] sm:$0xff]  }
 0x1af   : > { %v3057_v3 = vadd.f32 %v2938_v54, %v2527_v20  ;;  %3928 = vst [vmem:[%s8964_s6 + $0xa8] sm:$0xff] %v3880_v43  ;;  %v3885_v28 = vadd.f32 %v7851_v60, %v3059_v1  ;;  %v2532_v60 = vld [vmem:[%s8964_s6 + $0xe8] sm:$0xff]  ;;  %v6361_v1 = vsel %vm2060_vm0, %v6358_v2, %v6360_v13  ;;  %v5661_v43 = vshrl.u32 %v8438_v36, 16  ;;  %v9646_v20 = vld [vmem:[%s8506_s26 + $0xc0] sm:$0xff]  }
 0x1b0   : > { %v7788_v15 = vpop.f32.mrf.mxu1  ;;  %v7852_v39 = vpop.f32.mrf.mxu0  ;;  %v6364_v48 = vrot.slane %v9646_v20, 1  ;;  %v2536_v2 = vld [vmem:[%s8964_s6 + $0x108] sm:$0xff] }
 0x1b1   : > { %v3060_v62 = vadd.f32 %v7788_v15, %v2530_v17  ;;  %3933 = vst [vmem:[%s8964_s6 + $0xd0] sm:$0xff] %v3885_v28  ;;  %v9610_v61 = vadd.f32 %v3764_v50, %v3057_v3  ;;  %v6362_v3 = vrot.slane %v8440_v52, 1  ;;  %v8442_v28 = vld [vmem:[%s8506_s26 + $0xc8] sm:$0xff]  }
 0x1b2   : > { %v2941_v23 = vpop.f32.mrf.mxu1  ;;  %v3767_v32 = vpop.f32.mrf.mxu0  ;;  %v5673_v40 = vshll.u32 %v8442_v28, 16 }
 0x1b3   : > { %v3058_v55 = vadd.f32 %v2941_v23, %v2528_v47  ;;  %v9621_v59 = vadd.f32 %v7852_v39, %v3060_v62  ;;  %v2535_v39 = vld [vmem:[%s8964_s6 + $0x100] sm:$0xff]  ;;  %v5663_v62 = vor.u32 %v5661_v43, %v5659_v53  ;;  %v9657_v47 = vld [vmem:[%s8506_s26 + $0xd0] sm:$0xff]   ;;  %v6363_v9 = vsel %vm2060_vm0, %v6360_v13, %v6362_v3 }
 0x1b4   : > { %v7791_v56 = vpop.f32.mrf.mxu1  ;;  %8046 = vmatmul.mubr.bf16.gmra.mxu1 %v5628_v42  ;;  %v7855_v57 = vpop.f32.mrf.mxu0  ;;  %8110 = vmatmul.mubr.bf16.gmra.mxu0 %v6355_v12  ;;  %v5655_v42 = vor.u32 %v5653_v16, %v5651_v4  ;;  %v5667_v12 = vrot.slane %v5665_v24, 1  ;;  %v2542_v24 = vld [vmem:[%s8964_s6 + $0x138] sm:$0xff] }
 0x1b5   : > { %v3063_v22 = vadd.f32 %v7791_v56, %v2533_v46  ;;  %v9625_v49 = vadd.f32 %v3767_v32, %v3058_v55  ;;  %8049 = vmatprep.mubr.bf16.mxu1 %v5636_v63  ;;  %8113 = vmatprep.mubr.bf16.mxu0 %v6357_v30  ;;  %v2538_v63 = vld [vmem:[%s8964_s6 + $0x118] sm:$0xff] }
 0x1b6   : > { %v2954_v29 = vpop.f32.mrf.mxu1  ;;  %v3780_v7 = vpop.f32.mrf.mxu0  ;;  %v5660_v56 = vsel %vm1233_vm1, %v5655_v42, %v5659_v53  ;;  %v5668_v45 = vsel %vm1233_vm1, %v5663_v62, %v5667_v12  ;;  %v2540_v42 = vld [vmem:[%s8964_s6 + $0x128] sm:$0xff] }
 0x1b7   : > { %v3061_v38 = vadd.f32 %v2954_v29, %v2531_v18  ;;  %v9632_v51 = vadd.f32 %v7855_v57, %v3063_v22  ;;  %v5669_v57 = vshrl.u32 %v9630_v14, 16  ;;  %v6365_v18 = vsel %vm2060_vm0, %v6362_v3, %v6364_v48 }
 0x1b8   : > { %v7792_v44 = vpop.f32.mrf.mxu1  ;;  %v7856_v11 = vpop.f32.mrf.mxu0  ;;  %v5677_v29 = vshrl.u32 %v8442_v28, 16 }
 0x1b9   : > { %v3064_v37 = vadd.f32 %v7792_v44, %v2534_v19  ;;  %v9637_v0 = vadd.f32 %v3780_v7, %v3061_v38  ;;  %v5681_v7 = vshll.u32 %v9657_v47, 16  ;;  %v2541_v38 = vld [vmem:[%s8964_s6 + $0x130] sm:$0xff]  ;;  %v5675_v44 = vrot.slane %v5673_v40, 1 }
 0x1ba   : > { %v2957_v27 = vpop.f32.mrf.mxu1  ;;  %v3783_v26 = vpop.f32.mrf.mxu0  ;;  %v5671_v52 = vor.u32 %v5669_v57, %v5667_v12 }
 0x1bb   : > { %v3062_v54 = vadd.f32 %v2957_v27, %v2532_v60  ;;  %v9648_v50 = vadd.f32 %v7856_v11, %v3064_v37  ;;  %v8446_v11 = vld [vmem:[%s8506_s26 + $0xd8] ss:$0 sps:$4 sm:$0x11]   ;;  %v6366_v37 = vrot.slane %v8444_v58, 1  ;;  %v5679_v27 = vor.u32 %v5677_v29, %v5675_v44 }
 0x1bc   : > { %v7795_v5 = vpop.f32.mrf.mxu1  ;;  %8050 = vmatmul.mubr.bf16.gmra.mxu1 %v5644_v21  ;;  %v7859_v6 = vpop.f32.mrf.mxu0  ;;  %8114 = vmatmul.mubr.bf16.gmra.mxu0 %v6359_v41  ;;  %v2539_v21 = vld [vmem:[%s8964_s6 + $0x120] sm:$0xff]  ;;  %v5676_v3 = vsel %vm1233_vm1, %v5671_v52, %v5675_v44 }
 0x1bd   : > { %v3067_v17 = vadd.f32 %v7795_v5, %v2537_v33  ;;  %v9652_v15 = vadd.f32 %v3783_v26, %v3062_v54  ;;  %8053 = vmatprep.mubr.bf16.mxu1 %v5652_v35  ;;  %8117 = vmatprep.mubr.bf16.mxu0 %v6361_v1  ;;  %v5683_v26 = vrot.slane %v5681_v7, 1  ;;  %v6368_v35 = vrot.slane %v9673_v34, 1 }
 0x1be   : > { %v2970_v31 = vpop.f32.mrf.mxu1  ;;  %v3796_v25 = vpop.f32.mrf.mxu0  ;;  %v5685_v33 = vshrl.u32 %v9657_v47, 16  ;;  %v5689_v5 = vshll.u32 %v8446_v11, 16  ;;  %v6367_v28 = vsel %vm2060_vm0, %v6364_v48, %v6366_v37  ;;  %v2545_v47 = vld [vmem:[%s8964_s6 + $0x150] sm:$0xff] }
 0x1bf   : > { %v3065_v23 = vadd.f32 %v2970_v31, %v2535_v39  ;;  %v9659_v32 = vadd.f32 %v7859_v6, %v3067_v17  ;;  %v8448_v17 = vld [vmem:[%s8506_s26 + $0xd8] ss:$0 sps:$4 sm:$0x11]   ;;  %v6369_v62 = vsel %vm2060_vm0, %v6366_v37, %v6368_v35 }
 0x1c0   : > { %v7796_v30 = vpop.f32.mrf.mxu1  ;;  %v7860_v8 = vpop.f32.mrf.mxu0  ;;  %v5687_v40 = vor.u32 %v5685_v33, %v5683_v26 }
 0x1c1   : > { %v3068_v55 = vadd.f32 %v7796_v30, %v2538_v63  ;;  %v9663_v46 = vadd.f32 %v3796_v25, %v3065_v23  ;;  %v5684_v25 = vsel %vm1233_vm1, %v5679_v27, %v5683_v26 }
 0x1c2   : > { %v2973_v36 = vpop.f32.mrf.mxu1  ;;  %v3799_v22 = vpop.f32.mrf.mxu0 }
 0x1c3   : > { %v3066_v4 = vadd.f32 %v2973_v36, %v2536_v2  ;;  %v9675_v13 = vadd.f32 %v7860_v8, %v3068_v55  ;;  %v5691_v8 = vrot.slane %v5689_v5, 1  ;;  %v6370_v55 = vrot.slane %v8448_v17, 1 }
 0x1c4   : > { %v7799_v14 = vpop.f32.mrf.mxu1  ;;  %8054 = vmatmul.mubr.bf16.gmra.mxu1 %v5660_v56  ;;  %v7863_v19 = vpop.f32.mrf.mxu0  ;;  %8118 = vmatmul.mubr.bf16.gmra.mxu0 %v6363_v9  ;;  %v2543_v56 = vld [vmem:[%s8964_s6 + $0x140] sm:$0xff] }
 0x1c5   : > { %v3071_v41 = vadd.f32 %v7799_v14, %v2541_v38  ;;  %v9679_v10 = vadd.f32 %v3799_v22, %v3066_v4  ;;  %8057 = vmatprep.mubr.bf16.mxu1 %v5668_v45  ;;  %8121 = vmatprep.mubr.bf16.mxu0 %v6365_v18  ;;  %v2546_v22 = vld [vmem:[%s8964_s6 + $0x158] sm:$0xff]  ;;  %v5692_v34 = vsel %vm1233_vm1, %v5687_v40, %v5691_v8  ;;  %v2544_v38 = vld [vmem:[%s8964_s6 + $0x148] sm:$0xff] }
 0x1c6   : > { %v2986_v16 = vpop.f32.mrf.mxu1  ;;  %v3812_v60 = vpop.f32.mrf.mxu0  ;;  %v6371_v4 = vsel %vm2060_vm0, %v6368_v35, %v6370_v55  ;;  %v3958_v40 = vld [vmem:[%s8964_s6 + $0x18] sm:$0xff] }
 0x1c7   : > { %v3069_v1 = vadd.f32 %v2986_v16, %v2539_v21  ;;  %v9683_v43 = vadd.f32 %v7863_v19, %v3071_v41  ;;  %v2549_v41 = vld [vmem:[%s8964_s6 + $0x170] sm:$0xff] }
 0x1c8   : > { %v7800_v20 = vpop.f32.mrf.mxu1  ;;  %v7864_v54 = vpop.f32.mrf.mxu0 }
 0x1c9   : > { %v3072_v6 = vadd.f32 %v7800_v20, %v2542_v24  ;;  %v9687_v53 = vadd.f32 %v3812_v60, %v3069_v1  ;;  %v2547_v60 = vld [vmem:[%s8964_s6 + $0x160] sm:$0xff]  ;;  %v2550_v24 = vld [vmem:[%s8964_s6 + $0x178] sm:$0xff] }
 0x1ca   : > { %v2989_v39 = vpop.f32.mrf.mxu1  ;;  %v3815_v31 = vpop.f32.mrf.mxu0 }
 0x1cb   : > { %v3070_v12 = vadd.f32 %v2989_v39, %v2540_v42  ;;  %v9695_v23 = vadd.f32 %v7864_v54, %v3072_v6  ;;  %v2548_v6 = vld [vmem:[%s8964_s6 + $0x168] sm:$0xff]  ;;  %v3957_v39 = vld [vmem:[%s8964_s6 + $0x10] sm:$0xff] }
 0x1cc   : > { %v7803_v63 = vpop.f32.mrf.mxu1  ;;  %8058 = vmatmul.mubr.bf16.gmra.mxu1 %v5676_v3  ;;  %v7867_v30 = vpop.f32.mrf.mxu0  ;;  %8122 = vmatmul.mubr.bf16.gmra.mxu0 %v6367_v28 }
 0x1cd   : > { %v3075_v48 = vadd.f32 %v7803_v63, %v2545_v47  ;;  %v9698_v9 = vadd.f32 %v3815_v31, %v3070_v12  ;;  %8061 = vmatprep.mubr.bf16.mxu1 %v5684_v25  ;;  %8125 = vmatprep.mubr.bf16.mxu0 %v6369_v62  ;;  %v3955_v47 = vld [vmem:[%s8964_s6] sm:$0xff] }
 0x1ce   : > { %v3002_v57 = vpop.f32.mrf.mxu1  ;;  %v3828_v58 = vpop.f32.mrf.mxu0 }
 0x1cf   : > { %v3073_v2 = vadd.f32 %v3002_v57, %v2543_v56  ;;  %v9701_v36 = vadd.f32 %v7867_v30, %v3075_v48 }
 0x1d0   : > { %v7804_v45 = vpop.f32.mrf.mxu1  ;;  %v7868_v18 = vpop.f32.mrf.mxu0 }
 0x1d1   : > { %v3076_v29 = vadd.f32 %v7804_v45, %v2546_v22  ;;  %v9704_v7 = vadd.f32 %v3828_v58, %v3073_v2  ;;  %v3956_v2 = vld [vmem:[%s8964_s6 + $0x8] sm:$0xff] }
 0x1d2   : > { %v3005_v14 = vpop.f32.mrf.mxu1  ;;  %v3831_v19 = vpop.f32.mrf.mxu0 }
 0x1d3   : > { %v3074_v44 = vadd.f32 %v3005_v14, %v2544_v38  ;;  %v9709_v11 = vadd.f32 %v7868_v18, %v3076_v29 }
 0x1d4   : > { %v7807_v52 = vpop.f32.mrf.mxu1  ;;  %8062 = vmatmul.mubr.bf16.gmra.mxu1 %v5692_v34  ;;  %v7871_v37 = vpop.f32.mrf.mxu0  ;;  %8126 = vmatmul.mubr.bf16.gmra.mxu0 %v6371_v4  ;;  %v3961_v34 = vld [vmem:[%s8964_s6 + $0x30] sm:$0xff] }
 0x1d5   : > { %v3079_v21 = vadd.f32 %v7807_v52, %v2549_v41  ;;  %v9712_v16 = vadd.f32 %v3831_v19, %v3074_v44  ;;  %v3959_v44 = vld [vmem:[%s8964_s6 + $0x20] sm:$0xff] }
 0x1d6   : > { %v3018_v27 = vpop.f32.mrf.mxu1  ;;  %v3844_v26 = vpop.f32.mrf.mxu0 }
 0x1d7   : > { %v3077_v35 = vadd.f32 %v3018_v27, %v2547_v60  ;;  %v9715_v1 = vadd.f32 %v7871_v37, %v3079_v21  ;;  %v3962_v60 = vld [vmem:[%s8964_s6 + $0x38] sm:$0xff] }
 0x1d8   : > { %v7808_v20 = vpop.f32.mrf.mxu1  ;;  %v7872_v54 = vpop.f32.mrf.mxu0 }
 0x1d9   : > { %v3080_v33 = vadd.f32 %v7808_v20, %v2550_v24  ;;  %v9718_v5 = vadd.f32 %v3844_v26, %v3077_v35  ;;  %v3960_v20 = vld [vmem:[%s8964_s6 + $0x28] sm:$0xff] }
 0x1da   : > { %v3021_v3 = vpop.f32.mrf.mxu1  ;;  %v3847_v28 = vpop.f32.mrf.mxu0 }
 0x1db   : > { %v3078_v17 = vadd.f32 %v3021_v3, %v2548_v6  ;;  %v9721_v42 = vadd.f32 %v7872_v54, %v3080_v33 }
 0x1dc   : > { %v7891_v31 = vpop.f32.mrf.mxu1  ;;  %v7955_v25 = vpop.f32.mrf.mxu0 }
 0x1dd   : > { %v4540_v62 = vadd.f32 %v7891_v31, %v3957_v39  ;;  %v9724_v12 = vadd.f32 %v3847_v28, %v3078_v17  ;;  %v3965_v28 = vld [vmem:[%s8964_s6 + $0x50] sm:$0xff] }
 0x1de   : > { %v4347_v63 = vpop.f32.mrf.mxu1  ;;  %v4973_v30 = vpop.f32.mrf.mxu0 }
 0x1df   : > { %v4538_v8 = vadd.f32 %v4347_v63, %v3955_v47  ;;  %v9727_v48 = vadd.f32 %v7955_v25, %v4540_v62  ;;  %v3963_v62 = vld [vmem:[%s8964_s6 + $0x40] sm:$0xff] }
 0x1e0   : > { %v7892_v55 = vpop.f32.mrf.mxu1  ;;  %v7956_v56 = vpop.f32.mrf.mxu0 }
 0x1e1   : > { %v4541_v57 = vadd.f32 %v7892_v55, %v3958_v40  ;;  %v9730_v58 = vadd.f32 %v4973_v30, %v4538_v8  ;;  %v3966_v40 = vld [vmem:[%s8964_s6 + $0x58] sm:$0xff] }
 0x1e2   : > { %v4350_v22 = vpop.f32.mrf.mxu1  ;;  %v4976_v45 = vpop.f32.mrf.mxu0 }
 0x1e3   : > { %v4539_v18 = vadd.f32 %v4350_v22, %v3956_v2  ;;  %v9733_v29 = vadd.f32 %v7956_v56, %v4541_v57  ;;  %v3964_v22 = vld [vmem:[%s8964_s6 + $0x48] sm:$0xff] }
 0x1e4   : > { %v7895_v4 = vpop.f32.mrf.mxu1  ;;  %v7959_v38 = vpop.f32.mrf.mxu0 }
 0x1e5   : > { %v4544_v14 = vadd.f32 %v7895_v4, %v3961_v34  ;;  %v9736_v19 = vadd.f32 %v4976_v45, %v4539_v18 }
 0x1e6   : > { %v4363_v41 = vpop.f32.mrf.mxu1  ;;  %v4989_v52 = vpop.f32.mrf.mxu0 }
 0x1e7   : > { %v4542_v37 = vadd.f32 %v4363_v41, %v3959_v44  ;;  %v9739_v21 = vadd.f32 %v7959_v38, %v4544_v14  ;;  %v3969_v38 = vld [vmem:[%s8964_s6 + $0x70] sm:$0xff] }
 0x1e8   : > { %v7896_v27 = vpop.f32.mrf.mxu1  ;;  %v7960_v26 = vpop.f32.mrf.mxu0 }
 0x1e9   : > { %v4545_v35 = vadd.f32 %v7896_v27, %v3962_v60  ;;  %v9742_v24 = vadd.f32 %v4989_v52, %v4542_v37  ;;  %v3967_v37 = vld [vmem:[%s8964_s6 + $0x60] sm:$0xff] }
 0x1ea   : > { %v4366_v54 = vpop.f32.mrf.mxu1  ;;  %v4992_v33 = vpop.f32.mrf.mxu0 }
 0x1eb   : > { %v4543_v6 = vadd.f32 %v4366_v54, %v3960_v20  ;;  %v9745_v3 = vadd.f32 %v7960_v26, %v4545_v35  ;;  %v3970_v20 = vld [vmem:[%s8964_s6 + $0x78] sm:$0xff] }
 0x1ec   : > { %v7899_v17 = vpop.f32.mrf.mxu1  ;;  %v7963_v39 = vpop.f32.mrf.mxu0 }
 0x1ed   : > { %v4548_v31 = vadd.f32 %v7899_v17, %v3965_v28  ;;  %v9748_v25 = vadd.f32 %v4992_v33, %v4543_v6  ;;  %v3968_v17 = vld [vmem:[%s8964_s6 + $0x68] sm:$0xff] }
 0x1ee   : > { %v4379_v47 = vpop.f32.mrf.mxu1  ;;  %v5005_v63 = vpop.f32.mrf.mxu0 }
 0x1ef   : > { %v4546_v30 = vadd.f32 %v4379_v47, %v3963_v62  ;;  %v9751_v8 = vadd.f32 %v7963_v39, %v4548_v31 }
 0x1f0   : > { %v7900_v55 = vpop.f32.mrf.mxu1  ;;  %v7964_v56 = vpop.f32.mrf.mxu0 }
 0x1f1   : > { %v4549_v57 = vadd.f32 %v7900_v55, %v3966_v40  ;;  %v9754_v2 = vadd.f32 %v5005_v63, %v4546_v30  ;;  %v3973_v63 = vld [vmem:[%s8964_s6 + $0x90] sm:$0xff] }
 0x1f2   : > { %v4382_v45 = vpop.f32.mrf.mxu1  ;;  %v5008_v18 = vpop.f32.mrf.mxu0 }
 0x1f3   : > { %v4547_v34 = vadd.f32 %v4382_v45, %v3964_v22  ;;  %v9757_v4 = vadd.f32 %v7964_v56, %v4549_v57  ;;  %v3971_v57 = vld [vmem:[%s8964_s6 + $0x80] sm:$0xff] }
 0x1f4   : > { %v7903_v14 = vpop.f32.mrf.mxu1  ;;  %v7967_v44 = vpop.f32.mrf.mxu0 }
 0x1f5   : > { %v4552_v41 = vadd.f32 %v7903_v14, %v3969_v38  ;;  %v9760_v52 = vadd.f32 %v5008_v18, %v4547_v34  ;;  %v3974_v38 = vld [vmem:[%s8964_s6 + $0x98] sm:$0xff] }
 0x1f6   : > { %v4395_v60 = vpop.f32.mrf.mxu1  ;;  %v5021_v27 = vpop.f32.mrf.mxu0 }
 0x1f7   : > { %v4550_v26 = vadd.f32 %v4395_v60, %v3967_v37  ;;  %v9763_v35 = vadd.f32 %v7967_v44, %v4552_v41  ;;  %v3972_v60 = vld [vmem:[%s8964_s6 + $0x88] sm:$0xff] }
 0x1f8   : > { %v7904_v54 = vpop.f32.mrf.mxu1  ;;  %v7968_v33 = vpop.f32.mrf.mxu0 }
 0x1f9   : > { %v4553_v6 = vadd.f32 %v7904_v54, %v3970_v20  ;;  %v9766_v28 = vadd.f32 %v5021_v27, %v4550_v26 }
 0x1fa   : > { %v4398_v39 = vpop.f32.mrf.mxu1  ;;  %v5024_v31 = vpop.f32.mrf.mxu0 }
 0x1fb   : > { %v4551_v62 = vadd.f32 %v4398_v39, %v3968_v17  ;;  %v9769_v47 = vadd.f32 %v7968_v33, %v4553_v6  ;;  %v3977_v33 = vld [vmem:[%s8964_s6 + $0xb0] sm:$0xff] }
 0x1fc   : > { %v7907_v30 = vpop.f32.mrf.mxu1  ;;  %v7971_v40 = vpop.f32.mrf.mxu0 }
 0x1fd   : > { %v4556_v55 = vadd.f32 %v7907_v30, %v3973_v63  ;;  %v9772_v56 = vadd.f32 %v5024_v31, %v4551_v62  ;;  %v3975_v62 = vld [vmem:[%s8964_s6 + $0xa0] sm:$0xff] }
 0x1fe   : > { %v4411_v22 = vpop.f32.mrf.mxu1  ;;  %v5037_v45 = vpop.f32.mrf.mxu0 }
 0x1ff   : > { %v4554_v18 = vadd.f32 %v4411_v22, %v3971_v57  ;;  %v9775_v34 = vadd.f32 %v7971_v40, %v4556_v55  ;;  %v3978_v57 = vld [vmem:[%s8964_s6 + $0xb8] sm:$0xff] }
 0x200   : > { %v7908_v14 = vpop.f32.mrf.mxu1  ;;  %v7972_v44 = vpop.f32.mrf.mxu0 }
 0x201   : > { %v4557_v41 = vadd.f32 %v7908_v14, %v3974_v38  ;;  %v9778_v37 = vadd.f32 %v5037_v45, %v4554_v18  ;;  %v3976_v14 = vld [vmem:[%s8964_s6 + $0xa8] sm:$0xff] }
 0x202   : > { %v4414_v27 = vpop.f32.mrf.mxu1  ;;  %v5040_v26 = vpop.f32.mrf.mxu0 }
 0x203   : > { %v4555_v20 = vadd.f32 %v4414_v27, %v3972_v60  ;;  %v9781_v54 = vadd.f32 %v7972_v44, %v4557_v41 }
 0x204   : > { %v7911_v6 = vpop.f32.mrf.mxu1  ;;  %v7975_v17 = vpop.f32.mrf.mxu0 }
 0x205   : > { %v4560_v39 = vadd.f32 %v7911_v6, %v3977_v33  ;;  %v9784_v31 = vadd.f32 %v5040_v26, %v4555_v20  ;;  %v3981_v26 = vld [vmem:[%s8964_s6 + $0xd0] sm:$0xff] }
 0x206   : > { %v4427_v63 = vpop.f32.mrf.mxu1  ;;  %v5053_v30 = vpop.f32.mrf.mxu0 }
 0x207   : > { %9983 = vst [vmem:[#allocation4_spill] sm:$0xff] %v9784_v31  ;;  %v4558_v40 = vadd.f32 %v4427_v63, %v3975_v62  ;;  %v9787_v55 = vadd.f32 %v7975_v17, %v4560_v39 }
 0x208   : > { %v7912_v22 = vpop.f32.mrf.mxu1  ;;  %v7976_v45 = vpop.f32.mrf.mxu0 }
 0x209   : > { %v4561_v18 = vadd.f32 %v7912_v22, %v3978_v57  ;;  %v9790_v38 = vadd.f32 %v5053_v30, %v4558_v40 }
 0x20a   : > { %v4430_v44 = vpop.f32.mrf.mxu1  ;;  %v5056_v41 = vpop.f32.mrf.mxu0 }
 0x20b   : > { %v4559_v60 = vadd.f32 %v4430_v44, %v3976_v14  ;;  %v9793_v27 = vadd.f32 %v7976_v45, %v4561_v18 }
 0x20c   : > { %v7915_v20 = vpop.f32.mrf.mxu1  ;;  %v7979_v33 = vpop.f32.mrf.mxu0 }
 0x20d   : > { %v4564_v6 = vadd.f32 %v7915_v20, %v3981_v26  ;;  %v9796_v31 = vadd.f32 %v5056_v41, %v4559_v60 }
 0x20e   : > { %v4443_v17 = vpop.f32.mrf.mxu1  ;;  %v5069_v39 = vpop.f32.mrf.mxu0 }
 0x20f   : > { %v4562_v62 = vadd.f32 %v4443_v17, %v9610_v61  ;;  %v9799_v63 = vadd.f32 %v7979_v33, %v4564_v6 }
 0x210   : > { %v7916_v30 = vpop.f32.mrf.mxu1  ;;  %v7980_v40 = vpop.f32.mrf.mxu0 }
 0x211   : > { %v4565_v57 = vadd.f32 %v7916_v30, %v9621_v59  ;;  %v9802_v22 = vadd.f32 %v5069_v39, %v4562_v62 }
 0x212   : > { %v4446_v45 = vpop.f32.mrf.mxu1  ;;  %v5072_v18 = vpop.f32.mrf.mxu0 }
 0x213   : > { %v4563_v14 = vadd.f32 %v4446_v45, %v9625_v49  ;;  %v9805_v44 = vadd.f32 %v7980_v40, %v4565_v57 }
 0x214   : > { %v7919_v41 = vpop.f32.mrf.mxu1  ;;  %v7983_v60 = vpop.f32.mrf.mxu0 }
 0x215   : > { %v4568_v26 = vadd.f32 %v7919_v41, %v9632_v51  ;;  %v9808_v20 = vadd.f32 %v5072_v18, %v4563_v14 }
 0x216   : > { %v4459_v61 = vpop.f32.mrf.mxu1  ;;  %v5085_v33 = vpop.f32.mrf.mxu0 }
 0x217   : > { %v4566_v6 = vadd.f32 %v4459_v61, %v9637_v0  ;;  %v9811_v17 = vadd.f32 %v7983_v60, %v4568_v26 }
 0x218   : > { %v7920_v59 = vpop.f32.mrf.mxu1  ;;  %v7984_v39 = vpop.f32.mrf.mxu0 }
 0x219   : > { %v4569_v62 = vadd.f32 %v7920_v59, %v9648_v50  ;;  %v9814_v30 = vadd.f32 %v5085_v33, %v4566_v6 }
 0x21a   : > { %v4462_v49 = vpop.f32.mrf.mxu1  ;;  %v5088_v40 = vpop.f32.mrf.mxu0 }
 0x21b   : > { %v4567_v57 = vadd.f32 %v4462_v49, %v9652_v15  ;;  %v9817_v45 = vadd.f32 %v7984_v39, %v4569_v62 }
 0x21c   : > { %v7923_v51 = vpop.f32.mrf.mxu1  ;;  %v7987_v18 = vpop.f32.mrf.mxu0 }
 0x21d   : > { %v4572_v14 = vadd.f32 %v7923_v51, %v9659_v32  ;;  %v9820_v41 = vadd.f32 %v5088_v40, %v4567_v57 }
 0x21e   : > { %v4475_v0 = vpop.f32.mrf.mxu1  ;;  %v5101_v60 = vpop.f32.mrf.mxu0 }
 0x21f   : > { %v4570_v26 = vadd.f32 %v4475_v0, %v9663_v46  ;;  %v9823_v61 = vadd.f32 %v7987_v18, %v4572_v14 }
 0x220   : > { %v7924_v50 = vpop.f32.mrf.mxu1  ;;  %v7988_v33 = vpop.f32.mrf.mxu0 }
 0x221   : > { %v4573_v6 = vadd.f32 %v7924_v50, %v9675_v13  ;;  %v9826_v59 = vadd.f32 %v5101_v60, %v4570_v26 }
 0x222   : > { %v4478_v15 = vpop.f32.mrf.mxu1  ;;  %v5104_v39 = vpop.f32.mrf.mxu0 }
 0x223   : > { %v4571_v62 = vadd.f32 %v4478_v15, %v9679_v10  ;;  %v9829_v49 = vadd.f32 %v7988_v33, %v4573_v6 }
 0x224   : > { %v7927_v32 = vpop.f32.mrf.mxu1  ;;  %v7991_v40 = vpop.f32.mrf.mxu0 }
 0x225   : > { %v4576_v57 = vadd.f32 %v7927_v32, %v9683_v43  ;;  %v9832_v51 = vadd.f32 %v5104_v39, %v4571_v62 }
 0x226   : > { %v4491_v46 = vpop.f32.mrf.mxu1  ;;  %v5117_v18 = vpop.f32.mrf.mxu0 }
 0x227   : > { %v4574_v14 = vadd.f32 %v4491_v46, %v9687_v53  ;;  %v9835_v0 = vadd.f32 %v7991_v40, %v4576_v57 }
 0x228   : > { %v7928_v13 = vpop.f32.mrf.mxu1  ;;  %v7992_v60 = vpop.f32.mrf.mxu0 }
 0x229   : > { %v4577_v26 = vadd.f32 %v7928_v13, %v9695_v23  ;;  %v9838_v50 = vadd.f32 %v5117_v18, %v4574_v14 }
 0x22a   : > { %v4494_v10 = vpop.f32.mrf.mxu1  ;;  %v5120_v33 = vpop.f32.mrf.mxu0 }
 0x22b   : > { %v4575_v6 = vadd.f32 %v4494_v10, %v9698_v9  ;;  %v9841_v15 = vadd.f32 %v7992_v60, %v4577_v26 }
 0x22c   : > { %v7931_v43 = vpop.f32.mrf.mxu1  ;;  %v7995_v39 = vpop.f32.mrf.mxu0 }
 0x22d   : > { %v4580_v62 = vadd.f32 %v7931_v43, %v9701_v36  ;;  %v9844_v32 = vadd.f32 %v5120_v33, %v4575_v6 }
 0x22e   : > { %v4507_v53 = vpop.f32.mrf.mxu1  ;;  %v5133_v40 = vpop.f32.mrf.mxu0 }
 0x22f   : > { %v4578_v57 = vadd.f32 %v4507_v53, %v9704_v7  ;;  %v9847_v46 = vadd.f32 %v7995_v39, %v4580_v62 }
 0x230   : > { %v7932_v23 = vpop.f32.mrf.mxu1  ;;  %v7996_v18 = vpop.f32.mrf.mxu0 }
 0x231   : > { %v4581_v14 = vadd.f32 %v7932_v23, %v9709_v11  ;;  %v9850_v13 = vadd.f32 %v5133_v40, %v4578_v57 }
 0x232   : > { %v4510_v9 = vpop.f32.mrf.mxu1  ;;  %v5136_v60 = vpop.f32.mrf.mxu0 }
 0x233   : > { %v4579_v26 = vadd.f32 %v4510_v9, %v9712_v16  ;;  %v9853_v10 = vadd.f32 %v7996_v18, %v4581_v14 }
 0x234   : > { %v7935_v36 = vpop.f32.mrf.mxu1  ;;  %v7999_v33 = vpop.f32.mrf.mxu0 }
 0x235   : > { %v4584_v6 = vadd.f32 %v7935_v36, %v9715_v1  ;;  %v9856_v43 = vadd.f32 %v5136_v60, %v4579_v26 }
 0x236   : > { %v4523_v7 = vpop.f32.mrf.mxu1  ;;  %v5149_v39 = vpop.f32.mrf.mxu0 }
 0x237   : > { %v4582_v62 = vadd.f32 %v4523_v7, %v9718_v5  ;;  %v9859_v53 = vadd.f32 %v7999_v33, %v4584_v6 }
 0x238   : > { %v7936_v11 = vpop.f32.mrf.mxu1  ;;  %v8000_v40 = vpop.f32.mrf.mxu0 }
 0x239   : > { %v4585_v57 = vadd.f32 %v7936_v11, %v9721_v42  ;;  %v9862_v23 = vadd.f32 %v5149_v39, %v4582_v62 }
 0x23a   : > { %v4526_v16 = vpop.f32.mrf.mxu1  ;;  %v5152_v18 = vpop.f32.mrf.mxu0 }
 0x23b   : > { %v4583_v14 = vadd.f32 %v4526_v16, %v9724_v12  ;;  %v9865_v1 = vadd.f32 %v8000_v40, %v4585_v57 }
 0x23c   : > { %v8019_v9 = vpop.f32.mrf.mxu1  ;;  %v8083_v60 = vpop.f32.mrf.mxu0 }
 0x23d   : > { %v5992_v5 = vadd.f32 %v8019_v9, %v9727_v48  ;;  %v9868_v26 = vadd.f32 %v5152_v18, %v4583_v14 }
 0x23e   : > { %v5799_v36 = vpop.f32.mrf.mxu1  ;;  %v6478_v33 = vpop.f32.mrf.mxu0 }
 0x23f   : > { %v5990_v42 = vadd.f32 %v5799_v36, %v9730_v58  ;;  %v6671_v6 = vadd.f32 %v8083_v60, %v5992_v5 }
 0x240   : > { %v8020_v7 = vpop.f32.mrf.mxu1  ;;  %v8084_v39 = vpop.f32.mrf.mxu0 }
 0x241   : > { %v5993_v62 = vadd.f32 %v8020_v7, %v9733_v29  ;;  %6719 = vst [vmem:[%s8964_s6 + $0x10] sm:$0xff] %v6671_v6  ;;  %v6669_v12 = vadd.f32 %v6478_v33, %v5990_v42 }
 0x242   : > { %v5802_v11 = vpop.f32.mrf.mxu1  ;;  %v6481_v40 = vpop.f32.mrf.mxu0 }
 0x243   : > { %v5991_v57 = vadd.f32 %v5802_v11, %v9736_v19  ;;  %6717 = vst [vmem:[%s8964_s6] sm:$0xff] %v6669_v12  ;;  %v6672_v48 = vadd.f32 %v8084_v39, %v5993_v62 }
 0x244   : > { %v8023_v16 = vpop.f32.mrf.mxu1  ;;  %v8087_v18 = vpop.f32.mrf.mxu0 }
 0x245   : > { %v5996_v14 = vadd.f32 %v8023_v16, %v9739_v21  ;;  %6720 = vst [vmem:[%s8964_s6 + $0x18] sm:$0xff] %v6672_v48  ;;  %v6670_v58 = vadd.f32 %v6481_v40, %v5991_v57 }
 0x246   : > { %v5815_v9 = vpop.f32.mrf.mxu1  ;;  %v6494_v60 = vpop.f32.mrf.mxu0 }
 0x247   : > { %v5994_v29 = vadd.f32 %v5815_v9, %v9742_v24  ;;  %6718 = vst [vmem:[%s8964_s6 + $0x8] sm:$0xff] %v6670_v58  ;;  %v6675_v5 = vadd.f32 %v8087_v18, %v5996_v14 }
 0x248   : > { %v8024_v36 = vpop.f32.mrf.mxu1  ;;  %v8088_v33 = vpop.f32.mrf.mxu0 }
 0x249   : > { %v5997_v19 = vadd.f32 %v8024_v36, %v9745_v3  ;;  %6723 = vst [vmem:[%s8964_s6 + $0x30] sm:$0xff] %v6675_v5  ;;  %v6673_v42 = vadd.f32 %v6494_v60, %v5994_v29 }
 0x24a   : > { %v5818_v6 = vpop.f32.mrf.mxu1  ;;  %v6497_v7 = vpop.f32.mrf.mxu0 }
 0x24b   : > { %v5995_v21 = vadd.f32 %v5818_v6, %v9748_v25  ;;  %6721 = vst [vmem:[%s8964_s6 + $0x20] sm:$0xff] %v6673_v42  ;;  %v6676_v39 = vadd.f32 %v8088_v33, %v5997_v19 }
 0x24c   : > { %v8027_v62 = vpop.f32.mrf.mxu1  ;;  %v8091_v12 = vpop.f32.mrf.mxu0 }
 0x24d   : > { %v6000_v24 = vadd.f32 %v8027_v62, %v9751_v8  ;;  %6724 = vst [vmem:[%s8964_s6 + $0x38] sm:$0xff] %v6676_v39  ;;  %v6674_v11 = vadd.f32 %v6497_v7, %v5995_v21 }
 0x24e   : > { %v5831_v40 = vpop.f32.mrf.mxu1  ;;  %v6510_v57 = vpop.f32.mrf.mxu0 }
 0x24f   : > { %v5998_v3 = vadd.f32 %v5831_v40, %v9754_v2  ;;  %6722 = vst [vmem:[%s8964_s6 + $0x28] sm:$0xff] %v6674_v11  ;;  %v6679_v48 = vadd.f32 %v8091_v12, %v6000_v24 }
 0x250   : > { %v8028_v16 = vpop.f32.mrf.mxu1  ;;  %v8092_v18 = vpop.f32.mrf.mxu0 }
 0x251   : > { %v6001_v25 = vadd.f32 %v8028_v16, %v9757_v4  ;;  %6727 = vst [vmem:[%s8964_s6 + $0x50] sm:$0xff] %v6679_v48  ;;  %v6677_v14 = vadd.f32 %v6510_v57, %v5998_v3 }
 0x252   : > { %v5834_v58 = vpop.f32.mrf.mxu1  ;;  %v6513_v9 = vpop.f32.mrf.mxu0 }
 0x253   : > { %v5999_v8 = vadd.f32 %v5834_v58, %v9760_v52  ;;  %6725 = vst [vmem:[%s8964_s6 + $0x40] sm:$0xff] %v6677_v14  ;;  %v6680_v60 = vadd.f32 %v8092_v18, %v6001_v25 }
 0x254   : > { %v8031_v29 = vpop.f32.mrf.mxu1  ;;  %v8095_v5 = vpop.f32.mrf.mxu0 }
 0x255   : > { %v6004_v2 = vadd.f32 %v8031_v29, %v9763_v35  ;;  %6728 = vst [vmem:[%s8964_s6 + $0x58] sm:$0xff] %v6680_v60  ;;  %v6678_v36 = vadd.f32 %v6513_v9, %v5999_v8 }
 0x256   : > { %v5847_v33 = vpop.f32.mrf.mxu1  ;;  %v6526_v19 = vpop.f32.mrf.mxu0 }
 0x257   : > { %v6002_v4 = vadd.f32 %v5847_v33, %v9766_v28  ;;  %6726 = vst [vmem:[%s8964_s6 + $0x48] sm:$0xff] %v6678_v36  ;;  %v6683_v42 = vadd.f32 %v8095_v5, %v6004_v2 }
 0x258   : > { %v8032_v6 = vpop.f32.mrf.mxu1  ;;  %v8096_v7 = vpop.f32.mrf.mxu0 }
 0x259   : > { %v6005_v52 = vadd.f32 %v8032_v6, %v9769_v47  ;;  %6731 = vst [vmem:[%s8964_s6 + $0x70] sm:$0xff] %v6683_v42  ;;  %v6681_v21 = vadd.f32 %v6526_v19, %v6002_v4 }
 0x25a   : > { %v5850_v39 = vpop.f32.mrf.mxu1  ;;  %v6529_v62 = vpop.f32.mrf.mxu0 }
 0x25b   : > { %v6003_v35 = vadd.f32 %v5850_v39, %v9772_v56  ;;  %6729 = vst [vmem:[%s8964_s6 + $0x60] sm:$0xff] %v6681_v21  ;;  %v6684_v12 = vadd.f32 %v8096_v7, %v6005_v52 }
 0x25c   : > { %v8035_v24 = vpop.f32.mrf.mxu1  ;;  %v8099_v11 = vpop.f32.mrf.mxu0 }
 0x25d   : > { %v6008_v28 = vadd.f32 %v8035_v24, %v9775_v34  ;;  %6732 = vst [vmem:[%s8964_s6 + $0x78] sm:$0xff] %v6684_v12  ;;  %v6682_v40 = vadd.f32 %v6529_v62, %v6003_v35  ;;  %v9984_v34 = vld [vmem:[#allocation4_spill] sm:$0xff] }
 0x25e   : > { %v5863_v57 = vpop.f32.mrf.mxu1  ;;  %v6542_v3 = vpop.f32.mrf.mxu0 }
 0x25f   : > { %v6006_v47 = vadd.f32 %v5863_v57, %v9778_v37  ;;  %6730 = vst [vmem:[%s8964_s6 + $0x68] sm:$0xff] %v6682_v40  ;;  %v6687_v48 = vadd.f32 %v8099_v11, %v6008_v28 }
 0x260   : > { %v8036_v16 = vpop.f32.mrf.mxu1  ;;  %v8100_v18 = vpop.f32.mrf.mxu0 }
 0x261   : > { %v6009_v56 = vadd.f32 %v8036_v16, %v9781_v54  ;;  %6735 = vst [vmem:[%s8964_s6 + $0x90] sm:$0xff] %v6687_v48  ;;  %v6685_v25 = vadd.f32 %v6542_v3, %v6006_v47 }
 0x262   : > { %v5866_v14 = vpop.f32.mrf.mxu1  ;;  %v6545_v58 = vpop.f32.mrf.mxu0 }
 0x263   : > { %v6007_v9 = vadd.f32 %v5866_v14, %v9984_v34  ;;  %6733 = vst [vmem:[%s8964_s6 + $0x80] sm:$0xff] %v6685_v25  ;;  %v6688_v8 = vadd.f32 %v8100_v18, %v6009_v56 }
 0x264   : > { %v8039_v60 = vpop.f32.mrf.mxu1  ;;  %v8103_v29 = vpop.f32.mrf.mxu0 }
 0x265   : > { %v6012_v37 = vadd.f32 %v8039_v60, %v9787_v55  ;;  %6736 = vst [vmem:[%s8964_s6 + $0x98] sm:$0xff] %v6688_v8  ;;  %v6686_v5 = vadd.f32 %v6545_v58, %v6007_v9 }
 0x266   : > { %v5879_v2 = vpop.f32.mrf.mxu1  ;;  %v6558_v36 = vpop.f32.mrf.mxu0 }
 0x267   : > { %v6010_v54 = vadd.f32 %v5879_v2, %v9790_v38  ;;  %6734 = vst [vmem:[%s8964_s6 + $0x88] sm:$0xff] %v6686_v5  ;;  %v6691_v33 = vadd.f32 %v8103_v29, %v6012_v37 }
 0x268   : > { %v8040_v19 = vpop.f32.mrf.mxu1  ;;  %v8104_v4 = vpop.f32.mrf.mxu0 }
 0x269   : > { %v6013_v42 = vadd.f32 %v8040_v19, %v9793_v27  ;;  %6739 = vst [vmem:[%s8964_s6 + $0xb0] sm:$0xff] %v6691_v33  ;;  %v6689_v6 = vadd.f32 %v6558_v36, %v6010_v54 }
 0x26a   : > { %v5882_v7 = vpop.f32.mrf.mxu1  ;;  %v6561_v52 = vpop.f32.mrf.mxu0 }
 0x26b   : > { %v6011_v55 = vadd.f32 %v5882_v7, %v9796_v31  ;;  %6737 = vst [vmem:[%s8964_s6 + $0xa0] sm:$0xff] %v6689_v6  ;;  %v6692_v21 = vadd.f32 %v8104_v4, %v6013_v42 }
 0x26c   : > { %v8043_v39 = vpop.f32.mrf.mxu1  ;;  %v8107_v62 = vpop.f32.mrf.mxu0 }
 0x26d   : > { %v6016_v38 = vadd.f32 %v8043_v39, %v9799_v63  ;;  %6740 = vst [vmem:[%s8964_s6 + $0xb8] sm:$0xff] %v6692_v21  ;;  %v6690_v35 = vadd.f32 %v6561_v52, %v6011_v55 }
 0x26e   : > { %v5895_v12 = vpop.f32.mrf.mxu1  ;;  %v6574_v24 = vpop.f32.mrf.mxu0 }
 0x26f   : > { %v6014_v27 = vadd.f32 %v5895_v12, %v9802_v22  ;;  %6738 = vst [vmem:[%s8964_s6 + $0xa8] sm:$0xff] %v6690_v35  ;;  %v6695_v11 = vadd.f32 %v8107_v62, %v6016_v38 }
 0x270   : > { %v8044_v28 = vpop.f32.mrf.mxu1  ;;  %v8108_v40 = vpop.f32.mrf.mxu0 }
 0x271   : > { %v6017_v31 = vadd.f32 %v8044_v28, %v9805_v44  ;;  %6743 = vst [vmem:[%s8964_s6 + $0xd0] sm:$0xff] %v6695_v11  ;;  %v6693_v57 = vadd.f32 %v6574_v24, %v6014_v27 }
 0x272   : > { %v5898_v3 = vpop.f32.mrf.mxu1  ;;  %v6577_v47 = vpop.f32.mrf.mxu0 }
 0x273   : > { %v6015_v63 = vadd.f32 %v5898_v3, %v9808_v20  ;;  %6741 = vst [vmem:[%s8964_s6 + $0xc0] sm:$0xff] %v6693_v57  ;;  %v6696_v48 = vadd.f32 %v8108_v40, %v6017_v31 }
 0x274   : > { %v8047_v16 = vpop.f32.mrf.mxu1  ;;  %v8111_v18 = vpop.f32.mrf.mxu0 }
 0x275   : > { %v6020_v22 = vadd.f32 %v8047_v16, %v9811_v17  ;;  %6744 = vst [vmem:[%s8964_s6 + $0xd8] sm:$0xff] %v6696_v48  ;;  %v6694_v56 = vadd.f32 %v6577_v47, %v6015_v63 }
 0x276   : > { %v5911_v25 = vpop.f32.mrf.mxu1  ;;  %v6590_v14 = vpop.f32.mrf.mxu0 }
 0x277   : > { %v6018_v44 = vadd.f32 %v5911_v25, %v9814_v30  ;;  %6742 = vst [vmem:[%s8964_s6 + $0xc8] sm:$0xff] %v6694_v56  ;;  %v6699_v58 = vadd.f32 %v8111_v18, %v6020_v22 }
 0x278   : > { %v8048_v34 = vpop.f32.mrf.mxu1  ;;  %v8112_v9 = vpop.f32.mrf.mxu0 }
 0x279   : > { %v6021_v20 = vadd.f32 %v8048_v34, %v9817_v45  ;;  %6747 = vst [vmem:[%s8964_s6 + $0xf0] sm:$0xff] %v6699_v58  ;;  %v6697_v8 = vadd.f32 %v6590_v14, %v6018_v44 }
 0x27a   : > { %v5914_v60 = vpop.f32.mrf.mxu1  ;;  %v6593_v29 = vpop.f32.mrf.mxu0 }
 0x27b   : > { %v6019_v17 = vadd.f32 %v5914_v60, %v9820_v41  ;;  %6745 = vst [vmem:[%s8964_s6 + $0xe0] sm:$0xff] %v6697_v8  ;;  %v6700_v37 = vadd.f32 %v8112_v9, %v6021_v20 }
 0x27c   : > { %v8051_v5 = vpop.f32.mrf.mxu1  ;;  %v8115_v2 = vpop.f32.mrf.mxu0 }
 0x27d   : > { %v6024_v30 = vadd.f32 %v8051_v5, %v9823_v61  ;;  %6748 = vst [vmem:[%s8964_s6 + $0xf8] sm:$0xff] %v6700_v37  ;;  %v6698_v36 = vadd.f32 %v6593_v29, %v6019_v17 }
 0x27e   : > { %v5927_v54 = vpop.f32.mrf.mxu1  ;;  %v6606_v33 = vpop.f32.mrf.mxu0 }
 0x27f   : > { %v6022_v45 = vadd.f32 %v5927_v54, %v9826_v59  ;;  %6746 = vst [vmem:[%s8964_s6 + $0xe8] sm:$0xff] %v6698_v36  ;;  %v6703_v19 = vadd.f32 %v8115_v2, %v6024_v30 }
 0x280   : > { %v8052_v4 = vpop.f32.mrf.mxu1  ;;  %v8116_v42 = vpop.f32.mrf.mxu0 }
 0x281   : > { %v6025_v41 = vadd.f32 %v8052_v4, %v9829_v49  ;;  %6751 = vst [vmem:[%s8964_s6 + $0x110] sm:$0xff] %v6703_v19  ;;  %v6701_v6 = vadd.f32 %v6606_v33, %v6022_v45 }
 0x282   : > { %v5930_v7 = vpop.f32.mrf.mxu1  ;;  %v6609_v52 = vpop.f32.mrf.mxu0 }
 0x283   : > { %v6023_v61 = vadd.f32 %v5930_v7, %v9832_v51  ;;  %6749 = vst [vmem:[%s8964_s6 + $0x100] sm:$0xff] %v6701_v6  ;;  %v6704_v55 = vadd.f32 %v8116_v42, %v6025_v41 }
 0x284   : > { %v8055_v21 = vpop.f32.mrf.mxu1  ;;  %v8119_v39 = vpop.f32.mrf.mxu0 }
 0x285   : > { %v6028_v59 = vadd.f32 %v8055_v21, %v9835_v0  ;;  %6752 = vst [vmem:[%s8964_s6 + $0x118] sm:$0xff] %v6704_v55  ;;  %v6702_v62 = vadd.f32 %v6609_v52, %v6023_v61 }
 0x286   : > { %v5943_v38 = vpop.f32.mrf.mxu1  ;;  %v6622_v35 = vpop.f32.mrf.mxu0 }
 0x287   : > { %v6026_v49 = vadd.f32 %v5943_v38, %v9838_v50  ;;  %6750 = vst [vmem:[%s8964_s6 + $0x108] sm:$0xff] %v6702_v62  ;;  %v6707_v12 = vadd.f32 %v8119_v39, %v6028_v59 }
 0x288   : > { %v8056_v24 = vpop.f32.mrf.mxu1  ;;  %v8120_v27 = vpop.f32.mrf.mxu0 }
 0x289   : > { %v6029_v51 = vadd.f32 %v8056_v24, %v9841_v15  ;;  %6755 = vst [vmem:[%s8964_s6 + $0x130] sm:$0xff] %v6707_v12  ;;  %v6705_v11 = vadd.f32 %v6622_v35, %v6026_v49 }
 0x28a   : > { %v5946_v28 = vpop.f32.mrf.mxu1  ;;  %v6625_v40 = vpop.f32.mrf.mxu0 }
 0x28b   : > { %v6027_v0 = vadd.f32 %v5946_v28, %v9844_v32  ;;  %6753 = vst [vmem:[%s8964_s6 + $0x120] sm:$0xff] %v6705_v11  ;;  %v6708_v31 = vadd.f32 %v8120_v27, %v6029_v51 }
 0x28c   : > { %v8059_v57 = vpop.f32.mrf.mxu1  ;;  %v8123_v3 = vpop.f32.mrf.mxu0 }
 0x28d   : > { %v6032_v50 = vadd.f32 %v8059_v57, %v9847_v46  ;;  %6756 = vst [vmem:[%s8964_s6 + $0x138] sm:$0xff] %v6708_v31  ;;  %v6706_v47 = vadd.f32 %v6625_v40, %v6027_v0 }
 0x28e   : > { %v5959_v63 = vpop.f32.mrf.mxu1  ;;  %v6638_v48 = vpop.f32.mrf.mxu0 }
 0x28f   : > { %v6030_v15 = vadd.f32 %v5959_v63, %v9850_v13  ;;  %6754 = vst [vmem:[%s8964_s6 + $0x128] sm:$0xff] %v6706_v47  ;;  %v6711_v16 = vadd.f32 %v8123_v3, %v6032_v50 }
 0x290   : > { %v8060_v18 = vpop.f32.mrf.mxu1  ;;  %v8124_v22 = vpop.f32.mrf.mxu0 }
 0x291   : > { %v6033_v32 = vadd.f32 %v8060_v18, %v9853_v10  ;;  %6759 = vst [vmem:[%s8964_s6 + $0x150] sm:$0xff] %v6711_v16  ;;  %v6709_v56 = vadd.f32 %v6638_v48, %v6030_v15 }
 0x292   : > { %v5962_v25 = vpop.f32.mrf.mxu1  ;;  %v6641_v14 = vpop.f32.mrf.mxu0 }
 0x293   : > { %v6031_v46 = vadd.f32 %v5962_v25, %v9856_v43  ;;  %6757 = vst [vmem:[%s8964_s6 + $0x140] sm:$0xff] %v6709_v56  ;;  %v6712_v44 = vadd.f32 %v8124_v22, %v6033_v32 }
 0x294   : > { %v8063_v58 = vpop.f32.mrf.mxu1  ;;  %v8127_v34 = vpop.f32.mrf.mxu0 }
 0x295   : > { %v6036_v13 = vadd.f32 %v8063_v58, %v9859_v53  ;;  %6760 = vst [vmem:[%s8964_s6 + $0x158] sm:$0xff] %v6712_v44  ;;  %v6710_v9 = vadd.f32 %v6641_v14, %v6031_v46 }
 0x296   : > { %v5975_v20 = vpop.f32.mrf.mxu1  ;;  %v6654_v10 = vpop.f32.mrf.mxu0 }
 0x297   : > { %v6034_v8 = vadd.f32 %v5975_v20, %v9862_v23  ;;  %6758 = vst [vmem:[%s8964_s6 + $0x148] sm:$0xff] %v6710_v9  ;;  %v6715_v60 = vadd.f32 %v8127_v34, %v6036_v13 }
 0x298   : > { %v8064_v29 = vpop.f32.mrf.mxu1  ;;  %v8128_v43 = vpop.f32.mrf.mxu0 }
 0x299   : > { %v6037_v17 = vadd.f32 %v8064_v29, %v9865_v1  ;;  %6763 = vst [vmem:[%s8964_s6 + $0x170] sm:$0xff] %v6715_v60  ;;  %v6713_v37 = vadd.f32 %v6654_v10, %v6034_v8 }
 0x29a   : > { %v5978_v5 = vpop.f32.mrf.mxu1  ;;  %v6657_v30 = vpop.f32.mrf.mxu0 }
 0x29b   : > { %v6035_v2 = vadd.f32 %v5978_v5, %v9868_v26  ;;  %6761 = vst [vmem:[%s8964_s6 + $0x160] sm:$0xff] %v6713_v37  ;;  %v6716_v53 = vadd.f32 %v8128_v43, %v6037_v17 }
 0x29d   : > { %6764 = vst [vmem:[%s8964_s6 + $0x178] sm:$0xff] %v6716_v53  ;;  %v6714_v36 = vadd.f32 %v6657_v30, %v6035_v2 }
 0x29f   : > { %6762 = vst [vmem:[%s8964_s6 + $0x168] sm:$0xff] %v6714_v36 }
 0x2a0 PF: > { %s14_s15 = sadd.s32 1, %s8456_s15  }
 0x2a1   : > { %p11_p4 = scmp.ge.s32.totalorder %s14_s15, 4  }
 0x2a3   :  { %13 = sbr.rel (!%p11_p4) target bundleno = 1 (0x1), region = 77 }

</bundles_post_ra>
